<compile_context>
chip_gen: v7x
topology: tpu7x:2x2x1
jax: 0.10.0
libtpu: 0.0.40
codegen_flags: <defaults>
</compile_context>

<pallas_src>
import numpy as np
import jax
import jax.numpy as jnp
from jax.experimental import pallas as pl
from jax.experimental.pallas import tpu as pltpu


DILATIONS = (1, 2, 5)                 # conv2 / conv3 / conv4
P = max(DILATIONS)                    # shared spatial padding for all branches
SHIFTS = (-5, -2, -1, 0, 1, 2, 5)     # distinct horizontal tap offsets
SHIFT_STEP = {1: 1, 2: 2, 5: 3}       # dilation -> index step inside SHIFTS


# ----------------------------------------------------------------------------
# Parameter init (Conv2d + BatchNorm2d(eval, default stats) folded together)
# ----------------------------------------------------------------------------
def init_convbnswish(key, cin, cout, ks):
    k1, k2 = jax.random.split(key)
    fan = cin * ks * ks
    w = jax.random.normal(k1, (cout, cin, ks, ks), jnp.float32) / np.sqrt(fan)
    b = jax.random.normal(k2, (cout,), jnp.float32) * 0.1
    # BN eval with default stats: y = (conv_out - 0) / sqrt(1 + eps) * 1 + 0
    s = 1.0 / np.sqrt(1.0 + 1e-5)
    return {"w": w * s, "b": b * s}


def init_hdc_params(key, in_chan, out_chan):
    ks = jax.random.split(key, 6)
    q = out_chan // 4
    return {
        "conv1":    init_convbnswish(ks[0], in_chan, q, 1),
        "conv2":    init_convbnswish(ks[1], in_chan, q, 3),
        "conv3":    init_convbnswish(ks[2], in_chan, q, 3),
        "conv4":    init_convbnswish(ks[3], in_chan, q, 3),
        "conv1x1":  init_convbnswish(ks[4], in_chan, q, 1),
        "conv_out": init_convbnswish(ks[5], q * 5, out_chan, 1),
    }


# ----------------------------------------------------------------------------
# Fused hybrid_dilated_convolution forward (single Pallas kernel)
# ----------------------------------------------------------------------------
def hdc_forward(params, x_nhwc):
    """x_nhwc: (B, H, W, Cin) float32 -> (B, H, W, Cout) float32."""
    B, H, W, Cin = x_nhwc.shape
    q = params["conv1"]["w"].shape[0]
    Cout = params["conv_out"]["w"].shape[0]
    Hp = H + 2 * P
    HW = H * W

    # ---- pack weights (BN already folded), bf16 for the MXU -----------------
    w1 = jnp.transpose(params["conv1"]["w"][:, :, 0, 0]).astype(jnp.bfloat16)    # (Cin,q)
    w3 = jnp.stack(
        [jnp.transpose(params[n]["w"], (2, 3, 1, 0)).reshape(9, Cin, q)
         for n in ("conv2", "conv3", "conv4")]).astype(jnp.bfloat16)             # (3,9,Cin,q)
    wgp = jnp.transpose(params["conv1x1"]["w"][:, :, 0, 0]).astype(jnp.bfloat16) # (Cin,q)
    wout = jnp.transpose(params["conv_out"]["w"][:, :, 0, 0])                    # (5q,Cout) f32
    wo4 = wout[:4 * q].astype(jnp.bfloat16)                                      # (4q,Cout)
    wo5 = wout[4 * q:].astype(jnp.bfloat16)                                      # (q, Cout)
    bb = jnp.stack([params[n]["b"] for n in
                    ("conv1", "conv2", "conv3", "conv4", "conv1x1")])            # (5,q) f32
    bout = params["conv_out"]["b"].reshape(1, Cout)                              # (1,Cout) f32

    # Unpadded bf16 activation (cast fuses with the caller's layout transpose);
    # all padding / shifting happens in VMEM inside the kernel.
    x_bf = x_nhwc.astype(jnp.bfloat16)

    def swish(v):
        # Swish in f32 with the divide on the EUP approx-reciprocal path.
        return v * pl.reciprocal(1.0 + jnp.exp(-v), approx=True)

    def kernel(x_ref, w1_ref, w3_ref, wgp_ref, wo4_ref, wo5_ref, bb_ref, bo_ref,
               o_ref, shift_ref, feat_ref):
        # x_ref    : (1, H, W, Cin)   bf16  unpadded activation for this batch
        # w1_ref   : (Cin, q)         bf16
        # w3_ref   : (3, 9, Cin, q)   bf16  per-tap matrices for conv2/3/4
        # wgp_ref  : (Cin, q)         bf16  conv1x1 (global-pool branch)
        # wo4_ref  : (4q, Cout)       bf16  conv_out rows for feat1..feat4
        # wo5_ref  : (q, Cout)        bf16  conv_out rows for feat5
        # bb_ref   : (5, q)           f32   biases (conv1..conv4, conv1x1)
        # bo_ref   : (1, Cout)        f32   conv_out bias
        # o_ref    : (1, HW, Cout)    f32
        # shift_ref: (7, Hp, W, Cin)  bf16  zero-padded horizontally shifted copies
        # feat_ref : (HW, 4q)         bf16  concat(feat1..feat4) for fused conv_out

        # --- build the 7 shifted / vertically padded activation copies.
        #     Every 3x3 tap below is then a contiguous (H, W, Cin) slab
        #     (row stride == W*Cin), so no per-tap strided relayout. ---
        ztb = jnp.zeros((P, W, Cin), jnp.bfloat16)
        for s, dj in enumerate(SHIFTS):
            shift_ref[s, pl.ds(0, P), :, :] = ztb          # top pad rows
            shift_ref[s, pl.ds(P + H, P), :, :] = ztb      # bottom pad rows
            a = abs(dj)
            if dj == 0:
                shift_ref[s, pl.ds(P, H), :, :] = x_ref[0]
            elif dj > 0:
                shift_ref[s, pl.ds(P, H), pl.ds(W - a, a), :] = \
                    jnp.zeros((H, a, Cin), jnp.bfloat16)
                shift_ref[s, pl.ds(P, H), pl.ds(0, W - a), :] = \
                    x_ref[0, :, pl.ds(a, W - a), :]
            else:
                shift_ref[s, pl.ds(P, H), pl.ds(0, a), :] = \
                    jnp.zeros((H, a, Cin), jnp.bfloat16)
                shift_ref[s, pl.ds(P, H), pl.ds(a, W - a), :] = \
                    x_ref[0, :, pl.ds(0, W - a), :]

        xc = x_ref[0].reshape(HW, Cin)                     # center window, bf16

        # --- branch 1: 1x1 conv + Swish -> feat columns [0, q) ---
        a1 = jnp.dot(xc, w1_ref[...], preferred_element_type=jnp.float32)
        a1 = a1 + bb_ref[pl.ds(0, 1), :]
        feat_ref[:, pl.ds(0, q)] = swish(a1).astype(jnp.bfloat16)

        # --- branches 2..4: 3x3 dilated convs, 9 tap matmuls each.  Each tap
        #     is consumed immediately by the chained dot-accumulation, so the
        #     running sum stays on the MXU result path (MRB on v7x) and no
        #     large window temporaries stay live. ---
        for br, d in enumerate(DILATIONS):
            m = SHIFT_STEP[d]
            acc = jnp.zeros((HW, q), jnp.float32)
            for t in range(9):
                di, cj = t // 3 - 1, t % 3 - 1
                win = shift_ref[3 + cj * m, pl.ds(P + di * d, H), :, :]
                acc = acc + jnp.dot(win.reshape(HW, Cin), w3_ref[br, t],
                                    preferred_element_type=jnp.float32)
            acc = acc + bb_ref[pl.ds(br + 1, 1), :]
            feat_ref[:, pl.ds((br + 1) * q, q)] = swish(acc).astype(jnp.bfloat16)

        # --- global-average-pool branch: spatially constant, folded into the
        #     conv_out bias (bilinear upsample from 1x1 == broadcast). ---
        avg = jnp.mean(xc.astype(jnp.float32), axis=0, keepdims=True)       # (1,Cin)
        z5 = jnp.dot(avg.astype(jnp.bfloat16), wgp_ref[...],
                     preferred_element_type=jnp.float32) + bb_ref[pl.ds(4, 1), :]
        f5 = swish(z5)                                                       # (1,q)
        bias = jnp.dot(f5.astype(jnp.bfloat16), wo5_ref[...],
                       preferred_element_type=jnp.float32) + bo_ref[...]     # (1,Cout)

        # --- conv_out: ONE (HW,4q)@(4q,Cout) matmul + bias + Swish, written
        #     straight to the output block (no f32 accumulator scratch). ---
        y = jnp.dot(feat_ref[...], wo4_ref[...],
                    preferred_element_type=jnp.float32) + bias
        o_ref[0] = swish(y)

    # TODO(synk): for v7x with B==1, add a second "parallel" grid axis over row
    # tiles (with a +/-P row halo) so both TensorCores stay busy.
    out = pl.pallas_call(
        kernel,
        out_shape=jax.ShapeDtypeStruct((B, HW, Cout), jnp.float32),
        grid=(B,),
        in_specs=[
            pl.BlockSpec((1, H, W, Cin), lambda b: (b, 0, 0, 0)),
            pl.BlockSpec((Cin, q),       lambda b: (0, 0)),
            pl.BlockSpec((3, 9, Cin, q), lambda b: (0, 0, 0, 0)),
            pl.BlockSpec((Cin, q),       lambda b: (0, 0)),
            pl.BlockSpec((4 * q, Cout),  lambda b: (0, 0)),
            pl.BlockSpec((q, Cout),      lambda b: (0, 0)),
            pl.BlockSpec((5, q),         lambda b: (0, 0)),
            pl.BlockSpec((1, Cout),      lambda b: (0, 0)),
        ],
        out_specs=pl.BlockSpec((1, HW, Cout), lambda b: (b, 0, 0)),
        scratch_shapes=[
            pltpu.VMEM((len(SHIFTS), Hp, W, Cin), jnp.bfloat16),
            pltpu.VMEM((HW, 4 * q), jnp.bfloat16),
        ],
        compiler_params=pltpu.CompilerParams(
            dimension_semantics=("parallel",),
            vmem_limit_bytes=32 * 1024 * 1024),
    )(x_bf, w1, w3, wgp, wo4, wo5, bb, bout)

    return out.reshape(B, H, W, Cout)


# ----------------------------------------------------------------------------
# Pure-JAX reference (lax.conv) of the same module, for a correctness check
# ----------------------------------------------------------------------------
def _conv_bn_swish_ref(p, x, dilation=1):
    w, b = p["w"], p["b"]                      # BN already folded into w, b
    kh = w.shape[2]
    pad = dilation if kh == 3 else 0
    y = jax.lax.conv_general_dilated(
        x, jnp.transpose(w, (2, 3, 1, 0)),
        window_strides=(1, 1),
        padding=((pad, pad), (pad, pad)),
        rhs_dilation=(dilation, dilation),
        dimension_numbers=("NHWC", "HWIO", "NHWC"))
    y = y + b
    return y * jax.nn.sigmoid(y)


def hdc_reference(params, x):
    B, H, W, _ = x.shape
    f1 = _conv_bn_swish_ref(params["conv1"], x)
    f2 = _conv_bn_swish_ref(params["conv2"], x, 1)
    f3 = _conv_bn_swish_ref(params["conv3"], x, 2)
    f4 = _conv_bn_swish_ref(params["conv4"], x, 5)
    avg = jnp.mean(x, axis=(1, 2), keepdims=True)
    f5 = _conv_bn_swish_ref(params["conv1x1"], avg)
    f5 = jnp.broadcast_to(f5, (B, H, W, f5.shape[-1]))   # bilinear from 1x1
    feat = jnp.concatenate([f1, f2, f3, f4, f5], axis=-1)
    return _conv_bn_swish_ref(params["conv_out"], feat)


# ----------------------------------------------------------------------------
if __name__ == "__main__":
    key = jax.random.PRNGKey(0)
    kx, kp = jax.random.split(key)

    # small stand-ins for the (2048 -> 256) defaults: batch=2, channels=16
    B, CIN, H, W = 2, 16, 16, 16
    OUT_CHAN = 16

    x_nchw = jax.random.normal(kx, (B, CIN, H, W), jnp.float32)   # PyTorch NCHW
    params = init_hdc_params(kp, in_chan=CIN, out_chan=OUT_CHAN)

    @jax.jit
    def run(p, x):
        x_nhwc = jnp.transpose(x, (0, 2, 3, 1))        # NCHW -> NHWC
        y_nhwc = hdc_forward(p, x_nhwc)
        return jnp.transpose(y_nhwc, (0, 3, 1, 2))     # NHWC -> NCHW

    y = run(params, x_nchw)
    jax.block_until_ready(y)
    assert y.shape == (B, OUT_CHAN, H, W), y.shape
    assert y.dtype == jnp.float32

    # correctness check against a pure-JAX (f32, lax.conv) reference;
    # tolerance covers bf16 MXU operands + approx-reciprocal Swish.
    y_ref = jnp.transpose(
        hdc_reference(params, jnp.transpose(x_nchw, (0, 2, 3, 1))), (0, 3, 1, 2))
    max_err = float(jnp.max(jnp.abs(y - y_ref)))
    assert max_err < 1.5e-1, f"max abs error {max_err}"

    print("KERNEL_OK")
</pallas_src>

<mosaic_0001>
module attributes {stable_mosaic.version = 11 : i64} {
  func.func @kernel(%arg0: i32, %arg1: memref<1x16x16x16xbf16, #tpu.memory_space<vmem>>, %arg2: memref<16x4xbf16, #tpu.memory_space<vmem>>, %arg3: memref<3x9x16x4xbf16, #tpu.memory_space<vmem>>, %arg4: memref<16x4xbf16, #tpu.memory_space<vmem>>, %arg5: memref<16x16xbf16, #tpu.memory_space<vmem>>, %arg6: memref<4x16xbf16, #tpu.memory_space<vmem>>, %arg7: memref<5x4xf32, #tpu.memory_space<vmem>>, %arg8: memref<1x16xf32, #tpu.memory_space<vmem>>, %arg9: memref<1x256x16xf32, #tpu.memory_space<vmem>>, %arg10: memref<7x26x16x16xbf16, #tpu.memory_space<vmem>>, %arg11: memref<256x16xbf16, #tpu.memory_space<vmem>>) attributes {dimension_semantics = [#tpu.dimension_semantics<parallel>], iteration_bounds = array<i64: 2>, scalar_prefetch = 0 : i64, scratch_operands = 2 : i64, tpu.core_type = #tpu.core_type<tc>, window_params = [{transform_indices = @transform_0, window_bounds = array<i64: 1, 16, 16, 16>}, {pipeline_mode = #tpu.pipeline_mode<synchronous>, transform_indices = @transform_1, window_bounds = array<i64: 16, 4>}, {pipeline_mode = #tpu.pipeline_mode<synchronous>, transform_indices = @transform_2, window_bounds = array<i64: 3, 9, 16, 4>}, {pipeline_mode = #tpu.pipeline_mode<synchronous>, transform_indices = @transform_3, window_bounds = array<i64: 16, 4>}, {pipeline_mode = #tpu.pipeline_mode<synchronous>, transform_indices = @transform_4, window_bounds = array<i64: 16, 16>}, {pipeline_mode = #tpu.pipeline_mode<synchronous>, transform_indices = @transform_5, window_bounds = array<i64: 4, 16>}, {pipeline_mode = #tpu.pipeline_mode<synchronous>, transform_indices = @transform_6, window_bounds = array<i64: 5, 4>}, {pipeline_mode = #tpu.pipeline_mode<synchronous>, transform_indices = @transform_7, window_bounds = array<i64: 1, 16>}, {transform_indices = @transform_8, window_bounds = array<i64: 1, 256, 16>}]} {
    %cst = arith.constant 0.000000e+00 : bf16
    %0 = vector.broadcast %cst : bf16 to vector<5x16x16xbf16>
    %c0 = arith.constant 0 : index
    %c0_0 = arith.constant 0 : index
    %c0_1 = arith.constant 0 : index
    %c0_2 = arith.constant 0 : index
    %1 = vector.load %arg10[%c0, %c0_0, %c0_1, %c0_2] : memref<7x26x16x16xbf16, #tpu.memory_space<vmem>>, vector<1x5x16x16xbf16>
    %2 = vector.shape_cast %1 : vector<1x5x16x16xbf16> to vector<5x16x16xbf16>
    %3 = vector.shape_cast %0 : vector<5x16x16xbf16> to vector<1x5x16x16xbf16>
    tpu.vector_store %arg10[%c0, %c0_0, %c0_1, %c0_2], %3 {strides = array<i32>} : memref<7x26x16x16xbf16, #tpu.memory_space<vmem>>, vector<1x5x16x16xbf16>,
    %c0_3 = arith.constant 0 : index
    %c21 = arith.constant 21 : index
    %c0_4 = arith.constant 0 : index
    %c0_5 = arith.constant 0 : index
    %4 = vector.load %arg10[%c0_3, %c21, %c0_4, %c0_5] : memref<7x26x16x16xbf16, #tpu.memory_space<vmem>>, vector<1x5x16x16xbf16>
    %5 = vector.shape_cast %4 : vector<1x5x16x16xbf16> to vector<5x16x16xbf16>
    %6 = vector.shape_cast %0 : vector<5x16x16xbf16> to vector<1x5x16x16xbf16>
    tpu.vector_store %arg10[%c0_3, %c21, %c0_4, %c0_5], %6 {strides = array<i32>} : memref<7x26x16x16xbf16, #tpu.memory_space<vmem>>, vector<1x5x16x16xbf16>,
    %cst_6 = arith.constant 0.000000e+00 : bf16
    %7 = vector.broadcast %cst_6 : bf16 to vector<16x5x16xbf16>
    %c0_7 = arith.constant 0 : index
    %c5 = arith.constant 5 : index
    %c0_8 = arith.constant 0 : index
    %c0_9 = arith.constant 0 : index
    %8 = vector.load %arg10[%c0_7, %c5, %c0_8, %c0_9] : memref<7x26x16x16xbf16, #tpu.memory_space<vmem>>, vector<1x16x5x16xbf16>
    %9 = vector.shape_cast %8 : vector<1x16x5x16xbf16> to vector<16x5x16xbf16>
    %10 = vector.shape_cast %7 : vector<16x5x16xbf16> to vector<1x16x5x16xbf16>
    tpu.vector_store %arg10[%c0_7, %c5, %c0_8, %c0_9], %10 {strides = array<i32>} : memref<7x26x16x16xbf16, #tpu.memory_space<vmem>>, vector<1x16x5x16xbf16>,
    %c0_10 = arith.constant 0 : index
    %c0_11 = arith.constant 0 : index
    %c0_12 = arith.constant 0 : index
    %c0_13 = arith.constant 0 : index
    %11 = vector.load %arg1[%c0_10, %c0_11, %c0_12, %c0_13] : memref<1x16x16x16xbf16, #tpu.memory_space<vmem>>, vector<1x16x11x16xbf16>
    %12 = vector.shape_cast %11 : vector<1x16x11x16xbf16> to vector<16x11x16xbf16>
    %c0_14 = arith.constant 0 : index
    %c5_15 = arith.constant 5 : index
    %c5_16 = arith.constant 5 : index
    %c0_17 = arith.constant 0 : index
    %13 = vector.load %arg10[%c0_14, %c5_15, %c5_16, %c0_17] : memref<7x26x16x16xbf16, #tpu.memory_space<vmem>>, vector<1x16x11x16xbf16>
    %14 = vector.shape_cast %13 : vector<1x16x11x16xbf16> to vector<16x11x16xbf16>
    %15 = vector.shape_cast %12 : vector<16x11x16xbf16> to vector<1x16x11x16xbf16>
    tpu.vector_store %arg10[%c0_14, %c5_15, %c5_16, %c0_17], %15 {strides = array<i32>} : memref<7x26x16x16xbf16, #tpu.memory_space<vmem>>, vector<1x16x11x16xbf16>,
    %c1 = arith.constant 1 : index
    %c0_18 = arith.constant 0 : index
    %c0_19 = arith.constant 0 : index
    %c0_20 = arith.constant 0 : index
    %16 = vector.load %arg10[%c1, %c0_18, %c0_19, %c0_20] : memref<7x26x16x16xbf16, #tpu.memory_space<vmem>>, vector<1x5x16x16xbf16>
    %17 = vector.shape_cast %16 : vector<1x5x16x16xbf16> to vector<5x16x16xbf16>
    %18 = vector.shape_cast %0 : vector<5x16x16xbf16> to vector<1x5x16x16xbf16>
    tpu.vector_store %arg10[%c1, %c0_18, %c0_19, %c0_20], %18 {strides = array<i32>} : memref<7x26x16x16xbf16, #tpu.memory_space<vmem>>, vector<1x5x16x16xbf16>,
    %c1_21 = arith.constant 1 : index
    %c21_22 = arith.constant 21 : index
    %c0_23 = arith.constant 0 : index
    %c0_24 = arith.constant 0 : index
    %19 = vector.load %arg10[%c1_21, %c21_22, %c0_23, %c0_24] : memref<7x26x16x16xbf16, #tpu.memory_space<vmem>>, vector<1x5x16x16xbf16>
    %20 = vector.shape_cast %19 : vector<1x5x16x16xbf16> to vector<5x16x16xbf16>
    %21 = vector.shape_cast %0 : vector<5x16x16xbf16> to vector<1x5x16x16xbf16>
    tpu.vector_store %arg10[%c1_21, %c21_22, %c0_23, %c0_24], %21 {strides = array<i32>} : memref<7x26x16x16xbf16, #tpu.memory_space<vmem>>, vector<1x5x16x16xbf16>,
    %cst_25 = arith.constant 0.000000e+00 : bf16
    %22 = vector.broadcast %cst_25 : bf16 to vector<16x2x16xbf16>
    %c1_26 = arith.constant 1 : index
    %c5_27 = arith.constant 5 : index
    %c0_28 = arith.constant 0 : index
    %c0_29 = arith.constant 0 : index
    %23 = vector.load %arg10[%c1_26, %c5_27, %c0_28, %c0_29] : memref<7x26x16x16xbf16, #tpu.memory_space<vmem>>, vector<1x16x2x16xbf16>
    %24 = vector.shape_cast %23 : vector<1x16x2x16xbf16> to vector<16x2x16xbf16>
    %25 = vector.shape_cast %22 : vector<16x2x16xbf16> to vector<1x16x2x16xbf16>
    tpu.vector_store %arg10[%c1_26, %c5_27, %c0_28, %c0_29], %25 {strides = array<i32>} : memref<7x26x16x16xbf16, #tpu.memory_space<vmem>>, vector<1x16x2x16xbf16>,
    %c0_30 = arith.constant 0 : index
    %c0_31 = arith.constant 0 : index
    %c0_32 = arith.constant 0 : index
    %c0_33 = arith.constant 0 : index
    %26 = vector.load %arg1[%c0_30, %c0_31, %c0_32, %c0_33] : memref<1x16x16x16xbf16, #tpu.memory_space<vmem>>, vector<1x16x14x16xbf16>
    %27 = vector.shape_cast %26 : vector<1x16x14x16xbf16> to vector<16x14x16xbf16>
    %c1_34 = arith.constant 1 : index
    %c5_35 = arith.constant 5 : index
    %c2 = arith.constant 2 : index
    %c0_36 = arith.constant 0 : index
    %28 = vector.load %arg10[%c1_34, %c5_35, %c2, %c0_36] : memref<7x26x16x16xbf16, #tpu.memory_space<vmem>>, vector<1x16x14x16xbf16>
    %29 = vector.shape_cast %28 : vector<1x16x14x16xbf16> to vector<16x14x16xbf16>
    %30 = vector.shape_cast %27 : vector<16x14x16xbf16> to vector<1x16x14x16xbf16>
    tpu.vector_store %arg10[%c1_34, %c5_35, %c2, %c0_36], %30 {strides = array<i32>} : memref<7x26x16x16xbf16, #tpu.memory_space<vmem>>, vector<1x16x14x16xbf16>,
    %c2_37 = arith.constant 2 : index
    %c0_38 = arith.constant 0 : index
    %c0_39 = arith.constant 0 : index
    %c0_40 = arith.constant 0 : index
    %31 = vector.load %arg10[%c2_37, %c0_38, %c0_39, %c0_40] : memref<7x26x16x16xbf16, #tpu.memory_space<vmem>>, vector<1x5x16x16xbf16>
    %32 = vector.shape_cast %31 : vector<1x5x16x16xbf16> to vector<5x16x16xbf16>
    %33 = vector.shape_cast %0 : vector<5x16x16xbf16> to vector<1x5x16x16xbf16>
    tpu.vector_store %arg10[%c2_37, %c0_38, %c0_39, %c0_40], %33 {strides = array<i32>} : memref<7x26x16x16xbf16, #tpu.memory_space<vmem>>, vector<1x5x16x16xbf16>,
    %c2_41 = arith.constant 2 : index
    %c21_42 = arith.constant 21 : index
    %c0_43 = arith.constant 0 : index
    %c0_44 = arith.constant 0 : index
    %34 = vector.load %arg10[%c2_41, %c21_42, %c0_43, %c0_44] : memref<7x26x16x16xbf16, #tpu.memory_space<vmem>>, vector<1x5x16x16xbf16>
    %35 = vector.shape_cast %34 : vector<1x5x16x16xbf16> to vector<5x16x16xbf16>
    %36 = vector.shape_cast %0 : vector<5x16x16xbf16> to vector<1x5x16x16xbf16>
    tpu.vector_store %arg10[%c2_41, %c21_42, %c0_43, %c0_44], %36 {strides = array<i32>} : memref<7x26x16x16xbf16, #tpu.memory_space<vmem>>, vector<1x5x16x16xbf16>,
    %cst_45 = arith.constant 0.000000e+00 : bf16
    %37 = vector.broadcast %cst_45 : bf16 to vector<16x1x16xbf16>
    %c2_46 = arith.constant 2 : index
    %c5_47 = arith.constant 5 : index
    %c0_48 = arith.constant 0 : index
    %c0_49 = arith.constant 0 : index
    %38 = vector.load %arg10[%c2_46, %c5_47, %c0_48, %c0_49] : memref<7x26x16x16xbf16, #tpu.memory_space<vmem>>, vector<1x16x1x16xbf16>
    %39 = vector.shape_cast %38 : vector<1x16x1x16xbf16> to vector<16x1x16xbf16>
    %40 = vector.shape_cast %37 : vector<16x1x16xbf16> to vector<1x16x1x16xbf16>
    tpu.vector_store %arg10[%c2_46, %c5_47, %c0_48, %c0_49], %40 {strides = array<i32>} : memref<7x26x16x16xbf16, #tpu.memory_space<vmem>>, vector<1x16x1x16xbf16>,
    %c0_50 = arith.constant 0 : index
    %c0_51 = arith.constant 0 : index
    %c0_52 = arith.constant 0 : index
    %c0_53 = arith.constant 0 : index
    %41 = vector.load %arg1[%c0_50, %c0_51, %c0_52, %c0_53] : memref<1x16x16x16xbf16, #tpu.memory_space<vmem>>, vector<1x16x15x16xbf16>
    %42 = vector.shape_cast %41 : vector<1x16x15x16xbf16> to vector<16x15x16xbf16>
    %c2_54 = arith.constant 2 : index
    %c5_55 = arith.constant 5 : index
    %c1_56 = arith.constant 1 : index
    %c0_57 = arith.constant 0 : index
    %43 = vector.load %arg10[%c2_54, %c5_55, %c1_56, %c0_57] : memref<7x26x16x16xbf16, #tpu.memory_space<vmem>>, vector<1x16x15x16xbf16>
    %44 = vector.shape_cast %43 : vector<1x16x15x16xbf16> to vector<16x15x16xbf16>
    %45 = vector.shape_cast %42 : vector<16x15x16xbf16> to vector<1x16x15x16xbf16>
    tpu.vector_store %arg10[%c2_54, %c5_55, %c1_56, %c0_57], %45 {strides = array<i32>} : memref<7x26x16x16xbf16, #tpu.memory_space<vmem>>, vector<1x16x15x16xbf16>,
    %c3 = arith.constant 3 : index
    %c0_58 = arith.constant 0 : index
    %c0_59 = arith.constant 0 : index
    %c0_60 = arith.constant 0 : index
    %46 = vector.load %arg10[%c3, %c0_58, %c0_59, %c0_60] : memref<7x26x16x16xbf16, #tpu.memory_space<vmem>>, vector<1x5x16x16xbf16>
    %47 = vector.shape_cast %46 : vector<1x5x16x16xbf16> to vector<5x16x16xbf16>
    %48 = vector.shape_cast %0 : vector<5x16x16xbf16> to vector<1x5x16x16xbf16>
    tpu.vector_store %arg10[%c3, %c0_58, %c0_59, %c0_60], %48 {strides = array<i32>} : memref<7x26x16x16xbf16, #tpu.memory_space<vmem>>, vector<1x5x16x16xbf16>,
    %c3_61 = arith.constant 3 : index
    %c21_62 = arith.constant 21 : index
    %c0_63 = arith.constant 0 : index
    %c0_64 = arith.constant 0 : index
    %49 = vector.load %arg10[%c3_61, %c21_62, %c0_63, %c0_64] : memref<7x26x16x16xbf16, #tpu.memory_space<vmem>>, vector<1x5x16x16xbf16>
    %50 = vector.shape_cast %49 : vector<1x5x16x16xbf16> to vector<5x16x16xbf16>
    %51 = vector.shape_cast %0 : vector<5x16x16xbf16> to vector<1x5x16x16xbf16>
    tpu.vector_store %arg10[%c3_61, %c21_62, %c0_63, %c0_64], %51 {strides = array<i32>} : memref<7x26x16x16xbf16, #tpu.memory_space<vmem>>, vector<1x5x16x16xbf16>,
    %c0_65 = arith.constant 0 : index
    %c0_66 = arith.constant 0 : index
    %c0_67 = arith.constant 0 : index
    %c0_68 = arith.constant 0 : index
    %52 = vector.load %arg1[%c0_65, %c0_66, %c0_67, %c0_68] : memref<1x16x16x16xbf16, #tpu.memory_space<vmem>>, vector<1x16x16x16xbf16>
    %53 = vector.shape_cast %52 : vector<1x16x16x16xbf16> to vector<16x16x16xbf16>
    %c3_69 = arith.constant 3 : index
    %c5_70 = arith.constant 5 : index
    %c0_71 = arith.constant 0 : index
    %c0_72 = arith.constant 0 : index
    %54 = vector.load %arg10[%c3_69, %c5_70, %c0_71, %c0_72] : memref<7x26x16x16xbf16, #tpu.memory_space<vmem>>, vector<1x16x16x16xbf16>
    %55 = vector.shape_cast %54 : vector<1x16x16x16xbf16> to vector<16x16x16xbf16>
    %56 = vector.shape_cast %53 : vector<16x16x16xbf16> to vector<1x16x16x16xbf16>
    tpu.vector_store %arg10[%c3_69, %c5_70, %c0_71, %c0_72], %56 {strides = array<i32>} : memref<7x26x16x16xbf16, #tpu.memory_space<vmem>>, vector<1x16x16x16xbf16>,
    %c4 = arith.constant 4 : index
    %c0_73 = arith.constant 0 : index
    %c0_74 = arith.constant 0 : index
    %c0_75 = arith.constant 0 : index
    %57 = vector.load %arg10[%c4, %c0_73, %c0_74, %c0_75] : memref<7x26x16x16xbf16, #tpu.memory_space<vmem>>, vector<1x5x16x16xbf16>
    %58 = vector.shape_cast %57 : vector<1x5x16x16xbf16> to vector<5x16x16xbf16>
    %59 = vector.shape_cast %0 : vector<5x16x16xbf16> to vector<1x5x16x16xbf16>
    tpu.vector_store %arg10[%c4, %c0_73, %c0_74, %c0_75], %59 {strides = array<i32>} : memref<7x26x16x16xbf16, #tpu.memory_space<vmem>>, vector<1x5x16x16xbf16>,
    %c4_76 = arith.constant 4 : index
    %c21_77 = arith.constant 21 : index
    %c0_78 = arith.constant 0 : index
    %c0_79 = arith.constant 0 : index
    %60 = vector.load %arg10[%c4_76, %c21_77, %c0_78, %c0_79] : memref<7x26x16x16xbf16, #tpu.memory_space<vmem>>, vector<1x5x16x16xbf16>
    %61 = vector.shape_cast %60 : vector<1x5x16x16xbf16> to vector<5x16x16xbf16>
    %62 = vector.shape_cast %0 : vector<5x16x16xbf16> to vector<1x5x16x16xbf16>
    tpu.vector_store %arg10[%c4_76, %c21_77, %c0_78, %c0_79], %62 {strides = array<i32>} : memref<7x26x16x16xbf16, #tpu.memory_space<vmem>>, vector<1x5x16x16xbf16>,
    %cst_80 = arith.constant 0.000000e+00 : bf16
    %63 = vector.broadcast %cst_80 : bf16 to vector<16x1x16xbf16>
    %c4_81 = arith.constant 4 : index
    %c5_82 = arith.constant 5 : index
    %c15 = arith.constant 15 : index
    %c0_83 = arith.constant 0 : index
    %64 = vector.load %arg10[%c4_81, %c5_82, %c15, %c0_83] : memref<7x26x16x16xbf16, #tpu.memory_space<vmem>>, vector<1x16x1x16xbf16>
    %65 = vector.shape_cast %64 : vector<1x16x1x16xbf16> to vector<16x1x16xbf16>
    %66 = vector.shape_cast %63 : vector<16x1x16xbf16> to vector<1x16x1x16xbf16>
    tpu.vector_store %arg10[%c4_81, %c5_82, %c15, %c0_83], %66 {strides = array<i32>} : memref<7x26x16x16xbf16, #tpu.memory_space<vmem>>, vector<1x16x1x16xbf16>,
    %c0_84 = arith.constant 0 : index
    %c0_85 = arith.constant 0 : index
    %c1_86 = arith.constant 1 : index
    %c0_87 = arith.constant 0 : index
    %67 = vector.load %arg1[%c0_84, %c0_85, %c1_86, %c0_87] : memref<1x16x16x16xbf16, #tpu.memory_space<vmem>>, vector<1x16x15x16xbf16>
    %68 = vector.shape_cast %67 : vector<1x16x15x16xbf16> to vector<16x15x16xbf16>
    %c4_88 = arith.constant 4 : index
    %c5_89 = arith.constant 5 : index
    %c0_90 = arith.constant 0 : index
    %c0_91 = arith.constant 0 : index
    %69 = vector.load %arg10[%c4_88, %c5_89, %c0_90, %c0_91] : memref<7x26x16x16xbf16, #tpu.memory_space<vmem>>, vector<1x16x15x16xbf16>
    %70 = vector.shape_cast %69 : vector<1x16x15x16xbf16> to vector<16x15x16xbf16>
    %71 = vector.shape_cast %68 : vector<16x15x16xbf16> to vector<1x16x15x16xbf16>
    tpu.vector_store %arg10[%c4_88, %c5_89, %c0_90, %c0_91], %71 {strides = array<i32>} : memref<7x26x16x16xbf16, #tpu.memory_space<vmem>>, vector<1x16x15x16xbf16>,
    %c5_92 = arith.constant 5 : index
    %c0_93 = arith.constant 0 : index
    %c0_94 = arith.constant 0 : index
    %c0_95 = arith.constant 0 : index
    %72 = vector.load %arg10[%c5_92, %c0_93, %c0_94, %c0_95] : memref<7x26x16x16xbf16, #tpu.memory_space<vmem>>, vector<1x5x16x16xbf16>
    %73 = vector.shape_cast %72 : vector<1x5x16x16xbf16> to vector<5x16x16xbf16>
    %74 = vector.shape_cast %0 : vector<5x16x16xbf16> to vector<1x5x16x16xbf16>
    tpu.vector_store %arg10[%c5_92, %c0_93, %c0_94, %c0_95], %74 {strides = array<i32>} : memref<7x26x16x16xbf16, #tpu.memory_space<vmem>>, vector<1x5x16x16xbf16>,
    %c5_96 = arith.constant 5 : index
    %c21_97 = arith.constant 21 : index
    %c0_98 = arith.constant 0 : index
    %c0_99 = arith.constant 0 : index
    %75 = vector.load %arg10[%c5_96, %c21_97, %c0_98, %c0_99] : memref<7x26x16x16xbf16, #tpu.memory_space<vmem>>, vector<1x5x16x16xbf16>
    %76 = vector.shape_cast %75 : vector<1x5x16x16xbf16> to vector<5x16x16xbf16>
    %77 = vector.shape_cast %0 : vector<5x16x16xbf16> to vector<1x5x16x16xbf16>
    tpu.vector_store %arg10[%c5_96, %c21_97, %c0_98, %c0_99], %77 {strides = array<i32>} : memref<7x26x16x16xbf16, #tpu.memory_space<vmem>>, vector<1x5x16x16xbf16>,
    %cst_100 = arith.constant 0.000000e+00 : bf16
    %78 = vector.broadcast %cst_100 : bf16 to vector<16x2x16xbf16>
    %c5_101 = arith.constant 5 : index
    %c5_102 = arith.constant 5 : index
    %c14 = arith.constant 14 : index
    %c0_103 = arith.constant 0 : index
    %79 = vector.load %arg10[%c5_101, %c5_102, %c14, %c0_103] : memref<7x26x16x16xbf16, #tpu.memory_space<vmem>>, vector<1x16x2x16xbf16>
    %80 = vector.shape_cast %79 : vector<1x16x2x16xbf16> to vector<16x2x16xbf16>
    %81 = vector.shape_cast %78 : vector<16x2x16xbf16> to vector<1x16x2x16xbf16>
    tpu.vector_store %arg10[%c5_101, %c5_102, %c14, %c0_103], %81 {strides = array<i32>} : memref<7x26x16x16xbf16, #tpu.memory_space<vmem>>, vector<1x16x2x16xbf16>,
    %c0_104 = arith.constant 0 : index
    %c0_105 = arith.constant 0 : index
    %c2_106 = arith.constant 2 : index
    %c0_107 = arith.constant 0 : index
    %82 = vector.load %arg1[%c0_104, %c0_105, %c2_106, %c0_107] : memref<1x16x16x16xbf16, #tpu.memory_space<vmem>>, vector<1x16x14x16xbf16>
    %83 = vector.shape_cast %82 : vector<1x16x14x16xbf16> to vector<16x14x16xbf16>
    %c5_108 = arith.constant 5 : index
    %c5_109 = arith.constant 5 : index
    %c0_110 = arith.constant 0 : index
    %c0_111 = arith.constant 0 : index
    %84 = vector.load %arg10[%c5_108, %c5_109, %c0_110, %c0_111] : memref<7x26x16x16xbf16, #tpu.memory_space<vmem>>, vector<1x16x14x16xbf16>
    %85 = vector.shape_cast %84 : vector<1x16x14x16xbf16> to vector<16x14x16xbf16>
    %86 = vector.shape_cast %83 : vector<16x14x16xbf16> to vector<1x16x14x16xbf16>
    tpu.vector_store %arg10[%c5_108, %c5_109, %c0_110, %c0_111], %86 {strides = array<i32>} : memref<7x26x16x16xbf16, #tpu.memory_space<vmem>>, vector<1x16x14x16xbf16>,
    %c6 = arith.constant 6 : index
    %c0_112 = arith.constant 0 : index
    %c0_113 = arith.constant 0 : index
    %c0_114 = arith.constant 0 : index
    %87 = vector.load %arg10[%c6, %c0_112, %c0_113, %c0_114] : memref<7x26x16x16xbf16, #tpu.memory_space<vmem>>, vector<1x5x16x16xbf16>
    %88 = vector.shape_cast %87 : vector<1x5x16x16xbf16> to vector<5x16x16xbf16>
    %89 = vector.shape_cast %0 : vector<5x16x16xbf16> to vector<1x5x16x16xbf16>
    tpu.vector_store %arg10[%c6, %c0_112, %c0_113, %c0_114], %89 {strides = array<i32>} : memref<7x26x16x16xbf16, #tpu.memory_space<vmem>>, vector<1x5x16x16xbf16>,
    %c6_115 = arith.constant 6 : index
    %c21_116 = arith.constant 21 : index
    %c0_117 = arith.constant 0 : index
    %c0_118 = arith.constant 0 : index
    %90 = vector.load %arg10[%c6_115, %c21_116, %c0_117, %c0_118] : memref<7x26x16x16xbf16, #tpu.memory_space<vmem>>, vector<1x5x16x16xbf16>
    %91 = vector.shape_cast %90 : vector<1x5x16x16xbf16> to vector<5x16x16xbf16>
    %92 = vector.shape_cast %0 : vector<5x16x16xbf16> to vector<1x5x16x16xbf16>
    tpu.vector_store %arg10[%c6_115, %c21_116, %c0_117, %c0_118], %92 {strides = array<i32>} : memref<7x26x16x16xbf16, #tpu.memory_space<vmem>>, vector<1x5x16x16xbf16>,
    %cst_119 = arith.constant 0.000000e+00 : bf16
    %93 = vector.broadcast %cst_119 : bf16 to vector<16x5x16xbf16>
    %c6_120 = arith.constant 6 : index
    %c5_121 = arith.constant 5 : index
    %c11 = arith.constant 11 : index
    %c0_122 = arith.constant 0 : index
    %94 = vector.load %arg10[%c6_120, %c5_121, %c11, %c0_122] : memref<7x26x16x16xbf16, #tpu.memory_space<vmem>>, vector<1x16x5x16xbf16>
    %95 = vector.shape_cast %94 : vector<1x16x5x16xbf16> to vector<16x5x16xbf16>
    %96 = vector.shape_cast %93 : vector<16x5x16xbf16> to vector<1x16x5x16xbf16>
    tpu.vector_store %arg10[%c6_120, %c5_121, %c11, %c0_122], %96 {strides = array<i32>} : memref<7x26x16x16xbf16, #tpu.memory_space<vmem>>, vector<1x16x5x16xbf16>,
    %c0_123 = arith.constant 0 : index
    %c0_124 = arith.constant 0 : index
    %c5_125 = arith.constant 5 : index
    %c0_126 = arith.constant 0 : index
    %97 = vector.load %arg1[%c0_123, %c0_124, %c5_125, %c0_126] : memref<1x16x16x16xbf16, #tpu.memory_space<vmem>>, vector<1x16x11x16xbf16>
    %98 = vector.shape_cast %97 : vector<1x16x11x16xbf16> to vector<16x11x16xbf16>
    %c6_127 = arith.constant 6 : index
    %c5_128 = arith.constant 5 : index
    %c0_129 = arith.constant 0 : index
    %c0_130 = arith.constant 0 : index
    %99 = vector.load %arg10[%c6_127, %c5_128, %c0_129, %c0_130] : memref<7x26x16x16xbf16, #tpu.memory_space<vmem>>, vector<1x16x11x16xbf16>
    %100 = vector.shape_cast %99 : vector<1x16x11x16xbf16> to vector<16x11x16xbf16>
    %101 = vector.shape_cast %98 : vector<16x11x16xbf16> to vector<1x16x11x16xbf16>
    tpu.vector_store %arg10[%c6_127, %c5_128, %c0_129, %c0_130], %101 {strides = array<i32>} : memref<7x26x16x16xbf16, #tpu.memory_space<vmem>>, vector<1x16x11x16xbf16>,
    %c0_131 = arith.constant 0 : index
    %c0_132 = arith.constant 0 : index
    %c0_133 = arith.constant 0 : index
    %c0_134 = arith.constant 0 : index
    %102 = vector.load %arg1[%c0_131, %c0_132, %c0_133, %c0_134] : memref<1x16x16x16xbf16, #tpu.memory_space<vmem>>, vector<1x16x16x16xbf16>
    %103 = vector.shape_cast %102 : vector<1x16x16x16xbf16> to vector<16x16x16xbf16>
    %104 = vector.shape_cast %103 : vector<16x16x16xbf16> to vector<256x16xbf16>
    %c0_135 = arith.constant 0 : index
    %c0_136 = arith.constant 0 : index
    %105 = vector.load %arg2[%c0_135, %c0_136] : memref<16x4xbf16, #tpu.memory_space<vmem>>, vector<16x4xbf16>
    %cst_137 = arith.constant dense<0.000000e+00> : vector<256x4xf32>
    %106 = tpu.matmul %104, %105, %cst_137 {dimension_numbers = #tpu.dot_dimension_numbers<[1], [0], [0], [1], [0, 0, 1, 1], [], []>} : vector<256x16xbf16>, vector<16x4xbf16>, vector<256x4xf32> -> vector<256x4xf32>
    %c0_138 = arith.constant 0 : index
    %c0_139 = arith.constant 0 : index
    %107 = vector.load %arg7[%c0_138, %c0_139] : memref<5x4xf32, #tpu.memory_space<vmem>>, vector<1x4xf32>
    %108 = vector.broadcast %107 : vector<1x4xf32> to vector<256x4xf32>
    %109 = arith.addf %106, %108 : vector<256x4xf32>
    %cst_140 = arith.constant 0.000000e+00 : f32
    %110 = vector.broadcast %cst_140 : f32 to vector<256x4xf32>
    %111 = arith.subf %110, %109 : vector<256x4xf32>
    %112 = math.exp %111 : vector<256x4xf32>
    %cst_141 = arith.constant 1.000000e+00 : f32
    %113 = vector.broadcast %cst_141 : f32 to vector<256x4xf32>
    %114 = arith.addf %113, %112 : vector<256x4xf32>
    %115 = tpu.reciprocal %114 {approx = true} : vector<256x4xf32> -> vector<256x4xf32>
    %116 = arith.mulf %109, %115 : vector<256x4xf32>
    %117 = arith.truncf %116 : vector<256x4xf32> to vector<256x4xbf16>
    %c0_142 = arith.constant 0 : index
    %c0_143 = arith.constant 0 : index
    %118 = vector.load %arg11[%c0_142, %c0_143] : memref<256x16xbf16, #tpu.memory_space<vmem>>, vector<256x4xbf16>
    tpu.vector_store %arg11[%c0_142, %c0_143], %117 {strides = array<i32>} : memref<256x16xbf16, #tpu.memory_space<vmem>>, vector<256x4xbf16>,
    %cst_144 = arith.constant 0.000000e+00 : f32
    %119 = vector.broadcast %cst_144 : f32 to vector<256x4xf32>
    %c2_145 = arith.constant 2 : index
    %c4_146 = arith.constant 4 : index
    %c0_147 = arith.constant 0 : index
    %c0_148 = arith.constant 0 : index
    %120 = vector.load %arg10[%c2_145, %c4_146, %c0_147, %c0_148] : memref<7x26x16x16xbf16, #tpu.memory_space<vmem>>, vector<1x16x16x16xbf16>
    %121 = vector.shape_cast %120 : vector<1x16x16x16xbf16> to vector<16x16x16xbf16>
    %122 = vector.shape_cast %121 : vector<16x16x16xbf16> to vector<256x16xbf16>
    %c0_149 = arith.constant 0 : index
    %c0_150 = arith.constant 0 : index
    %c0_151 = arith.constant 0 : index
    %c0_152 = arith.constant 0 : index
    %123 = vector.load %arg3[%c0_149, %c0_150, %c0_151, %c0_152] : memref<3x9x16x4xbf16, #tpu.memory_space<vmem>>, vector<1x1x16x4xbf16>
    %124 = vector.shape_cast %123 : vector<1x1x16x4xbf16> to vector<16x4xbf16>
    %cst_153 = arith.constant dense<0.000000e+00> : vector<256x4xf32>
    %125 = tpu.matmul %122, %124, %cst_153 {dimension_numbers = #tpu.dot_dimension_numbers<[1], [0], [0], [1], [0, 0, 1, 1], [], []>} : vector<256x16xbf16>, vector<16x4xbf16>, vector<256x4xf32> -> vector<256x4xf32>
    %126 = arith.addf %119, %125 : vector<256x4xf32>
    %c3_154 = arith.constant 3 : index
    %c4_155 = arith.constant 4 : index
    %c0_156 = arith.constant 0 : index
    %c0_157 = arith.constant 0 : index
    %127 = vector.load %arg10[%c3_154, %c4_155, %c0_156, %c0_157] : memref<7x26x16x16xbf16, #tpu.memory_space<vmem>>, vector<1x16x16x16xbf16>
    %128 = vector.shape_cast %127 : vector<1x16x16x16xbf16> to vector<16x16x16xbf16>
    %129 = vector.shape_cast %128 : vector<16x16x16xbf16> to vector<256x16xbf16>
    %c0_158 = arith.constant 0 : index
    %c1_159 = arith.constant 1 : index
    %c0_160 = arith.constant 0 : index
    %c0_161 = arith.constant 0 : index
    %130 = vector.load %arg3[%c0_158, %c1_159, %c0_160, %c0_161] : memref<3x9x16x4xbf16, #tpu.memory_space<vmem>>, vector<1x1x16x4xbf16>
    %131 = vector.shape_cast %130 : vector<1x1x16x4xbf16> to vector<16x4xbf16>
    %cst_162 = arith.constant dense<0.000000e+00> : vector<256x4xf32>
    %132 = tpu.matmul %129, %131, %cst_162 {dimension_numbers = #tpu.dot_dimension_numbers<[1], [0], [0], [1], [0, 0, 1, 1], [], []>} : vector<256x16xbf16>, vector<16x4xbf16>, vector<256x4xf32> -> vector<256x4xf32>
    %133 = arith.addf %126, %132 : vector<256x4xf32>
    %c4_163 = arith.constant 4 : index
    %c4_164 = arith.constant 4 : index
    %c0_165 = arith.constant 0 : index
    %c0_166 = arith.constant 0 : index
    %134 = vector.load %arg10[%c4_163, %c4_164, %c0_165, %c0_166] : memref<7x26x16x16xbf16, #tpu.memory_space<vmem>>, vector<1x16x16x16xbf16>
    %135 = vector.shape_cast %134 : vector<1x16x16x16xbf16> to vector<16x16x16xbf16>
    %136 = vector.shape_cast %135 : vector<16x16x16xbf16> to vector<256x16xbf16>
    %c0_167 = arith.constant 0 : index
    %c2_168 = arith.constant 2 : index
    %c0_169 = arith.constant 0 : index
    %c0_170 = arith.constant 0 : index
    %137 = vector.load %arg3[%c0_167, %c2_168, %c0_169, %c0_170] : memref<3x9x16x4xbf16, #tpu.memory_space<vmem>>, vector<1x1x16x4xbf16>
    %138 = vector.shape_cast %137 : vector<1x1x16x4xbf16> to vector<16x4xbf16>
    %cst_171 = arith.constant dense<0.000000e+00> : vector<256x4xf32>
    %139 = tpu.matmul %136, %138, %cst_171 {dimension_numbers = #tpu.dot_dimension_numbers<[1], [0], [0], [1], [0, 0, 1, 1], [], []>} : vector<256x16xbf16>, vector<16x4xbf16>, vector<256x4xf32> -> vector<256x4xf32>
    %140 = arith.addf %133, %139 : vector<256x4xf32>
    %c2_172 = arith.constant 2 : index
    %c5_173 = arith.constant 5 : index
    %c0_174 = arith.constant 0 : index
    %c0_175 = arith.constant 0 : index
    %141 = vector.load %arg10[%c2_172, %c5_173, %c0_174, %c0_175] : memref<7x26x16x16xbf16, #tpu.memory_space<vmem>>, vector<1x16x16x16xbf16>
    %142 = vector.shape_cast %141 : vector<1x16x16x16xbf16> to vector<16x16x16xbf16>
    %143 = vector.shape_cast %142 : vector<16x16x16xbf16> to vector<256x16xbf16>
    %c0_176 = arith.constant 0 : index
    %c3_177 = arith.constant 3 : index
    %c0_178 = arith.constant 0 : index
    %c0_179 = arith.constant 0 : index
    %144 = vector.load %arg3[%c0_176, %c3_177, %c0_178, %c0_179] : memref<3x9x16x4xbf16, #tpu.memory_space<vmem>>, vector<1x1x16x4xbf16>
    %145 = vector.shape_cast %144 : vector<1x1x16x4xbf16> to vector<16x4xbf16>
    %cst_180 = arith.constant dense<0.000000e+00> : vector<256x4xf32>
    %146 = tpu.matmul %143, %145, %cst_180 {dimension_numbers = #tpu.dot_dimension_numbers<[1], [0], [0], [1], [0, 0, 1, 1], [], []>} : vector<256x16xbf16>, vector<16x4xbf16>, vector<256x4xf32> -> vector<256x4xf32>
    %147 = arith.addf %140, %146 : vector<256x4xf32>
    %c3_181 = arith.constant 3 : index
    %c5_182 = arith.constant 5 : index
    %c0_183 = arith.constant 0 : index
    %c0_184 = arith.constant 0 : index
    %148 = vector.load %arg10[%c3_181, %c5_182, %c0_183, %c0_184] : memref<7x26x16x16xbf16, #tpu.memory_space<vmem>>, vector<1x16x16x16xbf16>
    %149 = vector.shape_cast %148 : vector<1x16x16x16xbf16> to vector<16x16x16xbf16>
    %150 = vector.shape_cast %149 : vector<16x16x16xbf16> to vector<256x16xbf16>
    %c0_185 = arith.constant 0 : index
    %c4_186 = arith.constant 4 : index
    %c0_187 = arith.constant 0 : index
    %c0_188 = arith.constant 0 : index
    %151 = vector.load %arg3[%c0_185, %c4_186, %c0_187, %c0_188] : memref<3x9x16x4xbf16, #tpu.memory_space<vmem>>, vector<1x1x16x4xbf16>
    %152 = vector.shape_cast %151 : vector<1x1x16x4xbf16> to vector<16x4xbf16>
    %cst_189 = arith.constant dense<0.000000e+00> : vector<256x4xf32>
    %153 = tpu.matmul %150, %152, %cst_189 {dimension_numbers = #tpu.dot_dimension_numbers<[1], [0], [0], [1], [0, 0, 1, 1], [], []>} : vector<256x16xbf16>, vector<16x4xbf16>, vector<256x4xf32> -> vector<256x4xf32>
    %154 = arith.addf %147, %153 : vector<256x4xf32>
    %c4_190 = arith.constant 4 : index
    %c5_191 = arith.constant 5 : index
    %c0_192 = arith.constant 0 : index
    %c0_193 = arith.constant 0 : index
    %155 = vector.load %arg10[%c4_190, %c5_191, %c0_192, %c0_193] : memref<7x26x16x16xbf16, #tpu.memory_space<vmem>>, vector<1x16x16x16xbf16>
    %156 = vector.shape_cast %155 : vector<1x16x16x16xbf16> to vector<16x16x16xbf16>
    %157 = vector.shape_cast %156 : vector<16x16x16xbf16> to vector<256x16xbf16>
    %c0_194 = arith.constant 0 : index
    %c5_195 = arith.constant 5 : index
    %c0_196 = arith.constant 0 : index
    %c0_197 = arith.constant 0 : index
    %158 = vector.load %arg3[%c0_194, %c5_195, %c0_196, %c0_197] : memref<3x9x16x4xbf16, #tpu.memory_space<vmem>>, vector<1x1x16x4xbf16>
    %159 = vector.shape_cast %158 : vector<1x1x16x4xbf16> to vector<16x4xbf16>
    %cst_198 = arith.constant dense<0.000000e+00> : vector<256x4xf32>
    %160 = tpu.matmul %157, %159, %cst_198 {dimension_numbers = #tpu.dot_dimension_numbers<[1], [0], [0], [1], [0, 0, 1, 1], [], []>} : vector<256x16xbf16>, vector<16x4xbf16>, vector<256x4xf32> -> vector<256x4xf32>
    %161 = arith.addf %154, %160 : vector<256x4xf32>
    %c2_199 = arith.constant 2 : index
    %c6_200 = arith.constant 6 : index
    %c0_201 = arith.constant 0 : index
    %c0_202 = arith.constant 0 : index
    %162 = vector.load %arg10[%c2_199, %c6_200, %c0_201, %c0_202] : memref<7x26x16x16xbf16, #tpu.memory_space<vmem>>, vector<1x16x16x16xbf16>
    %163 = vector.shape_cast %162 : vector<1x16x16x16xbf16> to vector<16x16x16xbf16>
    %164 = vector.shape_cast %163 : vector<16x16x16xbf16> to vector<256x16xbf16>
    %c0_203 = arith.constant 0 : index
    %c6_204 = arith.constant 6 : index
    %c0_205 = arith.constant 0 : index
    %c0_206 = arith.constant 0 : index
    %165 = vector.load %arg3[%c0_203, %c6_204, %c0_205, %c0_206] : memref<3x9x16x4xbf16, #tpu.memory_space<vmem>>, vector<1x1x16x4xbf16>
    %166 = vector.shape_cast %165 : vector<1x1x16x4xbf16> to vector<16x4xbf16>
    %cst_207 = arith.constant dense<0.000000e+00> : vector<256x4xf32>
    %167 = tpu.matmul %164, %166, %cst_207 {dimension_numbers = #tpu.dot_dimension_numbers<[1], [0], [0], [1], [0, 0, 1, 1], [], []>} : vector<256x16xbf16>, vector<16x4xbf16>, vector<256x4xf32> -> vector<256x4xf32>
    %168 = arith.addf %161, %167 : vector<256x4xf32>
    %c3_208 = arith.constant 3 : index
    %c6_209 = arith.constant 6 : index
    %c0_210 = arith.constant 0 : index
    %c0_211 = arith.constant 0 : index
    %169 = vector.load %arg10[%c3_208, %c6_209, %c0_210, %c0_211] : memref<7x26x16x16xbf16, #tpu.memory_space<vmem>>, vector<1x16x16x16xbf16>
    %170 = vector.shape_cast %169 : vector<1x16x16x16xbf16> to vector<16x16x16xbf16>
    %171 = vector.shape_cast %170 : vector<16x16x16xbf16> to vector<256x16xbf16>
    %c0_212 = arith.constant 0 : index
    %c7 = arith.constant 7 : index
    %c0_213 = arith.constant 0 : index
    %c0_214 = arith.constant 0 : index
    %172 = vector.load %arg3[%c0_212, %c7, %c0_213, %c0_214] : memref<3x9x16x4xbf16, #tpu.memory_space<vmem>>, vector<1x1x16x4xbf16>
    %173 = vector.shape_cast %172 : vector<1x1x16x4xbf16> to vector<16x4xbf16>
    %cst_215 = arith.constant dense<0.000000e+00> : vector<256x4xf32>
    %174 = tpu.matmul %171, %173, %cst_215 {dimension_numbers = #tpu.dot_dimension_numbers<[1], [0], [0], [1], [0, 0, 1, 1], [], []>} : vector<256x16xbf16>, vector<16x4xbf16>, vector<256x4xf32> -> vector<256x4xf32>
    %175 = arith.addf %168, %174 : vector<256x4xf32>
    %c4_216 = arith.constant 4 : index
    %c6_217 = arith.constant 6 : index
    %c0_218 = arith.constant 0 : index
    %c0_219 = arith.constant 0 : index
    %176 = vector.load %arg10[%c4_216, %c6_217, %c0_218, %c0_219] : memref<7x26x16x16xbf16, #tpu.memory_space<vmem>>, vector<1x16x16x16xbf16>
    %177 = vector.shape_cast %176 : vector<1x16x16x16xbf16> to vector<16x16x16xbf16>
    %178 = vector.shape_cast %177 : vector<16x16x16xbf16> to vector<256x16xbf16>
    %c0_220 = arith.constant 0 : index
    %c8 = arith.constant 8 : index
    %c0_221 = arith.constant 0 : index
    %c0_222 = arith.constant 0 : index
    %179 = vector.load %arg3[%c0_220, %c8, %c0_221, %c0_222] : memref<3x9x16x4xbf16, #tpu.memory_space<vmem>>, vector<1x1x16x4xbf16>
    %180 = vector.shape_cast %179 : vector<1x1x16x4xbf16> to vector<16x4xbf16>
    %cst_223 = arith.constant dense<0.000000e+00> : vector<256x4xf32>
    %181 = tpu.matmul %178, %180, %cst_223 {dimension_numbers = #tpu.dot_dimension_numbers<[1], [0], [0], [1], [0, 0, 1, 1], [], []>} : vector<256x16xbf16>, vector<16x4xbf16>, vector<256x4xf32> -> vector<256x4xf32>
    %182 = arith.addf %175, %181 : vector<256x4xf32>
    %c1_224 = arith.constant 1 : index
    %c0_225 = arith.constant 0 : index
    %183 = vector.load %arg7[%c1_224, %c0_225] : memref<5x4xf32, #tpu.memory_space<vmem>>, vector<1x4xf32>
    %184 = vector.broadcast %183 : vector<1x4xf32> to vector<256x4xf32>
    %185 = arith.addf %182, %184 : vector<256x4xf32>
    %cst_226 = arith.constant 0.000000e+00 : f32
    %186 = vector.broadcast %cst_226 : f32 to vector<256x4xf32>
    %187 = arith.subf %186, %185 : vector<256x4xf32>
    %188 = math.exp %187 : vector<256x4xf32>
    %cst_227 = arith.constant 1.000000e+00 : f32
    %189 = vector.broadcast %cst_227 : f32 to vector<256x4xf32>
    %190 = arith.addf %189, %188 : vector<256x4xf32>
    %191 = tpu.reciprocal %190 {approx = true} : vector<256x4xf32> -> vector<256x4xf32>
    %192 = arith.mulf %185, %191 : vector<256x4xf32>
    %193 = arith.truncf %192 : vector<256x4xf32> to vector<256x4xbf16>
    %c0_228 = arith.constant 0 : index
    %c4_229 = arith.constant 4 : index
    %194 = vector.load %arg11[%c0_228, %c4_229] : memref<256x16xbf16, #tpu.memory_space<vmem>>, vector<256x4xbf16>
    tpu.vector_store %arg11[%c0_228, %c4_229], %193 {strides = array<i32>} : memref<256x16xbf16, #tpu.memory_space<vmem>>, vector<256x4xbf16>,
    %cst_230 = arith.constant 0.000000e+00 : f32
    %195 = vector.broadcast %cst_230 : f32 to vector<256x4xf32>
    %c1_231 = arith.constant 1 : index
    %c3_232 = arith.constant 3 : index
    %c0_233 = arith.constant 0 : index
    %c0_234 = arith.constant 0 : index
    %196 = vector.load %arg10[%c1_231, %c3_232, %c0_233, %c0_234] : memref<7x26x16x16xbf16, #tpu.memory_space<vmem>>, vector<1x16x16x16xbf16>
    %197 = vector.shape_cast %196 : vector<1x16x16x16xbf16> to vector<16x16x16xbf16>
    %198 = vector.shape_cast %197 : vector<16x16x16xbf16> to vector<256x16xbf16>
    %c1_235 = arith.constant 1 : index
    %c0_236 = arith.constant 0 : index
    %c0_237 = arith.constant 0 : index
    %c0_238 = arith.constant 0 : index
    %199 = vector.load %arg3[%c1_235, %c0_236, %c0_237, %c0_238] : memref<3x9x16x4xbf16, #tpu.memory_space<vmem>>, vector<1x1x16x4xbf16>
    %200 = vector.shape_cast %199 : vector<1x1x16x4xbf16> to vector<16x4xbf16>
    %cst_239 = arith.constant dense<0.000000e+00> : vector<256x4xf32>
    %201 = tpu.matmul %198, %200, %cst_239 {dimension_numbers = #tpu.dot_dimension_numbers<[1], [0], [0], [1], [0, 0, 1, 1], [], []>} : vector<256x16xbf16>, vector<16x4xbf16>, vector<256x4xf32> -> vector<256x4xf32>
    %202 = arith.addf %195, %201 : vector<256x4xf32>
    %c3_240 = arith.constant 3 : index
    %c3_241 = arith.constant 3 : index
    %c0_242 = arith.constant 0 : index
    %c0_243 = arith.constant 0 : index
    %203 = vector.load %arg10[%c3_240, %c3_241, %c0_242, %c0_243] : memref<7x26x16x16xbf16, #tpu.memory_space<vmem>>, vector<1x16x16x16xbf16>
    %204 = vector.shape_cast %203 : vector<1x16x16x16xbf16> to vector<16x16x16xbf16>
    %205 = vector.shape_cast %204 : vector<16x16x16xbf16> to vector<256x16xbf16>
    %c1_244 = arith.constant 1 : index
    %c1_245 = arith.constant 1 : index
    %c0_246 = arith.constant 0 : index
    %c0_247 = arith.constant 0 : index
    %206 = vector.load %arg3[%c1_244, %c1_245, %c0_246, %c0_247] : memref<3x9x16x4xbf16, #tpu.memory_space<vmem>>, vector<1x1x16x4xbf16>
    %207 = vector.shape_cast %206 : vector<1x1x16x4xbf16> to vector<16x4xbf16>
    %cst_248 = arith.constant dense<0.000000e+00> : vector<256x4xf32>
    %208 = tpu.matmul %205, %207, %cst_248 {dimension_numbers = #tpu.dot_dimension_numbers<[1], [0], [0], [1], [0, 0, 1, 1], [], []>} : vector<256x16xbf16>, vector<16x4xbf16>, vector<256x4xf32> -> vector<256x4xf32>
    %209 = arith.addf %202, %208 : vector<256x4xf32>
    %c5_249 = arith.constant 5 : index
    %c3_250 = arith.constant 3 : index
    %c0_251 = arith.constant 0 : index
    %c0_252 = arith.constant 0 : index
    %210 = vector.load %arg10[%c5_249, %c3_250, %c0_251, %c0_252] : memref<7x26x16x16xbf16, #tpu.memory_space<vmem>>, vector<1x16x16x16xbf16>
    %211 = vector.shape_cast %210 : vector<1x16x16x16xbf16> to vector<16x16x16xbf16>
    %212 = vector.shape_cast %211 : vector<16x16x16xbf16> to vector<256x16xbf16>
    %c1_253 = arith.constant 1 : index
    %c2_254 = arith.constant 2 : index
    %c0_255 = arith.constant 0 : index
    %c0_256 = arith.constant 0 : index
    %213 = vector.load %arg3[%c1_253, %c2_254, %c0_255, %c0_256] : memref<3x9x16x4xbf16, #tpu.memory_space<vmem>>, vector<1x1x16x4xbf16>
    %214 = vector.shape_cast %213 : vector<1x1x16x4xbf16> to vector<16x4xbf16>
    %cst_257 = arith.constant dense<0.000000e+00> : vector<256x4xf32>
    %215 = tpu.matmul %212, %214, %cst_257 {dimension_numbers = #tpu.dot_dimension_numbers<[1], [0], [0], [1], [0, 0, 1, 1], [], []>} : vector<256x16xbf16>, vector<16x4xbf16>, vector<256x4xf32> -> vector<256x4xf32>
    %216 = arith.addf %209, %215 : vector<256x4xf32>
    %c1_258 = arith.constant 1 : index
    %c5_259 = arith.constant 5 : index
    %c0_260 = arith.constant 0 : index
    %c0_261 = arith.constant 0 : index
    %217 = vector.load %arg10[%c1_258, %c5_259, %c0_260, %c0_261] : memref<7x26x16x16xbf16, #tpu.memory_space<vmem>>, vector<1x16x16x16xbf16>
    %218 = vector.shape_cast %217 : vector<1x16x16x16xbf16> to vector<16x16x16xbf16>
    %219 = vector.shape_cast %218 : vector<16x16x16xbf16> to vector<256x16xbf16>
    %c1_262 = arith.constant 1 : index
    %c3_263 = arith.constant 3 : index
    %c0_264 = arith.constant 0 : index
    %c0_265 = arith.constant 0 : index
    %220 = vector.load %arg3[%c1_262, %c3_263, %c0_264, %c0_265] : memref<3x9x16x4xbf16, #tpu.memory_space<vmem>>, vector<1x1x16x4xbf16>
    %221 = vector.shape_cast %220 : vector<1x1x16x4xbf16> to vector<16x4xbf16>
    %cst_266 = arith.constant dense<0.000000e+00> : vector<256x4xf32>
    %222 = tpu.matmul %219, %221, %cst_266 {dimension_numbers = #tpu.dot_dimension_numbers<[1], [0], [0], [1], [0, 0, 1, 1], [], []>} : vector<256x16xbf16>, vector<16x4xbf16>, vector<256x4xf32> -> vector<256x4xf32>
    %223 = arith.addf %216, %222 : vector<256x4xf32>
    %c3_267 = arith.constant 3 : index
    %c5_268 = arith.constant 5 : index
    %c0_269 = arith.constant 0 : index
    %c0_270 = arith.constant 0 : index
    %224 = vector.load %arg10[%c3_267, %c5_268, %c0_269, %c0_270] : memref<7x26x16x16xbf16, #tpu.memory_space<vmem>>, vector<1x16x16x16xbf16>
    %225 = vector.shape_cast %224 : vector<1x16x16x16xbf16> to vector<16x16x16xbf16>
    %226 = vector.shape_cast %225 : vector<16x16x16xbf16> to vector<256x16xbf16>
    %c1_271 = arith.constant 1 : index
    %c4_272 = arith.constant 4 : index
    %c0_273 = arith.constant 0 : index
    %c0_274 = arith.constant 0 : index
    %227 = vector.load %arg3[%c1_271, %c4_272, %c0_273, %c0_274] : memref<3x9x16x4xbf16, #tpu.memory_space<vmem>>, vector<1x1x16x4xbf16>
    %228 = vector.shape_cast %227 : vector<1x1x16x4xbf16> to vector<16x4xbf16>
    %cst_275 = arith.constant dense<0.000000e+00> : vector<256x4xf32>
    %229 = tpu.matmul %226, %228, %cst_275 {dimension_numbers = #tpu.dot_dimension_numbers<[1], [0], [0], [1], [0, 0, 1, 1], [], []>} : vector<256x16xbf16>, vector<16x4xbf16>, vector<256x4xf32> -> vector<256x4xf32>
    %230 = arith.addf %223, %229 : vector<256x4xf32>
    %c5_276 = arith.constant 5 : index
    %c5_277 = arith.constant 5 : index
    %c0_278 = arith.constant 0 : index
    %c0_279 = arith.constant 0 : index
    %231 = vector.load %arg10[%c5_276, %c5_277, %c0_278, %c0_279] : memref<7x26x16x16xbf16, #tpu.memory_space<vmem>>, vector<1x16x16x16xbf16>
    %232 = vector.shape_cast %231 : vector<1x16x16x16xbf16> to vector<16x16x16xbf16>
    %233 = vector.shape_cast %232 : vector<16x16x16xbf16> to vector<256x16xbf16>
    %c1_280 = arith.constant 1 : index
    %c5_281 = arith.constant 5 : index
    %c0_282 = arith.constant 0 : index
    %c0_283 = arith.constant 0 : index
    %234 = vector.load %arg3[%c1_280, %c5_281, %c0_282, %c0_283] : memref<3x9x16x4xbf16, #tpu.memory_space<vmem>>, vector<1x1x16x4xbf16>
    %235 = vector.shape_cast %234 : vector<1x1x16x4xbf16> to vector<16x4xbf16>
    %cst_284 = arith.constant dense<0.000000e+00> : vector<256x4xf32>
    %236 = tpu.matmul %233, %235, %cst_284 {dimension_numbers = #tpu.dot_dimension_numbers<[1], [0], [0], [1], [0, 0, 1, 1], [], []>} : vector<256x16xbf16>, vector<16x4xbf16>, vector<256x4xf32> -> vector<256x4xf32>
    %237 = arith.addf %230, %236 : vector<256x4xf32>
    %c1_285 = arith.constant 1 : index
    %c7_286 = arith.constant 7 : index
    %c0_287 = arith.constant 0 : index
    %c0_288 = arith.constant 0 : index
    %238 = vector.load %arg10[%c1_285, %c7_286, %c0_287, %c0_288] : memref<7x26x16x16xbf16, #tpu.memory_space<vmem>>, vector<1x16x16x16xbf16>
    %239 = vector.shape_cast %238 : vector<1x16x16x16xbf16> to vector<16x16x16xbf16>
    %240 = vector.shape_cast %239 : vector<16x16x16xbf16> to vector<256x16xbf16>
    %c1_289 = arith.constant 1 : index
    %c6_290 = arith.constant 6 : index
    %c0_291 = arith.constant 0 : index
    %c0_292 = arith.constant 0 : index
    %241 = vector.load %arg3[%c1_289, %c6_290, %c0_291, %c0_292] : memref<3x9x16x4xbf16, #tpu.memory_space<vmem>>, vector<1x1x16x4xbf16>
    %242 = vector.shape_cast %241 : vector<1x1x16x4xbf16> to vector<16x4xbf16>
    %cst_293 = arith.constant dense<0.000000e+00> : vector<256x4xf32>
    %243 = tpu.matmul %240, %242, %cst_293 {dimension_numbers = #tpu.dot_dimension_numbers<[1], [0], [0], [1], [0, 0, 1, 1], [], []>} : vector<256x16xbf16>, vector<16x4xbf16>, vector<256x4xf32> -> vector<256x4xf32>
    %244 = arith.addf %237, %243 : vector<256x4xf32>
    %c3_294 = arith.constant 3 : index
    %c7_295 = arith.constant 7 : index
    %c0_296 = arith.constant 0 : index
    %c0_297 = arith.constant 0 : index
    %245 = vector.load %arg10[%c3_294, %c7_295, %c0_296, %c0_297] : memref<7x26x16x16xbf16, #tpu.memory_space<vmem>>, vector<1x16x16x16xbf16>
    %246 = vector.shape_cast %245 : vector<1x16x16x16xbf16> to vector<16x16x16xbf16>
    %247 = vector.shape_cast %246 : vector<16x16x16xbf16> to vector<256x16xbf16>
    %c1_298 = arith.constant 1 : index
    %c7_299 = arith.constant 7 : index
    %c0_300 = arith.constant 0 : index
    %c0_301 = arith.constant 0 : index
    %248 = vector.load %arg3[%c1_298, %c7_299, %c0_300, %c0_301] : memref<3x9x16x4xbf16, #tpu.memory_space<vmem>>, vector<1x1x16x4xbf16>
    %249 = vector.shape_cast %248 : vector<1x1x16x4xbf16> to vector<16x4xbf16>
    %cst_302 = arith.constant dense<0.000000e+00> : vector<256x4xf32>
    %250 = tpu.matmul %247, %249, %cst_302 {dimension_numbers = #tpu.dot_dimension_numbers<[1], [0], [0], [1], [0, 0, 1, 1], [], []>} : vector<256x16xbf16>, vector<16x4xbf16>, vector<256x4xf32> -> vector<256x4xf32>
    %251 = arith.addf %244, %250 : vector<256x4xf32>
    %c5_303 = arith.constant 5 : index
    %c7_304 = arith.constant 7 : index
    %c0_305 = arith.constant 0 : index
    %c0_306 = arith.constant 0 : index
    %252 = vector.load %arg10[%c5_303, %c7_304, %c0_305, %c0_306] : memref<7x26x16x16xbf16, #tpu.memory_space<vmem>>, vector<1x16x16x16xbf16>
    %253 = vector.shape_cast %252 : vector<1x16x16x16xbf16> to vector<16x16x16xbf16>
    %254 = vector.shape_cast %253 : vector<16x16x16xbf16> to vector<256x16xbf16>
    %c1_307 = arith.constant 1 : index
    %c8_308 = arith.constant 8 : index
    %c0_309 = arith.constant 0 : index
    %c0_310 = arith.constant 0 : index
    %255 = vector.load %arg3[%c1_307, %c8_308, %c0_309, %c0_310] : memref<3x9x16x4xbf16, #tpu.memory_space<vmem>>, vector<1x1x16x4xbf16>
    %256 = vector.shape_cast %255 : vector<1x1x16x4xbf16> to vector<16x4xbf16>
    %cst_311 = arith.constant dense<0.000000e+00> : vector<256x4xf32>
    %257 = tpu.matmul %254, %256, %cst_311 {dimension_numbers = #tpu.dot_dimension_numbers<[1], [0], [0], [1], [0, 0, 1, 1], [], []>} : vector<256x16xbf16>, vector<16x4xbf16>, vector<256x4xf32> -> vector<256x4xf32>
    %258 = arith.addf %251, %257 : vector<256x4xf32>
    %c2_312 = arith.constant 2 : index
    %c0_313 = arith.constant 0 : index
    %259 = vector.load %arg7[%c2_312, %c0_313] : memref<5x4xf32, #tpu.memory_space<vmem>>, vector<1x4xf32>
    %260 = vector.broadcast %259 : vector<1x4xf32> to vector<256x4xf32>
    %261 = arith.addf %258, %260 : vector<256x4xf32>
    %cst_314 = arith.constant 0.000000e+00 : f32
    %262 = vector.broadcast %cst_314 : f32 to vector<256x4xf32>
    %263 = arith.subf %262, %261 : vector<256x4xf32>
    %264 = math.exp %263 : vector<256x4xf32>
    %cst_315 = arith.constant 1.000000e+00 : f32
    %265 = vector.broadcast %cst_315 : f32 to vector<256x4xf32>
    %266 = arith.addf %265, %264 : vector<256x4xf32>
    %267 = tpu.reciprocal %266 {approx = true} : vector<256x4xf32> -> vector<256x4xf32>
    %268 = arith.mulf %261, %267 : vector<256x4xf32>
    %269 = arith.truncf %268 : vector<256x4xf32> to vector<256x4xbf16>
    %c0_316 = arith.constant 0 : index
    %c8_317 = arith.constant 8 : index
    %270 = vector.load %arg11[%c0_316, %c8_317] : memref<256x16xbf16, #tpu.memory_space<vmem>>, vector<256x4xbf16>
    tpu.vector_store %arg11[%c0_316, %c8_317], %269 {strides = array<i32>} : memref<256x16xbf16, #tpu.memory_space<vmem>>, vector<256x4xbf16>,
    %cst_318 = arith.constant 0.000000e+00 : f32
    %271 = vector.broadcast %cst_318 : f32 to vector<256x4xf32>
    %c0_319 = arith.constant 0 : index
    %c0_320 = arith.constant 0 : index
    %c0_321 = arith.constant 0 : index
    %c0_322 = arith.constant 0 : index
    %272 = vector.load %arg10[%c0_319, %c0_320, %c0_321, %c0_322] : memref<7x26x16x16xbf16, #tpu.memory_space<vmem>>, vector<1x16x16x16xbf16>
    %273 = vector.shape_cast %272 : vector<1x16x16x16xbf16> to vector<16x16x16xbf16>
    %274 = vector.shape_cast %273 : vector<16x16x16xbf16> to vector<256x16xbf16>
    %c2_323 = arith.constant 2 : index
    %c0_324 = arith.constant 0 : index
    %c0_325 = arith.constant 0 : index
    %c0_326 = arith.constant 0 : index
    %275 = vector.load %arg3[%c2_323, %c0_324, %c0_325, %c0_326] : memref<3x9x16x4xbf16, #tpu.memory_space<vmem>>, vector<1x1x16x4xbf16>
    %276 = vector.shape_cast %275 : vector<1x1x16x4xbf16> to vector<16x4xbf16>
    %cst_327 = arith.constant dense<0.000000e+00> : vector<256x4xf32>
    %277 = tpu.matmul %274, %276, %cst_327 {dimension_numbers = #tpu.dot_dimension_numbers<[1], [0], [0], [1], [0, 0, 1, 1], [], []>} : vector<256x16xbf16>, vector<16x4xbf16>, vector<256x4xf32> -> vector<256x4xf32>
    %278 = arith.addf %271, %277 : vector<256x4xf32>
    %c3_328 = arith.constant 3 : index
    %c0_329 = arith.constant 0 : index
    %c0_330 = arith.constant 0 : index
    %c0_331 = arith.constant 0 : index
    %279 = vector.load %arg10[%c3_328, %c0_329, %c0_330, %c0_331] : memref<7x26x16x16xbf16, #tpu.memory_space<vmem>>, vector<1x16x16x16xbf16>
    %280 = vector.shape_cast %279 : vector<1x16x16x16xbf16> to vector<16x16x16xbf16>
    %281 = vector.shape_cast %280 : vector<16x16x16xbf16> to vector<256x16xbf16>
    %c2_332 = arith.constant 2 : index
    %c1_333 = arith.constant 1 : index
    %c0_334 = arith.constant 0 : index
    %c0_335 = arith.constant 0 : index
    %282 = vector.load %arg3[%c2_332, %c1_333, %c0_334, %c0_335] : memref<3x9x16x4xbf16, #tpu.memory_space<vmem>>, vector<1x1x16x4xbf16>
    %283 = vector.shape_cast %282 : vector<1x1x16x4xbf16> to vector<16x4xbf16>
    %cst_336 = arith.constant dense<0.000000e+00> : vector<256x4xf32>
    %284 = tpu.matmul %281, %283, %cst_336 {dimension_numbers = #tpu.dot_dimension_numbers<[1], [0], [0], [1], [0, 0, 1, 1], [], []>} : vector<256x16xbf16>, vector<16x4xbf16>, vector<256x4xf32> -> vector<256x4xf32>
    %285 = arith.addf %278, %284 : vector<256x4xf32>
    %c6_337 = arith.constant 6 : index
    %c0_338 = arith.constant 0 : index
    %c0_339 = arith.constant 0 : index
    %c0_340 = arith.constant 0 : index
    %286 = vector.load %arg10[%c6_337, %c0_338, %c0_339, %c0_340] : memref<7x26x16x16xbf16, #tpu.memory_space<vmem>>, vector<1x16x16x16xbf16>
    %287 = vector.shape_cast %286 : vector<1x16x16x16xbf16> to vector<16x16x16xbf16>
    %288 = vector.shape_cast %287 : vector<16x16x16xbf16> to vector<256x16xbf16>
    %c2_341 = arith.constant 2 : index
    %c2_342 = arith.constant 2 : index
    %c0_343 = arith.constant 0 : index
    %c0_344 = arith.constant 0 : index
    %289 = vector.load %arg3[%c2_341, %c2_342, %c0_343, %c0_344] : memref<3x9x16x4xbf16, #tpu.memory_space<vmem>>, vector<1x1x16x4xbf16>
    %290 = vector.shape_cast %289 : vector<1x1x16x4xbf16> to vector<16x4xbf16>
    %cst_345 = arith.constant dense<0.000000e+00> : vector<256x4xf32>
    %291 = tpu.matmul %288, %290, %cst_345 {dimension_numbers = #tpu.dot_dimension_numbers<[1], [0], [0], [1], [0, 0, 1, 1], [], []>} : vector<256x16xbf16>, vector<16x4xbf16>, vector<256x4xf32> -> vector<256x4xf32>
    %292 = arith.addf %285, %291 : vector<256x4xf32>
    %c0_346 = arith.constant 0 : index
    %c5_347 = arith.constant 5 : index
    %c0_348 = arith.constant 0 : index
    %c0_349 = arith.constant 0 : index
    %293 = vector.load %arg10[%c0_346, %c5_347, %c0_348, %c0_349] : memref<7x26x16x16xbf16, #tpu.memory_space<vmem>>, vector<1x16x16x16xbf16>
    %294 = vector.shape_cast %293 : vector<1x16x16x16xbf16> to vector<16x16x16xbf16>
    %295 = vector.shape_cast %294 : vector<16x16x16xbf16> to vector<256x16xbf16>
    %c2_350 = arith.constant 2 : index
    %c3_351 = arith.constant 3 : index
    %c0_352 = arith.constant 0 : index
    %c0_353 = arith.constant 0 : index
    %296 = vector.load %arg3[%c2_350, %c3_351, %c0_352, %c0_353] : memref<3x9x16x4xbf16, #tpu.memory_space<vmem>>, vector<1x1x16x4xbf16>
    %297 = vector.shape_cast %296 : vector<1x1x16x4xbf16> to vector<16x4xbf16>
    %cst_354 = arith.constant dense<0.000000e+00> : vector<256x4xf32>
    %298 = tpu.matmul %295, %297, %cst_354 {dimension_numbers = #tpu.dot_dimension_numbers<[1], [0], [0], [1], [0, 0, 1, 1], [], []>} : vector<256x16xbf16>, vector<16x4xbf16>, vector<256x4xf32> -> vector<256x4xf32>
    %299 = arith.addf %292, %298 : vector<256x4xf32>
    %c3_355 = arith.constant 3 : index
    %c5_356 = arith.constant 5 : index
    %c0_357 = arith.constant 0 : index
    %c0_358 = arith.constant 0 : index
    %300 = vector.load %arg10[%c3_355, %c5_356, %c0_357, %c0_358] : memref<7x26x16x16xbf16, #tpu.memory_space<vmem>>, vector<1x16x16x16xbf16>
    %301 = vector.shape_cast %300 : vector<1x16x16x16xbf16> to vector<16x16x16xbf16>
    %302 = vector.shape_cast %301 : vector<16x16x16xbf16> to vector<256x16xbf16>
    %c2_359 = arith.constant 2 : index
    %c4_360 = arith.constant 4 : index
    %c0_361 = arith.constant 0 : index
    %c0_362 = arith.constant 0 : index
    %303 = vector.load %arg3[%c2_359, %c4_360, %c0_361, %c0_362] : memref<3x9x16x4xbf16, #tpu.memory_space<vmem>>, vector<1x1x16x4xbf16>
    %304 = vector.shape_cast %303 : vector<1x1x16x4xbf16> to vector<16x4xbf16>
    %cst_363 = arith.constant dense<0.000000e+00> : vector<256x4xf32>
    %305 = tpu.matmul %302, %304, %cst_363 {dimension_numbers = #tpu.dot_dimension_numbers<[1], [0], [0], [1], [0, 0, 1, 1], [], []>} : vector<256x16xbf16>, vector<16x4xbf16>, vector<256x4xf32> -> vector<256x4xf32>
    %306 = arith.addf %299, %305 : vector<256x4xf32>
    %c6_364 = arith.constant 6 : index
    %c5_365 = arith.constant 5 : index
    %c0_366 = arith.constant 0 : index
    %c0_367 = arith.constant 0 : index
    %307 = vector.load %arg10[%c6_364, %c5_365, %c0_366, %c0_367] : memref<7x26x16x16xbf16, #tpu.memory_space<vmem>>, vector<1x16x16x16xbf16>
    %308 = vector.shape_cast %307 : vector<1x16x16x16xbf16> to vector<16x16x16xbf16>
    %309 = vector.shape_cast %308 : vector<16x16x16xbf16> to vector<256x16xbf16>
    %c2_368 = arith.constant 2 : index
    %c5_369 = arith.constant 5 : index
    %c0_370 = arith.constant 0 : index
    %c0_371 = arith.constant 0 : index
    %310 = vector.load %arg3[%c2_368, %c5_369, %c0_370, %c0_371] : memref<3x9x16x4xbf16, #tpu.memory_space<vmem>>, vector<1x1x16x4xbf16>
    %311 = vector.shape_cast %310 : vector<1x1x16x4xbf16> to vector<16x4xbf16>
    %cst_372 = arith.constant dense<0.000000e+00> : vector<256x4xf32>
    %312 = tpu.matmul %309, %311, %cst_372 {dimension_numbers = #tpu.dot_dimension_numbers<[1], [0], [0], [1], [0, 0, 1, 1], [], []>} : vector<256x16xbf16>, vector<16x4xbf16>, vector<256x4xf32> -> vector<256x4xf32>
    %313 = arith.addf %306, %312 : vector<256x4xf32>
    %c0_373 = arith.constant 0 : index
    %c10 = arith.constant 10 : index
    %c0_374 = arith.constant 0 : index
    %c0_375 = arith.constant 0 : index
    %314 = vector.load %arg10[%c0_373, %c10, %c0_374, %c0_375] : memref<7x26x16x16xbf16, #tpu.memory_space<vmem>>, vector<1x16x16x16xbf16>
    %315 = vector.shape_cast %314 : vector<1x16x16x16xbf16> to vector<16x16x16xbf16>
    %316 = vector.shape_cast %315 : vector<16x16x16xbf16> to vector<256x16xbf16>
    %c2_376 = arith.constant 2 : index
    %c6_377 = arith.constant 6 : index
    %c0_378 = arith.constant 0 : index
    %c0_379 = arith.constant 0 : index
    %317 = vector.load %arg3[%c2_376, %c6_377, %c0_378, %c0_379] : memref<3x9x16x4xbf16, #tpu.memory_space<vmem>>, vector<1x1x16x4xbf16>
    %318 = vector.shape_cast %317 : vector<1x1x16x4xbf16> to vector<16x4xbf16>
    %cst_380 = arith.constant dense<0.000000e+00> : vector<256x4xf32>
    %319 = tpu.matmul %316, %318, %cst_380 {dimension_numbers = #tpu.dot_dimension_numbers<[1], [0], [0], [1], [0, 0, 1, 1], [], []>} : vector<256x16xbf16>, vector<16x4xbf16>, vector<256x4xf32> -> vector<256x4xf32>
    %320 = arith.addf %313, %319 : vector<256x4xf32>
    %c3_381 = arith.constant 3 : index
    %c10_382 = arith.constant 10 : index
    %c0_383 = arith.constant 0 : index
    %c0_384 = arith.constant 0 : index
    %321 = vector.load %arg10[%c3_381, %c10_382, %c0_383, %c0_384] : memref<7x26x16x16xbf16, #tpu.memory_space<vmem>>, vector<1x16x16x16xbf16>
    %322 = vector.shape_cast %321 : vector<1x16x16x16xbf16> to vector<16x16x16xbf16>
    %323 = vector.shape_cast %322 : vector<16x16x16xbf16> to vector<256x16xbf16>
    %c2_385 = arith.constant 2 : index
    %c7_386 = arith.constant 7 : index
    %c0_387 = arith.constant 0 : index
    %c0_388 = arith.constant 0 : index
    %324 = vector.load %arg3[%c2_385, %c7_386, %c0_387, %c0_388] : memref<3x9x16x4xbf16, #tpu.memory_space<vmem>>, vector<1x1x16x4xbf16>
    %325 = vector.shape_cast %324 : vector<1x1x16x4xbf16> to vector<16x4xbf16>
    %cst_389 = arith.constant dense<0.000000e+00> : vector<256x4xf32>
    %326 = tpu.matmul %323, %325, %cst_389 {dimension_numbers = #tpu.dot_dimension_numbers<[1], [0], [0], [1], [0, 0, 1, 1], [], []>} : vector<256x16xbf16>, vector<16x4xbf16>, vector<256x4xf32> -> vector<256x4xf32>
    %327 = arith.addf %320, %326 : vector<256x4xf32>
    %c6_390 = arith.constant 6 : index
    %c10_391 = arith.constant 10 : index
    %c0_392 = arith.constant 0 : index
    %c0_393 = arith.constant 0 : index
    %328 = vector.load %arg10[%c6_390, %c10_391, %c0_392, %c0_393] : memref<7x26x16x16xbf16, #tpu.memory_space<vmem>>, vector<1x16x16x16xbf16>
    %329 = vector.shape_cast %328 : vector<1x16x16x16xbf16> to vector<16x16x16xbf16>
    %330 = vector.shape_cast %329 : vector<16x16x16xbf16> to vector<256x16xbf16>
    %c2_394 = arith.constant 2 : index
    %c8_395 = arith.constant 8 : index
    %c0_396 = arith.constant 0 : index
    %c0_397 = arith.constant 0 : index
    %331 = vector.load %arg3[%c2_394, %c8_395, %c0_396, %c0_397] : memref<3x9x16x4xbf16, #tpu.memory_space<vmem>>, vector<1x1x16x4xbf16>
    %332 = vector.shape_cast %331 : vector<1x1x16x4xbf16> to vector<16x4xbf16>
    %cst_398 = arith.constant dense<0.000000e+00> : vector<256x4xf32>
    %333 = tpu.matmul %330, %332, %cst_398 {dimension_numbers = #tpu.dot_dimension_numbers<[1], [0], [0], [1], [0, 0, 1, 1], [], []>} : vector<256x16xbf16>, vector<16x4xbf16>, vector<256x4xf32> -> vector<256x4xf32>
    %334 = arith.addf %327, %333 : vector<256x4xf32>
    %c3_399 = arith.constant 3 : index
    %c0_400 = arith.constant 0 : index
    %335 = vector.load %arg7[%c3_399, %c0_400] : memref<5x4xf32, #tpu.memory_space<vmem>>, vector<1x4xf32>
    %336 = vector.broadcast %335 : vector<1x4xf32> to vector<256x4xf32>
    %337 = arith.addf %334, %336 : vector<256x4xf32>
    %cst_401 = arith.constant 0.000000e+00 : f32
    %338 = vector.broadcast %cst_401 : f32 to vector<256x4xf32>
    %339 = arith.subf %338, %337 : vector<256x4xf32>
    %340 = math.exp %339 : vector<256x4xf32>
    %cst_402 = arith.constant 1.000000e+00 : f32
    %341 = vector.broadcast %cst_402 : f32 to vector<256x4xf32>
    %342 = arith.addf %341, %340 : vector<256x4xf32>
    %343 = tpu.reciprocal %342 {approx = true} : vector<256x4xf32> -> vector<256x4xf32>
    %344 = arith.mulf %337, %343 : vector<256x4xf32>
    %345 = arith.truncf %344 : vector<256x4xf32> to vector<256x4xbf16>
    %c0_403 = arith.constant 0 : index
    %c12 = arith.constant 12 : index
    %346 = vector.load %arg11[%c0_403, %c12] : memref<256x16xbf16, #tpu.memory_space<vmem>>, vector<256x4xbf16>
    tpu.vector_store %arg11[%c0_403, %c12], %345 {strides = array<i32>} : memref<256x16xbf16, #tpu.memory_space<vmem>>, vector<256x4xbf16>,
    %347 = arith.extf %104 : vector<256x16xbf16> to vector<256x16xf32>
    %cst_404 = arith.constant dense<0.000000e+00> : vector<16xf32>
    %348 = vector.multi_reduction <add>, %347, %cst_404 [0] : vector<256x16xf32> to vector<16xf32>
    %349 = vector.shape_cast %348 : vector<16xf32> to vector<1x16xf32>
    %cst_405 = arith.constant 2.560000e+02 : f32
    %350 = vector.broadcast %cst_405 : f32 to vector<1x16xf32>
    %351 = arith.divf %349, %350 : vector<1x16xf32>
    %352 = arith.truncf %351 : vector<1x16xf32> to vector<1x16xbf16>
    %c0_406 = arith.constant 0 : index
    %c0_407 = arith.constant 0 : index
    %353 = vector.load %arg4[%c0_406, %c0_407] : memref<16x4xbf16, #tpu.memory_space<vmem>>, vector<16x4xbf16>
    %cst_408 = arith.constant dense<0.000000e+00> : vector<1x4xf32>
    %354 = tpu.matmul %352, %353, %cst_408 {dimension_numbers = #tpu.dot_dimension_numbers<[1], [0], [0], [1], [0, 0, 1, 1], [], []>} : vector<1x16xbf16>, vector<16x4xbf16>, vector<1x4xf32> -> vector<1x4xf32>
    %c4_409 = arith.constant 4 : index
    %c0_410 = arith.constant 0 : index
    %355 = vector.load %arg7[%c4_409, %c0_410] : memref<5x4xf32, #tpu.memory_space<vmem>>, vector<1x4xf32>
    %356 = arith.addf %354, %355 : vector<1x4xf32>
    %cst_411 = arith.constant 0.000000e+00 : f32
    %357 = vector.broadcast %cst_411 : f32 to vector<1x4xf32>
    %358 = arith.subf %357, %356 : vector<1x4xf32>
    %359 = math.exp %358 : vector<1x4xf32>
    %cst_412 = arith.constant 1.000000e+00 : f32
    %360 = vector.broadcast %cst_412 : f32 to vector<1x4xf32>
    %361 = arith.addf %360, %359 : vector<1x4xf32>
    %362 = tpu.reciprocal %361 {approx = true} : vector<1x4xf32> -> vector<1x4xf32>
    %363 = arith.mulf %356, %362 : vector<1x4xf32>
    %364 = arith.truncf %363 : vector<1x4xf32> to vector<1x4xbf16>
    %c0_413 = arith.constant 0 : index
    %c0_414 = arith.constant 0 : index
    %365 = vector.load %arg6[%c0_413, %c0_414] : memref<4x16xbf16, #tpu.memory_space<vmem>>, vector<4x16xbf16>
    %cst_415 = arith.constant dense<0.000000e+00> : vector<1x16xf32>
    %366 = tpu.matmul %364, %365, %cst_415 {dimension_numbers = #tpu.dot_dimension_numbers<[1], [0], [0], [1], [0, 0, 1, 1], [], []>} : vector<1x4xbf16>, vector<4x16xbf16>, vector<1x16xf32> -> vector<1x16xf32>
    %c0_416 = arith.constant 0 : index
    %c0_417 = arith.constant 0 : index
    %367 = vector.load %arg8[%c0_416, %c0_417] : memref<1x16xf32, #tpu.memory_space<vmem>>, vector<1x16xf32>
    %368 = arith.addf %366, %367 : vector<1x16xf32>
    %c0_418 = arith.constant 0 : index
    %c0_419 = arith.constant 0 : index
    %369 = vector.load %arg11[%c0_418, %c0_419] : memref<256x16xbf16, #tpu.memory_space<vmem>>, vector<256x16xbf16>
    %c0_420 = arith.constant 0 : index
    %c0_421 = arith.constant 0 : index
    %370 = vector.load %arg5[%c0_420, %c0_421] : memref<16x16xbf16, #tpu.memory_space<vmem>>, vector<16x16xbf16>
    %cst_422 = arith.constant dense<0.000000e+00> : vector<256x16xf32>
    %371 = tpu.matmul %369, %370, %cst_422 {dimension_numbers = #tpu.dot_dimension_numbers<[1], [0], [0], [1], [0, 0, 1, 1], [], []>} : vector<256x16xbf16>, vector<16x16xbf16>, vector<256x16xf32> -> vector<256x16xf32>
    %372 = vector.broadcast %368 : vector<1x16xf32> to vector<256x16xf32>
    %373 = arith.addf %371, %372 : vector<256x16xf32>
    %cst_423 = arith.constant 0.000000e+00 : f32
    %374 = vector.broadcast %cst_423 : f32 to vector<256x16xf32>
    %375 = arith.subf %374, %373 : vector<256x16xf32>
    %376 = math.exp %375 : vector<256x16xf32>
    %cst_424 = arith.constant 1.000000e+00 : f32
    %377 = vector.broadcast %cst_424 : f32 to vector<256x16xf32>
    %378 = arith.addf %377, %376 : vector<256x16xf32>
    %379 = tpu.reciprocal %378 {approx = true} : vector<256x16xf32> -> vector<256x16xf32>
    %380 = arith.mulf %373, %379 : vector<256x16xf32>
    %c0_425 = arith.constant 0 : index
    %c0_426 = arith.constant 0 : index
    %c0_427 = arith.constant 0 : index
    %381 = vector.load %arg9[%c0_425, %c0_426, %c0_427] : memref<1x256x16xf32, #tpu.memory_space<vmem>>, vector<1x256x16xf32>
    %382 = vector.shape_cast %381 : vector<1x256x16xf32> to vector<256x16xf32>
    %383 = vector.shape_cast %380 : vector<256x16xf32> to vector<1x256x16xf32>
    tpu.vector_store %arg9[%c0_425, %c0_426, %c0_427], %383 {strides = array<i32>} : memref<1x256x16xf32, #tpu.memory_space<vmem>>, vector<1x256x16xf32>,
    return
  }
  func.func @transform_0(%arg0: i32) -> (i32, i32, i32, i32) {
    %c0_i32 = arith.constant 0 : i32
    %c0_i32_0 = arith.constant 0 : i32
    %c0_i32_1 = arith.constant 0 : i32
    %c0_i32_2 = arith.constant 0 : i32
    return %arg0, %c0_i32, %c0_i32_0, %c0_i32_1 : i32, i32, i32, i32
  }
  func.func @transform_1(%arg0: i32) -> (i32, i32) {
    %c0_i32 = arith.constant 0 : i32
    %c0_i32_0 = arith.constant 0 : i32
    %c0_i32_1 = arith.constant 0 : i32
    return %c0_i32, %c0_i32_0 : i32, i32
  }
  func.func @transform_2(%arg0: i32) -> (i32, i32, i32, i32) {
    %c0_i32 = arith.constant 0 : i32
    %c0_i32_0 = arith.constant 0 : i32
    %c0_i32_1 = arith.constant 0 : i32
    %c0_i32_2 = arith.constant 0 : i32
    %c0_i32_3 = arith.constant 0 : i32
    return %c0_i32, %c0_i32_0, %c0_i32_1, %c0_i32_2 : i32, i32, i32, i32
  }
  func.func @transform_3(%arg0: i32) -> (i32, i32) {
    %c0_i32 = arith.constant 0 : i32
    %c0_i32_0 = arith.constant 0 : i32
    %c0_i32_1 = arith.constant 0 : i32
    return %c0_i32, %c0_i32_0 : i32, i32
  }
  func.func @transform_4(%arg0: i32) -> (i32, i32) {
    %c0_i32 = arith.constant 0 : i32
    %c0_i32_0 = arith.constant 0 : i32
    %c0_i32_1 = arith.constant 0 : i32
    return %c0_i32, %c0_i32_0 : i32, i32
  }
  func.func @transform_5(%arg0: i32) -> (i32, i32) {
    %c0_i32 = arith.constant 0 : i32
    %c0_i32_0 = arith.constant 0 : i32
    %c0_i32_1 = arith.constant 0 : i32
    return %c0_i32, %c0_i32_0 : i32, i32
  }
  func.func @transform_6(%arg0: i32) -> (i32, i32) {
    %c0_i32 = arith.constant 0 : i32
    %c0_i32_0 = arith.constant 0 : i32
    %c0_i32_1 = arith.constant 0 : i32
    return %c0_i32, %c0_i32_0 : i32, i32
  }
  func.func @transform_7(%arg0: i32) -> (i32, i32) {
    %c0_i32 = arith.constant 0 : i32
    %c0_i32_0 = arith.constant 0 : i32
    %c0_i32_1 = arith.constant 0 : i32
    return %c0_i32, %c0_i32_0 : i32, i32
  }
  func.func @transform_8(%arg0: i32) -> (i32, i32, i32) {
    %c0_i32 = arith.constant 0 : i32
    %c0_i32_0 = arith.constant 0 : i32
    %c0_i32_1 = arith.constant 0 : i32
    return %arg0, %c0_i32, %c0_i32_0 : i32, i32, i32
  }
}

</mosaic_0001>

<bundles_post_ra>
// kernel: run.1
= control target key start
LH: loop header
LB: loop body
LE: loop exit
PB: predicated region body
PF: predicated region fallthrough
CT: control target
= control target key end

     0   :  { %s15434_s27 = smov 0   ;;  %s18539_s0 = inlined_call_operand.vmem [shape: bf16[2,16,16,16], index: 0, kind: input, shape index: {}]   ;;  %s18540_s1 = inlined_call_operand.vmem [shape: bf16[16,4], index: 1, kind: input, shape index: {}]   ;;  %s18541_s2 = inlined_call_operand.vmem [shape: bf16[3,9,16,4], index: 2, kind: input, shape index: {}]   ;;  %s18542_s3 = inlined_call_operand.vmem [shape: bf16[16,4], index: 3, kind: input, shape index: {}]   ;;  %s18543_s4 = inlined_call_operand.vmem [shape: bf16[16,16], index: 4, kind: input, shape index: {}]   ;;  %s18544_s5 = inlined_call_operand.vmem [shape: bf16[4,16], index: 5, kind: input, shape index: {}]   ;;  %s18545_s6 = inlined_call_operand.vmem [shape: f32[5,4], index: 6, kind: input, shape index: {}]   ;;  %s18546_s7 = inlined_call_operand.vmem [shape: f32[1,16], index: 7, kind: input, shape index: {}]   ;;  %s18547_s8 = inlined_call_operand.vmem [shape: f32[2,256,16], index: 8, kind: output, shape index: {}]  }
   0x1 LB: > { %s11566_s28 = sadd.s32 4294967295, %s15381_s27   ;;  %p11570_p0 = scmp.ge.s32.totalorder %s15381_s27, 1  ;;  %s15381_s27 = sphi %s15434_s27, %s18_s27  }
   0x2   : > { %p262_p1 = scmp.lt.s32.totalorder %s15381_s27, 3 }
   0x4   : > { %p263_p2 = pnand %p11570_p0, %p262_p1 }
   0x6   : > { %266 = sbr.rel (%p263_p2) target bundleno = 1615 (0x64f), region = 52 }
   0xd   : > { %v14538_v0 = vld [vmem:[%s18540_s1] sm:$0xff]   ;;  %p296_p3 = scmp.lt.s32.totalorder %s11566_s28, 1  ;;  %v14543_v1 = vld [vmem:[%s18541_s2 + $0x18] sm:$0xff]   ;;  %vm691_vm0 = vcmask 122880   ;;  %vm883_vm1 = vsmask.f32 256 }
   0xe   : > { %12756 = vmatprep.subr.bf16.mxu0 %v14538_v0  ;;  %v903_v2 = vld [vmem:[#allocation2 + $0x1f8] sm:$0x1]  ;;  %vm307_vm2 = vcmask 130048   ;;  %13754 = vmatprep.subr.bf16.mxu1 %v14543_v1  ;;  %vm15451_vm3 = vmand %vm691_vm0, %vm883_vm1  ;;  %v15461_v5 = vld [vmem:[%s18541_s2 + $0x20] sm:$0xff]   ;;  %v15383_v10 = vmov 0   ;;  %vm1394_vm4 = vcmask 130055  }
   0xf   : > { %s18588_s28 = smov (!%p296_p3, %s11566_s28), 1  ;;  %12757 = vmatpush3.bf16.msra.mxu0 %v14538_v0  ;;  %13755 = vmatpush3.bf16.msra.mxu1 %v14543_v1  ;;  %v904_v4 = vsel %vm15451_vm3, 0, %v903_v2  ;;  %v15463_v6 = vld [vmem:[#allocation2 + $0x200] sm:$0x1]  ;;  %v15473_v8 = vld [vmem:[#allocation2 + $0x208] sm:$0x1] }
  0x10   : > { %s12257_s11 = sshll.u32 %s18588_s28, 7  ;;  %905 = vst [vmem:[#allocation2 + $0x1f8] sm:$0x1] %v904_v4  ;;  %v907_v7 = vsel %vm15451_vm3, 0, %v15463_v6  ;;  %v15475_v9 = vld [vmem:[#allocation2 + $0x210] sm:$0x1]  ;;  %12926 = vmatprep.subr.bf16.mxu1 %v15461_v5 }
  0x11   : > { %s15468_s16 = scalar_lea.vmem %s18539_s0, %s12257_s11  ;;  %1229 = vst.msk [vmem:[#allocation2 + $0x290] sm:$0xff] %vm307_vm2, %v15383_v10  ;;  %308 = vst.msk [vmem:[#allocation2] sm:$0xff] %vm307_vm2, %v15383_v10  ;;  %v910_v14 = vsel %vm15451_vm3, 0, %v15473_v8  ;;  %v913_v15 = vsel %vm15451_vm3, 0, %v15475_v9  ;;  %vm1174_vm5 = vsmask.f32 7938 }
  0x12   : > { %309 = vst.msk [vmem:[#allocation2 + $0x8] sm:$0xff] %vm307_vm2, %v15383_v10  ;;  %310 = vst.msk [vmem:[#allocation2 + $0x10] sm:$0xff] %vm307_vm2, %v15383_v10  ;;  %v2297_v11 = vld [vmem:[%s15468_s16] sm:$0xff]   ;;  %v2299_v12 = vld [vmem:[%s15468_s16 + $0x8] sm:$0xff]   ;;  %vm1395_vm7 = vsmask.f32 7966 }
  0x13   : > { %311 = vst.msk [vmem:[#allocation2 + $0x18] sm:$0xff] %vm307_vm2, %v15383_v10  ;;  %312 = vst.msk [vmem:[#allocation2 + $0x20] sm:$0xff] %vm307_vm2, %v15383_v10  ;;  %v2301_v13 = vld [vmem:[%s15468_s16 + $0x10] sm:$0xff]   ;;  %v10838_v16 = vunpack.c.l.bf16 %v2297_v11  ;;  %v10839_v17 = vunpack.c.h.bf16 %v2297_v11  ;;  %v10840_v18 = vunpack.c.l.bf16 %v2299_v12  ;;  %v10841_v19 = vunpack.c.h.bf16 %v2299_v12  ;;  %12758 = vmatprep.mubr.msk.bf16.mxu0 %vm307_vm2, %v2297_v11  ;;  %v2303_v26 = vld [vmem:[%s15468_s16 + $0x18] sm:$0xff]   ;;  %s15384_s23 = smov 4   ;;  %s15387_s20 = smov 8  }
  0x14   : > { %314 = vst.msk [vmem:[#allocation2 + $0xa8] sm:$0xff] %vm307_vm2, %v15383_v10  ;;  %315 = vst.msk [vmem:[#allocation2 + $0xb0] sm:$0xff] %vm307_vm2, %v15383_v10  ;;  %v14544_v20 = vld [vmem:[%s15468_s16 + $0x30] sm:$0xff]   ;;  %v10842_v24 = vunpack.c.l.bf16 %v2301_v13  ;;  %12759 = vmatmul.mubr.msk.bf16.vlgmr.msra.gmra.mrb[0].mxu0 %vm307_vm2, %v2299_v12  ;;  %v14547_v27 = vld [vmem:[%s15468_s16 + $0x38] sm:$0xff]   ;;  %v10843_v29 = vunpack.c.h.bf16 %v2301_v13  ;;  %v10844_v33 = vunpack.c.l.bf16 %v2303_v26  ;;  %v10845_v39 = vunpack.c.h.bf16 %v2303_v26  ;;  %s15388_s9 = smov 12   ;;  %s12258_s11 = sshll.u32 %s18588_s28, 8 }
  0x15   : > { %316 = vst.msk [vmem:[#allocation2 + $0xb8] sm:$0xff] %vm307_vm2, %v15383_v10  ;;  %317 = vst.msk [vmem:[#allocation2 + $0xc0] sm:$0xff] %vm307_vm2, %v15383_v10  ;;  %v10870_v21 = vsel %vm307_vm2, %v10838_v16, 0.0  ;;  %v10871_v22 = vsel %vm307_vm2, %v10839_v17, 0.0  ;;  %v10873_v23 = vsel %vm307_vm2, %v10840_v18, 0.0  ;;  %v10875_v28 = vsel %vm307_vm2, %v10841_v19, 0.0  ;;  %12762 = vmatprep.mubr.msk.bf16.mxu0 %vm307_vm2, %v2301_v13  ;;  %s18372_s13 = scalar_lea.vmem %s18547_s8, %s12258_s11 }
  0x16   : > { %318 = vst.msk [vmem:[#allocation2 + $0xc8] sm:$0xff] %vm307_vm2, %v15383_v10  ;;  %682 = vst.msk [vmem:[#allocation2 + $0xe8] sm:$0xff] %vm307_vm2, %v15383_v10  ;;  %v10872_v25 = vadd.f32 %v10871_v22, %v10870_v21  ;;  %v1088_v30 = vshrl.u32 %v14544_v20, 16  ;;  %v2305_v31 = vld [vmem:[%s15468_s16 + $0x20] sm:$0xff]   ;;  %v1091_v34 = vshll.u32 %v14544_v20, 16  ;;  %v10877_v36 = vsel %vm307_vm2, %v10842_v24, 0.0 }
  0x17   : > { %683 = vst.msk [vmem:[#allocation2 + $0xf0] sm:$0xff] %vm307_vm2, %v15383_v10  ;;  %685 = vst.msk [vmem:[#allocation2 + $0x178] sm:$0xff] %vm307_vm2, %v15383_v10  ;;  %v14549_v35 = vld [vmem:[%s15468_s16 + $0x40] sm:$0xff]   ;;  %v1194_v41 = vld [vmem:[#allocation2 + $0x1f8] sm:$0xff]  ;;  %v1095_v42 = vshrl.u32 %v14547_v27, 16  ;;  %v1098_v43 = vshll.u32 %v14547_v27, 16  ;;  %v10846_v53 = vunpack.c.l.bf16 %v2305_v31  ;;  %v10847_v54 = vunpack.c.h.bf16 %v2305_v31 }
  0x18   : > { %686 = vst.msk [vmem:[#allocation2 + $0x180] sm:$0xff] %vm307_vm2, %v15383_v10  ;;  %874 = vst.msk [vmem:[#allocation2 + $0x1c0] sm:$0xff] %vm307_vm2, %v15383_v10  ;;  %v10874_v32 = vadd.f32 %v10873_v23, %v10872_v25  ;;  %v1090_v37 = vrot.slane %v1088_v30, 7  ;;  %v10879_v44 = vsel %vm307_vm2, %v10843_v29, 0.0  ;;  %v14551_v46 = vld [vmem:[%s15468_s16 + $0x48] sm:$0xff]   ;;  %v10881_v48 = vsel %vm307_vm2, %v10844_v33, 0.0 }
  0x19   : > { %692 = vst.msk [vmem:[#allocation2 + $0xf8] sm:$0x1] %vm691_vm0, %v15383_v10  ;;  %693 = vst.msk [vmem:[#allocation2 + $0x100] sm:$0x1] %vm691_vm0, %v15383_v10  ;;  %v1097_v49 = vrot.slane %v1095_v42, 7  ;;  %v15662_v50 = vld [vmem:[%s15468_s16 + $0x28] sm:$0xff]  }
  0x1a   : > { %694 = vst.msk [vmem:[#allocation2 + $0x108] sm:$0x1] %vm691_vm0, %v15383_v10  ;;  %695 = vst.msk [vmem:[#allocation2 + $0x110] sm:$0x1] %vm691_vm0, %v15383_v10  ;;  %v10876_v38 = vadd.f32 %v10875_v28, %v10874_v32  ;;  %v1093_v45 = vor.u32 %v1091_v34, %v1090_v37  ;;  %v1102_v51 = vshrl.u32 %v14549_v35, 16  ;;  %v1105_v56 = vshll.u32 %v14549_v35, 16 }
  0x1b   : > { %696 = vst.msk [vmem:[#allocation2 + $0x118] sm:$0x1] %vm691_vm0, %v15383_v10  ;;  %697 = vst.msk [vmem:[#allocation2 + $0x120] sm:$0x1] %vm691_vm0, %v15383_v10  ;;  %v15669_v57 = vld [vmem:[%s18541_s2 + $0x28] sm:$0xff]   ;;  %v10883_v59 = vsel %vm307_vm2, %v10845_v39, 0.0  ;;  %v1100_v60 = vor.u32 %v1098_v43, %v1097_v49 }
  0x1c   : > { %698 = vst.msk [vmem:[#allocation2 + $0x128] sm:$0x1] %vm691_vm0, %v15383_v10  ;;  %699 = vst.msk [vmem:[#allocation2 + $0x130] sm:$0x1] %vm691_vm0, %v15383_v10  ;;  %v10878_v47 = vadd.f32 %v10877_v36, %v10876_v38  ;;  %12763 = vmatmul.mubr.msk.bf16.gmra.mrb[4].mxu0 %vm307_vm2, %v2303_v26  ;;  %v1104_v61 = vrot.slane %v1102_v51, 7  ;;  %v14553_v0 = vld [vmem:[%s15468_s16 + $0x50] sm:$0xff]  }
  0x1d   : > { %700 = vst.msk [vmem:[#allocation2 + $0x138] sm:$0x1] %vm691_vm0, %v15383_v10  ;;  %701 = vst.msk [vmem:[#allocation2 + $0x140] sm:$0x1] %vm691_vm0, %v15383_v10  ;;  %v915_v63 = vld [vmem:[#allocation2 + $0x218] sm:$0x1]  ;;  %12766 = vmatprep.mubr.msk.bf16.mxu0 %vm307_vm2, %v2305_v31 }
  0x1e   : > { %702 = vst.msk [vmem:[#allocation2 + $0x148] sm:$0x1] %vm691_vm0, %v15383_v10  ;;  %703 = vst.msk [vmem:[#allocation2 + $0x150] sm:$0x1] %vm691_vm0, %v15383_v10  ;;  %v10880_v58 = vadd.f32 %v10879_v44, %v10878_v47  ;;  %v1109_v1 = vshrl.u32 %v14551_v46, 16  ;;  %v1112_v2 = vshll.u32 %v14551_v46, 16  ;;  %v1107_v8 = vor.u32 %v1105_v56, %v1104_v61 }
  0x1f   : > { %704 = vst.msk [vmem:[#allocation2 + $0x158] sm:$0x1] %vm691_vm0, %v15383_v10  ;;  %705 = vst.msk [vmem:[#allocation2 + $0x160] sm:$0x1] %vm691_vm0, %v15383_v10  ;;  %v2309_v9 = vld [vmem:[%s15468_s16 + $0x30] sm:$0xff]   ;;  %v10887_v11 = vsel %vm307_vm2, %v10847_v54, 0.0 }
  0x20   : > { %706 = vst.msk [vmem:[#allocation2 + $0x168] sm:$0x1] %vm691_vm0, %v15383_v10  ;;  %707 = vst.msk [vmem:[#allocation2 + $0x170] sm:$0x1] %vm691_vm0, %v15383_v10  ;;  %v10882_v4 = vadd.f32 %v10881_v48, %v10880_v58  ;;  %v1111_v12 = vrot.slane %v1109_v1, 7  ;;  %v916_v17 = vsel %vm15451_vm3, 0, %v915_v63  ;;  %v10850_v26 = vunpack.c.l.bf16 %v2309_v9 }
  0x21   : > { %876 = vst.msk [vmem:[#allocation2 + $0x248] sm:$0xff] %vm307_vm2, %v15383_v10  ;;  %1225 = vst.msk [vmem:[#allocation2 + $0x270] sm:$0xff] %vm307_vm2, %v15383_v10  ;;  %v918_v18 = vld [vmem:[#allocation2 + $0x220] sm:$0x1]  ;;  %v14555_v19 = vld [vmem:[%s15468_s16 + $0x58] sm:$0xff]   ;;  %v1116_v21 = vshrl.u32 %v14553_v0, 16  ;;  %v10851_v32 = vunpack.c.h.bf16 %v2309_v9 }
  0x22   : > { %1226 = vst.msk [vmem:[#allocation2 + $0x278] sm:$0xff] %vm307_vm2, %v15383_v10  ;;  %1227 = vst.msk [vmem:[#allocation2 + $0x280] sm:$0xff] %vm307_vm2, %v15383_v10  ;;  %v1114_v20 = vor.u32 %v1112_v2, %v1111_v12  ;;  %v1119_v22 = vshll.u32 %v14553_v0, 16  ;;  %v2311_v24 = vld [vmem:[%s15468_s16 + $0x38] sm:$0xff]   ;;  %v921_v25 = vld [vmem:[#allocation2 + $0x228] sm:$0x1] }
  0x23   : > { %1228 = vst.msk [vmem:[#allocation2 + $0x288] sm:$0xff] %vm307_vm2, %v15383_v10  ;;  %1231 = vst.msk [vmem:[#allocation2 + $0x318] sm:$0xff] %vm307_vm2, %v15383_v10  ;;  %v1118_v28 = vrot.slane %v1116_v21, 7  ;;  %v919_v29 = vsel %vm15451_vm3, 0, %v918_v18  ;;  %v14557_v30 = vld [vmem:[%s15468_s16 + $0x60] sm:$0xff]   ;;  %v1123_v34 = vshrl.u32 %v14555_v19, 16  ;;  %v10852_v43 = vunpack.c.l.bf16 %v2311_v24 }
  0x24   : > { %1232 = vst.msk [vmem:[#allocation2 + $0x320] sm:$0xff] %vm307_vm2, %v15383_v10  ;;  %1233 = vst.msk [vmem:[#allocation2 + $0x328] sm:$0xff] %vm307_vm2, %v15383_v10  ;;  %12767 = vmatmul.mubr.msk.bf16.gmra.mrb[8].mxu0 %vm307_vm2, %v15662_v50  ;;  %v15702_v33 = vld [vmem:[%s15468_s16 + $0x40] sm:$0xff]   ;;  %v1126_v35 = vshll.u32 %v14555_v19, 16  ;;  %v924_v36 = vld [vmem:[#allocation2 + $0x230] sm:$0x1]  ;;  %v10853_v47 = vunpack.c.h.bf16 %v2311_v24 }
  0x25   : > { %1234 = vst.msk [vmem:[#allocation2 + $0x330] sm:$0xff] %vm307_vm2, %v15383_v10  ;;  %1235 = vst.msk [vmem:[#allocation2 + $0x338] sm:$0xff] %vm307_vm2, %v15383_v10  ;;  %v14565_v37 = vld [vmem:[%s15468_s16] sm:$0xff]   ;;  %12770 = vmatprep.mubr.msk.bf16.mxu0 %vm307_vm2, %v2309_v9  ;;  %v1121_v39 = vor.u32 %v1119_v22, %v1118_v28  ;;  %v1125_v44 = vrot.slane %v1123_v34, 7  ;;  %v10893_v46 = vsel %vm307_vm2, %v10850_v26, 0.0  ;;  %v1130_v48 = vshrl.u32 %v14557_v30, 16 }
  0x26   : > { %1386 = vst.msk [vmem:[#allocation2 + $0x360] sm:$0xff] %vm307_vm2, %v15383_v10  ;;  %1388 = vst.msk [vmem:[#allocation2 + $0x3e8] sm:$0xff] %vm307_vm2, %v15383_v10  ;;  %v1133_v49 = vshll.u32 %v14557_v30, 16  ;;  %v15716_v56 = vld [vmem:[%s15468_s16 + $0x70] sm:$0xff]   ;;  %v925_v61 = vsel %vm15451_vm3, 0, %v924_v36  ;;  %v10897_v1 = vsel %vm307_vm2, %v10852_v43, 0.0 }
  0x27   : > { %1739 = vst.msk [vmem:[#allocation2 + $0x428] sm:$0xff] %vm307_vm2, %v15383_v10  ;;  %1740 = vst.msk [vmem:[#allocation2 + $0x430] sm:$0xff] %vm307_vm2, %v15383_v10  ;;  %v1128_v54 = vor.u32 %v1126_v35, %v1125_v44  ;;  %v14571_v63 = vld [vmem:[%s15468_s16 + $0x10] sm:$0xff]   ;;  %v2315_v9 = vld [vmem:[%s15468_s16 + $0x48] sm:$0xff]   ;;  %v1144_v19 = vshrl.u32 %v15716_v56, 16  ;;  %vm852_vm11 = vcmask 130049  }
  0x28   : > { %1742 = vst.msk [vmem:[#allocation2 + $0x4b8] sm:$0xff] %vm307_vm2, %v15383_v10  ;;  %1743 = vst.msk [vmem:[#allocation2 + $0x4c0] sm:$0xff] %vm307_vm2, %v15383_v10  ;;  %v14573_v21 = vld [vmem:[%s15468_s16 + $0x20] sm:$0xff]   ;;  %v14574_v28 = vld [vmem:[%s15468_s16 + $0x28] sm:$0xff]   ;;  %vm1685_vm9 = vsmask.f32 7424 }
  0x29   : > { %1927 = vst.msk [vmem:[#allocation2 + $0x4e0] sm:$0xff] %vm307_vm2, %v15383_v10  ;;  %1928 = vst.msk [vmem:[#allocation2 + $0x4e8] sm:$0xff] %vm307_vm2, %v15383_v10  ;;  %v14575_v36 = vld [vmem:[%s15468_s16 + $0x30] sm:$0xff]   ;;  %vm2839_vm12 = vcmask 31744   ;;  %vm1909_vm13 = vcmask 129024   ;;  %vm320_vm14 = vcmask 124928  }
  0x2a   : > { %1929 = vst.msk [vmem:[#allocation2 + $0x4f0] sm:$0xff] %vm307_vm2, %v15383_v10  ;;  %1930 = vst.msk [vmem:[#allocation2 + $0x4f8] sm:$0xff] %vm307_vm2, %v15383_v10  ;;  %vm321_vm15 = vsmask.f32 2304  ;;  %vm627_vm1 = vcmask 130050  }
  0x2b   : > { %1931 = vst.msk [vmem:[#allocation2 + $0x500] sm:$0xff] %vm307_vm2, %v15383_v10  ;;  %1933 = vst.msk [vmem:[#allocation2 + $0x588] sm:$0xff] %vm307_vm2, %v15383_v10 }
  0x2c   : > { %1934 = vst.msk [vmem:[#allocation2 + $0x590] sm:$0xff] %vm307_vm2, %v15383_v10  ;;  %1935 = vst.msk [vmem:[#allocation2 + $0x598] sm:$0xff] %vm307_vm2, %v15383_v10  ;;  %12771 = vmatmul.mubr.msk.bf16.gmra.mrb[12].mxu0 %vm307_vm2, %v2311_v24  ;;  %v1147_v24 = vshll.u32 %v15716_v56, 16 }
  0x2d   : > { %1936 = vst.msk [vmem:[#allocation2 + $0x5a0] sm:$0xff] %vm307_vm2, %v15383_v10  ;;  %1937 = vst.msk [vmem:[#allocation2 + $0x5a8] sm:$0xff] %vm307_vm2, %v15383_v10  ;;  %12774 = vmatprep.mubr.msk.bf16.mxu0 %vm307_vm2, %v15702_v33 }
  0x2e   : > { %908 = vst [vmem:[#allocation2 + $0x200] sm:$0x1] %v907_v7  ;;  %911 = vst [vmem:[#allocation2 + $0x208] sm:$0x1] %v910_v14  ;;  %v10848_v7 = vunpack.c.l.bf16 %v15662_v50  ;;  %v10884_v14 = vadd.f32 %v10883_v59, %v10882_v4  ;;  %v10854_v59 = vunpack.c.l.bf16 %v15702_v33 }
  0x2f   : > { %914 = vst [vmem:[#allocation2 + $0x210] sm:$0x1] %v913_v15  ;;  %1749 = vst.msk [vmem:[#allocation2 + $0x438] sm:$0x80] %vm1394_vm4, %v15383_v10  ;;  %v10849_v15 = vunpack.c.h.bf16 %v15662_v50  ;;  %v14568_v50 = vld [vmem:[%s15468_s16 + $0x8] sm:$0xff]  }
  0x30   : > { %1750 = vst.msk [vmem:[#allocation2 + $0x440] sm:$0x80] %vm1394_vm4, %v15383_v10  ;;  %1751 = vst.msk [vmem:[#allocation2 + $0x448] sm:$0x80] %vm1394_vm4, %v15383_v10  ;;  %v10889_v23 = vsel %vm307_vm2, %v10848_v7, 0.0  ;;  %v10899_v7 = vsel %vm307_vm2, %v10853_v47, 0.0 }
  0x31   : > { %1752 = vst.msk [vmem:[#allocation2 + $0x450] sm:$0x80] %vm1394_vm4, %v15383_v10  ;;  %1753 = vst.msk [vmem:[#allocation2 + $0x458] sm:$0x80] %vm1394_vm4, %v15383_v10  ;;  %v10891_v38 = vsel %vm307_vm2, %v10849_v15, 0.0  ;;  %v14572_v15 = vld [vmem:[%s15468_s16 + $0x18] sm:$0xff]  }
  0x32   : > { %1754 = vst.msk [vmem:[#allocation2 + $0x460] sm:$0x80] %vm1394_vm4, %v15383_v10  ;;  %1755 = vst.msk [vmem:[#allocation2 + $0x468] sm:$0x80] %vm1394_vm4, %v15383_v10  ;;  %v14578_v47 = vld [vmem:[%s15468_s16 + $0x48] sm:$0xff]  }
  0x33   : > { %1756 = vst.msk [vmem:[#allocation2 + $0x470] sm:$0x80] %vm1394_vm4, %v15383_v10  ;;  %1757 = vst.msk [vmem:[#allocation2 + $0x478] sm:$0x80] %vm1394_vm4, %v15383_v10 }
  0x34   : > { %1758 = vst.msk [vmem:[#allocation2 + $0x480] sm:$0x80] %vm1394_vm4, %v15383_v10  ;;  %1759 = vst.msk [vmem:[#allocation2 + $0x488] sm:$0x80] %vm1394_vm4, %v15383_v10  ;;  %12775 = vmatmul.mubr.msk.bf16.gmra.mrb[16].mxu0 %vm307_vm2, %v2315_v9 }
  0x35   : > { %1760 = vst.msk [vmem:[#allocation2 + $0x490] sm:$0x80] %vm1394_vm4, %v15383_v10  ;;  %1761 = vst.msk [vmem:[#allocation2 + $0x498] sm:$0x80] %vm1394_vm4, %v15383_v10  ;;  %v1197_v55 = vld [vmem:[#allocation2 + $0x200] sm:$0xff]  ;;  %v1200_v62 = vld [vmem:[#allocation2 + $0x208] sm:$0xff] }
  0x36   : > { %1762 = vst.msk [vmem:[#allocation2 + $0x4a0] sm:$0x80] %vm1394_vm4, %v15383_v10  ;;  %1763 = vst.msk [vmem:[#allocation2 + $0x4a8] sm:$0x80] %vm1394_vm4, %v15383_v10  ;;  %v1203_v13 = vld [vmem:[#allocation2 + $0x210] sm:$0xff] }
  0x37   : > { %1764 = vst.msk [vmem:[#allocation2 + $0x4b0] sm:$0x80] %vm1394_vm4, %v15383_v10  ;;  %vm15654_vm6 = vmand %vm307_vm2, %vm1174_vm5  ;;  %v10885_v10 = vsel %vm307_vm2, %v10846_v53, 0.0  ;;  %vm1939_vm5 = vcmask 130053  }
  0x38   : > { %v1195_v52 = vsel %vm15654_vm6, %v1093_v45, %v1194_v41  ;;  %v1198_v6 = vsel %vm15654_vm6, %v1100_v60, %v1197_v55  ;;  %v1201_v16 = vsel %vm15654_vm6, %v1107_v8, %v1200_v62  ;;  %917 = vst [vmem:[#allocation2 + $0x218] sm:$0x1] %v916_v17  ;;  %v1204_v27 = vsel %vm15654_vm6, %v1114_v20, %v1203_v13  ;;  %v14559_v41 = vld [vmem:[%s15468_s16 + $0x68] sm:$0xff]   ;;  %v927_v55 = vld [vmem:[#allocation2 + $0x238] sm:$0x1]  ;;  %v15740_v13 = vld [vmem:[%s15468_s16 + $0x50] sm:$0xff]  }
  0x39   : > { %1196 = vst [vmem:[#allocation2 + $0x1f8] sm:$0xff] %v1195_v52  ;;  %12906 = vmatprep.mubr.msk.bf16.mxu1 %vm307_vm2, %v1195_v52  ;;  %1199 = vst [vmem:[#allocation2 + $0x200] sm:$0xff] %v1198_v6  ;;  %v922_v45 = vsel %vm15451_vm3, 0, %v921_v25  ;;  %v10895_v52 = vsel %vm307_vm2, %v10851_v32, 0.0  ;;  %v1132_v60 = vrot.slane %v1130_v48, 7  ;;  %v14570_v62 = vld [vmem:[%s18541_s2 + $0x8] sm:$0xff]   ;;  %v10856_v25 = vunpack.c.l.bf16 %v2315_v9  ;;  %12778 = vmatprep.mubr.msk.bf16.mxu0 %vm307_vm2, %v15740_v13 }
  0x3a   : > { %12907 = vmatmul.mubr.msk.bf16.vlgmr.msra.gmra.mrb[0].mxu1 %vm307_vm2, %v1198_v6  ;;  %1202 = vst [vmem:[#allocation2 + $0x208] sm:$0xff] %v1201_v16  ;;  %1205 = vst [vmem:[#allocation2 + $0x210] sm:$0xff] %v1204_v27  ;;  %v1137_v2 = vshrl.u32 %v14559_v41, 16  ;;  %v1140_v4 = vshll.u32 %v14559_v41, 16  ;;  %v15731_v6 = vld [vmem:[%s15468_s16 + $0x78] sm:$0xff]   ;;  %12790 = vmatprep.subr.bf16.mxu0 %v14570_v62  ;;  %v10901_v17 = vsel %vm307_vm2, %v10854_v59, 0.0  ;;  %v10858_v44 = vunpack.c.l.bf16 %v15740_v13 }
  0x3b   : > { %12927 = vmatpush3.bf16.msra.mxu1 %v15461_v5  ;;  %12910 = vmatprep.mubr.msk.bf16.mxu1 %vm307_vm2, %v1201_v16  ;;  %v10886_v5 = vadd.f32 %v10885_v10, %v10884_v14  ;;  %920 = vst [vmem:[#allocation2 + $0x220] sm:$0x1] %v919_v29  ;;  %1365 = vst.msk [vmem:[#allocation2 + $0x298] sm:$0xff] %vm307_vm2, %v14565_v37  ;;  %v1135_v10 = vor.u32 %v1133_v49, %v1132_v60  ;;  %v10855_v16 = vunpack.c.h.bf16 %v15702_v33  ;;  %v930_v20 = vld [vmem:[#allocation2 + $0x240] sm:$0x1]  ;;  %v14580_v60 = vld [vmem:[%s15468_s16 + $0x58] sm:$0xff]  }
  0x3c   : > { %12960 = vmatprep.subr.bf16.mxu1 %v15669_v57  ;;  %923 = vst [vmem:[#allocation2 + $0x228] sm:$0x1] %v922_v45  ;;  %1366 = vst.msk [vmem:[#allocation2 + $0x2a0] sm:$0xff] %vm307_vm2, %v14568_v50  ;;  %v1139_v14 = vrot.slane %v1137_v2, 7  ;;  %v928_v18 = vsel %vm15451_vm3, 0, %v927_v55  ;;  %12791 = vmatpush3.bf16.msra.mxu0 %v14570_v62  ;;  %v931_v30 = vsel %vm15451_vm3, 0, %v930_v20  ;;  %v10857_v33 = vunpack.c.h.bf16 %v2315_v9 }
  0x3d   : > { %v10888_v31 = vadd.f32 %v10887_v11, %v10886_v5  ;;  %926 = vst [vmem:[#allocation2 + $0x230] sm:$0x1] %v925_v61  ;;  %1367 = vst.msk [vmem:[#allocation2 + $0x2a8] sm:$0xff] %vm307_vm2, %v14571_v63  ;;  %v10903_v32 = vsel %vm307_vm2, %v10855_v16, 0.0  ;;  %v1154_v35 = vshll.u32 %v15731_v6, 16  ;;  %v10905_v43 = vsel %vm307_vm2, %v10856_v25, 0.0 }
  0x3e   : > { %929 = vst [vmem:[#allocation2 + $0x238] sm:$0x1] %v928_v18  ;;  %1368 = vst.msk [vmem:[#allocation2 + $0x2b0] sm:$0xff] %vm307_vm2, %v14572_v15  ;;  %v14577_v45 = vld [vmem:[%s15468_s16 + $0x40] sm:$0xff]   ;;  %v10907_v48 = vsel %vm307_vm2, %v10857_v33, 0.0  ;;  %v10859_v49 = vunpack.c.h.bf16 %v15740_v13  ;;  %v2319_v50 = vld [vmem:[%s15468_s16 + $0x58] sm:$0xff]  }
  0x3f   : > { %v10890_v42 = vadd.f32 %v10889_v23, %v10888_v31  ;;  %v1206_v53 = vld [vmem:[#allocation2 + $0x218] sm:$0xff]  ;;  %v1142_v23 = vor.u32 %v1140_v4, %v1139_v14  ;;  %1369 = vst.msk [vmem:[#allocation2 + $0x2b8] sm:$0xff] %vm307_vm2, %v14573_v21  ;;  %v1151_v31 = vshrl.u32 %v15731_v6, 16  ;;  %932 = vst [vmem:[#allocation2 + $0x240] sm:$0x1] %v931_v30  ;;  %v10860_v55 = vunpack.c.l.bf16 %v2319_v50  ;;  %v14581_v2 = vld [vmem:[%s15468_s16 + $0x60] sm:$0xff]   ;;  %12779 = vmatmul.mubr.msk.bf16.gmra.mrb[20].mxu0 %vm307_vm2, %v2319_v50 }
  0x40   : > { %v1207_v58 = vsel %vm15654_vm6, %v1121_v39, %v1206_v53  ;;  %1370 = vst.msk [vmem:[#allocation2 + $0x2c0] sm:$0xff] %vm307_vm2, %v14574_v28  ;;  %1371 = vst.msk [vmem:[#allocation2 + $0x2c8] sm:$0xff] %vm307_vm2, %v14575_v36  ;;  %v14579_v53 = vld [vmem:[%s15468_s16 + $0x50] sm:$0xff]   ;;  %v10909_v59 = vsel %vm307_vm2, %v10858_v44, 0.0  ;;  %v10911_v63 = vsel %vm307_vm2, %v10859_v49, 0.0  ;;  %v14582_v9 = vld [vmem:[%s15468_s16 + $0x68] sm:$0xff]  }
  0x41   : > { %v10892_v51 = vadd.f32 %v10891_v38, %v10890_v42  ;;  %1208 = vst [vmem:[#allocation2 + $0x218] sm:$0xff] %v1207_v58  ;;  %v1153_v41 = vrot.slane %v1151_v31, 7  ;;  %v14576_v42 = vld [vmem:[%s15468_s16 + $0x38] sm:$0xff]   ;;  %1373 = vst.msk [vmem:[#allocation2 + $0x2d8] sm:$0xff] %vm307_vm2, %v14577_v45  ;;  %v10913_v6 = vsel %vm307_vm2, %v10860_v55, 0.0  ;;  %v2325_v20 = vld [vmem:[%s15468_s16 + $0x70] sm:$0xff]  }
  0x42   : > { %12911 = vmatmul.mubr.msk.bf16.gmra.mrb[4].mxu1 %vm307_vm2, %v1204_v27  ;;  %v1209_v8 = vld [vmem:[#allocation2 + $0x220] sm:$0xff]  ;;  %v1146_v27 = vrot.slane %v1144_v19, 7  ;;  %1372 = vst.msk [vmem:[#allocation2 + $0x2d0] sm:$0xff] %vm307_vm2, %v14576_v42  ;;  %1374 = vst.msk [vmem:[#allocation2 + $0x2e0] sm:$0xff] %vm307_vm2, %v14578_v47  ;;  %v15806_v14 = vld [vmem:[#allocation2 + $0x298] sm:$0xff]  ;;  %v10867_v33 = vunpack.c.h.bf16 %v2325_v20 }
  0x43   : > { %v10894_v0 = vadd.f32 %v10893_v46, %v10892_v51  ;;  %12914 = vmatprep.mubr.msk.bf16.mxu1 %vm307_vm2, %v1207_v58  ;;  %v1210_v12 = vsel %vm15654_vm6, %v1128_v54, %v1209_v8  ;;  %v1212_v5 = vld [vmem:[#allocation2 + $0x228] sm:$0xff]  ;;  %v2321_v58 = vld [vmem:[%s15468_s16 + $0x60] sm:$0xff]   ;;  %1375 = vst.msk [vmem:[#allocation2 + $0x2e8] sm:$0xff] %vm307_vm2, %v14579_v53  ;;  %1376 = vst.msk [vmem:[#allocation2 + $0x2f0] sm:$0xff] %vm307_vm2, %v14580_v60 }
  0x44   : > { %1211 = vst [vmem:[#allocation2 + $0x220] sm:$0xff] %v1210_v12  ;;  %v1213_v26 = vsel %vm15654_vm6, %v1135_v10, %v1212_v5  ;;  %v1215_v34 = vld [vmem:[#allocation2 + $0x230] sm:$0xff]  ;;  %v1149_v39 = vor.u32 %v1147_v24, %v1146_v27  ;;  %v10863_v8 = vunpack.c.h.bf16 %v2321_v58  ;;  %1377 = vst.msk [vmem:[#allocation2 + $0x2f8] sm:$0xff] %vm307_vm2, %v14581_v2  ;;  %12782 = vmatprep.mubr.msk.bf16.mxu0 %vm307_vm2, %v2321_v58  ;;  %v14584_v15 = vld [vmem:[%s15468_s16 + $0x78] sm:$0xff]  }
  0x45   : > { %v10896_v11 = vadd.f32 %v10895_v52, %v10894_v0  ;;  %1214 = vst [vmem:[#allocation2 + $0x228] sm:$0xff] %v1213_v26  ;;  %v1216_v38 = vsel %vm15654_vm6, %v1142_v23, %v1215_v34  ;;  %v1218_v51 = vld [vmem:[#allocation2 + $0x238] sm:$0xff]  ;;  %v1156_v52 = vor.u32 %v1154_v35, %v1153_v41  ;;  %v10861_v0 = vunpack.c.h.bf16 %v2319_v50  ;;  %1378 = vst.msk [vmem:[#allocation2 + $0x300] sm:$0xff] %vm307_vm2, %v14582_v9  ;;  %v14585_v23 = vld [vmem:[%s15468_s16] sm:$0xff]  }
  0x46   : > { %1217 = vst [vmem:[#allocation2 + $0x230] sm:$0xff] %v1216_v38  ;;  %v1219_v56 = vsel %vm15654_vm6, %v1149_v39, %v1218_v51  ;;  %v1221_v62 = vld [vmem:[#allocation2 + $0x240] sm:$0xff]  ;;  %v10919_v18 = vsel %vm307_vm2, %v10863_v8, 0.0  ;;  %vm15815_vm8 = vmand %vm1394_vm4, %vm1395_vm7  ;;  %v15827_v27 = vld [vmem:[%s15468_s16 + $0x78] sm:$0xff]   ;;  %v1558_v28 = vshrl.u32 %v14585_v23, 16 }
  0x47   : > { %v10898_v22 = vadd.f32 %v10897_v1, %v10896_v11  ;;  %1220 = vst [vmem:[#allocation2 + $0x238] sm:$0xff] %v1219_v56  ;;  %v1222_v1 = vsel %vm15654_vm6, %v1156_v52, %v1221_v62  ;;  %v2323_v11 = vld [vmem:[%s15468_s16 + $0x68] sm:$0xff]   ;;  %v10915_v13 = vsel %vm307_vm2, %v10861_v0, 0.0  ;;  %1380 = vst.msk [vmem:[#allocation2 + $0x310] sm:$0xff] %vm307_vm2, %v14584_v15  ;;  %v15831_v34 = vld [vmem:[#allocation2 + $0x2a0] sm:$0xff]  ;;  %v10868_v35 = vunpack.c.l.bf16 %v15827_v27 }
  0x48   : > { %1223 = vst [vmem:[#allocation2 + $0x240] sm:$0xff] %v1222_v1  ;;  %v10864_v19 = vunpack.c.l.bf16 %v2323_v11  ;;  %v10865_v25 = vunpack.c.h.bf16 %v2323_v11  ;;  %v14587_v30 = vld [vmem:[%s15468_s16 + $0x8] sm:$0xff]   ;;  %v1400_v36 = vld [vmem:[#allocation2 + $0x370] sm:$0x80]  ;;  %vm15839_vm10 = vmand %vm307_vm2, %vm1685_vm9  ;;  %12783 = vmatmul.mubr.msk.bf16.gmra.mrb[24].mxu0 %vm307_vm2, %v2323_v11  ;;  %vm2247_vm9 = vsmask.f32 5376 }
  0x49   : > { %v10900_v29 = vadd.f32 %v10899_v7, %v10898_v22  ;;  %v10862_v7 = vunpack.c.l.bf16 %v2321_v58  ;;  %v1397_v22 = vld [vmem:[#allocation2 + $0x368] sm:$0x80]  ;;  %v1401_v42 = vsel %vm15815_vm8, 0, %v1400_v36  ;;  %v1567_v45 = vshll.u32 %v14587_v30, 16  ;;  %12786 = vmatprep.mubr.msk.bf16.mxu0 %vm307_vm2, %v2325_v20  ;;  %v15856_v49 = vld [vmem:[%s18541_s2 + $0x30] sm:$0xff]   ;;  %v15885_v15 = vld [vmem:[#allocation2 + $0x2b8] sm:$0xff] }
  0x4a   : > { %12915 = vmatmul.mubr.msk.bf16.gmra.mrb[8].mxu1 %vm307_vm2, %v1210_v12  ;;  %v14583_v12 = vld [vmem:[%s15468_s16 + $0x70] sm:$0xff]   ;;  %v1398_v5 = vsel %vm15815_vm8, 0, %v1397_v22  ;;  %1402 = vst [vmem:[#allocation2 + $0x370] sm:$0x80] %v1401_v42  ;;  %v10923_v47 = vsel %vm307_vm2, %v10865_v25, 0.0  ;;  %v10929_v58 = vsel %vm307_vm2, %v10868_v35, 0.0  ;;  %vm16560_vm0 = vmand %vm320_vm14, %vm321_vm15 }
  0x4b   : > { %12918 = vmatprep.mubr.msk.bf16.mxu1 %vm307_vm2, %v1213_v26  ;;  %v10902_v37 = vadd.f32 %v10901_v17, %v10900_v29  ;;  %v10917_v17 = vsel %vm307_vm2, %v10862_v7, 0.0  ;;  %1379 = vst.msk [vmem:[#allocation2 + $0x308] sm:$0xff] %vm307_vm2, %v14583_v12  ;;  %1399 = vst [vmem:[#allocation2 + $0x368] sm:$0x80] %v1398_v5  ;;  %v10866_v26 = vunpack.c.l.bf16 %v2325_v20  ;;  %v1560_v29 = vshll.u32 %v14585_v23, 16  ;;  %v14589_v55 = vld [vmem:[%s15468_s16 + $0x10] sm:$0xff]  }
  0x4c   : > { %v1403_v50 = vld [vmem:[#allocation2 + $0x378] sm:$0x80]  ;;  %v1569_v53 = vrot.slane %v1567_v45, 1  ;;  %v1572_v2 = vshrl.u32 %v14589_v55, 16  ;;  %v885_v7 = vld [vmem:[#allocation2 + $0x1c8] sm:$0x1] }
  0x4d   : > { %v10904_v46 = vadd.f32 %v10903_v32, %v10902_v37  ;;  %v10921_v32 = vsel %vm307_vm2, %v10864_v19, 0.0  ;;  %v10869_v37 = vunpack.c.h.bf16 %v15827_v27  ;;  %v1562_v39 = vrot.slane %v1560_v29, 1  ;;  %v15880_v9 = vld [vmem:[#allocation2 + $0x2b0] sm:$0xff]  ;;  %v14592_v23 = vld [vmem:[%s15468_s16 + $0x20] sm:$0xff]   ;;  %v14594_v35 = vld [vmem:[%s15468_s16 + $0x28] sm:$0xff]  }
  0x4e   : > { %v10925_v52 = vsel %vm307_vm2, %v10866_v26, 0.0  ;;  %v886_v12 = vsel %vm15451_vm3, 0, %v885_v7  ;;  %v14609_v41 = vld [vmem:[%s18541_s2 + $0x38] sm:$0xff]   ;;  %vm11006_vm14 = vcmask 1041408   ;;  %vm10821_vm15 = vcmask 130144  }
  0x4f   : > { %v10906_v54 = vadd.f32 %v10905_v43, %v10904_v46  ;;  %v1565_v43 = vshrl.u32 %v14587_v30, 16  ;;  %v15849_v46 = vld [vmem:[%s18541_s2] sm:$0xff]   ;;  %887 = vst [vmem:[#allocation2 + $0x1c8] sm:$0x1] %v886_v12 }
  0x50   : > { %12824 = vmatprep.subr.bf16.mxu0 %v15849_v46  ;;  %12787 = vmatmul.mubr.msk.bf16.gmra.mrb[28].mxu0 %vm307_vm2, %v15827_v27  ;;  %v888_v27 = vld [vmem:[#allocation2 + $0x1d0] sm:$0x1] }
  0x51   : > { %v10908_v61 = vadd.f32 %v10907_v48, %v10906_v54  ;;  %v1563_v48 = vor.u32 %v1562_v39, %v1558_v28  ;;  %v1404_v54 = vsel %vm15815_vm8, 0, %v1403_v50  ;;  %v889_v39 = vsel %vm15451_vm3, 0, %v888_v27 }
  0x52   : > { %12919 = vmatmul.mubr.msk.bf16.gmra.mrb[12].mxu1 %vm307_vm2, %v1216_v38  ;;  %v15835_v38 = vld [vmem:[#allocation2 + $0x2a8] sm:$0xff]  ;;  %1405 = vst [vmem:[#allocation2 + $0x378] sm:$0x80] %v1404_v54  ;;  %890 = vst [vmem:[#allocation2 + $0x1d0] sm:$0x1] %v889_v39  ;;  %v1593_v54 = vshrl.u32 %v14594_v35, 16 }
  0x53   : > { %12922 = vmatprep.mubr.msk.bf16.mxu1 %vm307_vm2, %v1219_v56  ;;  %v10910_v4 = vadd.f32 %v10909_v59, %v10908_v61  ;;  %v10927_v56 = vsel %vm307_vm2, %v10867_v33, 0.0  ;;  %v10931_v59 = vsel %vm307_vm2, %v10869_v37, 0.0  ;;  %v1687_v60 = vld [vmem:[#allocation2 + $0x368] sm:$0xff]  ;;  %v1406_v61 = vld [vmem:[#allocation2 + $0x380] sm:$0x80]  ;;  %v1586_v33 = vshrl.u32 %v14592_v23, 16 }
  0x54   : > { %v15873_v0 = vsel %vm15839_vm10, %v1563_v48, %v1687_v60  ;;  %v1588_v37 = vshll.u32 %v14592_v23, 16 }
  0x55   : > { %v10912_v10 = vadd.f32 %v10911_v63, %v10910_v4  ;;  %v2876_v63 = vld [vmem:[#allocation2 + $0x290] sm:$0xff]  ;;  %v14590_v4 = vld [vmem:[%s15468_s16 + $0x18] sm:$0xff]   ;;  %1689 = vst [vmem:[#allocation2 + $0x368] sm:$0xff] %v15873_v0 }
  0x56   : > { %v1581_v11 = vshll.u32 %v14590_v4, 16  ;;  %12792 = vmatprep.mubr.msk.bf16.mxu0 %vm307_vm2, %v2876_v63  ;;  %v1176_v60 = vld [vmem:[#allocation2 + $0x1c8] sm:$0xff] }
  0x57   : > { %v10914_v16 = vadd.f32 %v10913_v6, %v10912_v10  ;;  %v1574_v6 = vshll.u32 %v14589_v55, 16  ;;  %v1579_v10 = vshrl.u32 %v14590_v4, 16  ;;  %v1595_v55 = vshll.u32 %v14594_v35, 16  ;;  %v14597_v4 = vld [vmem:[%s15468_s16 + $0x18] sm:$0xff]  }
  0x58   : > { %v1583_v22 = vrot.slane %v1581_v11, 1  ;;  %12793 = vmatmul.mubr.msk.bf16.vlgmr.msra.gmra.mrb[32].mxu0 %vm307_vm2, %v15806_v14  ;;  %v1067_v23 = vshrl.u32 %v14597_v4, 16 }
  0x59   : > { %v10916_v24 = vadd.f32 %v10915_v13, %v10914_v16  ;;  %v14591_v13 = vld [vmem:[%s15468_s16] sm:$0xff]   ;;  %v1690_v16 = vld [vmem:[#allocation2 + $0x370] sm:$0xff]  ;;  %v1693_v30 = vld [vmem:[#allocation2 + $0x378] sm:$0xff]  ;;  %12796 = vmatprep.mubr.msk.bf16.mxu0 %vm307_vm2, %v15831_v34  ;;  %12825 = vmatpush3.bf16.msra.mxu0 %v15849_v46 }
  0x5a   : > { %12923 = vmatmul.mubr.msk.bf16.gmra.mrb[16].mxu1 %vm307_vm2, %v1222_v1  ;;  %v1570_v1 = vor.u32 %v1569_v53, %v1565_v43  ;;  %v1046_v5 = vshrl.u32 %v14591_v13, 16  ;;  %v1049_v26 = vshll.u32 %v14591_v13, 16  ;;  %v1412_v43 = vld [vmem:[#allocation2 + $0x390] sm:$0x80] }
  0x5b   : > { %12928 = vmatprep.mubr.msk.bf16.mxu1 %vm307_vm2, %v15806_v14  ;;  %v10918_v31 = vadd.f32 %v10917_v17, %v10916_v24  ;;  %v1576_v17 = vrot.slane %v1574_v6, 1  ;;  %v14593_v24 = vld [vmem:[%s15468_s16 + $0x8] sm:$0xff]   ;;  %v1413_v50 = vsel %vm15815_vm8, 0, %v1412_v43  ;;  %v15969_v43 = vld [vmem:[#allocation2 + $0x2d8] sm:$0xff] }
  0x5c   : > { %v15891_v20 = vsel %vm15839_vm10, %v1570_v1, %v1690_v16  ;;  %v1053_v42 = vshrl.u32 %v14593_v24, 16  ;;  %v1056_v48 = vshll.u32 %v14593_v24, 16  ;;  %1414 = vst [vmem:[#allocation2 + $0x390] sm:$0x80] %v1413_v50  ;;  %v1597_v1 = vrot.slane %v1595_v55, 1  ;;  %v15931_v6 = vld [vmem:[#allocation2 + $0x2c8] sm:$0xff] }
  0x5d   : > { %v10920_v44 = vadd.f32 %v10919_v18, %v10918_v31  ;;  %v1409_v18 = vld [vmem:[#allocation2 + $0x388] sm:$0x80]  ;;  %1692 = vst [vmem:[#allocation2 + $0x370] sm:$0xff] %v15891_v20  ;;  %v1577_v25 = vor.u32 %v1576_v17, %v1572_v2  ;;  %v1584_v31 = vor.u32 %v1583_v22, %v1579_v10  ;;  %v1415_v2 = vld [vmem:[#allocation2 + $0x398] sm:$0x80] }
  0x5e   : > { %v1410_v28 = vsel %vm15815_vm8, 0, %v1409_v18  ;;  %v1055_v53 = vrot.slane %v1053_v42, 7  ;;  %v1598_v12 = vor.u32 %v1597_v1, %v1593_v54  ;;  %v1416_v14 = vsel %vm15815_vm8, 0, %v1415_v2  ;;  %v14598_v16 = vld [vmem:[%s15468_s16 + $0x38] sm:$0xff]   ;;  %v894_v22 = vld [vmem:[#allocation2 + $0x1e0] sm:$0x1] }
  0x5f   : > { %v10922_v51 = vadd.f32 %v10921_v32, %v10920_v44  ;;  %v1048_v32 = vrot.slane %v1046_v5, 7  ;;  %1411 = vst [vmem:[#allocation2 + $0x388] sm:$0x80] %v1410_v28  ;;  %v15904_v36 = vsel %vm15839_vm10, %v1577_v25, %v1693_v30  ;;  %v14595_v44 = vld [vmem:[%s15468_s16 + $0x10] sm:$0xff]   ;;  %1417 = vst [vmem:[#allocation2 + $0x398] sm:$0x80] %v1416_v14 }
  0x60   : > { %1695 = vst [vmem:[#allocation2 + $0x378] sm:$0xff] %v15904_v36  ;;  %v1063_v10 = vshll.u32 %v14595_v44, 16  ;;  %v895_v5 = vsel %vm15451_vm3, 0, %v894_v22  ;;  %v1418_v28 = vld [vmem:[#allocation2 + $0x3a0] sm:$0x80]  ;;  %v1069_v30 = vrot.slane %v1067_v23, 7  ;;  %12797 = vmatmul.mubr.msk.bf16.gmra.mrb[36].mxu0 %vm307_vm2, %v15835_v38 }
  0x61   : > { %v10924_v62 = vadd.f32 %v10923_v47, %v10922_v51  ;;  %v1051_v47 = vor.u32 %v1049_v26, %v1048_v32  ;;  %896 = vst [vmem:[#allocation2 + $0x1e0] sm:$0x1] %v895_v5  ;;  %v1070_v26 = vshll.u32 %v14597_v4, 16  ;;  %v897_v32 = vld [vmem:[#allocation2 + $0x1e8] sm:$0x1]  ;;  %v1609_v39 = vshll.u32 %v14598_v16, 16  ;;  %12800 = vmatprep.mubr.msk.bf16.mxu0 %vm307_vm2, %v15880_v9 }
  0x62   : > { %12929 = vmatmul.mubr.msk.bf16.vlgmr.msra.gmra.mrb[20].mxu1 %vm307_vm2, %v15831_v34  ;;  %v1179_v34 = vld [vmem:[#allocation2 + $0x1d0] sm:$0xff]  ;;  %v898_v42 = vsel %vm15451_vm3, 0, %v897_v32  ;;  %v16004_v22 = vld [vmem:[#allocation2 + $0x2e0] sm:$0xff]  ;;  %v1427_v23 = vld [vmem:[#allocation2 + $0x3b8] sm:$0x80] }
  0x63   : > { %12961 = vmatpush3.bf16.msra.mxu1 %v15669_v57  ;;  %12932 = vmatprep.mubr.msk.bf16.mxu1 %vm307_vm2, %v15835_v38  ;;  %v1407_v57 = vsel %vm15815_vm8, 0, %v1406_v61  ;;  %v10926_v8 = vadd.f32 %v10925_v52, %v10924_v62  ;;  %v1590_v52 = vrot.slane %v1588_v37, 1  ;;  %v891_v61 = vld [vmem:[#allocation2 + $0x1d8] sm:$0x1]  ;;  %v15926_v62 = vsel %vm15654_vm6, %v1051_v47, %v1176_v60  ;;  %v1702_v25 = vld [vmem:[#allocation2 + $0x390] sm:$0xff] }
  0x64   : > { %12994 = vmatprep.subr.bf16.mxu1 %v15856_v49  ;;  %1408 = vst [vmem:[#allocation2 + $0x380] sm:$0x80] %v1407_v57  ;;  %1178 = vst [vmem:[#allocation2 + $0x1c8] sm:$0xff] %v15926_v62  ;;  %v1058_v57 = vor.u32 %v1056_v48, %v1055_v53  ;;  %v892_v7 = vsel %vm15451_vm3, 0, %v891_v61  ;;  %v15960_v27 = vsel %vm15839_vm10, %v1598_v12, %v1702_v25  ;;  %v1607_v37 = vshrl.u32 %v14598_v16, 16  ;;  %v14600_v53 = vld [vmem:[%s15468_s16 + $0x40] sm:$0xff]  }
  0x65   : > { %v10928_v19 = vadd.f32 %v10927_v56, %v10926_v8  ;;  %v14596_v56 = vld [vmem:[%s15468_s16 + $0x30] sm:$0xff]   ;;  %v1591_v63 = vor.u32 %v1590_v52, %v1586_v33  ;;  %v1060_v8 = vshrl.u32 %v14595_v44, 16  ;;  %893 = vst [vmem:[#allocation2 + $0x1d8] sm:$0x1] %v892_v7  ;;  %1704 = vst [vmem:[#allocation2 + $0x390] sm:$0xff] %v15960_v27  ;;  %v14599_v44 = vld [vmem:[%s15468_s16 + $0x20] sm:$0xff]   ;;  %v1072_v50 = vor.u32 %v1070_v26, %v1069_v30 }
  0x66   : > { %v1699_v11 = vld [vmem:[#allocation2 + $0x388] sm:$0xff]  ;;  %v1602_v13 = vshll.u32 %v14596_v56, 16  ;;  %v15955_v24 = vsel %vm15654_vm6, %v1058_v57, %v1179_v34  ;;  %v15964_v33 = vld [vmem:[#allocation2 + $0x2d0] sm:$0xff]  ;;  %899 = vst [vmem:[#allocation2 + $0x1e8] sm:$0x1] %v898_v42  ;;  %v1705_v55 = vld [vmem:[#allocation2 + $0x398] sm:$0xff] }
  0x67   : > { %v10930_v29 = vadd.f32 %v10929_v58, %v10928_v19  ;;  %v15917_v58 = vld [vmem:[#allocation2 + $0x2c0] sm:$0xff]  ;;  %v15944_v17 = vsel %vm15839_vm10, %v1591_v63, %v1699_v11  ;;  %v1062_v18 = vrot.slane %v1060_v8, 7  ;;  %v1600_v19 = vshrl.u32 %v14596_v56, 16  ;;  %1181 = vst [vmem:[#allocation2 + $0x1d0] sm:$0xff] %v15955_v24  ;;  %v1421_v47 = vld [vmem:[#allocation2 + $0x3a8] sm:$0x80] }
  0x68   : > { %1701 = vst [vmem:[#allocation2 + $0x388] sm:$0xff] %v15944_v17  ;;  %v1604_v46 = vrot.slane %v1602_v13, 1  ;;  %v1422_v52 = vsel %vm15815_vm8, 0, %v1421_v47  ;;  %v1074_v56 = vshrl.u32 %v14599_v44, 16  ;;  %v1077_v60 = vshll.u32 %v14599_v44, 16  ;;  %v14601_v61 = vld [vmem:[%s15468_s16 + $0x28] sm:$0xff]   ;;  %12801 = vmatmul.mubr.msk.bf16.gmra.mrb[40].mxu0 %vm307_vm2, %v15885_v15 }
  0x69   : > { %v15909_v45 = vadd.f32 %v10931_v59, %v10930_v29  ;;  %v1065_v29 = vor.u32 %v1063_v10, %v1062_v18  ;;  %1423 = vst [vmem:[#allocation2 + $0x3a8] sm:$0x80] %v1422_v52  ;;  %v1614_v1 = vshrl.u32 %v14600_v53, 16  ;;  %v1616_v2 = vshll.u32 %v14600_v53, 16  ;;  %v900_v4 = vld [vmem:[#allocation2 + $0x1f0] sm:$0x1]  ;;  %12804 = vmatprep.mubr.msk.bf16.mxu0 %vm307_vm2, %v15917_v58 }
  0x6a   : > { %12933 = vmatmul.mubr.msk.bf16.gmra.mrb[24].mxu1 %vm307_vm2, %v15880_v9  ;;  %v1605_v35 = vor.u32 %v1604_v46, %v1600_v19  ;;  %v1185_v9 = vld [vmem:[#allocation2 + $0x1e0] sm:$0xff]  ;;  %v1076_v57 = vrot.slane %v1074_v56, 7  ;;  %v901_v7 = vsel %vm15451_vm3, 0, %v900_v4  ;;  %v1081_v8 = vshrl.u32 %v14601_v61, 16  ;;  %v1424_v14 = vld [vmem:[#allocation2 + $0x3b0] sm:$0x80] }
  0x6b   : > { %18559 = vst [vmem:[#allocation4_spill] sm:$0xff] %v15909_v45  ;;  %12936 = vmatprep.mubr.msk.bf16.mxu1 %vm307_vm2, %v15885_v15  ;;  %v1696_v51 = vld [vmem:[#allocation2 + $0x380] sm:$0xff]  ;;  %v15998_v10 = vsel %vm15654_vm6, %v1072_v50, %v1185_v9  ;;  %v1618_v11 = vrot.slane %v1616_v2, 1  ;;  %902 = vst [vmem:[#allocation2 + $0x1f0] sm:$0x1] %v901_v7  ;;  %v1084_v12 = vshll.u32 %v14601_v61, 16 }
  0x6c   : > { %v15921_v59 = vsel %vm15839_vm10, %v1584_v31, %v1696_v51  ;;  %v1419_v31 = vsel %vm15815_vm8, 0, %v1418_v28  ;;  %v1182_v48 = vld [vmem:[#allocation2 + $0x1d8] sm:$0xff]  ;;  %v1611_v51 = vrot.slane %v1609_v39, 1  ;;  %v15987_v38 = vsel %vm15839_vm10, %v1605_v35, %v1705_v55  ;;  %1187 = vst [vmem:[#allocation2 + $0x1e0] sm:$0xff] %v15998_v10  ;;  %v14602_v19 = vld [vmem:[%s15468_s16 + $0x48] sm:$0xff]   ;;  %v14603_v35 = vld [vmem:[%s15468_s16 + $0x50] sm:$0xff]  }
  0x6d   : > { %1698 = vst [vmem:[#allocation2 + $0x380] sm:$0xff] %v15921_v59  ;;  %1420 = vst [vmem:[#allocation2 + $0x3a0] sm:$0x80] %v1419_v31  ;;  %v15981_v54 = vsel %vm15654_vm6, %v1065_v29, %v1182_v48  ;;  %v1079_v16 = vor.u32 %v1077_v60, %v1076_v57  ;;  %v1083_v18 = vrot.slane %v1081_v8, 7  ;;  %v1425_v3 = vsel %vm15815_vm8, 0, %v1424_v14  ;;  %v1188_v46 = vld [vmem:[#allocation2 + $0x1e8] sm:$0xff] }
  0x6e   : > { %1184 = vst [vmem:[#allocation2 + $0x1d8] sm:$0xff] %v15981_v54  ;;  %v1612_v63 = vor.u32 %v1611_v51, %v1607_v37  ;;  %1707 = vst [vmem:[#allocation2 + $0x398] sm:$0xff] %v15987_v38  ;;  %v1619_v5 = vor.u32 %v1618_v11, %v1614_v1  ;;  %v1621_v26 = vshrl.u32 %v14602_v19, 16  ;;  %v1623_v28 = vshll.u32 %v14602_v19, 16  ;;  %v16017_v29 = vld [vmem:[#allocation2 + $0x2e8] sm:$0xff]  ;;  %v14604_v42 = vld [vmem:[%s15468_s16 + $0x58] sm:$0xff]  }
  0x6f   : > { %1426 = vst [vmem:[#allocation2 + $0x3b0] sm:$0x80] %v1425_v3  ;;  %v16013_v25 = vsel %vm15654_vm6, %v1079_v16, %v1188_v46  ;;  %v1086_v31 = vor.u32 %v1084_v12, %v1083_v18  ;;  %v1428_v32 = vsel %vm15815_vm8, 0, %v1427_v23  ;;  %v1430_v15 = vld [vmem:[#allocation2 + $0x3c0] sm:$0x80]  ;;  %v1628_v44 = vshrl.u32 %v14603_v35, 16 }
  0x70   : > { %1190 = vst [vmem:[#allocation2 + $0x1e8] sm:$0xff] %v16013_v25  ;;  %v1711_v30 = vld [vmem:[#allocation2 + $0x3a8] sm:$0xff]  ;;  %v1625_v39 = vrot.slane %v1623_v28, 1  ;;  %1429 = vst [vmem:[#allocation2 + $0x3b8] sm:$0x80] %v1428_v32  ;;  %v1630_v47 = vshll.u32 %v14603_v35, 16  ;;  %12805 = vmatmul.mubr.msk.bf16.gmra.mrb[44].mxu0 %vm307_vm2, %v15931_v6 }
  0x71   : > { %v16027_v37 = vsel %vm15839_vm10, %v1619_v5, %v1711_v30  ;;  %v1431_v48 = vsel %vm15815_vm8, 0, %v1430_v15  ;;  %v1635_v51 = vshrl.u32 %v14604_v42, 16  ;;  %v1637_v52 = vshll.u32 %v14604_v42, 16  ;;  %v1433_v53 = vld [vmem:[#allocation2 + $0x3c8] sm:$0x80]  ;;  %v14605_v55 = vld [vmem:[%s15468_s16 + $0x60] sm:$0xff]   ;;  %12808 = vmatprep.mubr.msk.bf16.mxu0 %vm307_vm2, %v15964_v33 }
  0x72   : > { %12937 = vmatmul.mubr.msk.bf16.gmra.mrb[28].mxu1 %vm307_vm2, %v15917_v58  ;;  %1713 = vst [vmem:[#allocation2 + $0x3a8] sm:$0xff] %v16027_v37  ;;  %v1191_v58 = vld [vmem:[#allocation2 + $0x1f0] sm:$0xff]  ;;  %v1626_v50 = vor.u32 %v1625_v39, %v1621_v26  ;;  %1432 = vst [vmem:[#allocation2 + $0x3c0] sm:$0x80] %v1431_v48  ;;  %v1632_v60 = vrot.slane %v1630_v47, 1  ;;  %v1434_v61 = vsel %vm15815_vm8, 0, %v1433_v53 }
  0x73   : > { %12940 = vmatprep.mubr.msk.bf16.mxu1 %vm307_vm2, %v15931_v6  ;;  %v16040_v56 = vsel %vm15654_vm6, %v1086_v31, %v1191_v58  ;;  %v1639_v1 = vrot.slane %v1637_v52, 1  ;;  %1435 = vst [vmem:[#allocation2 + $0x3c8] sm:$0x80] %v1434_v61  ;;  %v1642_v2 = vshrl.u32 %v14605_v55, 16  ;;  %v1644_v4 = vshll.u32 %v14605_v55, 16  ;;  %v14606_v9 = vld [vmem:[%s15468_s16 + $0x68] sm:$0xff]  }
  0x74   : > { %v1708_v13 = vld [vmem:[#allocation2 + $0x3a0] sm:$0xff]  ;;  %1193 = vst [vmem:[#allocation2 + $0x1f0] sm:$0xff] %v16040_v56  ;;  %v1633_v40 = vor.u32 %v1632_v60, %v1628_v44  ;;  %v1436_v7 = vld [vmem:[#allocation2 + $0x3d0] sm:$0x80]  ;;  %v1439_v16 = vld [vmem:[#allocation2 + $0x3d8] sm:$0x80] }
  0x75   : > { %v16008_v34 = vsel %vm15839_vm10, %v1612_v63, %v1708_v13  ;;  %v3869_v8 = vld [vmem:[#allocation2 + $0x2f0] sm:$0xff]  ;;  %v1640_v11 = vor.u32 %v1639_v1, %v1635_v51  ;;  %v1646_v12 = vrot.slane %v1644_v4, 1  ;;  %v1437_v14 = vsel %vm15815_vm8, 0, %v1436_v7  ;;  %v3870_v5 = vld [vmem:[#allocation2 + $0x2f8] sm:$0xff]  ;;  %v1442_v28 = vld [vmem:[#allocation2 + $0x3e0] sm:$0x80] }
  0x76   : > { %1710 = vst [vmem:[#allocation2 + $0x3a0] sm:$0xff] %v16008_v34  ;;  %v1714_v63 = vld [vmem:[#allocation2 + $0x3b0] sm:$0xff]  ;;  %v1649_v13 = vshrl.u32 %v14606_v9, 16  ;;  %1438 = vst [vmem:[#allocation2 + $0x3d0] sm:$0x80] %v1437_v14  ;;  %v1651_v3 = vshll.u32 %v14606_v9, 16 }
  0x77   : > { %v16048_v57 = vsel %vm15839_vm10, %v1626_v50, %v1714_v63  ;;  %v1717_v18 = vld [vmem:[#allocation2 + $0x3b8] sm:$0xff]  ;;  %v1440_v19 = vsel %vm15815_vm8, 0, %v1439_v16  ;;  %v14607_v46 = vld [vmem:[%s15468_s16 + $0x70] sm:$0xff]   ;;  %v1647_v26 = vor.u32 %v1646_v12, %v1642_v2  ;;  %v1443_v35 = vsel %vm15815_vm8, 0, %v1442_v28  ;;  %v3871_v58 = vld [vmem:[#allocation2 + $0x300] sm:$0xff] }
  0x78   : > { %1716 = vst [vmem:[#allocation2 + $0x3b0] sm:$0xff] %v16048_v57  ;;  %v16062_v23 = vsel %vm15839_vm10, %v1633_v40, %v1717_v18  ;;  %1441 = vst [vmem:[#allocation2 + $0x3d8] sm:$0x80] %v1440_v19  ;;  %v1653_v30 = vrot.slane %v1651_v3, 1  ;;  %v1656_v31 = vshrl.u32 %v14607_v46, 16  ;;  %v1658_v32 = vshll.u32 %v14607_v46, 16  ;;  %12809 = vmatmul.mubr.msk.bf16.gmra.mrb[48].mxu0 %vm307_vm2, %v15969_v43 }
  0x79   : > { %1719 = vst [vmem:[#allocation2 + $0x3b8] sm:$0xff] %v16062_v23  ;;  %v1720_v6 = vld [vmem:[#allocation2 + $0x3c0] sm:$0xff]  ;;  %v14608_v39 = vld [vmem:[%s15468_s16 + $0x78] sm:$0xff]   ;;  %1444 = vst [vmem:[#allocation2 + $0x3e0] sm:$0x80] %v1443_v35  ;;  %12812 = vmatprep.mubr.msk.bf16.mxu0 %vm307_vm2, %v16004_v22  ;;  %vm2246_vm8 = vcmask 128000  }
  0x7a   : > { %12941 = vmatmul.mubr.msk.bf16.gmra.mrb[0].mxu1 %vm307_vm2, %v15964_v33  ;;  %v16071_v33 = vsel %vm15839_vm10, %v1640_v11, %v1720_v6  ;;  %v1723_v15 = vld [vmem:[#allocation2 + $0x3c8] sm:$0xff]  ;;  %v1654_v42 = vor.u32 %v1653_v30, %v1649_v13  ;;  %v1660_v44 = vrot.slane %v1658_v32, 1  ;;  %v1663_v47 = vshrl.u32 %v14608_v39, 16  ;;  %v14610_v55 = vld [vmem:[%s18541_s2 + $0x10] sm:$0xff]   ;;  %v2868_v40 = vld [vmem:[#allocation2 + $0x218] sm:$0xff] }
  0x7b   : > { %12944 = vmatprep.mubr.msk.bf16.mxu1 %vm307_vm2, %v15969_v43  ;;  %1722 = vst [vmem:[#allocation2 + $0x3c0] sm:$0xff] %v16071_v33  ;;  %v1665_v48 = vshll.u32 %v14608_v39, 16  ;;  %v16077_v21 = vsel %vm15839_vm10, %v1647_v26, %v1723_v15  ;;  %v3872_v52 = vld [vmem:[#allocation2 + $0x308] sm:$0xff]  ;;  %12858 = vmatprep.subr.bf16.mxu0 %v14610_v55  ;;  %v2867_v9 = vld [vmem:[#allocation2 + $0x210] sm:$0xff]  ;;  %v2869_v7 = vld [vmem:[#allocation2 + $0x220] sm:$0xff] }
  0x7c   : > { %1725 = vst [vmem:[#allocation2 + $0x3c8] sm:$0xff] %v16077_v21  ;;  %v1661_v50 = vor.u32 %v1660_v44, %v1656_v31  ;;  %v2866_v4 = vld [vmem:[#allocation2 + $0x208] sm:$0xff]  ;;  %v2871_v11 = vld [vmem:[#allocation2 + $0x230] sm:$0xff]  ;;  %v16172_v12 = vld [vmem:[%s18541_s2 + $0x40] sm:$0xff]   ;;  %vm628_vm3 = vsmask.f32 7946 }
  0x7d   : > { %v1667_v51 = vrot.slane %v1665_v48, 1  ;;  %v1726_v53 = vld [vmem:[#allocation2 + $0x3d0] sm:$0xff]  ;;  %v16178_v14 = vld [vmem:[#allocation2 + $0x238] sm:$0xff]  ;;  %v14615_v28 = vld [vmem:[%s15468_s16] sm:$0x7f]  }
  0x7e   : > { %v16087_v60 = vsel %vm15839_vm10, %v1654_v42, %v1726_v53  ;;  %v14616_v30 = vld [vmem:[%s15468_s16 + $0x8] sm:$0x7f]   ;;  %v820_v35 = vrot.slane %v14615_v28, 7  ;;  %v4405_v53 = vld [vmem:[#allocation2 + $0x240] sm:$0xff]  ;;  %vm16591_vm4 = vmand %vm627_vm1, %vm628_vm3  ;;  %vm1940_vm6 = vsmask.f32 7958 }
  0x7f   : > { %v1729_v61 = vld [vmem:[#allocation2 + $0x3d8] sm:$0xff]  ;;  %v1668_v63 = vor.u32 %v1667_v51, %v1663_v47  ;;  %1728 = vst [vmem:[#allocation2 + $0x3d0] sm:$0xff] %v16087_v60  ;;  %v821_v39 = vrot.slane %v14616_v30, 7  ;;  %v14619_v28 = vld [vmem:[%s15468_s16 + $0x20] sm:$0x7f]   ;;  %vm16714_vm7 = vmand %vm1939_vm5, %vm1940_vm6 }
  0x80   : > { %v16094_v1 = vsel %vm15839_vm10, %v1661_v50, %v1729_v61  ;;  %v1732_v2 = vld [vmem:[#allocation2 + $0x3e0] sm:$0xff]  ;;  %12813 = vmatmul.mubr.msk.bf16.gmra.mrb[52].mxu0 %vm307_vm2, %v16017_v29  ;;  %853 = vst.msk [vmem:[#allocation2 + $0xf8] sm:$0xfe] %vm852_vm11, %v820_v35  ;;  %v14620_v30 = vld [vmem:[%s15468_s16 + $0x28] sm:$0x7f]  }
  0x81   : > { %1731 = vst [vmem:[#allocation2 + $0x3d8] sm:$0xff] %v16094_v1  ;;  %v1733_v43 = vsel %vm15839_vm10, %v1668_v63, %v1732_v2  ;;  %12816 = vmatprep.mubr.msk.bf16.mxu0 %vm307_vm2, %v3869_v8  ;;  %854 = vst.msk [vmem:[#allocation2 + $0x100] sm:$0xfe] %vm852_vm11, %v821_v39  ;;  %v14617_v63 = vld [vmem:[%s15468_s16 + $0x10] sm:$0x7f]   ;;  %v825_v39 = vrot.slane %v14620_v30, 7 }
  0x82   : > { %12945 = vmatmul.mubr.msk.bf16.gmra.mrb[4].mxu1 %vm307_vm2, %v16004_v22  ;;  %1734 = vst [vmem:[#allocation2 + $0x3e0] sm:$0xff] %v1733_v43  ;;  %v3873_v22 = vld [vmem:[#allocation2 + $0x310] sm:$0xff]  ;;  %vm16742_vm10 = vmand %vm2246_vm8, %vm2247_vm9 }
  0x83   : > { %12948 = vmatprep.mubr.msk.bf16.mxu1 %vm307_vm2, %v16017_v29  ;;  %v2857_v29 = vld [vmem:[#allocation2 + $0x1c0] sm:$0xff]  ;;  %858 = vst.msk [vmem:[#allocation2 + $0x120] sm:$0xfe] %vm852_vm11, %v825_v39 }
  0x88   : > { %12817 = vmatmul.mubr.msk.bf16.gmra.mrb[56].mxu0 %vm307_vm2, %v3870_v5 }
  0x89   : > { %12820 = vmatprep.mubr.msk.bf16.mxu0 %vm307_vm2, %v3871_v58 }
  0x8a   : > { %12949 = vmatmul.mubr.msk.bf16.gmra.mrb[8].mxu1 %vm307_vm2, %v3869_v8  ;;  %v2870_v8 = vld [vmem:[#allocation2 + $0x228] sm:$0xff] }
  0x8b   : > { %12952 = vmatprep.mubr.msk.bf16.mxu1 %vm307_vm2, %v3870_v5 }
  0x90   : > { %12821 = vmatmul.mubr.msk.bf16.gmra.mrb[60].mxu0 %vm307_vm2, %v3872_v52 }
  0x91   : > { %12826 = vmatprep.mubr.msk.bf16.mxu0 %vm307_vm2, %v2857_v29 }
  0x92   : > { %12953 = vmatmul.mubr.msk.bf16.gmra.mrb[12].mxu1 %vm307_vm2, %v3871_v58 }
  0x93   : > { %12956 = vmatprep.mubr.msk.bf16.mxu1 %vm307_vm2, %v3872_v52 }
  0x98   : > { %12827 = vmatmul.mubr.msk.bf16.vlgmr.msra.gmra.mrb[32].mxu0 %vm307_vm2, %v15926_v62  ;;  %v2865_v62 = vld [vmem:[#allocation2 + $0x200] sm:$0xff] }
  0x99   : > { %12830 = vmatprep.mubr.msk.bf16.mxu0 %vm307_vm2, %v15955_v24  ;;  %12859 = vmatpush3.bf16.msra.mxu0 %v14610_v55 }
  0x9a   : > { %12957 = vmatmul.mubr.msk.bf16.gmra.mrb[16].mxu1 %vm307_vm2, %v3873_v22 }
  0x9b   : > { %12962 = vmatprep.mubr.msk.bf16.mxu1 %vm307_vm2, %v15873_v0  ;;  %v2864_v0 = vld [vmem:[#allocation2 + $0x1f8] sm:$0xff] }
  0xa0   : > { %12831 = vmatmul.mubr.msk.bf16.gmra.mrb[36].mxu0 %vm307_vm2, %v15981_v54 }
  0xa1   : > { %12834 = vmatprep.mubr.msk.bf16.mxu0 %vm307_vm2, %v15998_v10 }
  0xa2   : > { %12963 = vmatmul.mubr.msk.bf16.vlgmr.msra.gmra.mrb[20].mxu1 %vm307_vm2, %v15891_v20 }
  0xa3   : > { %12995 = vmatpush3.bf16.msra.mxu1 %v15856_v49  ;;  %12966 = vmatprep.mubr.msk.bf16.mxu1 %vm307_vm2, %v15904_v36  ;;  %v15356_v49 = vld [vmem:[%s18541_s2 + $0x18] sm:$0xff]  }
  0xa4   : > { %13028 = vmatprep.subr.bf16.mxu1 %v14609_v41  ;;  %12892 = vmatprep.subr.bf16.mxu0 %v15356_v49 }
  0xa8   : > { %12835 = vmatmul.mubr.msk.bf16.gmra.mrb[40].mxu0 %vm307_vm2, %v16013_v25 }
  0xa9   : > { %12838 = vmatprep.mubr.msk.bf16.mxu0 %vm307_vm2, %v16040_v56 }
  0xaa   : > { %12967 = vmatmul.mubr.msk.bf16.gmra.mrb[24].mxu1 %vm307_vm2, %v15921_v59 }
  0xab   : > { %12970 = vmatprep.mubr.msk.bf16.mxu1 %vm307_vm2, %v15944_v17 }
  0xb0   : > { %12839 = vmatmul.mubr.msk.bf16.gmra.mrb[44].mxu0 %vm307_vm2, %v2864_v0 }
  0xb1   : > { %12842 = vmatprep.mubr.msk.bf16.mxu0 %vm307_vm2, %v2865_v62 }
  0xb2   : > { %12971 = vmatmul.mubr.msk.bf16.gmra.mrb[28].mxu1 %vm307_vm2, %v15960_v27 }
  0xb3   : > { %12974 = vmatprep.mubr.msk.bf16.mxu1 %vm307_vm2, %v15987_v38 }
  0xb8   : > { %12843 = vmatmul.mubr.msk.bf16.gmra.mrb[48].mxu0 %vm307_vm2, %v2866_v4 }
  0xb9   : > { %12846 = vmatprep.mubr.msk.bf16.mxu0 %vm307_vm2, %v2867_v9 }
  0xba   : > { %12975 = vmatmul.mubr.msk.bf16.gmra.mrb[0].mxu1 %vm307_vm2, %v16008_v34 }
  0xbb   : > { %12978 = vmatprep.mubr.msk.bf16.mxu1 %vm307_vm2, %v16027_v37 }
  0xc0   : > { %12847 = vmatmul.mubr.msk.bf16.gmra.mrb[52].mxu0 %vm307_vm2, %v2868_v40 }
  0xc1   : > { %12850 = vmatprep.mubr.msk.bf16.mxu0 %vm307_vm2, %v2869_v7 }
  0xc2   : > { %12979 = vmatmul.mubr.msk.bf16.gmra.mrb[4].mxu1 %vm307_vm2, %v16048_v57 }
  0xc3   : > { %12982 = vmatprep.mubr.msk.bf16.mxu1 %vm307_vm2, %v16062_v23 }
  0xc8   : > { %12851 = vmatmul.mubr.msk.bf16.gmra.mrb[56].mxu0 %vm307_vm2, %v2870_v8 }
  0xc9   : > { %12854 = vmatprep.mubr.msk.bf16.mxu0 %vm307_vm2, %v2871_v11 }
  0xca   : > { %12983 = vmatmul.mubr.msk.bf16.gmra.mrb[8].mxu1 %vm307_vm2, %v16071_v33 }
  0xcb   : > { %12986 = vmatprep.mubr.msk.bf16.mxu1 %vm307_vm2, %v16077_v21 }
  0xd0   : > { %12855 = vmatmul.mubr.msk.bf16.gmra.mrb[60].mxu0 %vm307_vm2, %v16178_v14 }
  0xd2   : > { %12987 = vmatmul.mubr.msk.bf16.gmra.mrb[12].mxu1 %vm307_vm2, %v16087_v60 }
  0xd3   : > { %12990 = vmatprep.mubr.msk.bf16.mxu1 %vm307_vm2, %v16094_v1 }
  0xda   : > { %12991 = vmatmul.mubr.msk.bf16.gmra.mrb[16].mxu1 %vm307_vm2, %v1733_v43  ;;  %v14618_v43 = vld [vmem:[%s15468_s16 + $0x18] sm:$0x7f]  }
  0xdb   : > { %12996 = vmatprep.mubr.msk.bf16.mxu1 %vm307_vm2, %v15955_v24  ;;  %v3326_v24 = vld [vmem:[#allocation2 + $0x360] sm:$0xff] }
  0xdc   : > { %12860 = vmatprep.mubr.msk.bf16.mxu0 %vm307_vm2, %v3326_v24 }
  0xe2   : > { %12997 = vmatmul.mubr.msk.bf16.vlgmr.msra.gmra.mrb[20].mxu1 %vm307_vm2, %v15981_v54  ;;  %v16191_v54 = vld [vmem:[%s18541_s2 + $0x50] sm:$0xff]  }
  0xe3   : > { %13029 = vmatpush3.bf16.msra.mxu1 %v14609_v41  ;;  %13000 = vmatprep.mubr.msk.bf16.mxu1 %vm307_vm2, %v15998_v10  ;;  %v15357_v10 = vld [vmem:[#allocation2 + $0x368] sm:$0xff]  ;;  %v822_v41 = vrot.slane %v14617_v63, 7 }
  0xe4   : > { %13062 = vmatprep.subr.bf16.mxu1 %v16172_v12  ;;  %12861 = vmatmul.mubr.msk.bf16.vlgmr.msra.gmra.mrb[32].mxu0 %vm307_vm2, %v15357_v10 }
  0xe5   : > { %12864 = vmatprep.mubr.msk.bf16.mxu0 %vm307_vm2, %v15891_v20  ;;  %12893 = vmatpush3.bf16.msra.mxu0 %v15356_v49  ;;  %v16212_v20 = vld [vmem:[%s18545_s6] ss:$0 sm:$0xff]  ;;  %855 = vst.msk [vmem:[#allocation2 + $0x108] sm:$0xfe] %vm852_vm11, %v822_v41  ;;  %v16316_v41 = vld [vmem:[#allocation2 + $0x2b0] sm:$0xff] }
  0xe6   : > { %13096 = vmatprep.subr.bf16.mxu0 %v16191_v54 }
  0xea   : > { %13001 = vmatmul.mubr.msk.bf16.gmra.mrb[24].mxu1 %vm307_vm2, %v16013_v25 }
  0xeb   : > { %13004 = vmatprep.mubr.msk.bf16.mxu1 %vm307_vm2, %v16040_v56 }
  0xec   : > { %12865 = vmatmul.mubr.msk.bf16.gmra.mrb[36].mxu0 %vm307_vm2, %v15904_v36  ;;  %v12760_v36 = vpop.f32.mrb[0].mxu0 }
  0xed   : > { %12868 = vmatprep.mubr.msk.bf16.mxu0 %vm307_vm2, %v15921_v59  ;;  %v16217_v59 = vadd.f32 %v12760_v36, %v16212_v20  ;;  %v2504_v25 = vpop.f32.mrb[1].mxu0 }
  0xef   : > { %v2633_v56 = vsub.f32 0.0, %v16217_v59 }
  0xf1   : > { %v2667_v19 = vmul.f32 1.442695, %v2633_v56  ;;  %v4406_v56 = vld [vmem:[#allocation2 + $0x248] sm:$0xff] }
  0xf2   : > { %13005 = vmatmul.mubr.msk.bf16.gmra.mrb[28].mxu1 %vm307_vm2, %v2864_v0  ;;  %v823_v0 = vrot.slane %v14618_v43, 7 }
  0xf3   : > { %13008 = vmatprep.mubr.msk.bf16.mxu1 %vm307_vm2, %v2865_v62  ;;  %14712 = vpow2.f32 %v2667_v19 }
  0xf4   : > { %12869 = vmatmul.mubr.msk.bf16.gmra.mrb[40].mxu0 %vm307_vm2, %v15944_v17  ;;  %v16220_v17 = vadd.f32 %v16212_v20, %v2504_v25  ;;  %856 = vst.msk [vmem:[#allocation2 + $0x110] sm:$0xfe] %vm852_vm11, %v823_v0 }
  0xf5   : > { %12872 = vmatprep.mubr.msk.bf16.mxu0 %vm307_vm2, %v15960_v27  ;;  %v12761_v27 = vpop.f32.mrb[2].mxu0 }
  0xf6   : > { %v16224_v13 = vadd.f32 %v12761_v27, %v16212_v20  ;;  %v2507_v16 = vpop.f32.mrb[3].mxu0  ;;  %v2631_v18 = vsub.f32 0.0, %v16220_v17 }
  0xf7   : > { %v16228_v3 = vadd.f32 %v16212_v20, %v2507_v16  ;;  %v12764_v32 = vpop.f32.mrb[4].mxu0 }
  0xf8   : > { %v2634_v46 = vsub.f32 0.0, %v16224_v13  ;;  %v2663_v5 = vmul.f32 1.442695, %v2631_v18 }
  0xf9   : > { %v2632_v26 = vsub.f32 0.0, %v16228_v3 }
  0xfa   : > { %13009 = vmatmul.mubr.msk.bf16.gmra.mrb[0].mxu1 %vm307_vm2, %v2866_v4  ;;  %v2669_v6 = vmul.f32 1.442695, %v2634_v46  ;;  %14714 = vpow2.f32 %v2663_v5  ;;  %v16288_v46 = vld [vmem:[#allocation2 + $0x2a0] sm:$0xff] }
  0xfb   : > { %13012 = vmatprep.mubr.msk.bf16.mxu1 %vm307_vm2, %v2867_v9  ;;  %v2665_v31 = vmul.f32 1.442695, %v2632_v26 }
  0xfc   : > { %12873 = vmatmul.mubr.msk.bf16.gmra.mrb[44].mxu0 %vm307_vm2, %v15987_v38  ;;  %14716 = vpow2.f32 %v2669_v6  ;;  %v16241_v38 = vadd.f32 %v12764_v32, %v16212_v20  ;;  %v824_v32 = vrot.slane %v14619_v28, 7 }
  0xfd   : > { %12876 = vmatprep.mubr.msk.bf16.mxu0 %vm307_vm2, %v16008_v34  ;;  %v2520_v34 = vpop.f32.mrb[5].mxu0  ;;  %14718 = vpow2.f32 %v2665_v31  ;;  %v14713_v29 = vpop.eup %14712 }
  0xfe   : > { %v16244_v15 = vadd.f32 %v16212_v20, %v2520_v34  ;;  %v12765_v42 = vpop.f32.mrb[6].mxu0  ;;  %v2637_v44 = vsub.f32 0.0, %v16241_v38  ;;  %v2729_v4 = vadd.f32 1.0, %v14713_v29  ;;  %857 = vst.msk [vmem:[#allocation2 + $0x118] sm:$0xfe] %vm852_vm11, %v824_v32 }
  0xff   : > { %v16249_v47 = vadd.f32 %v12765_v42, %v16212_v20  ;;  %v2523_v48 = vpop.f32.mrb[7].mxu0 }
 0x100   : > { %v2635_v58 = vsub.f32 0.0, %v16244_v15  ;;  %v16254_v50 = vadd.f32 %v16212_v20, %v2523_v48  ;;  %v2675_v51 = vmul.f32 1.442695, %v2637_v44 }
 0x101   : > { %v2638_v52 = vsub.f32 0.0, %v16249_v47 }
 0x102   : > { %13013 = vmatmul.mubr.msk.bf16.gmra.mrb[4].mxu1 %vm307_vm2, %v2868_v40  ;;  %v2671_v55 = vmul.f32 1.442695, %v2635_v58  ;;  %v2636_v61 = vsub.f32 0.0, %v16254_v50  ;;  %14720 = vpow2.f32 %v2675_v51 }
 0x103   : > { %13016 = vmatprep.mubr.msk.bf16.mxu1 %vm307_vm2, %v2869_v7  ;;  %v2677_v2 = vmul.f32 1.442695, %v2638_v52 }
 0x104   : > { %12877 = vmatmul.mubr.msk.bf16.gmra.mrb[48].mxu0 %vm307_vm2, %v16027_v37  ;;  %14722 = vpow2.f32 %v2671_v55  ;;  %v2673_v22 = vmul.f32 1.442695, %v2636_v61  ;;  %v12768_v37 = vpop.f32.mrb[8].mxu0  ;;  %v14715_v62 = vpop.eup %14714 }
 0x105   : > { %12880 = vmatprep.mubr.msk.bf16.mxu0 %vm307_vm2, %v16048_v57  ;;  %14724 = vpow2.f32 %v2677_v2  ;;  %v16268_v57 = vadd.f32 %v12768_v37, %v16212_v20  ;;  %v2536_v49 = vpop.f32.mrb[9].mxu0  ;;  %v16314_v37 = vld [vmem:[#allocation2 + $0x2a8] sm:$0xff] }
 0x106   : > { %14726 = vpow2.f32 %v2673_v22  ;;  %v16271_v9 = vadd.f32 %v16212_v20, %v2536_v49  ;;  %v12769_v40 = vpop.f32.mrb[10].mxu0  ;;  %v14717_v7 = vpop.eup %14716 }
 0x107   : > { %v2539_v24 = vpop.f32.mrb[11].mxu0  ;;  %v14719_v10 = vpop.eup %14718  ;;  %14728 = vrcp.f32 %v2729_v4  ;;  %v2730_v36 = vadd.f32 1.0, %v14717_v7  ;;  %v14622_v7 = vld [vmem:[%s15468_s16 + $0x30] sm:$0x7f]  }
 0x108   : > { %v2639_v25 = vsub.f32 0.0, %v16271_v9  ;;  %v16281_v27 = vadd.f32 %v16212_v20, %v2539_v24  ;;  %v2728_v16 = vadd.f32 1.0, %v14719_v10  ;;  %v12772_v31 = vpop.f32.mrb[12].mxu0  ;;  %v14623_v10 = vld [vmem:[%s15468_s16 + $0x38] sm:$0x7f]  }
 0x109   : > { %v2552_v34 = vpop.f32.mrb[13].mxu0 }
 0x10a   : > { %13017 = vmatmul.mubr.msk.bf16.gmra.mrb[8].mxu1 %vm307_vm2, %v2870_v8  ;;  %v2727_v8 = vadd.f32 1.0, %v14715_v62  ;;  %v2679_v5 = vmul.f32 1.442695, %v2639_v25  ;;  %v2640_v26 = vsub.f32 0.0, %v16281_v27  ;;  %v16300_v48 = vadd.f32 %v16212_v20, %v2552_v34  ;;  %v12773_v58 = vpop.f32.mrb[14].mxu0  ;;  %v16348_v34 = vld [vmem:[#allocation2 + $0x2b8] sm:$0xff] }
 0x10b   : > { %13020 = vmatprep.mubr.msk.bf16.mxu1 %vm307_vm2, %v2871_v11  ;;  %v2641_v11 = vsub.f32 0.0, %v16268_v57  ;;  %v16305_v55 = vadd.f32 %v12773_v58, %v16212_v20  ;;  %v2555_v61 = vpop.f32.mrb[15].mxu0 }
 0x10c   : > { %12881 = vmatmul.mubr.msk.bf16.gmra.mrb[52].mxu0 %vm307_vm2, %v16062_v23  ;;  %14730 = vrcp.f32 %v2727_v8  ;;  %v2681_v23 = vmul.f32 1.442695, %v2640_v26  ;;  %v14721_v35 = vpop.eup %14720  ;;  %v2643_v43 = vsub.f32 0.0, %v16300_v48  ;;  %v16310_v22 = vadd.f32 %v16212_v20, %v2555_v61 }
 0x10d   : > { %v2683_v18 = vmul.f32 1.442695, %v2641_v11  ;;  %12884 = vmatprep.mubr.msk.bf16.mxu0 %vm307_vm2, %v16071_v33  ;;  %14732 = vrcp.f32 %v2730_v36  ;;  %v16297_v33 = vadd.f32 %v12772_v31, %v16212_v20  ;;  %v2733_v44 = vadd.f32 1.0, %v14721_v35 }
 0x10e   : > { %14734 = vrcp.f32 %v2728_v16  ;;  %v14723_v42 = vpop.eup %14722  ;;  %v2646_v0 = vsub.f32 0.0, %v16305_v55  ;;  %v2687_v4 = vmul.f32 1.442695, %v2643_v43  ;;  %v826_v16 = vrot.slane %v14622_v7, 7  ;;  %v15358_v43 = vld [vmem:[#allocation2 + $0x1c8] sm:$0xff] }
 0x10f   : > { %14736 = vpow2.f32 %v2683_v18  ;;  %v14725_v51 = vpop.eup %14724  ;;  %v2731_v52 = vadd.f32 1.0, %v14723_v42  ;;  %v827_v26 = vrot.slane %v14623_v10, 7 }
 0x110   : > { %14738 = vpow2.f32 %v2679_v5  ;;  %v14727_v63 = vpop.eup %14726  ;;  %v2734_v2 = vadd.f32 1.0, %v14725_v51  ;;  %v2693_v24 = vmul.f32 1.442695, %v2646_v0  ;;  %859 = vst.msk [vmem:[#allocation2 + $0x128] sm:$0xfe] %vm852_vm11, %v826_v16  ;;  %v16356_v51 = vld [vmem:[#allocation2 + $0x2c0] sm:$0xff] }
 0x111   : > { %v2732_v29 = vadd.f32 1.0, %v14727_v63  ;;  %v14729_v62 = vpop.eup %14728  ;;  %860 = vst.msk [vmem:[#allocation2 + $0x130] sm:$0xfe] %vm852_vm11, %v827_v26  ;;  %v14624_v63 = vld [vmem:[%s15468_s16 + $0x40] sm:$0x7f]  }
 0x112   : > { %13021 = vmatmul.mubr.msk.bf16.gmra.mrb[12].mxu1 %vm307_vm2, %v16178_v14  ;;  %v16276_v14 = vadd.f32 %v12769_v40, %v16212_v20  ;;  %v2644_v40 = vsub.f32 0.0, %v16310_v22  ;;  %v2793_v11 = vmul.f32 %v14729_v62, %v16217_v59  ;;  %v14625_v0 = vld [vmem:[%s15468_s16 + $0x48] sm:$0x7f]   ;;  %v828_v7 = vrot.slane %v14624_v63, 7  ;;  %v16400_v63 = vld [vmem:[#allocation2 + $0x2d0] sm:$0xff] }
 0x113   : > { %13024 = vmatprep.mubr.msk.bf16.mxu1 %vm307_vm2, %v4405_v53  ;;  %v2645_v53 = vsub.f32 0.0, %v16297_v33 }
 0x114   : > { %v2642_v19 = vsub.f32 0.0, %v16276_v14  ;;  %12885 = vmatmul.mubr.msk.bf16.gmra.mrb[56].mxu0 %vm307_vm2, %v16077_v21  ;;  %v16325_v21 = vld [vmem:[%s18541_s2 + $0x98] sm:$0xff]   ;;  %v2689_v25 = vmul.f32 1.442695, %v2644_v40  ;;  %861 = vst.msk [vmem:[#allocation2 + $0x138] sm:$0xfe] %vm852_vm11, %v828_v7 }
 0x115   : > { %v2691_v49 = vmul.f32 1.442695, %v2645_v53  ;;  %12888 = vmatprep.mubr.msk.bf16.mxu0 %vm307_vm2, %v16087_v60 }
 0x116   : > { %v2685_v6 = vmul.f32 1.442695, %v2642_v19  ;;  %v14731_v8 = vpop.eup %14730 }
 0x117   : > { %v14733_v36 = vpop.eup %14732  ;;  %v2791_v60 = vmul.f32 %v14731_v8, %v16220_v17 }
 0x118   : > { %14740 = vpow2.f32 %v2685_v6  ;;  %v14735_v18 = vpop.eup %14734  ;;  %v2794_v19 = vmul.f32 %v14733_v36, %v16224_v13  ;;  %v829_v36 = vrot.slane %v14625_v0, 7 }
 0x119   : > { %14742 = vpow2.f32 %v2681_v23  ;;  %v14737_v28 = vpop.eup %14736  ;;  %v2792_v17 = vmul.f32 %v14735_v18, %v16228_v3 }
 0x11a   : > { %13025 = vmatmul.mubr.msk.bf16.gmra.mrb[16].mxu1 %vm307_vm2, %v4406_v56  ;;  %14744 = vrcp.f32 %v2733_v44  ;;  %v12776_v56 = vpop.f32.mrb[16].mxu0  ;;  %v2824_v13 = vpack.c.bf16 %v2794_v19, %v2793_v11  ;;  %v2737_v23 = vadd.f32 1.0, %v14737_v28  ;;  %862 = vst.msk [vmem:[#allocation2 + $0x140] sm:$0xfe] %vm852_vm11, %v829_v36 }
 0x11b   : > { %13030 = vmatprep.mubr.msk.bf16.mxu1 %vm307_vm2, %v16288_v46  ;;  %14746 = vrcp.f32 %v2731_v52  ;;  %v16338_v59 = vadd.f32 %v12776_v56, %v16212_v20  ;;  %v2568_v5 = vpop.f32.mrb[17].mxu0  ;;  %v2823_v35 = vpack.c.bf16 %v2792_v17, %v2791_v60 }
 0x11c   : > { %14748 = vrcp.f32 %v2734_v2  ;;  %v16342_v6 = vadd.f32 %v16212_v20, %v2568_v5  ;;  %v12777_v30 = vpop.f32.mrb[18].mxu0  ;;  %12889 = vmatmul.mubr.msk.bf16.gmra.mrb[60].mxu0 %vm307_vm2, %v16094_v1  ;;  %2841 = vst.msk [vmem:[#allocation3 + $0x8] sm:$0xff] %vm2839_vm12, %v2824_v13 }
 0x11d   : > { %14750 = vrcp.f32 %v2732_v29  ;;  %v2649_v31 = vsub.f32 0.0, %v16338_v59  ;;  %v2571_v32 = vpop.f32.mrb[19].mxu0  ;;  %v16352_v44 = vadd.f32 %v12777_v30, %v16212_v20  ;;  %12894 = vmatprep.mubr.msk.bf16.mxu0 %vm307_vm2, %v15358_v43  ;;  %2840 = vst.msk [vmem:[#allocation3] sm:$0xff] %vm2839_vm12, %v2823_v35  ;;  %v16392_v35 = vld [vmem:[#allocation2 + $0x2c8] sm:$0xff] }
 0x11e   : > { %14752 = vpow2.f32 %v2691_v49  ;;  %v2647_v42 = vsub.f32 0.0, %v16342_v6  ;;  %v16359_v61 = vadd.f32 %v16212_v20, %v2571_v32  ;;  %v12780_v10 = vpop.f32.mrb[20].mxu0 }
 0x11f   : > { %14754 = vpow2.f32 %v2687_v4  ;;  %v2699_v53 = vmul.f32 1.442695, %v2649_v31  ;;  %v2650_v1 = vsub.f32 0.0, %v16352_v44  ;;  %v16376_v56 = vadd.f32 %v12780_v10, %v16212_v20  ;;  %v2584_v16 = vpop.f32.mrb[21].mxu0 }
 0x120   : > { %14756 = vpow2.f32 %v2693_v24  ;;  %v2695_v49 = vmul.f32 1.442695, %v2647_v42  ;;  %v2648_v40 = vsub.f32 0.0, %v16359_v61  ;;  %v16381_v19 = vadd.f32 %v16212_v20, %v2584_v16  ;;  %v12781_v5 = vpop.f32.mrb[22].mxu0 }
 0x121   : > { %14758 = vpow2.f32 %v2689_v25  ;;  %v2701_v24 = vmul.f32 1.442695, %v2650_v1  ;;  %v2653_v17 = vsub.f32 0.0, %v16376_v56  ;;  %v2587_v30 = vpop.f32.mrb[23].mxu0 }
 0x122   : > { %13031 = vmatmul.mubr.msk.bf16.vlgmr.msra.gmra.mrb[20].mxu1 %vm307_vm2, %v16314_v37  ;;  %14760 = vrcp.f32 %v2737_v23  ;;  %v2651_v31 = vsub.f32 0.0, %v16381_v19  ;;  %v12784_v7 = vpop.f32.mrb[24].mxu0 }
 0x123   : > { %13063 = vmatpush3.bf16.msra.mxu1 %v16172_v12  ;;  %13034 = vmatprep.mubr.msk.bf16.mxu1 %vm307_vm2, %v16316_v41  ;;  %v14739_v12 = vpop.eup %14738  ;;  %v2707_v42 = vmul.f32 1.442695, %v2653_v17  ;;  %v16418_v36 = vadd.f32 %v12784_v7, %v16212_v20 }
 0x124   : > { %13402 = vmatprep.subr.bf16.mxu1 %v16325_v21  ;;  %v14741_v3 = vpop.eup %14740  ;;  %v2735_v39 = vadd.f32 1.0, %v14739_v12  ;;  %v16388_v12 = vld [vmem:[%s18541_s2 + $0x48] sm:$0xff]   ;;  %v2703_v43 = vmul.f32 1.442695, %v2651_v31 }
 0x125   : > { %v14743_v58 = vpop.eup %14742  ;;  %v2738_v52 = vadd.f32 1.0, %v14741_v3  ;;  %v15359_v3 = vld [vmem:[#allocation2 + $0x1d0] sm:$0xff] }
 0x126   : > { %v14745_v2 = vpop.eup %14744  ;;  %14762 = vrcp.f32 %v2735_v39  ;;  %v2736_v29 = vadd.f32 1.0, %v14743_v58  ;;  %12895 = vmatmul.mubr.msk.bf16.vlgmr.msra.gmra.mrb[32].mxu0 %vm307_vm2, %v15359_v3  ;;  %v16395_v58 = vadd.f32 %v12781_v5, %v16212_v20  ;;  %v2657_v5 = vsub.f32 0.0, %v16418_v36 }
 0x127   : > { %v14747_v62 = vpop.eup %14746  ;;  %v2797_v4 = vmul.f32 %v14745_v2, %v16241_v38  ;;  %14764 = vrcp.f32 %v2738_v52  ;;  %v2697_v38 = vmul.f32 1.442695, %v2648_v40  ;;  %v14626_v52 = vld [vmem:[%s15468_s16 + $0x50] sm:$0x7f]   ;;  %13097 = vmatpush3.bf16.msra.mxu0 %v16191_v54 }
 0x128   : > { %v14749_v8 = vpop.eup %14748  ;;  %v2795_v11 = vmul.f32 %v14747_v62, %v16244_v15  ;;  %14766 = vrcp.f32 %v2736_v29  ;;  %v16404_v29 = vadd.f32 %v16212_v20, %v2587_v30  ;;  %v2654_v0 = vsub.f32 0.0, %v16395_v58  ;;  %13130 = vmatprep.subr.bf16.mxu0 %v16388_v12 }
 0x129   : > { %v14751_v60 = vpop.eup %14750  ;;  %v2798_v25 = vmul.f32 %v14749_v8, %v16249_v47  ;;  %14768 = vpow2.f32 %v2699_v53  ;;  %v15360_v53 = vld [vmem:[#allocation2 + $0x1d8] sm:$0xff]  ;;  %v830_v62 = vrot.slane %v14626_v52, 7  ;;  %v16437_v52 = vld [vmem:[#allocation2 + $0x2e0] sm:$0xff] }
 0x12a   : > { %13035 = vmatmul.mubr.msk.bf16.gmra.mrb[24].mxu1 %vm307_vm2, %v16348_v34  ;;  %v14753_v18 = vpop.eup %14752  ;;  %v2796_v15 = vmul.f32 %v14751_v60, %v16254_v50  ;;  %14770 = vpow2.f32 %v2695_v49  ;;  %12898 = vmatprep.mubr.msk.bf16.mxu0 %vm307_vm2, %v15360_v53  ;;  %v14627_v49 = vld [vmem:[%s15468_s16 + $0x58] sm:$0x7f]   ;;  %v2652_v54 = vsub.f32 0.0, %v16404_v29  ;;  %v2709_v10 = vmul.f32 1.442695, %v2654_v0 }
 0x12b   : > { %13038 = vmatprep.mubr.msk.bf16.mxu1 %vm307_vm2, %v16356_v51  ;;  %v14755_v47 = vpop.eup %14754  ;;  %v2826_v26 = vpack.c.bf16 %v2798_v25, %v2797_v4  ;;  %v2741_v28 = vadd.f32 1.0, %v14753_v18  ;;  %14772 = vpow2.f32 %v2701_v24  ;;  %v831_v8 = vrot.slane %v14627_v49, 7  ;;  %863 = vst.msk [vmem:[#allocation2 + $0x148] sm:$0xfe] %vm852_vm11, %v830_v62  ;;  %v14628_v49 = vld [vmem:[%s15468_s16 + $0x60] sm:$0x7f]  }
 0x12c   : > { %v14757_v50 = vpop.eup %14756  ;;  %v2825_v13 = vpack.c.bf16 %v2796_v15, %v2795_v11  ;;  %v2739_v23 = vadd.f32 1.0, %v14755_v47  ;;  %14774 = vpow2.f32 %v2697_v38  ;;  %v2705_v38 = vmul.f32 1.442695, %v2652_v54 }
 0x12d   : > { %v14759_v32 = vpop.eup %14758  ;;  %14776 = vrcp.f32 %v2741_v28  ;;  %v2742_v39 = vadd.f32 1.0, %v14757_v50  ;;  %2843 = vst.msk [vmem:[#allocation3 + $0x18] sm:$0xff] %vm2839_vm12, %v2826_v26 }
 0x12e   : > { %14778 = vrcp.f32 %v2739_v23  ;;  %v2740_v2 = vadd.f32 1.0, %v14759_v32  ;;  %2842 = vst.msk [vmem:[#allocation3 + $0x10] sm:$0xff] %vm2839_vm12, %v2825_v13  ;;  %v14761_v1 = vpop.eup %14760  ;;  %v15361_v13 = vld [vmem:[#allocation2 + $0x1e0] sm:$0xff]  ;;  %v2715_v32 = vmul.f32 1.442695, %v2657_v5 }
 0x12f   : > { %14780 = vrcp.f32 %v2742_v39  ;;  %v2801_v40 = vmul.f32 %v14761_v1, %v16268_v57  ;;  %v2600_v57 = vpop.f32.mrb[25].mxu0  ;;  %864 = vst.msk [vmem:[#allocation2 + $0x150] sm:$0xfe] %vm852_vm11, %v831_v8  ;;  %12899 = vmatmul.mubr.msk.bf16.gmra.mrb[36].mxu0 %vm307_vm2, %v15361_v13 }
 0x130   : > { %v14763_v4 = vpop.eup %14762  ;;  %14782 = vrcp.f32 %v2740_v2  ;;  %v16423_v16 = vadd.f32 %v16212_v20, %v2600_v57 }
 0x131   : > { %v14765_v11 = vpop.eup %14764  ;;  %v2799_v24 = vmul.f32 %v14763_v4, %v16271_v9  ;;  %14784 = vpow2.f32 %v2707_v42  ;;  %v12785_v9 = vpop.f32.mrb[26].mxu0  ;;  %v15362_v42 = vld [vmem:[#allocation2 + $0x1e8] sm:$0xff] }
 0x132   : > { %13039 = vmatmul.mubr.msk.bf16.gmra.mrb[28].mxu1 %vm307_vm2, %v16392_v35  ;;  %v14767_v60 = vpop.eup %14766  ;;  %v2802_v25 = vmul.f32 %v14765_v11, %v16276_v14  ;;  %14786 = vpow2.f32 %v2703_v43  ;;  %v16429_v47 = vadd.f32 %v12785_v9, %v16212_v20  ;;  %v2603_v26 = vpop.f32.mrb[27].mxu0  ;;  %v2655_v30 = vsub.f32 0.0, %v16423_v16  ;;  %12902 = vmatprep.mubr.msk.bf16.mxu0 %vm307_vm2, %v15362_v42  ;;  %v14629_v4 = vld [vmem:[%s15468_s16 + $0x68] sm:$0x7f]   ;;  %v16475_v42 = vld [vmem:[#allocation2 + $0x2f0] sm:$0xff] }
 0x133   : > { %13042 = vmatprep.mubr.msk.bf16.mxu1 %vm307_vm2, %v16400_v63  ;;  %v14769_v18 = vpop.eup %14768  ;;  %v2800_v15 = vmul.f32 %v14767_v60, %v16281_v27  ;;  %14788 = vpow2.f32 %v2709_v10  ;;  %v16433_v27 = vld [vmem:[#allocation2 + $0x2d8] sm:$0xff]  ;;  %v16440_v43 = vadd.f32 %v16212_v20, %v2603_v26  ;;  %v12788_v8 = vpop.f32.mrb[28].mxu0  ;;  %v832_v11 = vrot.slane %v14628_v49, 7  ;;  %v16462_v26 = vld [vmem:[#allocation2 + $0x288] sm:$0xff] }
 0x134   : > { %v14771_v28 = vpop.eup %14770  ;;  %v2828_v14 = vpack.c.bf16 %v2802_v25, %v2801_v40  ;;  %v2745_v17 = vadd.f32 1.0, %v14769_v18  ;;  %14790 = vpow2.f32 %v2705_v38  ;;  %v2658_v3 = vsub.f32 0.0, %v16429_v47  ;;  %v2616_v60 = vpop.f32.mrb[29].mxu0 }
 0x135   : > { %v14773_v50 = vpop.eup %14772  ;;  %v2827_v23 = vpack.c.bf16 %v2800_v15, %v2799_v24  ;;  %v2743_v31 = vadd.f32 1.0, %v14771_v28  ;;  %v2711_v2 = vmul.f32 1.442695, %v2655_v30  ;;  %v2656_v7 = vsub.f32 0.0, %v16440_v43  ;;  %v12789_v15 = vpop.f32.mrb[30].mxu0 }
 0x136   : > { %v14775_v39 = vpop.eup %14774  ;;  %14792 = vrcp.f32 %v2745_v17  ;;  %v2746_v53 = vadd.f32 1.0, %v14773_v50  ;;  %2845 = vst.msk [vmem:[#allocation3 + $0x28] sm:$0xff] %vm2839_vm12, %v2828_v14  ;;  %v2717_v62 = vmul.f32 1.442695, %v2658_v3  ;;  %v16454_v57 = vadd.f32 %v12788_v8, %v16212_v20 }
 0x137   : > { %v14777_v1 = vpop.eup %14776  ;;  %14794 = vrcp.f32 %v2743_v31  ;;  %v2744_v0 = vadd.f32 1.0, %v14775_v39  ;;  %2844 = vst.msk [vmem:[#allocation3 + $0x20] sm:$0xff] %vm2839_vm12, %v2827_v23  ;;  %v2713_v9 = vmul.f32 1.442695, %v2656_v7  ;;  %v16458_v18 = vadd.f32 %v16212_v20, %v2616_v60  ;;  %v15363_v31 = vld [vmem:[#allocation2 + $0x1f0] sm:$0xff] }
 0x138   : > { %v14779_v40 = vpop.eup %14778  ;;  %v2805_v54 = vmul.f32 %v14777_v1, %v16297_v33  ;;  %14796 = vrcp.f32 %v2746_v53  ;;  %v833_v33 = vrot.slane %v14629_v4, 7  ;;  %865 = vst.msk [vmem:[#allocation2 + $0x158] sm:$0xfe] %vm852_vm11, %v832_v11  ;;  %v2661_v28 = vsub.f32 0.0, %v16454_v57  ;;  %12903 = vmatmul.mubr.msk.bf16.gmra.mrb[40].mxu0 %vm307_vm2, %v15363_v31 }
 0x139   : > { %v14781_v24 = vpop.eup %14780  ;;  %v2803_v10 = vmul.f32 %v14779_v40, %v16300_v48  ;;  %14798 = vrcp.f32 %v2744_v0  ;;  %v16466_v14 = vadd.f32 %v12789_v15, %v16212_v20  ;;  %v2659_v13 = vsub.f32 0.0, %v16458_v18  ;;  %13098 = vmatprep.mubr.msk.bf16.mxu0 %vm307_vm2, %v16462_v26 }
 0x13a   : > { %13043 = vmatmul.mubr.msk.bf16.gmra.mrb[0].mxu1 %vm307_vm2, %v16433_v27  ;;  %v14783_v25 = vpop.eup %14782  ;;  %v2806_v38 = vmul.f32 %v14781_v24, %v16305_v55  ;;  %14800 = vpow2.f32 %v2715_v32  ;;  %v2619_v55 = vpop.f32.mrb[31].mxu0  ;;  %866 = vst.msk [vmem:[#allocation2 + $0x160] sm:$0xfe] %vm852_vm11, %v833_v33  ;;  %v16471_v32 = vld [vmem:[#allocation2 + $0x2e8] sm:$0xff]  ;;  %v16490_v24 = vld [vmem:[#allocation2 + $0x290] sm:$0xff]  ;;  %v16493_v33 = vld [vmem:[#allocation2 + $0x298] sm:$0xff] }
 0x13b   : > { %13046 = vmatprep.mubr.msk.bf16.mxu1 %vm307_vm2, %v16437_v52  ;;  %v14785_v48 = vpop.eup %14784  ;;  %v2804_v5 = vmul.f32 %v14783_v25, %v16310_v22  ;;  %14802 = vpow2.f32 %v2711_v2  ;;  %v2723_v2 = vmul.f32 1.442695, %v2661_v28  ;;  %v2662_v49 = vsub.f32 0.0, %v16466_v14  ;;  %v16498_v25 = vld [vmem:[%s18541_s2 + $0x58] sm:$0xff]  }
 0x13c   : > { %v14787_v17 = vpop.eup %14786  ;;  %v2830_v30 = vpack.c.bf16 %v2806_v38, %v2805_v54  ;;  %v2749_v50 = vadd.f32 1.0, %v14785_v48  ;;  %14804 = vpow2.f32 %v2717_v62  ;;  %v2719_v0 = vmul.f32 1.442695, %v2659_v13 }
 0x13d   : > { %v14789_v23 = vpop.eup %14788  ;;  %v2829_v22 = vpack.c.bf16 %v2804_v5, %v2803_v10  ;;  %v2747_v3 = vadd.f32 1.0, %v14787_v17  ;;  %14806 = vpow2.f32 %v2713_v9  ;;  %v16480_v62 = vadd.f32 %v16212_v20, %v2619_v55  ;;  %v14631_v5 = vld [vmem:[%s15468_s16] sm:$0xfe]  }
 0x13e   : > { %v14791_v39 = vpop.eup %14790  ;;  %14808 = vrcp.f32 %v2749_v50  ;;  %v2750_v53 = vadd.f32 1.0, %v14789_v23  ;;  %2847 = vst.msk [vmem:[#allocation3 + $0x38] sm:$0xff] %vm2839_vm12, %v2830_v30  ;;  %v2725_v40 = vmul.f32 1.442695, %v2662_v49  ;;  %v16508_v17 = vld [vmem:[#allocation2 + $0x300] sm:$0xff]  ;;  %v1877_v23 = vrot.slane %v14631_v5, 1 }
 0x13f   : > { %14810 = vrcp.f32 %v2747_v3  ;;  %v2748_v1 = vadd.f32 1.0, %v14791_v39  ;;  %2846 = vst.msk [vmem:[#allocation3 + $0x30] sm:$0xff] %vm2839_vm12, %v2829_v22  ;;  %v2660_v8 = vsub.f32 0.0, %v16480_v62  ;;  %v14632_v30 = vld [vmem:[%s15468_s16 + $0x8] sm:$0xfe]  }
 0x140   : > { %v14793_v4 = vpop.eup %14792  ;;  %14812 = vrcp.f32 %v2750_v53  ;;  %13099 = vmatmul.mubr.msk.bf16.vlgmr.msra.gmra.mrb[64].mxu0 %vm307_vm2, %v16490_v24  ;;  %v1878_v3 = vrot.slane %v14632_v30, 1  ;;  %1910 = vst.msk [vmem:[#allocation2 + $0x438] sm:$0x7f] %vm1909_vm13, %v1877_v23  ;;  %v14635_v30 = vld [vmem:[%s15468_s16 + $0x20] sm:$0xfe]  }
 0x141   : > { %v14795_v54 = vpop.eup %14794  ;;  %v2809_v7 = vmul.f32 %v14793_v4, %v16338_v59  ;;  %14814 = vrcp.f32 %v2748_v1  ;;  %v2721_v59 = vmul.f32 1.442695, %v2660_v8  ;;  %13102 = vmatprep.mubr.msk.bf16.mxu0 %vm307_vm2, %v16493_v33  ;;  %13131 = vmatpush3.bf16.msra.mxu0 %v16388_v12  ;;  %v14633_v8 = vld [vmem:[%s15468_s16 + $0x10] sm:$0xfe]  }
 0x142   : > { %13047 = vmatmul.mubr.msk.bf16.gmra.mrb[4].mxu1 %vm307_vm2, %v16471_v32  ;;  %v14797_v11 = vpop.eup %14796  ;;  %v2807_v20 = vmul.f32 %v14795_v54, %v16342_v6  ;;  %14816 = vpow2.f32 %v2723_v2  ;;  %13164 = vmatprep.subr.bf16.mxu0 %v16498_v25  ;;  %1911 = vst.msk [vmem:[#allocation2 + $0x440] sm:$0x7f] %vm1909_vm13, %v1878_v3  ;;  %v4671_v54 = vld [vmem:[#allocation2 + $0x308] sm:$0xff] }
 0x143   : > { %13050 = vmatprep.mubr.msk.bf16.mxu1 %vm307_vm2, %v16475_v42  ;;  %v14799_v10 = vpop.eup %14798  ;;  %v2810_v60 = vmul.f32 %v14797_v11, %v16352_v44  ;;  %14818 = vpow2.f32 %v2719_v0  ;;  %v16503_v44 = vld [vmem:[#allocation2 + $0x2f8] sm:$0xff] }
 0x144   : > { %v14801_v38 = vpop.eup %14800  ;;  %v2808_v9 = vmul.f32 %v14799_v10, %v16359_v61  ;;  %14820 = vpow2.f32 %v2725_v40 }
 0x145   : > { %v14803_v6 = vpop.eup %14802  ;;  %v2832_v15 = vpack.c.bf16 %v2810_v60, %v2809_v7  ;;  %v2753_v48 = vadd.f32 1.0, %v14801_v38  ;;  %14822 = vpow2.f32 %v2721_v59  ;;  %v14634_v60 = vld [vmem:[%s15468_s16 + $0x18] sm:$0xfe]  }
 0x146   : > { %v14805_v28 = vpop.eup %14804  ;;  %v2831_v55 = vpack.c.bf16 %v2808_v9, %v2807_v20  ;;  %v2751_v61 = vadd.f32 1.0, %v14803_v6  ;;  %v4672_v20 = vld [vmem:[#allocation2 + $0x310] sm:$0xff]  ;;  %v1880_v38 = vrot.slane %v14634_v60, 1 }
 0x147   : > { %v14807_v50 = vpop.eup %14806  ;;  %14824 = vrcp.f32 %v2753_v48  ;;  %v2754_v13 = vadd.f32 1.0, %v14805_v28  ;;  %2849 = vst.msk [vmem:[#allocation3 + $0x48] sm:$0xff] %vm2839_vm12, %v2832_v15  ;;  %v4929_v60 = vld [vmem:[#allocation2 + $0x390] sm:$0xff] }
 0x148   : > { %v14809_v31 = vpop.eup %14808  ;;  %14826 = vrcp.f32 %v2751_v61  ;;  %v2752_v22 = vadd.f32 1.0, %v14807_v50  ;;  %2848 = vst.msk [vmem:[#allocation3 + $0x40] sm:$0xff] %vm2839_vm12, %v2831_v55  ;;  %13103 = vmatmul.mubr.msk.bf16.gmra.mrb[68].mxu0 %vm307_vm2, %v16288_v46  ;;  %v4673_v61 = vld [vmem:[#allocation2 + $0x318] sm:$0xff] }
 0x149   : > { %v14811_v12 = vpop.eup %14810  ;;  %v2813_v39 = vmul.f32 %v14809_v31, %v16376_v56  ;;  %14828 = vrcp.f32 %v2754_v13  ;;  %13106 = vmatprep.mubr.msk.bf16.mxu0 %vm307_vm2, %v16314_v37  ;;  %1913 = vst.msk [vmem:[#allocation2 + $0x450] sm:$0x7f] %vm1909_vm13, %v1880_v38  ;;  %v14636_v13 = vld [vmem:[%s15468_s16 + $0x28] sm:$0xfe]   ;;  %v1881_v31 = vrot.slane %v14635_v30, 1 }
 0x14a   : > { %13051 = vmatmul.mubr.msk.bf16.gmra.mrb[8].mxu1 %vm307_vm2, %v16503_v44  ;;  %v14813_v53 = vpop.eup %14812  ;;  %v2811_v2 = vmul.f32 %v14811_v12, %v16381_v19  ;;  %14830 = vrcp.f32 %v2752_v22 }
 0x14b   : > { %13054 = vmatprep.mubr.msk.bf16.mxu1 %vm307_vm2, %v16508_v17  ;;  %v14815_v49 = vpop.eup %14814  ;;  %v2814_v1 = vmul.f32 %v14813_v53, %v16395_v58  ;;  %1914 = vst.msk [vmem:[#allocation2 + $0x458] sm:$0x7f] %vm1909_vm13, %v1881_v31 }
 0x14c   : > { %v14817_v0 = vpop.eup %14816  ;;  %v2812_v56 = vmul.f32 %v14815_v49, %v16404_v29  ;;  %v1879_v29 = vrot.slane %v14633_v8, 1  ;;  %v323_v49 = vld [vmem:[#allocation2 + $0x28] sm:$0x7] }
 0x14d   : > { %v14819_v4 = vpop.eup %14818  ;;  %v2834_v40 = vpack.c.bf16 %v2814_v1, %v2813_v39  ;;  %v2757_v7 = vadd.f32 1.0, %v14817_v0  ;;  %v4926_v39 = vld [vmem:[#allocation2 + $0x378] sm:$0xff] }
 0x14e   : > { %v14821_v11 = vpop.eup %14820  ;;  %v2833_v19 = vpack.c.bf16 %v2812_v56, %v2811_v2  ;;  %v2755_v10 = vadd.f32 1.0, %v14819_v4  ;;  %1912 = vst.msk [vmem:[#allocation2 + $0x448] sm:$0x7f] %vm1909_vm13, %v1879_v29  ;;  %v14638_v2 = vld [vmem:[%s15468_s16 + $0x30] sm:$0xfe]  }
 0x14f   : > { %v14823_v58 = vpop.eup %14822  ;;  %14832 = vrcp.f32 %v2757_v7  ;;  %v2758_v59 = vadd.f32 1.0, %v14821_v11  ;;  %2851 = vst.msk [vmem:[#allocation3 + $0x58] sm:$0xff] %vm2839_vm12, %v2834_v40  ;;  %v14639_v0 = vld [vmem:[%s15468_s16 + $0x38] sm:$0xfe]   ;;  %v1883_v56 = vrot.slane %v14638_v2, 1  ;;  %v4928_v11 = vld [vmem:[#allocation2 + $0x388] sm:$0xff] }
 0x150   : > { %14834 = vrcp.f32 %v2755_v10  ;;  %v2756_v46 = vadd.f32 1.0, %v14823_v58  ;;  %2850 = vst.msk [vmem:[#allocation3 + $0x50] sm:$0xff] %vm2839_vm12, %v2833_v19  ;;  %13107 = vmatmul.mubr.msk.bf16.gmra.mrb[72].mxu0 %vm307_vm2, %v16316_v41  ;;  %v14643_v4 = vld [vmem:[%s15468_s16] sm:$0x3f]   ;;  %v1884_v40 = vrot.slane %v14639_v0, 1 }
 0x151   : > { %v14825_v9 = vpop.eup %14824  ;;  %14836 = vrcp.f32 %v2758_v59  ;;  %13110 = vmatprep.mubr.msk.bf16.mxu0 %vm307_vm2, %v16348_v34  ;;  %1916 = vst.msk [vmem:[#allocation2 + $0x468] sm:$0x7f] %vm1909_vm13, %v1883_v56  ;;  %v326_v19 = vld [vmem:[#allocation2 + $0x30] sm:$0x7]  ;;  %v14641_v58 = vld [vmem:[%s15468_s16 + $0x48] sm:$0xfe]  }
 0x152   : > { %13055 = vmatmul.mubr.msk.bf16.gmra.mrb[12].mxu1 %vm307_vm2, %v4671_v54  ;;  %v14827_v37 = vpop.eup %14826  ;;  %v2817_v6 = vmul.f32 %v14825_v9, %v16418_v36  ;;  %14838 = vrcp.f32 %v2756_v46  ;;  %v4925_v36 = vld [vmem:[#allocation2 + $0x370] sm:$0xff]  ;;  %v487_v54 = vshll.u32 %v14643_v4, 16  ;;  %1917 = vst.msk [vmem:[#allocation2 + $0x470] sm:$0x7f] %vm1909_vm13, %v1884_v40  ;;  %v327_v10 = vsel %vm16560_vm0, 0, %v326_v19 }
 0x153   : > { %13058 = vmatprep.mubr.msk.bf16.mxu1 %vm307_vm2, %v4672_v20  ;;  %v14829_v15 = vpop.eup %14828  ;;  %v2815_v48 = vmul.f32 %v14827_v37, %v16423_v16  ;;  %v1882_v16 = vrot.slane %v14636_v13, 1  ;;  %328 = vst [vmem:[#allocation2 + $0x30] sm:$0x7] %v327_v10  ;;  %v14645_v46 = vld [vmem:[%s15468_s16 + $0x8] sm:$0x3f]   ;;  %v1886_v38 = vrot.slane %v14641_v58, 1 }
 0x154   : > { %v14831_v5 = vpop.eup %14830  ;;  %v2818_v28 = vmul.f32 %v14829_v15, %v16429_v47  ;;  %v489_v8 = vrot.slane %v487_v54, 6  ;;  %v329_v37 = vld [vmem:[#allocation2 + $0x38] sm:$0x7]  ;;  %v495_v15 = vshll.u32 %v14645_v46, 16  ;;  %v14648_v10 = vld [vmem:[%s15468_s16 + $0x68] sm:$0xfe]  }
 0x155   : > { %v2816_v55 = vmul.f32 %v14831_v5, %v16440_v43  ;;  %1915 = vst.msk [vmem:[#allocation2 + $0x460] sm:$0x7f] %vm1909_vm13, %v1882_v16  ;;  %1919 = vst.msk [vmem:[#allocation2 + $0x480] sm:$0x7f] %vm1909_vm13, %v1886_v38  ;;  %v4930_v13 = vld [vmem:[#allocation2 + $0x398] sm:$0xff]  ;;  %v1890_v38 = vrot.slane %v14648_v10, 1 }
 0x156   : > { %v2836_v50 = vpack.c.bf16 %v2818_v28, %v2817_v6  ;;  %v14647_v6 = vld [vmem:[%s15468_s16 + $0x10] sm:$0x3f]   ;;  %v14652_v58 = vld [vmem:[%s15468_s16 + $0x28] sm:$0x3f]  }
 0x157   : > { %v2835_v23 = vpack.c.bf16 %v2816_v55, %v2815_v48  ;;  %v330_v48 = vsel %vm16560_vm0, 0, %v329_v37  ;;  %v500_v5 = vshrl.u32 %v14647_v6, 16  ;;  %v503_v28 = vshll.u32 %v14647_v6, 16  ;;  %1923 = vst.msk [vmem:[#allocation2 + $0x4a0] sm:$0x7f] %vm1909_vm13, %v1890_v38  ;;  %v17000_v59 = vld [vmem:[%s18541_s2 + $0xb0] sm:$0xff]  }
 0x158   : > { %2853 = vst.msk [vmem:[#allocation3 + $0x68] sm:$0xff] %vm2839_vm12, %v2836_v50  ;;  %13111 = vmatmul.mubr.msk.bf16.gmra.mrb[76].mxu0 %vm307_vm2, %v16356_v51  ;;  %v324_v51 = vsel %vm16560_vm0, 0, %v323_v49  ;;  %331 = vst [vmem:[#allocation2 + $0x38] sm:$0x7] %v330_v48  ;;  %v524_v37 = vshrl.u32 %v14652_v58, 16  ;;  %v527_v6 = vshll.u32 %v14652_v58, 16 }
 0x159   : > { %v14833_v47 = vpop.eup %14832  ;;  %2852 = vst.msk [vmem:[#allocation3 + $0x60] sm:$0xff] %vm2839_vm12, %v2835_v23  ;;  %13114 = vmatprep.mubr.msk.bf16.mxu0 %vm307_vm2, %v16392_v35  ;;  %325 = vst [vmem:[#allocation2 + $0x28] sm:$0x7] %v324_v51  ;;  %v484_v35 = vshrl.u32 %v14643_v4, 16  ;;  %v502_v30 = vrot.slane %v500_v5, 5  ;;  %v505_v50 = vrot.slane %v503_v28, 6 }
 0x15a   : > { %13059 = vmatmul.mubr.msk.bf16.gmra.mrb[16].mxu1 %vm307_vm2, %v4673_v61  ;;  %v14835_v41 = vpop.eup %14834  ;;  %v2821_v34 = vmul.f32 %v14833_v47, %v16454_v57  ;;  %v497_v61 = vrot.slane %v495_v15, 6  ;;  %v14642_v23 = vld [vmem:[%s15468_s16 + $0x50] sm:$0xfe]   ;;  %v526_v48 = vrot.slane %v524_v37, 5  ;;  %v529_v5 = vrot.slane %v527_v6, 6  ;;  %v5518_v28 = vld [vmem:[#allocation2 + $0xe8] sm:$0xff] }
 0x15b   : > { %13064 = vmatprep.mubr.msk.bf16.mxu1 %vm307_vm2, %v4925_v36  ;;  %v14837_v43 = vpop.eup %14836  ;;  %v2819_v22 = vmul.f32 %v14835_v41, %v16458_v18  ;;  %v4927_v18 = vld [vmem:[#allocation2 + $0x380] sm:$0xff]  ;;  %v486_v7 = vrot.slane %v484_v35, 5  ;;  %v633_v16 = vld [vmem:[#allocation2 + $0x30] sm:$0xfc]  ;;  %v4932_v35 = vld [vmem:[#allocation2 + $0x3a8] sm:$0xff] }
 0x15c   : > { %v14839_v3 = vpop.eup %14838  ;;  %v2822_v12 = vmul.f32 %v14837_v43, %v16466_v14  ;;  %v16569_v14 = vld [vmem:[%s18541_s2 + $0x90] sm:$0xff]   ;;  %v332_v36 = vld [vmem:[#allocation2 + $0x40] sm:$0x7]  ;;  %v506_v43 = vor.u32 %v505_v50, %v502_v30  ;;  %v530_v30 = vor.u32 %v529_v5, %v526_v48 }
 0x15d   : > { %v2820_v53 = vmul.f32 %v14839_v3, %v16480_v62  ;;  %v490_v20 = vor.u32 %v489_v8, %v486_v7  ;;  %v333_v47 = vsel %vm16560_vm0, 0, %v332_v36  ;;  %v4931_v41 = vld [vmem:[#allocation2 + $0x3a0] sm:$0xff]  ;;  %v1887_v3 = vrot.slane %v14642_v23, 1  ;;  %v338_v7 = vld [vmem:[#allocation2 + $0x50] sm:$0x7]  ;;  %v4934_v36 = vld [vmem:[#allocation2 + $0x3b8] sm:$0xff] }
 0x15e   : > { %v2838_v1 = vpack.c.bf16 %v2822_v12, %v2821_v34  ;;  %v14644_v34 = vld [vmem:[%s15468_s16 + $0x58] sm:$0xfe]   ;;  %334 = vst [vmem:[#allocation2 + $0x40] sm:$0x7] %v333_v47  ;;  %v4933_v8 = vld [vmem:[#allocation2 + $0x3b0] sm:$0xff]  ;;  %v4935_v47 = vld [vmem:[#allocation2 + $0x3c0] sm:$0xff] }
 0x15f   : > { %v2837_v62 = vpack.c.bf16 %v2820_v53, %v2819_v22  ;;  %v14650_v22 = vld [vmem:[%s15468_s16 + $0x18] sm:$0x3f]   ;;  %v1888_v53 = vrot.slane %v14644_v34, 1  ;;  %1920 = vst.msk [vmem:[#allocation2 + $0x488] sm:$0x7f] %vm1909_vm13, %v1887_v3  ;;  %v4939_v5 = vld [vmem:[#allocation2 + $0x3e0] sm:$0xff] }
 0x160   : > { %2855 = vst.msk [vmem:[#allocation3 + $0x78] sm:$0xff] %vm2839_vm12, %v2838_v1  ;;  %13115 = vmatmul.mubr.msk.bf16.gmra.mrb[80].mxu0 %vm307_vm2, %v16400_v63  ;;  %v630_v63 = vld [vmem:[#allocation2 + $0x28] sm:$0xfc]  ;;  %v508_v2 = vshrl.u32 %v14650_v22, 16  ;;  %v511_v49 = vshll.u32 %v14650_v22, 16 }
 0x161   : > { %2854 = vst.msk [vmem:[#allocation3 + $0x70] sm:$0xff] %vm2839_vm12, %v2837_v62  ;;  %13118 = vmatprep.mubr.msk.bf16.mxu0 %vm307_vm2, %v16433_v27  ;;  %v631_v9 = vsel %vm16591_vm4, %v490_v20, %v630_v63  ;;  %v492_v27 = vshrl.u32 %v14645_v46, 16  ;;  %v636_v1 = vld [vmem:[#allocation2 + $0x38] sm:$0xfc]  ;;  %v339_v20 = vsel %vm16560_vm0, 0, %v338_v7 }
 0x162   : > { %13065 = vmatmul.mubr.msk.bf16.vlgmr.msra.gmra.mrb[20].mxu1 %vm307_vm2, %v4926_v39  ;;  %632 = vst [vmem:[#allocation2 + $0x28] sm:$0xfc] %v631_v9  ;;  %v14651_v39 = vld [vmem:[%s15468_s16 + $0x20] sm:$0x3f]   ;;  %1921 = vst.msk [vmem:[#allocation2 + $0x490] sm:$0x7f] %vm1909_vm13, %v1888_v53  ;;  %v637_v51 = vsel %vm16591_vm4, %v506_v43, %v636_v1 }
 0x163   : > { %13403 = vmatpush3.bf16.msra.mxu1 %v16325_v21  ;;  %13068 = vmatprep.mubr.msk.bf16.mxu1 %vm307_vm2, %v4927_v18  ;;  %v14640_v21 = vld [vmem:[%s15468_s16 + $0x40] sm:$0xfe]   ;;  %v494_v55 = vrot.slane %v492_v27, 5  ;;  %v516_v18 = vshrl.u32 %v14651_v39, 16  ;;  %v519_v0 = vshll.u32 %v14651_v39, 16  ;;  %v510_v62 = vrot.slane %v508_v2, 5 }
 0x164   : > { %13436 = vmatprep.subr.bf16.mxu1 %v16569_v14  ;;  %v1885_v29 = vrot.slane %v14640_v21, 1  ;;  %v513_v56 = vrot.slane %v511_v49, 6  ;;  %638 = vst [vmem:[#allocation2 + $0x38] sm:$0xfc] %v637_v51  ;;  %340 = vst [vmem:[#allocation2 + $0x50] sm:$0x7] %v339_v20 }
 0x165   : > { %v498_v31 = vor.u32 %v497_v61, %v494_v55  ;;  %v518_v4 = vrot.slane %v516_v18, 5  ;;  %v521_v40 = vrot.slane %v519_v0, 6  ;;  %v639_v19 = vld [vmem:[#allocation2 + $0x40] sm:$0xfc]  ;;  %v14653_v46 = vld [vmem:[%s15468_s16 + $0x30] sm:$0x3f]  }
 0x166   : > { %1918 = vst.msk [vmem:[#allocation2 + $0x478] sm:$0x7f] %vm1909_vm13, %v1885_v29  ;;  %v514_v54 = vor.u32 %v513_v56, %v510_v62  ;;  %v341_v29 = vld [vmem:[#allocation2 + $0x58] sm:$0x7]  ;;  %v532_v27 = vshrl.u32 %v14653_v46, 16  ;;  %v535_v15 = vshll.u32 %v14653_v46, 16 }
 0x167   : > { %v634_v12 = vsel %vm16591_vm4, %v498_v31, %v633_v16  ;;  %v522_v21 = vor.u32 %v521_v40, %v518_v4  ;;  %v344_v50 = vld [vmem:[#allocation2 + $0x60] sm:$0x7]  ;;  %v347_v16 = vld [vmem:[#allocation2 + $0x68] sm:$0x7]  ;;  %v14654_v34 = vld [vmem:[%s15468_s16 + $0x38] sm:$0x3f]  }
 0x168   : > { %13119 = vmatmul.mubr.msk.bf16.gmra.mrb[84].mxu0 %vm307_vm2, %v16437_v52  ;;  %v335_v52 = vld [vmem:[#allocation2 + $0x48] sm:$0x7]  ;;  %635 = vst [vmem:[#allocation2 + $0x30] sm:$0xfc] %v634_v12  ;;  %v534_v55 = vrot.slane %v532_v27, 5  ;;  %v537_v61 = vrot.slane %v535_v15, 6 }
 0x169   : > { %13122 = vmatprep.mubr.msk.bf16.mxu0 %vm307_vm2, %v16471_v32  ;;  %v336_v32 = vsel %vm16560_vm0, 0, %v335_v52  ;;  %v345_v31 = vsel %vm16560_vm0, 0, %v344_v50  ;;  %v348_v43 = vsel %vm16560_vm0, 0, %v347_v16  ;;  %v14655_v22 = vld [vmem:[%s15468_s16 + $0x40] sm:$0x3f]   ;;  %v540_v12 = vshrl.u32 %v14654_v34, 16 }
 0x16a   : > { %13069 = vmatmul.mubr.msk.bf16.gmra.mrb[24].mxu1 %vm307_vm2, %v4928_v11  ;;  %337 = vst [vmem:[#allocation2 + $0x48] sm:$0x7] %v336_v32  ;;  %v14646_v11 = vld [vmem:[%s15468_s16 + $0x60] sm:$0xfe]   ;;  %v538_v23 = vor.u32 %v537_v61, %v534_v55  ;;  %346 = vst [vmem:[#allocation2 + $0x60] sm:$0x7] %v345_v31 }
 0x16b   : > { %13072 = vmatprep.mubr.msk.bf16.mxu1 %vm307_vm2, %v4929_v60  ;;  %v640_v60 = vsel %vm16591_vm4, %v514_v54, %v639_v19  ;;  %v1889_v63 = vrot.slane %v14646_v11, 1  ;;  %349 = vst [vmem:[#allocation2 + $0x68] sm:$0x7] %v348_v43  ;;  %v543_v52 = vshll.u32 %v14654_v34, 16  ;;  %v548_v39 = vshrl.u32 %v14655_v22, 16  ;;  %v5519_v2 = vld [vmem:[#allocation2 + $0xf0] sm:$0xff] }
 0x16c   : > { %641 = vst [vmem:[#allocation2 + $0x40] sm:$0xfc] %v640_v60  ;;  %v551_v53 = vshll.u32 %v14655_v22, 16  ;;  %v542_v49 = vrot.slane %v540_v12, 5  ;;  %v16660_v1 = vld [vmem:[#allocation2 + $0xf8] sm:$0xff]  ;;  %v16665_v18 = vld [vmem:[%s18541_s2 + $0x60] sm:$0xff]  }
 0x16d   : > { %1922 = vst.msk [vmem:[#allocation2 + $0x498] sm:$0x7f] %vm1909_vm13, %v1889_v63  ;;  %v545_v32 = vrot.slane %v543_v52, 6  ;;  %v550_v0 = vrot.slane %v548_v39, 5  ;;  %v350_v56 = vld [vmem:[#allocation2 + $0x70] sm:$0x7] }
 0x16e   : > { %v553_v51 = vrot.slane %v551_v53, 6  ;;  %v4936_v4 = vld [vmem:[#allocation2 + $0x3c8] sm:$0xff]  ;;  %v351_v54 = vsel %vm16560_vm0, 0, %v350_v56  ;;  %v353_v7 = vld [vmem:[#allocation2 + $0x78] sm:$0x7]  ;;  %v16723_v34 = vld [vmem:[%s18541_s2 + $0xa0] sm:$0xff]  }
 0x16f   : > { %v546_v62 = vor.u32 %v545_v32, %v542_v49  ;;  %352 = vst [vmem:[#allocation2 + $0x70] sm:$0x7] %v351_v54  ;;  %v354_v20 = vsel %vm16560_vm0, 0, %v353_v7  ;;  %v14657_v60 = vld [vmem:[%s15468_s16 + $0x50] sm:$0x3f]   ;;  %v4938_v27 = vld [vmem:[#allocation2 + $0x3d8] sm:$0xff] }
 0x170   : > { %13123 = vmatmul.mubr.msk.bf16.gmra.mrb[88].mxu0 %vm307_vm2, %v16475_v42  ;;  %v342_v42 = vsel %vm16560_vm0, 0, %v341_v29  ;;  %355 = vst [vmem:[#allocation2 + $0x78] sm:$0x7] %v354_v20  ;;  %v564_v29 = vshrl.u32 %v14657_v60, 16  ;;  %v567_v63 = vshll.u32 %v14657_v60, 16  ;;  %v16700_v50 = vld [vmem:[#allocation2 + $0x118] sm:$0xff] }
 0x171   : > { %13126 = vmatprep.mubr.msk.bf16.mxu0 %vm307_vm2, %v16503_v44  ;;  %v642_v9 = vld [vmem:[#allocation2 + $0x48] sm:$0xfc]  ;;  %343 = vst [vmem:[#allocation2 + $0x58] sm:$0x7] %v342_v42  ;;  %v651_v40 = vld [vmem:[#allocation2 + $0x60] sm:$0xfc] }
 0x172   : > { %13073 = vmatmul.mubr.msk.bf16.gmra.mrb[28].mxu1 %vm307_vm2, %v4930_v13  ;;  %v643_v44 = vsel %vm16591_vm4, %v522_v21, %v642_v9  ;;  %v645_v13 = vld [vmem:[#allocation2 + $0x50] sm:$0xfc]  ;;  %v652_v11 = vsel %vm16591_vm4, %v546_v62, %v651_v40  ;;  %v654_v19 = vld [vmem:[#allocation2 + $0x68] sm:$0xfc]  ;;  %v16684_v42 = vld [vmem:[#allocation2 + $0x100] sm:$0xff]  ;;  %v566_v37 = vrot.slane %v564_v29, 5 }
 0x173   : > { %13076 = vmatprep.mubr.msk.bf16.mxu1 %vm307_vm2, %v4931_v41  ;;  %644 = vst [vmem:[#allocation2 + $0x48] sm:$0xfc] %v643_v44  ;;  %v646_v41 = vsel %vm16591_vm4, %v530_v30, %v645_v13  ;;  %v14656_v21 = vld [vmem:[%s15468_s16 + $0x48] sm:$0x3f]   ;;  %653 = vst [vmem:[#allocation2 + $0x60] sm:$0xfc] %v652_v11 }
 0x174   : > { %647 = vst [vmem:[#allocation2 + $0x50] sm:$0xfc] %v646_v41  ;;  %v559_v58 = vshll.u32 %v14656_v21, 16  ;;  %v16686_v9 = vld [vmem:[#allocation2 + $0x108] sm:$0xff]  ;;  %v569_v6 = vrot.slane %v567_v63, 6  ;;  %v16698_v30 = vld [vmem:[#allocation2 + $0x110] sm:$0xff] }
 0x175   : > { %v8198_v13 = vld [vmem:[#allocation2 + $0x270] sm:$0xff]  ;;  %v16710_v31 = vld [vmem:[#allocation2 + $0x128] sm:$0xff]  ;;  %v8199_v16 = vld [vmem:[#allocation2 + $0x278] sm:$0xff] }
 0x176   : > { %v561_v38 = vrot.slane %v559_v58, 6  ;;  %v657_v15 = vld [vmem:[#allocation2 + $0x70] sm:$0xfc]  ;;  %v570_v48 = vor.u32 %v569_v6, %v566_v37  ;;  %v8200_v41 = vld [vmem:[#allocation2 + $0x280] sm:$0xff]  ;;  %v1942_v43 = vld [vmem:[#allocation2 + $0x508] sm:$0xe0] }
 0x177   : > { %v660_v55 = vld [vmem:[#allocation2 + $0x78] sm:$0xfc]  ;;  %v14659_v22 = vld [vmem:[%s15468_s16] sm:$0xfc]   ;;  %v16731_v52 = vld [vmem:[#allocation2 + $0x130] sm:$0xff] }
 0x178   : > { %13127 = vmatmul.mubr.msk.bf16.gmra.mrb[92].mxu0 %vm307_vm2, %v16508_v17  ;;  %v648_v17 = vld [vmem:[#allocation2 + $0x58] sm:$0xfc]  ;;  %v661_v61 = vsel %vm16591_vm4, %v570_v48, %v660_v55  ;;  %v2106_v12 = vshll.u32 %v14659_v22, 16  ;;  %v1945_v49 = vld [vmem:[#allocation2 + $0x510] sm:$0xe0]  ;;  %v16758_v20 = vld [vmem:[#allocation2 + $0x148] sm:$0xff] }
 0x179   : > { %13132 = vmatprep.mubr.msk.bf16.mxu0 %vm307_vm2, %v5518_v28  ;;  %v649_v3 = vsel %vm16591_vm4, %v538_v23, %v648_v17  ;;  %662 = vst [vmem:[#allocation2 + $0x78] sm:$0xfc] %v661_v61  ;;  %v16708_v23 = vld [vmem:[#allocation2 + $0x120] sm:$0xff]  ;;  %v1943_v17 = vsel %vm16714_vm7, 0, %v1942_v43  ;;  %v16734_v39 = vld [vmem:[#allocation2 + $0x138] sm:$0xff] }
 0x17a   : > { %13077 = vmatmul.mubr.msk.bf16.gmra.mrb[0].mxu1 %vm307_vm2, %v4932_v35  ;;  %650 = vst [vmem:[#allocation2 + $0x58] sm:$0xfc] %v649_v3  ;;  %v554_v35 = vor.u32 %v553_v51, %v550_v0  ;;  %1944 = vst [vmem:[#allocation2 + $0x508] sm:$0xe0] %v1943_v17  ;;  %v2103_v3 = vshrl.u32 %v14659_v22, 16  ;;  %v17483_v0 = vld [vmem:[%s18541_s2 + $0xc0] sm:$0xff]  }
 0x17b   : > { %13080 = vmatprep.mubr.msk.bf16.mxu1 %vm307_vm2, %v4933_v8  ;;  %v4937_v8 = vld [vmem:[#allocation2 + $0x3d0] sm:$0xff]  ;;  %v14660_v51 = vld [vmem:[%s15468_s16 + $0x8] sm:$0xfc]   ;;  %v1948_v56 = vld [vmem:[#allocation2 + $0x518] sm:$0xe0] }
 0x17c   : > { %v655_v10 = vsel %vm16591_vm4, %v554_v35, %v654_v19  ;;  %v2105_v53 = vrot.slane %v2103_v3, 2  ;;  %v2111_v35 = vshrl.u32 %v14660_v51, 16  ;;  %v2114_v54 = vshll.u32 %v14660_v51, 16  ;;  %v16756_v19 = vld [vmem:[#allocation2 + $0x140] sm:$0xff]  ;;  %v14665_v6 = vld [vmem:[%s15468_s16 + $0x18] sm:$0xfc]  }
 0x17d   : > { %656 = vst [vmem:[#allocation2 + $0x68] sm:$0xfc] %v655_v10  ;;  %v1949_v7 = vsel %vm16714_vm7, 0, %v1948_v56  ;;  %v1951_v58 = vld [vmem:[#allocation2 + $0x520] sm:$0xe0]  ;;  %v2127_v48 = vshrl.u32 %v14665_v6, 16 }
 0x17e   : > { %1950 = vst [vmem:[#allocation2 + $0x518] sm:$0xe0] %v1949_v7  ;;  %v1952_v63 = vsel %vm16714_vm7, 0, %v1951_v58  ;;  %v14661_v22 = vld [vmem:[%s15468_s16 + $0x70] sm:$0x7f]   ;;  %v15364_v56 = vld [vmem:[#allocation2 + $0x2a8] sm:$0xff] }
 0x17f   : > { %1953 = vst [vmem:[#allocation2 + $0x520] sm:$0xe0] %v1952_v63  ;;  %v1957_v51 = vld [vmem:[#allocation2 + $0x530] sm:$0xe0] }
 0x180   : > { %13133 = vmatmul.mubr.msk.bf16.vlgmr.msra.gmra.mrb[64].mxu0 %vm307_vm2, %v5519_v2  ;;  %v2108_v2 = vrot.slane %v2106_v12, 3  ;;  %v15365_v7 = vld [vmem:[#allocation2 + $0x2b0] sm:$0xff] }
 0x181   : > { %13136 = vmatprep.mubr.msk.bf16.mxu0 %vm307_vm2, %v16660_v1  ;;  %13165 = vmatpush3.bf16.msra.mxu0 %v16498_v25  ;;  %v556_v25 = vshrl.u32 %v14656_v21, 16  ;;  %v2249_v62 = vld [vmem:[#allocation2 + $0x508] sm:$0x3f]  ;;  %v2113_v21 = vrot.slane %v2111_v35, 2  ;;  %v1960_v35 = vld [vmem:[#allocation2 + $0x538] sm:$0xe0] }
 0x182   : > { %13081 = vmatmul.mubr.msk.bf16.gmra.mrb[4].mxu1 %vm307_vm2, %v4934_v36  ;;  %13198 = vmatprep.subr.bf16.mxu0 %v16665_v18  ;;  %v4940_v36 = vld [vmem:[#allocation2 + $0x3e8] sm:$0xff]  ;;  %v2109_v32 = vor.u32 %v2108_v2, %v2105_v53  ;;  %v14663_v53 = vld [vmem:[%s15468_s16 + $0x78] sm:$0x7f]  }
 0x183   : > { %13084 = vmatprep.mubr.msk.bf16.mxu1 %vm307_vm2, %v4935_v47  ;;  %v558_v46 = vrot.slane %v556_v25, 5 }
 0x184   : > { %v2250_v40 = vsel %vm16742_vm10, %v2109_v32, %v2249_v62  ;;  %v834_v32 = vrot.slane %v14661_v22, 7  ;;  %v14667_v62 = vld [vmem:[%s15468_s16 + $0x28] sm:$0xfc]  }
 0x185   : > { %v562_v44 = vor.u32 %v561_v38, %v558_v46  ;;  %2251 = vst [vmem:[#allocation2 + $0x508] sm:$0x3f] %v2250_v40  ;;  %v1954_v46 = vld [vmem:[#allocation2 + $0x528] sm:$0xe0]  ;;  %v8204_v38 = vld [vmem:[#allocation2 + $0x2a0] sm:$0xff]  ;;  %v1958_v40 = vsel %vm16714_vm7, 0, %v1957_v51 }
 0x186   : > { %v2258_v3 = vld [vmem:[#allocation2 + $0x520] sm:$0x3f]  ;;  %867 = vst.msk [vmem:[#allocation2 + $0x168] sm:$0xfe] %vm852_vm11, %v834_v32  ;;  %1959 = vst [vmem:[#allocation2 + $0x530] sm:$0xe0] %v1958_v40 }
 0x187   : > { %v658_v28 = vsel %vm16591_vm4, %v562_v44, %v657_v15  ;;  %v1955_v44 = vsel %vm16714_vm7, 0, %v1954_v46  ;;  %v2255_v15 = vld [vmem:[#allocation2 + $0x518] sm:$0x3f] }
 0x188   : > { %13137 = vmatmul.mubr.msk.bf16.gmra.mrb[68].mxu0 %vm307_vm2, %v16684_v42  ;;  %659 = vst [vmem:[#allocation2 + $0x70] sm:$0xfc] %v658_v28  ;;  %1956 = vst [vmem:[#allocation2 + $0x528] sm:$0xe0] %v1955_v44  ;;  %v1966_v44 = vld [vmem:[#allocation2 + $0x548] sm:$0xe0] }
 0x189   : > { %13140 = vmatprep.mubr.msk.bf16.mxu0 %vm307_vm2, %v16686_v9 }
 0x18a   : > { %13085 = vmatmul.mubr.msk.bf16.gmra.mrb[8].mxu1 %vm307_vm2, %v4936_v4  ;;  %v14662_v4 = vld [vmem:[%s15468_s16 + $0x10] sm:$0xfc]  }
 0x18b   : > { %13088 = vmatprep.mubr.msk.bf16.mxu1 %vm307_vm2, %v4937_v8  ;;  %v2119_v8 = vshrl.u32 %v14662_v4, 16  ;;  %v2122_v11 = vshll.u32 %v14662_v4, 16  ;;  %v835_v4 = vrot.slane %v14663_v53, 7 }
 0x18d   : > { %v2121_v10 = vrot.slane %v2119_v8, 2  ;;  %v2124_v60 = vrot.slane %v2122_v11, 3  ;;  %v2143_v8 = vshrl.u32 %v14667_v62, 16  ;;  %v2146_v11 = vshll.u32 %v14667_v62, 16  ;;  %868 = vst.msk [vmem:[#allocation2 + $0x170] sm:$0xfe] %vm852_vm11, %v835_v4 }
 0x18e   : > { %v1969_v4 = vld [vmem:[#allocation2 + $0x550] sm:$0xe0]  ;;  %vm5500_vm11 = vcmask 64544  }
 0x18f   : > { %v2125_v29 = vor.u32 %v2124_v60, %v2121_v10  ;;  %v2145_v58 = vrot.slane %v2143_v8, 2  ;;  %v15368_v8 = vld [vmem:[#allocation2 + $0x2c8] sm:$0xff] }
 0x190   : > { %13141 = vmatmul.mubr.msk.bf16.gmra.mrb[72].mxu0 %vm307_vm2, %v16698_v30 }
 0x191   : > { %13144 = vmatprep.mubr.msk.bf16.mxu0 %vm307_vm2, %v16700_v50  ;;  %v2256_v28 = vsel %vm16742_vm10, %v2125_v29, %v2255_v15  ;;  %v1967_v15 = vsel %vm16714_vm7, 0, %v1966_v44 }
 0x192   : > { %13089 = vmatmul.mubr.msk.bf16.gmra.mrb[12].mxu1 %vm307_vm2, %v4938_v27  ;;  %v14666_v27 = vld [vmem:[%s15468_s16 + $0x20] sm:$0xfc]   ;;  %2257 = vst [vmem:[#allocation2 + $0x518] sm:$0x3f] %v2256_v28  ;;  %1968 = vst [vmem:[#allocation2 + $0x548] sm:$0xe0] %v1967_v15 }
 0x193   : > { %13092 = vmatprep.mubr.msk.bf16.mxu1 %vm307_vm2, %v4939_v5  ;;  %v2130_v5 = vshll.u32 %v14665_v6, 16  ;;  %v2135_v55 = vshrl.u32 %v14666_v27, 16  ;;  %v2138_v61 = vshll.u32 %v14666_v27, 16  ;;  %v14669_v27 = vld [vmem:[%s15468_s16 + $0x38] sm:$0xfc]  }
 0x194   : > { %v14670_v28 = vld [vmem:[%s15468_s16 + $0x40] sm:$0xfc]  }
 0x195   : > { %v2140_v43 = vrot.slane %v2138_v61, 3  ;;  %v2167_v22 = vshrl.u32 %v14670_v28, 16 }
 0x197   : > { %v2169_v32 = vrot.slane %v2167_v22, 2  ;;  %v15372_v22 = vld [vmem:[#allocation2 + $0x2e8] sm:$0xff] }
 0x198   : > { %13145 = vmatmul.mubr.msk.bf16.gmra.mrb[76].mxu0 %vm307_vm2, %v16708_v23 }
 0x199   : > { %13148 = vmatprep.mubr.msk.bf16.mxu0 %vm307_vm2, %v16710_v31 }
 0x19a   : > { %13093 = vmatmul.mubr.msk.bf16.gmra.mrb[16].mxu1 %vm307_vm2, %v4940_v36  ;;  %v16777_v36 = vld [vmem:[#allocation2 + $0x150] sm:$0xff] }
 0x19b   : > { %13404 = vmatprep.mubr.msk.bf16.mxu1 %vm307_vm2, %v8198_v13  ;;  %v2129_v13 = vrot.slane %v2127_v48, 2  ;;  %v15366_v48 = vld [vmem:[#allocation2 + $0x2b8] sm:$0xff] }
 0x1a0   : > { %13149 = vmatmul.mubr.msk.bf16.gmra.mrb[80].mxu0 %vm307_vm2, %v16731_v52 }
 0x1a1   : > { %13152 = vmatprep.mubr.msk.bf16.mxu0 %vm307_vm2, %v16734_v39 }
 0x1a2   : > { %13405 = vmatmul.mubr.msk.bf16.vlgmr.msra.gmra.mrb[32].mxu1 %vm307_vm2, %v8199_v16  ;;  %v2132_v16 = vrot.slane %v2130_v5, 3  ;;  %v2264_v5 = vld [vmem:[#allocation2 + $0x530] sm:$0x3f] }
 0x1a3   : > { %13437 = vmatpush3.bf16.msra.mxu1 %v16569_v14  ;;  %13408 = vmatprep.mubr.msk.bf16.mxu1 %vm307_vm2, %v8200_v41  ;;  %v1946_v14 = vsel %vm16714_vm7, 0, %v1945_v49  ;;  %v16779_v41 = vld [vmem:[#allocation2 + $0x158] sm:$0xff]  ;;  %v2261_v49 = vld [vmem:[#allocation2 + $0x528] sm:$0x3f] }
 0x1a4   : > { %13470 = vmatprep.subr.bf16.mxu1 %v16723_v34  ;;  %1947 = vst [vmem:[#allocation2 + $0x510] sm:$0xe0] %v1946_v14  ;;  %v2133_v17 = vor.u32 %v2132_v16, %v2129_v13  ;;  %v2159_v16 = vshrl.u32 %v14669_v27, 16 }
 0x1a6   : > { %v2259_v2 = vsel %vm16742_vm10, %v2133_v17, %v2258_v3  ;;  %v2170_v3 = vshll.u32 %v14670_v28, 16  ;;  %v2161_v53 = vrot.slane %v2159_v16, 2  ;;  %v5993_v16 = vld [vmem:[#allocation2 + $0x450] sm:$0xff] }
 0x1a7   : > { %2260 = vst [vmem:[#allocation2 + $0x520] sm:$0x3f] %v2259_v2 }
 0x1a8   : > { %13153 = vmatmul.mubr.msk.bf16.gmra.mrb[84].mxu0 %vm307_vm2, %v16756_v19 }
 0x1a9   : > { %13156 = vmatprep.mubr.msk.bf16.mxu0 %vm307_vm2, %v16758_v20 }
 0x1aa   : > { %13409 = vmatmul.mubr.msk.bf16.gmra.mrb[36].mxu1 %vm307_vm2, %v16462_v26  ;;  %v2116_v26 = vrot.slane %v2114_v54, 3  ;;  %v14668_v54 = vld [vmem:[%s15468_s16 + $0x30] sm:$0xfc]  }
 0x1ab   : > { %13412 = vmatprep.mubr.msk.bf16.mxu1 %vm307_vm2, %v16490_v24  ;;  %v2252_v24 = vld [vmem:[#allocation2 + $0x510] sm:$0x3f]  ;;  %v2151_v10 = vshrl.u32 %v14668_v54, 16  ;;  %v2154_v60 = vshll.u32 %v14668_v54, 16  ;;  %v1970_v54 = vsel %vm16714_vm7, 0, %v1969_v4 }
 0x1ac   : > { %v2117_v25 = vor.u32 %v2116_v26, %v2113_v21  ;;  %v1961_v21 = vsel %vm16714_vm7, 0, %v1960_v35  ;;  %v16800_v26 = vld [vmem:[#allocation2 + $0x160] sm:$0xff]  ;;  %v2273_v35 = vld [vmem:[#allocation2 + $0x548] sm:$0x3f]  ;;  %1971 = vst [vmem:[#allocation2 + $0x550] sm:$0xe0] %v1970_v54 }
 0x1ad   : > { %1962 = vst [vmem:[#allocation2 + $0x538] sm:$0xe0] %v1961_v21  ;;  %v2153_v29 = vrot.slane %v2151_v10, 2  ;;  %v2156_v63 = vrot.slane %v2154_v60, 3  ;;  %v15369_v10 = vld [vmem:[#allocation2 + $0x2d0] sm:$0xff] }
 0x1ae   : > { %v2253_v37 = vsel %vm16742_vm10, %v2117_v25, %v2252_v24  ;;  %v5988_v25 = vld [vmem:[#allocation2 + $0x428] sm:$0xff]  ;;  %v2148_v24 = vrot.slane %v2146_v11, 3  ;;  %v14672_v60 = vld [vmem:[%s15468_s16 + $0x50] sm:$0xfc]  }
 0x1af   : > { %2254 = vst [vmem:[#allocation2 + $0x510] sm:$0x3f] %v2253_v37  ;;  %v2157_v37 = vor.u32 %v2156_v63, %v2153_v29  ;;  %v14671_v11 = vld [vmem:[%s15468_s16 + $0x48] sm:$0xfc]   ;;  %v2183_v63 = vshrl.u32 %v14672_v60, 16 }
 0x1b0   : > { %13157 = vmatmul.mubr.msk.bf16.gmra.mrb[88].mxu0 %vm307_vm2, %v16777_v36  ;;  %v2149_v46 = vor.u32 %v2148_v24, %v2145_v58  ;;  %v2175_v58 = vshrl.u32 %v14671_v11, 16  ;;  %v2178_v24 = vshll.u32 %v14671_v11, 16  ;;  %v5992_v29 = vld [vmem:[#allocation2 + $0x448] sm:$0xff] }
 0x1b1   : > { %13160 = vmatprep.mubr.msk.bf16.mxu0 %vm307_vm2, %v16779_v41 }
 0x1b2   : > { %13413 = vmatmul.mubr.msk.bf16.gmra.mrb[40].mxu1 %vm307_vm2, %v16493_v33  ;;  %v2137_v33 = vrot.slane %v2135_v55, 2  ;;  %v15367_v55 = vld [vmem:[#allocation2 + $0x2c0] sm:$0xff]  ;;  %v2265_v61 = vsel %vm16742_vm10, %v2149_v46, %v2264_v5  ;;  %v2186_v46 = vshll.u32 %v14672_v60, 16  ;;  %v15370_v5 = vld [vmem:[#allocation2 + $0x2d8] sm:$0xff] }
 0x1b3   : > { %13416 = vmatprep.mubr.msk.bf16.mxu1 %vm307_vm2, %v8204_v38  ;;  %v1963_v38 = vld [vmem:[#allocation2 + $0x540] sm:$0xe0]  ;;  %2266 = vst [vmem:[#allocation2 + $0x530] sm:$0x3f] %v2265_v61  ;;  %v2276_v15 = vld [vmem:[#allocation2 + $0x550] sm:$0x3f] }
 0x1b4   : > { %v2141_v12 = vor.u32 %v2140_v43, %v2137_v33  ;;  %v1964_v6 = vsel %vm16714_vm7, 0, %v1963_v38  ;;  %v2267_v13 = vld [vmem:[#allocation2 + $0x538] sm:$0x3f]  ;;  %v2162_v33 = vshll.u32 %v14669_v27, 16  ;;  %v5989_v43 = vld [vmem:[#allocation2 + $0x430] sm:$0xff]  ;;  %v2177_v38 = vrot.slane %v2175_v58, 2 }
 0x1b5   : > { %1965 = vst [vmem:[#allocation2 + $0x540] sm:$0xe0] %v1964_v6  ;;  %v2268_v17 = vsel %vm16742_vm10, %v2157_v37, %v2267_v13  ;;  %v2180_v37 = vrot.slane %v2178_v24, 3  ;;  %v2185_v6 = vrot.slane %v2183_v63, 2  ;;  %v2188_v44 = vrot.slane %v2186_v46, 3  ;;  %v15371_v61 = vld [vmem:[#allocation2 + $0x2e0] sm:$0xff] }
 0x1b6   : > { %v2262_v14 = vsel %vm16742_vm10, %v2141_v12, %v2261_v49  ;;  %v5990_v12 = vld [vmem:[#allocation2 + $0x438] sm:$0xff]  ;;  %2269 = vst [vmem:[#allocation2 + $0x538] sm:$0x3f] %v2268_v17  ;;  %v2164_v2 = vrot.slane %v2162_v33, 3  ;;  %v16821_v49 = vld [vmem:[%s18541_s2 + $0x68] sm:$0xff]   ;;  %v8185_v24 = vld [vmem:[#allocation2 + $0x30] sm:$0xff] }
 0x1b7   : > { %2263 = vst [vmem:[#allocation2 + $0x528] sm:$0x3f] %v2262_v14  ;;  %v2172_v14 = vrot.slane %v2170_v3, 3  ;;  %v2181_v27 = vor.u32 %v2180_v37, %v2177_v38  ;;  %v5994_v33 = vld [vmem:[#allocation2 + $0x458] sm:$0xff]  ;;  %v8184_v58 = vld [vmem:[#allocation2 + $0x28] sm:$0xff]  ;;  %v6001_v38 = vld [vmem:[#allocation2 + $0x490] sm:$0xff] }
 0x1b8   : > { %13161 = vmatmul.mubr.msk.bf16.gmra.mrb[92].mxu0 %vm307_vm2, %v16800_v26  ;;  %v2165_v51 = vor.u32 %v2164_v2, %v2161_v53  ;;  %v5995_v53 = vld [vmem:[#allocation2 + $0x460] sm:$0xff] }
 0x1b9   : > { %13166 = vmatprep.mubr.msk.bf16.mxu0 %vm307_vm2, %v5988_v25  ;;  %v5991_v25 = vld [vmem:[#allocation2 + $0x440] sm:$0xff]  ;;  %v2277_v28 = vsel %vm16742_vm10, %v2181_v27, %v2276_v15 }
 0x1ba   : > { %13417 = vmatmul.mubr.msk.bf16.gmra.mrb[44].mxu1 %vm307_vm2, %v15364_v56  ;;  %v2173_v56 = vor.u32 %v2172_v14, %v2169_v32  ;;  %2278 = vst [vmem:[#allocation2 + $0x550] sm:$0x3f] %v2277_v28  ;;  %v5996_v32 = vld [vmem:[#allocation2 + $0x468] sm:$0xff]  ;;  %v8187_v27 = vld [vmem:[#allocation2 + $0x40] sm:$0xff] }
 0x1bb   : > { %13420 = vmatprep.mubr.msk.bf16.mxu1 %vm307_vm2, %v15365_v7  ;;  %v1972_v7 = vld [vmem:[#allocation2 + $0x558] sm:$0xe0]  ;;  %v8180_v14 = vld [vmem:[#allocation2 + $0x8] sm:$0xff]  ;;  %v6003_v28 = vld [vmem:[#allocation2 + $0x4a0] sm:$0xff] }
 0x1bc   : > { %v2270_v62 = vld [vmem:[#allocation2 + $0x540] sm:$0x3f]  ;;  %v1973_v21 = vsel %vm16714_vm7, 0, %v1972_v7  ;;  %v5998_v7 = vld [vmem:[#allocation2 + $0x478] sm:$0xff] }
 0x1bd   : > { %v2271_v40 = vsel %vm16742_vm10, %v2165_v51, %v2270_v62  ;;  %1974 = vst [vmem:[#allocation2 + $0x558] sm:$0xe0] %v1973_v21  ;;  %v8181_v51 = vld [vmem:[#allocation2 + $0x10] sm:$0xff]  ;;  %v16864_v62 = vld [vmem:[%s18541_s2 + $0xa8] sm:$0xff]  }
 0x1be   : > { %2272 = vst [vmem:[#allocation2 + $0x540] sm:$0x3f] %v2271_v40 }
 0x1c0   : > { %13167 = vmatmul.mubr.msk.bf16.vlgmr.msra.gmra.mrb[64].mxu0 %vm307_vm2, %v5989_v43  ;;  %v8179_v43 = vld [vmem:[#allocation2] sm:$0xff] }
 0x1c1   : > { %13170 = vmatprep.mubr.msk.bf16.mxu0 %vm307_vm2, %v5990_v12  ;;  %13199 = vmatpush3.bf16.msra.mxu0 %v16665_v18  ;;  %v2274_v18 = vsel %vm16742_vm10, %v2173_v56, %v2273_v35  ;;  %v5997_v35 = vld [vmem:[#allocation2 + $0x470] sm:$0xff] }
 0x1c2   : > { %13421 = vmatmul.mubr.msk.bf16.gmra.mrb[48].mxu1 %vm307_vm2, %v15366_v48  ;;  %13232 = vmatprep.subr.bf16.mxu0 %v16821_v49  ;;  %2275 = vst [vmem:[#allocation2 + $0x548] sm:$0x3f] %v2274_v18  ;;  %v2189_v48 = vor.u32 %v2188_v44, %v2185_v6  ;;  %v8183_v18 = vld [vmem:[#allocation2 + $0x20] sm:$0xff]  ;;  %v6002_v6 = vld [vmem:[#allocation2 + $0x498] sm:$0xff] }
 0x1c3   : > { %13424 = vmatprep.mubr.msk.bf16.mxu1 %vm307_vm2, %v15367_v55  ;;  %v8186_v44 = vld [vmem:[#allocation2 + $0x38] sm:$0xff] }
 0x1c4   : > { %v2279_v55 = vld [vmem:[#allocation2 + $0x558] sm:$0x3f] }
 0x1c5   : > { %v2280_v13 = vsel %vm16742_vm10, %v2189_v48, %v2279_v55 }
 0x1c6   : > { %2281 = vst [vmem:[#allocation2 + $0x558] sm:$0x3f] %v2280_v13 }
 0x1c8   : > { %13171 = vmatmul.mubr.msk.bf16.gmra.mrb[68].mxu0 %vm307_vm2, %v5991_v25  ;;  %v6000_v25 = vld [vmem:[#allocation2 + $0x488] sm:$0xff] }
 0x1c9   : > { %13174 = vmatprep.mubr.msk.bf16.mxu0 %vm307_vm2, %v5992_v29 }
 0x1ca   : > { %13425 = vmatmul.mubr.msk.bf16.gmra.mrb[52].mxu1 %vm307_vm2, %v15368_v8  ;;  %v8182_v8 = vld [vmem:[#allocation2 + $0x18] sm:$0xff] }
 0x1cb   : > { %13428 = vmatprep.mubr.msk.bf16.mxu1 %vm307_vm2, %v15369_v10  ;;  %v5999_v10 = vld [vmem:[#allocation2 + $0x480] sm:$0xff] }
 0x1cf   : > { %v16849_v17 = vpop.f32.mrb[44].mxu0 }
 0x1d0   : > { %13175 = vmatmul.mubr.msk.bf16.gmra.mrb[72].mxu0 %vm307_vm2, %v5993_v16  ;;  %v16852_v3 = vpop.f32.mrb[45].mxu0  ;;  %v8188_v16 = vld [vmem:[#allocation2 + $0x48] sm:$0xff] }
 0x1d1   : > { %13178 = vmatprep.mubr.msk.bf16.mxu0 %vm307_vm2, %v5994_v33  ;;  %v16855_v12 = vpop.f32.mrb[46].mxu0  ;;  %v14675_v33 = vld [vmem:[%s15468_s16 + $0x58] sm:$0x3f]  }
 0x1d2   : > { %13429 = vmatmul.mubr.msk.bf16.gmra.mrb[56].mxu1 %vm307_vm2, %v15370_v5  ;;  %v16857_v2 = vpop.f32.mrb[47].mxu0 }
 0x1d3   : > { %13432 = vmatprep.mubr.msk.bf16.mxu1 %vm307_vm2, %v15371_v61  ;;  %v356_v61 = vld [vmem:[#allocation2 + $0x80] sm:$0x7] }
 0x1d4   : > { %v357_v13 = vsel %vm16560_vm0, 0, %v356_v61 }
 0x1d5   : > { %358 = vst [vmem:[#allocation2 + $0x80] sm:$0x7] %v357_v13 }
 0x1d7   : > { %v16866_v56 = vpop.f32.mrb[48].mxu0 }
 0x1d8   : > { %13179 = vmatmul.mubr.msk.bf16.gmra.mrb[76].mxu0 %vm307_vm2, %v5995_v53  ;;  %v16869_v4 = vpop.f32.mrb[49].mxu0  ;;  %v575_v53 = vshll.u32 %v14675_v33, 16 }
 0x1d9   : > { %13182 = vmatprep.mubr.msk.bf16.mxu0 %vm307_vm2, %v5996_v32  ;;  %v16873_v40 = vpop.f32.mrb[50].mxu0 }
 0x1da   : > { %13433 = vmatmul.mubr.msk.bf16.gmra.mrb[60].mxu1 %vm307_vm2, %v15372_v22  ;;  %v16876_v54 = vpop.f32.mrb[51].mxu0  ;;  %v572_v22 = vshrl.u32 %v14675_v33, 16 }
 0x1db   : > { %13438 = vmatprep.mubr.msk.bf16.mxu1 %vm307_vm2, %v8179_v43  ;;  %v8189_v43 = vld [vmem:[#allocation2 + $0x50] sm:$0xff] }
 0x1df   : > { %v16880_v11 = vpop.f32.mrb[52].mxu0 }
 0x1e0   : > { %13183 = vmatmul.mubr.msk.bf16.gmra.mrb[80].mxu0 %vm307_vm2, %v5997_v35  ;;  %v577_v35 = vrot.slane %v575_v53, 6 }
 0x1e1   : > { %13186 = vmatprep.mubr.msk.bf16.mxu0 %vm307_vm2, %v5998_v7 }
 0x1e2   : > { %13439 = vmatmul.mubr.msk.bf16.vlgmr.msra.gmra.mrb[32].mxu1 %vm307_vm2, %v8180_v14 }
 0x1e3   : > { %13471 = vmatpush3.bf16.msra.mxu1 %v16723_v34  ;;  %13442 = vmatprep.mubr.msk.bf16.mxu1 %vm307_vm2, %v8181_v51  ;;  %v16883_v34 = vpop.f32.mrb[53].mxu0  ;;  %v574_v51 = vrot.slane %v572_v22, 5 }
 0x1e4   : > { %13504 = vmatprep.subr.bf16.mxu1 %v16864_v62  ;;  %v16886_v21 = vpop.f32.mrb[54].mxu0 }
 0x1e5   : > { %v16888_v60 = vpop.f32.mrb[55].mxu0 }
 0x1e7   : > { %v16892_v29 = vpop.f32.mrb[56].mxu0 }
 0x1e8   : > { %13187 = vmatmul.mubr.msk.bf16.gmra.mrb[84].mxu0 %vm307_vm2, %v5999_v10  ;;  %v16895_v63 = vpop.f32.mrb[57].mxu0 }
 0x1e9   : > { %13190 = vmatprep.mubr.msk.bf16.mxu0 %vm307_vm2, %v6000_v25  ;;  %v16898_v46 = vpop.f32.mrb[58].mxu0  ;;  %v362_v25 = vld [vmem:[#allocation2 + $0x90] sm:$0x7] }
 0x1ea   : > { %13443 = vmatmul.mubr.msk.bf16.gmra.mrb[36].mxu1 %vm307_vm2, %v8182_v8  ;;  %v16900_v37 = vpop.f32.mrb[59].mxu0  ;;  %v359_v8 = vld [vmem:[#allocation2 + $0x88] sm:$0x7] }
 0x1eb   : > { %13446 = vmatprep.mubr.msk.bf16.mxu1 %vm307_vm2, %v8183_v18  ;;  %v360_v10 = vsel %vm16560_vm0, 0, %v359_v8 }
 0x1ec   : > { %361 = vst [vmem:[#allocation2 + $0x88] sm:$0x7] %v360_v10 }
 0x1ef   : > { %v16904_v15 = vpop.f32.mrb[60].mxu0 }
 0x1f0   : > { %13191 = vmatmul.mubr.msk.bf16.gmra.mrb[88].mxu0 %vm307_vm2, %v6001_v38  ;;  %v16907_v48 = vpop.f32.mrb[61].mxu0  ;;  %v363_v38 = vsel %vm16560_vm0, 0, %v362_v25 }
 0x1f1   : > { %13194 = vmatprep.mubr.msk.bf16.mxu0 %vm307_vm2, %v6002_v6  ;;  %v16910_v5 = vpop.f32.mrb[62].mxu0  ;;  %v8190_v6 = vld [vmem:[#allocation2 + $0x58] sm:$0xff]  ;;  %364 = vst [vmem:[#allocation2 + $0x90] sm:$0x7] %v363_v38  ;;  %v368_v38 = vld [vmem:[#allocation2 + $0xa0] sm:$0x7] }
 0x1f2   : > { %13447 = vmatmul.mubr.msk.bf16.gmra.mrb[40].mxu1 %vm307_vm2, %v8184_v58  ;;  %v16912_v55 = vpop.f32.mrb[63].mxu0  ;;  %v663_v58 = vld [vmem:[#allocation2 + $0x80] sm:$0xfc] }
 0x1f3   : > { %13450 = vmatprep.mubr.msk.bf16.mxu1 %vm307_vm2, %v8185_v24  ;;  %v14676_v24 = vld [vmem:[%s15468_s16 + $0x60] sm:$0x3f]   ;;  %v666_v25 = vld [vmem:[#allocation2 + $0x88] sm:$0xfc] }
 0x1f4   : > { %v580_v61 = vshrl.u32 %v14676_v24, 16  ;;  %v583_v13 = vshll.u32 %v14676_v24, 16 }
 0x1f6   : > { %v585_v22 = vrot.slane %v583_v13, 6 }
 0x1f8   : > { %13195 = vmatmul.mubr.msk.bf16.gmra.mrb[92].mxu0 %vm307_vm2, %v6003_v28  ;;  %v8191_v28 = vld [vmem:[#allocation2 + $0x60] sm:$0xff] }
 0x1f9   : > { %13200 = vmatprep.mubr.msk.bf16.mxu0 %vm307_vm2, %v16660_v1  ;;  %v16920_v32 = vpop.f32.mrb[32].mxu0  ;;  %v578_v1 = vor.u32 %v577_v35, %v574_v51 }
 0x1fa   : > { %13451 = vmatmul.mubr.msk.bf16.gmra.mrb[44].mxu1 %vm307_vm2, %v8186_v44  ;;  %v16923_v14 = vpop.f32.mrb[33].mxu0 }
 0x1fb   : > { %13454 = vmatprep.mubr.msk.bf16.mxu1 %vm307_vm2, %v8187_v27  ;;  %v16926_v7 = vpop.f32.mrb[34].mxu0  ;;  %v664_v44 = vsel %vm16591_vm4, %v578_v1, %v663_v58  ;;  %v14677_v27 = vld [vmem:[%s15468_s16 + $0x68] sm:$0x3f]   ;;  %v365_v1 = vld [vmem:[#allocation2 + $0x98] sm:$0x7] }
 0x1fc   : > { %v16928_v18 = vpop.f32.mrb[35].mxu0  ;;  %665 = vst [vmem:[#allocation2 + $0x80] sm:$0xfc] %v664_v44  ;;  %v591_v33 = vshll.u32 %v14677_v27, 16  ;;  %v366_v24 = vsel %vm16560_vm0, 0, %v365_v1 }
 0x1fd   : > { %v669_v44 = vld [vmem:[#allocation2 + $0x90] sm:$0xfc]  ;;  %367 = vst [vmem:[#allocation2 + $0x98] sm:$0x7] %v366_v24 }
 0x1fe   : > { %v593_v51 = vrot.slane %v591_v33, 6  ;;  %v8193_v33 = vld [vmem:[#allocation2 + $0x70] sm:$0xff] }
 0x200   : > { %13201 = vmatmul.mubr.msk.bf16.vlgmr.msra.gmra.mrb[64].mxu0 %vm307_vm2, %v16684_v42  ;;  %v582_v42 = vrot.slane %v580_v61, 5  ;;  %v8192_v61 = vld [vmem:[#allocation2 + $0x68] sm:$0xff] }
 0x201   : > { %13204 = vmatprep.mubr.msk.bf16.mxu0 %vm307_vm2, %v16686_v9  ;;  %13233 = vmatpush3.bf16.msra.mxu0 %v16821_v49  ;;  %v16954_v49 = vld [vmem:[%s18541_s2 + $0x70] sm:$0xff]  }
 0x202   : > { %13455 = vmatmul.mubr.msk.bf16.gmra.mrb[48].mxu1 %vm307_vm2, %v8188_v16  ;;  %v588_v16 = vshrl.u32 %v14677_v27, 16  ;;  %v586_v8 = vor.u32 %v585_v22, %v582_v42  ;;  %13266 = vmatprep.subr.bf16.mxu0 %v16954_v49  ;;  %v14678_v27 = vld [vmem:[%s15468_s16 + $0x70] sm:$0x3f]  }
 0x203   : > { %13458 = vmatprep.mubr.msk.bf16.mxu1 %vm307_vm2, %v8189_v43  ;;  %v16943_v43 = vpop.f32.mrb[36].mxu0  ;;  %v596_v42 = vshrl.u32 %v14678_v27, 16  ;;  %v599_v22 = vshll.u32 %v14678_v27, 16 }
 0x204   : > { %v16946_v53 = vpop.f32.mrb[37].mxu0  ;;  %v590_v9 = vrot.slane %v588_v16, 5  ;;  %v14679_v16 = vld [vmem:[%s15468_s16 + $0x78] sm:$0x3f]  }
 0x205   : > { %v16949_v35 = vpop.f32.mrb[38].mxu0  ;;  %v607_v57 = vshll.u32 %v14679_v16, 16 }
 0x206   : > { %v16956_v10 = vpop.f32.mrb[39].mxu0  ;;  %v594_v58 = vor.u32 %v593_v51, %v590_v9  ;;  %v604_v9 = vshrl.u32 %v14679_v16, 16  ;;  %v8647_v16 = vld [vmem:[#allocation2 + $0x4e0] sm:$0xff] }
 0x208   : > { %13205 = vmatmul.mubr.msk.bf16.gmra.mrb[68].mxu0 %vm307_vm2, %v16698_v30  ;;  %v670_v13 = vsel %vm16591_vm4, %v594_v58, %v669_v44  ;;  %v598_v30 = vrot.slane %v596_v42, 5  ;;  %v609_v58 = vrot.slane %v607_v57, 6  ;;  %v6268_v42 = vld [vmem:[#allocation2 + $0x168] sm:$0xff]  ;;  %v8654_v57 = vld [vmem:[#allocation2 + $0x518] sm:$0xff] }
 0x209   : > { %13208 = vmatprep.mubr.msk.bf16.mxu0 %vm307_vm2, %v16700_v50  ;;  %671 = vst [vmem:[#allocation2 + $0x90] sm:$0xfc] %v670_v13 }
 0x20a   : > { %13459 = vmatmul.mubr.msk.bf16.gmra.mrb[52].mxu1 %vm307_vm2, %v8190_v6  ;;  %v667_v6 = vsel %vm16591_vm4, %v586_v8, %v666_v25  ;;  %v601_v8 = vrot.slane %v599_v22, 6  ;;  %v606_v25 = vrot.slane %v604_v9, 5 }
 0x20b   : > { %13462 = vmatprep.mubr.msk.bf16.mxu1 %vm307_vm2, %v8191_v28  ;;  %v369_v28 = vsel %vm16560_vm0, 0, %v368_v38  ;;  %668 = vst [vmem:[#allocation2 + $0x88] sm:$0xfc] %v667_v6  ;;  %v16973_v51 = vpop.f32.mrb[40].mxu0  ;;  %v672_v6 = vld [vmem:[#allocation2 + $0x98] sm:$0xfc] }
 0x20c   : > { %370 = vst [vmem:[#allocation2 + $0xa0] sm:$0x7] %v369_v28  ;;  %v16976_v1 = vpop.f32.mrb[41].mxu0  ;;  %v602_v50 = vor.u32 %v601_v8, %v598_v30  ;;  %v610_v44 = vor.u32 %v609_v58, %v606_v25  ;;  %v14681_v30 = vld [vmem:[%s15468_s16 + $0x70] sm:$0xfe]  }
 0x20d   : > { %v16979_v24 = vpop.f32.mrb[42].mxu0 }
 0x20e   : > { %v16981_v38 = vpop.f32.mrb[43].mxu0  ;;  %v673_v27 = vsel %vm16591_vm4, %v602_v50, %v672_v6  ;;  %v8655_v50 = vld [vmem:[#allocation2 + $0x520] sm:$0xff]  ;;  %v1891_v6 = vrot.slane %v14681_v30, 1 }
 0x20f   : > { %674 = vst [vmem:[#allocation2 + $0x98] sm:$0xfc] %v673_v27  ;;  %v14682_v27 = vld [vmem:[%s15468_s16 + $0x78] sm:$0xfe]  }
 0x210   : > { %13209 = vmatmul.mubr.msk.bf16.gmra.mrb[72].mxu0 %vm307_vm2, %v16708_v23  ;;  %v8649_v23 = vld [vmem:[#allocation2 + $0x4f0] sm:$0xff]  ;;  %1924 = vst.msk [vmem:[#allocation2 + $0x4a8] sm:$0x7f] %vm1909_vm13, %v1891_v6 }
 0x211   : > { %13212 = vmatprep.mubr.msk.bf16.mxu0 %vm307_vm2, %v16710_v31  ;;  %v8650_v31 = vld [vmem:[#allocation2 + $0x4f8] sm:$0xff] }
 0x212   : > { %13463 = vmatmul.mubr.msk.bf16.gmra.mrb[56].mxu1 %vm307_vm2, %v8192_v61  ;;  %v8194_v61 = vld [vmem:[#allocation2 + $0x78] sm:$0xff] }
 0x213   : > { %13466 = vmatprep.mubr.msk.bf16.mxu1 %vm307_vm2, %v8193_v33  ;;  %v675_v28 = vld [vmem:[#allocation2 + $0xa0] sm:$0xfc]  ;;  %v8648_v33 = vld [vmem:[#allocation2 + $0x4e8] sm:$0xff] }
 0x214   : > { %v676_v13 = vsel %vm16591_vm4, %v610_v44, %v675_v28 }
 0x215   : > { %677 = vst [vmem:[#allocation2 + $0xa0] sm:$0xfc] %v676_v13  ;;  %v6269_v13 = vld [vmem:[#allocation2 + $0x170] sm:$0xff] }
 0x216   : > { %v17433_v47 = vld [vmem:[#allocation2 + $0x98] sm:$0xff] }
 0x218   : > { %13213 = vmatmul.mubr.msk.bf16.gmra.mrb[76].mxu0 %vm307_vm2, %v16731_v52  ;;  %v8651_v52 = vld [vmem:[#allocation2 + $0x500] sm:$0xff] }
 0x219   : > { %13216 = vmatprep.mubr.msk.bf16.mxu0 %vm307_vm2, %v16734_v39  ;;  %v8652_v39 = vld [vmem:[#allocation2 + $0x508] sm:$0xff] }
 0x21a   : > { %13467 = vmatmul.mubr.msk.bf16.gmra.mrb[60].mxu1 %vm307_vm2, %v8194_v61 }
 0x21b   : > { %13472 = vmatprep.mubr.msk.bf16.mxu1 %vm307_vm2, %v8647_v16  ;;  %v1892_v16 = vrot.slane %v14682_v27, 1  ;;  %v17075_v27 = vld [vmem:[#allocation2 + $0x2a0] sm:$0xff] }
 0x21d   : > { %1925 = vst.msk [vmem:[#allocation2 + $0x4b0] sm:$0x7f] %vm1909_vm13, %v1892_v16  ;;  %vm15386_vm13 = vmmov 0  }
 0x220   : > { %13217 = vmatmul.mubr.msk.bf16.gmra.mrb[80].mxu0 %vm307_vm2, %v16756_v19 }
 0x221   : > { %13220 = vmatprep.mubr.msk.bf16.mxu0 %vm307_vm2, %v16758_v20  ;;  %v17021_v20 = vld [vmem:[%s18545_s6 + $0x1] ss:$0 sm:$0xff] }
 0x222   : > { %13473 = vmatmul.mubr.msk.bf16.vlgmr.msra.gmra.mrb[32].mxu1 %vm307_vm2, %v8648_v33 }
 0x223   : > { %13505 = vmatpush3.bf16.msra.mxu1 %v16864_v62  ;;  %13476 = vmatprep.mubr.msk.bf16.mxu1 %vm307_vm2, %v8649_v23  ;;  %v8653_v62 = vld [vmem:[#allocation2 + $0x510] sm:$0xff] }
 0x224   : > { %13538 = vmatprep.subr.bf16.mxu1 %v17000_v59 }
 0x228   : > { %13221 = vmatmul.mubr.msk.bf16.gmra.mrb[84].mxu0 %vm307_vm2, %v16777_v36 }
 0x229   : > { %13224 = vmatprep.mubr.msk.bf16.mxu0 %vm307_vm2, %v16779_v41 }
 0x22a   : > { %13477 = vmatmul.mubr.msk.bf16.gmra.mrb[36].mxu1 %vm307_vm2, %v8650_v31 }
 0x22b   : > { %13480 = vmatprep.mubr.msk.bf16.mxu1 %vm307_vm2, %v8651_v52  ;;  %v6520_v52 = vld [vmem:[#allocation2 + $0x298] sm:$0xff] }
 0x230   : > { %13225 = vmatmul.mubr.msk.bf16.gmra.mrb[88].mxu0 %vm307_vm2, %v16800_v26 }
 0x231   : > { %13228 = vmatprep.mubr.msk.bf16.mxu0 %vm307_vm2, %v6268_v42 }
 0x232   : > { %13481 = vmatmul.mubr.msk.bf16.gmra.mrb[40].mxu1 %vm307_vm2, %v8652_v39 }
 0x233   : > { %13484 = vmatprep.mubr.msk.bf16.mxu1 %vm307_vm2, %v8653_v62 }
 0x235   : > { %v13066_v19 = vpop.f32.mrb[20].mxu1 }
 0x236   : > { %v13756_v22 = vadd.f32 %v13066_v19, %v16920_v32  ;;  %v5032_v9 = vpop.f32.mrb[21].mxu1 }
 0x237   : > { %v13757_v36 = vadd.f32 %v5032_v9, %v16923_v14  ;;  %v13067_v41 = vpop.f32.mrb[22].mxu1 }
 0x238   : > { %v17029_v8 = vadd.f32 %v13756_v22, %v17021_v20  ;;  %v13758_v25 = vadd.f32 %v13067_v41, %v16926_v7  ;;  %v5035_v58 = vpop.f32.mrb[23].mxu1  ;;  %13229 = vmatmul.mubr.msk.bf16.gmra.mrb[92].mxu0 %vm307_vm2, %v6269_v13  ;;  %v17083_v13 = vld [vmem:[%s18541_s2 + $0x78] sm:$0xff]  }
 0x239   : > { %v17034_v32 = vadd.f32 %v13757_v36, %v17021_v20  ;;  %v13759_v26 = vadd.f32 %v5035_v58, %v16928_v18  ;;  %v8656_v36 = vld [vmem:[#allocation2 + $0x528] sm:$0xff]  ;;  %13234 = vmatprep.mubr.msk.bf16.mxu0 %vm307_vm2, %v6520_v52 }
 0x23a   : > { %v5230_v14 = vsub.f32 0.0, %v17029_v8  ;;  %v17039_v44 = vadd.f32 %v13758_v25, %v17021_v20  ;;  %13485 = vmatmul.mubr.msk.bf16.gmra.mrb[44].mxu1 %vm307_vm2, %v8654_v57 }
 0x23b   : > { %v5228_v7 = vsub.f32 0.0, %v17034_v32  ;;  %v17045_v28 = vadd.f32 %v13759_v26, %v17021_v20  ;;  %13488 = vmatprep.mubr.msk.bf16.mxu1 %vm307_vm2, %v8655_v50 }
 0x23c   : > { %v5264_v61 = vmul.f32 1.442695, %v5230_v14  ;;  %v5231_v18 = vsub.f32 0.0, %v17039_v44 }
 0x23d   : > { %v5260_v33 = vmul.f32 1.442695, %v5228_v7  ;;  %v5229_v23 = vsub.f32 0.0, %v17045_v28  ;;  %v13070_v31 = vpop.f32.mrb[24].mxu1 }
 0x23e   : > { %14840 = vpow2.f32 %v5264_v61  ;;  %v5266_v39 = vmul.f32 1.442695, %v5231_v18  ;;  %v13760_v62 = vadd.f32 %v13070_v31, %v16943_v43  ;;  %v5048_v19 = vpop.f32.mrb[25].mxu1  ;;  %v8657_v43 = vld [vmem:[#allocation2 + $0x530] sm:$0xff]  ;;  %v17078_v18 = vld [vmem:[#allocation2 + $0x2a8] sm:$0xff] }
 0x23f   : > { %14842 = vpow2.f32 %v5260_v33  ;;  %v5262_v42 = vmul.f32 1.442695, %v5229_v23  ;;  %v13761_v22 = vadd.f32 %v5048_v19, %v16946_v53  ;;  %v13071_v9 = vpop.f32.mrb[26].mxu1 }
 0x240   : > { %14844 = vpow2.f32 %v5266_v39  ;;  %v17056_v41 = vadd.f32 %v13760_v62, %v17021_v20  ;;  %v13762_v57 = vadd.f32 %v13071_v9, %v16949_v35  ;;  %v5051_v30 = vpop.f32.mrb[27].mxu1  ;;  %13235 = vmatmul.mubr.msk.bf16.vlgmr.msra.gmra.mrb[64].mxu0 %vm307_vm2, %v17075_v27  ;;  %v8658_v62 = vld [vmem:[#allocation2 + $0x538] sm:$0xff] }
 0x241   : > { %14846 = vpow2.f32 %v5262_v42  ;;  %v17061_v25 = vadd.f32 %v13761_v22, %v17021_v20  ;;  %v13763_v58 = vadd.f32 %v5051_v30, %v16956_v10  ;;  %13238 = vmatprep.mubr.msk.bf16.mxu0 %vm307_vm2, %v17078_v18  ;;  %13267 = vmatpush3.bf16.msra.mxu0 %v16954_v49 }
 0x242   : > { %v5234_v53 = vsub.f32 0.0, %v17056_v41  ;;  %v17066_v50 = vadd.f32 %v13762_v57, %v17021_v20  ;;  %13489 = vmatmul.mubr.msk.bf16.gmra.mrb[48].mxu1 %vm307_vm2, %v8656_v36  ;;  %13300 = vmatprep.subr.bf16.mxu0 %v17083_v13 }
 0x243   : > { %v5232_v26 = vsub.f32 0.0, %v17061_v25  ;;  %v17071_v35 = vadd.f32 %v13763_v58, %v17021_v20  ;;  %13492 = vmatprep.mubr.msk.bf16.mxu1 %vm307_vm2, %v8657_v43 }
 0x244   : > { %v5272_v6 = vmul.f32 1.442695, %v5234_v53  ;;  %v5235_v14 = vsub.f32 0.0, %v17066_v50 }
 0x245   : > { %v5268_v10 = vmul.f32 1.442695, %v5232_v26  ;;  %v5233_v7 = vsub.f32 0.0, %v17071_v35  ;;  %v13074_v61 = vpop.f32.mrb[28].mxu1 }
 0x246   : > { %14848 = vpow2.f32 %v5272_v6  ;;  %v5274_v16 = vmul.f32 1.442695, %v5235_v14  ;;  %v13764_v33 = vadd.f32 %v13074_v61, %v16973_v51  ;;  %v5064_v23 = vpop.f32.mrb[29].mxu1  ;;  %v8659_v51 = vld [vmem:[#allocation2 + $0x540] sm:$0xff]  ;;  %v17112_v61 = vld [vmem:[#allocation2 + $0x2b0] sm:$0xff] }
 0x247   : > { %14850 = vpow2.f32 %v5268_v10  ;;  %v5270_v31 = vmul.f32 1.442695, %v5233_v7  ;;  %v13765_v52 = vadd.f32 %v5064_v23, %v16976_v1  ;;  %v13075_v39 = vpop.f32.mrb[30].mxu1 }
 0x248   : > { %v14841_v19 = vpop.eup %14840  ;;  %14852 = vpow2.f32 %v5274_v16  ;;  %v17090_v42 = vadd.f32 %v13764_v33, %v17021_v20  ;;  %v13766_v22 = vadd.f32 %v13075_v39, %v16979_v24  ;;  %v5067_v9 = vpop.f32.mrb[31].mxu1  ;;  %13239 = vmatmul.mubr.msk.bf16.gmra.mrb[68].mxu0 %vm307_vm2, %v17112_v61 }
 0x249   : > { %v14843_v36 = vpop.eup %14842  ;;  %v5326_v57 = vadd.f32 1.0, %v14841_v19  ;;  %14854 = vpow2.f32 %v5270_v31  ;;  %v17097_v1 = vadd.f32 %v13765_v52, %v17021_v20  ;;  %v13767_v30 = vadd.f32 %v5067_v9, %v16981_v38  ;;  %v17115_v31 = vld [vmem:[#allocation2 + $0x2b8] sm:$0xff] }
 0x24a   : > { %v14845_v43 = vpop.eup %14844  ;;  %v5324_v58 = vadd.f32 1.0, %v14843_v36  ;;  %v5238_v24 = vsub.f32 0.0, %v17090_v42  ;;  %v17103_v53 = vadd.f32 %v13766_v22, %v17021_v20  ;;  %13493 = vmatmul.mubr.msk.bf16.gmra.mrb[52].mxu1 %vm307_vm2, %v8658_v62  ;;  %13242 = vmatprep.mubr.msk.bf16.mxu0 %vm307_vm2, %v17115_v31 }
 0x24b   : > { %v14847_v49 = vpop.eup %14846  ;;  %14856 = vrcp.f32 %v5326_v57  ;;  %v5327_v26 = vadd.f32 1.0, %v14845_v43  ;;  %v5236_v6 = vsub.f32 0.0, %v17097_v1  ;;  %v17108_v14 = vadd.f32 %v13767_v30, %v17021_v20  ;;  %13496 = vmatprep.mubr.msk.bf16.mxu1 %vm307_vm2, %v8659_v51  ;;  %v8660_v51 = vld [vmem:[#allocation2 + $0x548] sm:$0xff] }
 0x24c   : > { %14858 = vrcp.f32 %v5324_v58  ;;  %v5325_v38 = vadd.f32 1.0, %v14847_v49  ;;  %v5280_v10 = vmul.f32 1.442695, %v5238_v24  ;;  %v5239_v7 = vsub.f32 0.0, %v17103_v53 }
 0x24d   : > { %14860 = vrcp.f32 %v5327_v26  ;;  %v5276_v16 = vmul.f32 1.442695, %v5236_v6  ;;  %v5237_v33 = vsub.f32 0.0, %v17108_v14  ;;  %v13078_v23 = vpop.f32.mrb[0].mxu1 }
 0x24e   : > { %14862 = vrcp.f32 %v5325_v38  ;;  %v5282_v52 = vmul.f32 1.442695, %v5239_v7  ;;  %v13768_v39 = vadd.f32 %v13078_v23, %v16849_v17  ;;  %v5080_v62 = vpop.f32.mrb[1].mxu1  ;;  %v8661_v17 = vld [vmem:[#allocation2 + $0x550] sm:$0xff] }
 0x24f   : > { %14864 = vpow2.f32 %v5280_v10  ;;  %v5278_v19 = vmul.f32 1.442695, %v5237_v33  ;;  %v13769_v22 = vadd.f32 %v5080_v62, %v16852_v3  ;;  %v13079_v9 = vpop.f32.mrb[2].mxu1 }
 0x250   : > { %v14849_v36 = vpop.eup %14848  ;;  %14866 = vpow2.f32 %v5276_v16  ;;  %v17122_v57 = vadd.f32 %v13768_v39, %v17021_v20  ;;  %v13770_v30 = vadd.f32 %v13079_v9, %v16855_v12  ;;  %v5083_v43 = vpop.f32.mrb[3].mxu1  ;;  %v17142_v39 = vld [vmem:[#allocation2 + $0x2c0] sm:$0xff] }
 0x251   : > { %v14851_v58 = vpop.eup %14850  ;;  %v5330_v24 = vadd.f32 1.0, %v14849_v36  ;;  %14868 = vpow2.f32 %v5282_v52  ;;  %v17128_v49 = vadd.f32 %v13769_v22, %v17021_v20  ;;  %v13771_v3 = vadd.f32 %v5083_v43, %v16857_v2  ;;  %13243 = vmatmul.mubr.msk.bf16.gmra.mrb[72].mxu0 %vm307_vm2, %v17142_v39 }
 0x252   : > { %v14853_v26 = vpop.eup %14852  ;;  %v5328_v6 = vadd.f32 1.0, %v14851_v58  ;;  %14870 = vpow2.f32 %v5278_v19  ;;  %v5242_v38 = vsub.f32 0.0, %v17122_v57  ;;  %v17133_v12 = vadd.f32 %v13770_v30, %v17021_v20  ;;  %13497 = vmatmul.mubr.msk.bf16.gmra.mrb[56].mxu1 %vm307_vm2, %v8660_v51  ;;  %v17145_v51 = vld [vmem:[#allocation2 + $0x2c8] sm:$0xff] }
 0x253   : > { %v14855_v10 = vpop.eup %14854  ;;  %14872 = vrcp.f32 %v5330_v24  ;;  %v5331_v7 = vadd.f32 1.0, %v14853_v26  ;;  %v5240_v16 = vsub.f32 0.0, %v17128_v49  ;;  %v17138_v33 = vadd.f32 %v13771_v3, %v17021_v20  ;;  %13500 = vmatprep.mubr.msk.bf16.mxu1 %vm307_vm2, %v8661_v17  ;;  %13246 = vmatprep.mubr.msk.bf16.mxu0 %vm307_vm2, %v17145_v51 }
 0x254   : > { %14874 = vrcp.f32 %v5328_v6  ;;  %v5329_v2 = vadd.f32 1.0, %v14855_v10  ;;  %v5288_v23 = vmul.f32 1.442695, %v5242_v38  ;;  %v5243_v52 = vsub.f32 0.0, %v17133_v12  ;;  %v17155_v10 = vld [vmem:[#allocation2 + $0x558] sm:$0xff] }
 0x255   : > { %v14857_v62 = vpop.eup %14856  ;;  %14876 = vrcp.f32 %v5331_v7  ;;  %v5284_v19 = vmul.f32 1.442695, %v5240_v16  ;;  %v5241_v22 = vsub.f32 0.0, %v17138_v33  ;;  %v13082_v9 = vpop.f32.mrb[4].mxu1 }
 0x256   : > { %v14859_v36 = vpop.eup %14858  ;;  %14878 = vrcp.f32 %v5329_v2  ;;  %v5290_v30 = vmul.f32 1.442695, %v5243_v52  ;;  %v13772_v43 = vadd.f32 %v13082_v9, %v16866_v56  ;;  %v5096_v17 = vpop.f32.mrb[5].mxu1  ;;  %v5390_v58 = vmul.f32 %v14857_v62, %v17029_v8  ;;  %v8913_v2 = vld [vmem:[#allocation2 + $0x28] sm:$0xff] }
 0x257   : > { %v14861_v24 = vpop.eup %14860  ;;  %v17150_v3 = vmul.f32 %v14859_v36, %v17034_v32  ;;  %14880 = vpow2.f32 %v5288_v23  ;;  %v5286_v26 = vmul.f32 1.442695, %v5241_v22  ;;  %v13773_v6 = vadd.f32 %v5096_v17, %v16869_v4  ;;  %v13083_v38 = vpop.f32.mrb[6].mxu1 }
 0x258   : > { %v14863_v7 = vpop.eup %14862  ;;  %14882 = vpow2.f32 %v5284_v19  ;;  %v17158_v56 = vadd.f32 %v13772_v43, %v17021_v20  ;;  %v13774_v8 = vadd.f32 %v13083_v38, %v16873_v40  ;;  %v5099_v16 = vpop.f32.mrb[7].mxu1  ;;  %v5391_v32 = vmul.f32 %v14861_v24, %v17039_v44 }
 0x259   : > { %v14865_v23 = vpop.eup %14864  ;;  %v5389_v4 = vmul.f32 %v14863_v7, %v17045_v28  ;;  %14884 = vpow2.f32 %v5290_v30  ;;  %v17166_v52 = vadd.f32 %v13773_v6, %v17021_v20  ;;  %v13775_v62 = vadd.f32 %v5099_v16, %v16876_v54  ;;  %v17181_v6 = vld [vmem:[#allocation2 + $0x2d0] sm:$0xff] }
 0x25a   : > { %v14867_v19 = vpop.eup %14866  ;;  %v5334_v22 = vadd.f32 1.0, %v14865_v23  ;;  %14886 = vpow2.f32 %v5286_v26  ;;  %v5246_v40 = vsub.f32 0.0, %v17158_v56  ;;  %v17171_v9 = vadd.f32 %v13774_v8, %v17021_v20  ;;  %13501 = vmatmul.mubr.msk.bf16.gmra.mrb[60].mxu1 %vm307_vm2, %v17155_v10  ;;  %13247 = vmatmul.mubr.msk.bf16.gmra.mrb[76].mxu0 %vm307_vm2, %v17181_v6 }
 0x25b   : > { %v14869_v44 = vpop.eup %14868  ;;  %v5332_v36 = vadd.f32 1.0, %v14867_v19  ;;  %v5244_v28 = vsub.f32 0.0, %v17166_v52  ;;  %v17177_v30 = vadd.f32 %v13775_v62, %v17021_v20  ;;  %v5421_v43 = vpack.c.bf16 %v5391_v32, %v5390_v58  ;;  %13506 = vmatprep.mubr.msk.bf16.mxu1 %vm307_vm2, %v8913_v2  ;;  %v17185_v32 = vld [vmem:[#allocation2 + $0x2d8] sm:$0xff] }
 0x25c   : > { %v14871_v54 = vpop.eup %14870  ;;  %14888 = vrcp.f32 %v5334_v22  ;;  %v5335_v17 = vadd.f32 1.0, %v14869_v44  ;;  %v5296_v24 = vmul.f32 1.442695, %v5246_v40  ;;  %v5247_v26 = vsub.f32 0.0, %v17171_v9  ;;  %13250 = vmatprep.mubr.msk.bf16.mxu0 %vm307_vm2, %v17185_v32 }
 0x25d   : > { %v14873_v38 = vpop.eup %14872  ;;  %14890 = vrcp.f32 %v5332_v36  ;;  %v5333_v7 = vadd.f32 1.0, %v14871_v54  ;;  %v5292_v8 = vmul.f32 1.442695, %v5244_v28  ;;  %v5245_v16 = vsub.f32 0.0, %v17177_v30  ;;  %5454 = vrot.lane.b32.xlu0 %v5421_v43, %s15384_s23  ;;  %v13086_v58 = vpop.f32.mrb[8].mxu1  ;;  %v8914_v54 = vld [vmem:[#allocation2 + $0x30] sm:$0xff] }
 0x25e   : > { %v14875_v2 = vpop.eup %14874  ;;  %14892 = vrcp.f32 %v5335_v17  ;;  %v5298_v23 = vmul.f32 1.442695, %v5247_v26  ;;  %v13776_v62 = vadd.f32 %v13086_v58, %v16880_v11  ;;  %v5112_v19 = vpop.f32.mrb[9].mxu1  ;;  %v5420_v22 = vpack.c.bf16 %v5389_v4, %v17150_v3  ;;  %v8915_v26 = vld [vmem:[#allocation2 + $0x38] sm:$0xff] }
 0x25f   : > { %v14877_v40 = vpop.eup %14876  ;;  %v17190_v44 = vmul.f32 %v14875_v2, %v17061_v25  ;;  %14894 = vrcp.f32 %v5333_v7  ;;  %v5294_v36 = vmul.f32 1.442695, %v5245_v16  ;;  %v13777_v28 = vadd.f32 %v5112_v19, %v16883_v34  ;;  %v13087_v43 = vpop.f32.mrb[10].mxu1  ;;  %v17207_v34 = vld [vmem:[%s18541_s2 + $0xb8] sm:$0xff]  }
 0x260   : > { %v14879_v17 = vpop.eup %14878  ;;  %14896 = vpow2.f32 %v5296_v24  ;;  %v17196_v11 = vadd.f32 %v13776_v62, %v17021_v20  ;;  %v13778_v3 = vadd.f32 %v13087_v43, %v16886_v21  ;;  %v5115_v4 = vpop.f32.mrb[11].mxu1  ;;  %v17202_v25 = vmul.f32 %v14873_v38, %v17056_v41  ;;  %v17227_v43 = vld [vmem:[#allocation2 + $0x2e0] sm:$0xff] }
 0x261   : > { %v14881_v7 = vpop.eup %14880  ;;  %v5393_v24 = vmul.f32 %v14879_v17, %v17071_v35  ;;  %14898 = vpow2.f32 %v5292_v8  ;;  %v17211_v16 = vadd.f32 %v13777_v28, %v17021_v20  ;;  %v13779_v21 = vadd.f32 %v5115_v4, %v16888_v60  ;;  %5452 = vrot.lane.b32.xlu0 %v5420_v22, %s15384_s23  ;;  %v17231_v4 = vld [vmem:[#allocation2 + $0x2e8] sm:$0xff] }
 0x262   : > { %v14883_v58 = vpop.eup %14882  ;;  %v5338_v41 = vadd.f32 1.0, %v14881_v7  ;;  %14900 = vpow2.f32 %v5298_v23  ;;  %v5250_v38 = vsub.f32 0.0, %v17196_v11  ;;  %v17217_v2 = vadd.f32 %v13778_v3, %v17021_v20  ;;  %13507 = vmatmul.mubr.msk.bf16.vlgmr.msra.gmra.mrb[32].mxu1 %vm307_vm2, %v8914_v54  ;;  %13251 = vmatmul.mubr.msk.bf16.gmra.mrb[80].mxu0 %vm307_vm2, %v17227_v43 }
 0x263   : > { %v14885_v62 = vpop.eup %14884  ;;  %v5336_v35 = vadd.f32 1.0, %v14883_v58  ;;  %14902 = vpow2.f32 %v5294_v36  ;;  %v5248_v8 = vsub.f32 0.0, %v17211_v16  ;;  %v17222_v19 = vadd.f32 %v13779_v21, %v17021_v20  ;;  %13539 = vmatpush3.bf16.msra.mxu1 %v17000_v59  ;;  %13510 = vmatprep.mubr.msk.bf16.mxu1 %vm307_vm2, %v8915_v26 }
 0x264   : > { %v14887_v60 = vpop.eup %14886  ;;  %14904 = vrcp.f32 %v5338_v41  ;;  %v5339_v23 = vadd.f32 1.0, %v14885_v62  ;;  %v5304_v22 = vmul.f32 1.442695, %v5250_v38  ;;  %v5251_v28 = vsub.f32 0.0, %v17217_v2  ;;  %13572 = vmatprep.subr.bf16.mxu1 %v17207_v34  ;;  %13254 = vmatprep.mubr.msk.bf16.mxu0 %vm307_vm2, %v17231_v4 }
 0x265   : > { %14906 = vrcp.f32 %v5336_v35  ;;  %v5337_v36 = vadd.f32 1.0, %v14887_v60  ;;  %v5300_v54 = vmul.f32 1.442695, %v5248_v8  ;;  %v5249_v17 = vsub.f32 0.0, %v17222_v19  ;;  %v13090_v3 = vpop.f32.mrb[12].mxu1  ;;  %v8916_v60 = vld [vmem:[#allocation2 + $0x40] sm:$0xff] }
 0x266   : > { %v14889_v59 = vpop.eup %14888  ;;  %14908 = vrcp.f32 %v5339_v23  ;;  %v5306_v26 = vmul.f32 1.442695, %v5251_v28  ;;  %v5395_v7 = vmul.f32 %v14877_v40, %v17066_v50  ;;  %v13780_v21 = vadd.f32 %v13090_v3, %v16892_v29  ;;  %v5128_v58 = vpop.f32.mrb[13].mxu1  ;;  %v8917_v40 = vld [vmem:[#allocation2 + $0x48] sm:$0xff] }
 0x267   : > { %v14891_v41 = vpop.eup %14890  ;;  %v5398_v38 = vmul.f32 %v14889_v59, %v17090_v42  ;;  %14910 = vrcp.f32 %v5337_v36  ;;  %v5302_v62 = vmul.f32 1.442695, %v5249_v17  ;;  %v5422_v35 = vpack.c.bf16 %v5393_v24, %v17190_v44  ;;  %v13091_v8 = vpop.f32.mrb[14].mxu1 }
 0x268   : > { %v14893_v45 = vpop.eup %14892  ;;  %v17240_v23 = vmul.f32 %v14891_v41, %v17097_v1  ;;  %14912 = vpow2.f32 %v5304_v22  ;;  %v5423_v29 = vpack.c.bf16 %v5395_v7, %v17202_v25  ;;  %v17244_v50 = vadd.f32 %v13780_v21, %v17021_v20  ;;  %v5131_v42 = vpop.f32.mrb[15].mxu1 }
 0x269   : > { %v14895_v28 = vpop.eup %14894  ;;  %v5399_v44 = vmul.f32 %v14893_v45, %v17103_v53  ;;  %14914 = vpow2.f32 %v5300_v54  ;;  %5456 = vrot.lane.b32.xlu0 %v5422_v35, %s15384_s23  ;;  %v13781_v1 = vadd.f32 %v5128_v58, %v16895_v63  ;;  %v13782_v24 = vadd.f32 %v13091_v8, %v16898_v46  ;;  %v17271_v35 = vld [vmem:[#allocation2 + $0x2f8] sm:$0xff] }
 0x26a   : > { %v14897_v22 = vpop.eup %14896  ;;  %v5397_v25 = vmul.f32 %v14895_v28, %v17108_v14  ;;  %14916 = vpow2.f32 %v5306_v26  ;;  %5458 = vrot.lane.b32.xlu1 %v5423_v29, %s15384_s23  ;;  %v5254_v36 = vsub.f32 0.0, %v17244_v50  ;;  %v13783_v17 = vadd.f32 %v5131_v42, %v16900_v37  ;;  %13511 = vmatmul.mubr.msk.bf16.gmra.mrb[36].mxu1 %vm307_vm2, %v8916_v60  ;;  %v17267_v37 = vld [vmem:[#allocation2 + $0x2f0] sm:$0xff] }
 0x26b   : > { %v14899_v45 = vpop.eup %14898  ;;  %v5342_v53 = vadd.f32 1.0, %v14897_v22  ;;  %14918 = vpow2.f32 %v5302_v62  ;;  %v17258_v54 = vadd.f32 %v13781_v1, %v17021_v20  ;;  %v17261_v63 = vadd.f32 %v13782_v24, %v17021_v20  ;;  %13514 = vmatprep.mubr.msk.bf16.mxu1 %vm307_vm2, %v8917_v40  ;;  %13255 = vmatmul.mubr.msk.bf16.gmra.mrb[84].mxu0 %vm307_vm2, %v17267_v37  ;;  %v17279_v22 = vld [vmem:[#allocation2 + $0x50] sm:$0xff] }
 0x26c   : > { %v14901_v46 = vpop.eup %14900  ;;  %v5340_v14 = vadd.f32 1.0, %v14899_v45  ;;  %v5312_v3 = vmul.f32 1.442695, %v5254_v36  ;;  %v17265_v59 = vadd.f32 %v13783_v17, %v17021_v20  ;;  %v5425_v26 = vpack.c.bf16 %v5399_v44, %v5398_v38  ;;  %13258 = vmatprep.mubr.msk.bf16.mxu0 %vm307_vm2, %v17271_v35 }
 0x26d   : > { %v14903_v7 = vpop.eup %14902  ;;  %14920 = vrcp.f32 %v5342_v53  ;;  %v5343_v21 = vadd.f32 1.0, %v14901_v46  ;;  %v5252_v58 = vsub.f32 0.0, %v17258_v54  ;;  %v5255_v41 = vsub.f32 0.0, %v17261_v63  ;;  %v13094_v62 = vpop.f32.mrb[16].mxu1 }
 0x26e   : > { %v14905_v8 = vpop.eup %14904  ;;  %14922 = vrcp.f32 %v5340_v14  ;;  %v5341_v60 = vadd.f32 1.0, %v14903_v7  ;;  %v5253_v29 = vsub.f32 0.0, %v17265_v59  ;;  %5462 = vrot.lane.b32.xlu1 %v5425_v26, %s15384_s23  ;;  %v13784_v42 = vadd.f32 %v13094_v62, %v16904_v15  ;;  %v5144_v38 = vpop.f32.mrb[17].mxu1 }
 0x26f   : > { %v14907_v40 = vpop.eup %14906  ;;  %v5402_v28 = vmul.f32 %v14905_v8, %v17122_v57  ;;  %14924 = vrcp.f32 %v5343_v21  ;;  %v5308_v44 = vmul.f32 1.442695, %v5252_v58  ;;  %v5314_v1 = vmul.f32 1.442695, %v5255_v41  ;;  %v13095_v24 = vpop.f32.mrb[18].mxu1  ;;  %v17287_v57 = vld [vmem:[#allocation2 + $0x58] sm:$0xff] }
 0x270   : > { %v14909_v36 = vpop.eup %14908  ;;  %v5400_v17 = vmul.f32 %v14907_v40, %v17128_v49  ;;  %14926 = vrcp.f32 %v5341_v60  ;;  %v5310_v45 = vmul.f32 1.442695, %v5253_v29  ;;  %v17283_v15 = vadd.f32 %v13784_v42, %v17021_v20  ;;  %v5147_v53 = vpop.f32.mrb[19].mxu1 }
 0x271   : > { %v14911_v46 = vpop.eup %14910  ;;  %v5403_v14 = vmul.f32 %v14909_v36, %v17133_v12  ;;  %14928 = vpow2.f32 %v5312_v3  ;;  %v5424_v26 = vpack.c.bf16 %v5397_v25, %v17240_v23  ;;  %v13785_v7 = vadd.f32 %v5144_v38, %v16907_v48  ;;  %v17307_v3 = vld [vmem:[#allocation2 + $0x300] sm:$0xff] }
 0x272   : > { %v14913_v49 = vpop.eup %14912  ;;  %v5401_v21 = vmul.f32 %v14911_v46, %v17138_v33  ;;  %14930 = vpow2.f32 %v5308_v44  ;;  %v5258_v58 = vsub.f32 0.0, %v17283_v15  ;;  %v13786_v41 = vadd.f32 %v13095_v24, %v16910_v5  ;;  %13515 = vmatmul.mubr.msk.bf16.gmra.mrb[40].mxu1 %vm307_vm2, %v17279_v22  ;;  %v17319_v46 = vld [vmem:[#allocation2 + $0x60] sm:$0xff] }
 0x273   : > { %v14915_v62 = vpop.eup %14914  ;;  %v5346_v8 = vadd.f32 1.0, %v14913_v49  ;;  %14932 = vpow2.f32 %v5314_v1  ;;  %5460 = vrot.lane.b32.xlu0 %v5424_v26, %s15384_s23  ;;  %v17299_v12 = vadd.f32 %v13785_v7, %v17021_v20  ;;  %v13787_v48 = vadd.f32 %v5147_v53, %v16912_v55  ;;  %13518 = vmatprep.mubr.msk.bf16.mxu1 %vm307_vm2, %v17287_v57  ;;  %v17313_v55 = vld [vmem:[#allocation2 + $0x308] sm:$0xff] }
 0x274   : > { %v14917_v33 = vpop.eup %14916  ;;  %v5344_v23 = vadd.f32 1.0, %v14915_v62  ;;  %14934 = vpow2.f32 %v5310_v45  ;;  %v5320_v5 = vmul.f32 1.442695, %v5258_v58  ;;  %v17305_v25 = vadd.f32 %v13786_v41, %v17021_v20  ;;  %13259 = vmatmul.mubr.msk.bf16.gmra.mrb[88].mxu0 %vm307_vm2, %v17307_v3 }
 0x275   : > { %v14919_v60 = vpop.eup %14918  ;;  %14936 = vrcp.f32 %v5346_v8  ;;  %v5347_v29 = vadd.f32 1.0, %v14917_v33  ;;  %v5256_v42 = vsub.f32 0.0, %v17299_v12  ;;  %v17311_v38 = vadd.f32 %v13787_v48, %v17021_v20  ;;  %13262 = vmatprep.mubr.msk.bf16.mxu0 %vm307_vm2, %v17313_v55  ;;  %v17335_v33 = vld [vmem:[#allocation2 + $0x310] sm:$0xff] }
 0x276   : > { %14938 = vrcp.f32 %v5344_v23  ;;  %v5345_v40 = vadd.f32 1.0, %v14919_v60  ;;  %v5259_v44 = vsub.f32 0.0, %v17305_v25  ;;  %v5427_v1 = vpack.c.bf16 %v5403_v14, %v5402_v28  ;;  %v17324_v28 = vld [vmem:[#allocation2 + $0x68] sm:$0xff]  ;;  %v6786_v60 = vld [vmem:[#allocation2 + $0x438] sm:$0xff] }
 0x277   : > { %v14921_v24 = vpop.eup %14920  ;;  %14940 = vrcp.f32 %v5347_v29  ;;  %v5316_v36 = vmul.f32 1.442695, %v5256_v42  ;;  %v5257_v45 = vsub.f32 0.0, %v17311_v38  ;;  %v5426_v53 = vpack.c.bf16 %v5401_v21, %v5400_v17  ;;  %v1975_v29 = vld [vmem:[#allocation2 + $0x560] sm:$0xe0] }
 0x278   : > { %v14923_v20 = vpop.eup %14922  ;;  %14942 = vrcp.f32 %v5345_v40  ;;  %v5322_v26 = vmul.f32 1.442695, %v5259_v44  ;;  %5466 = vrot.lane.b32.xlu1 %v5427_v1, %s15384_s23  ;;  %v5406_v17 = vmul.f32 %v14921_v24, %v17158_v56  ;;  %v17343_v1 = vld [vmem:[#allocation2 + $0x70] sm:$0xff] }
 0x279   : > { %v14925_v14 = vpop.eup %14924  ;;  %14944 = vpow2.f32 %v5320_v5  ;;  %v5318_v7 = vmul.f32 1.442695, %v5257_v45  ;;  %5464 = vrot.lane.b32.xlu0 %v5426_v53, %s15384_s23  ;;  %v5404_v41 = vmul.f32 %v14923_v20, %v17166_v52  ;;  %v14686_v45 = vld [vmem:[%s15468_s16 + $0x58] sm:$0xfc]  }
 0x27a   : > { %v14927_v49 = vpop.eup %14926  ;;  %v5407_v21 = vmul.f32 %v14925_v14, %v17171_v9  ;;  %14946 = vpow2.f32 %v5316_v36  ;;  %13519 = vmatmul.mubr.msk.bf16.gmra.mrb[44].mxu1 %vm307_vm2, %v17319_v46  ;;  %v17346_v36 = vld [vmem:[#allocation2 + $0x78] sm:$0xff] }
 0x27b   : > { %v14929_v58 = vpop.eup %14928  ;;  %v5405_v62 = vmul.f32 %v14927_v49, %v17177_v30  ;;  %14948 = vpow2.f32 %v5322_v26  ;;  %13522 = vmatprep.mubr.msk.bf16.mxu1 %vm307_vm2, %v17324_v28  ;;  %v1976_v30 = vsel %vm16714_vm7, 0, %v1975_v29  ;;  %v2194_v49 = vshll.u32 %v14686_v45, 16 }
 0x27c   : > { %v14931_v8 = vpop.eup %14930  ;;  %v5350_v48 = vadd.f32 1.0, %v14929_v58  ;;  %14950 = vpow2.f32 %v5318_v7  ;;  %v5429_v56 = vpack.c.bf16 %v5407_v21, %v5406_v17  ;;  %13263 = vmatmul.mubr.msk.bf16.gmra.mrb[92].mxu0 %vm307_vm2, %v17335_v33  ;;  %1977 = vst [vmem:[#allocation2 + $0x560] sm:$0xe0] %v1976_v30  ;;  %v2191_v7 = vshrl.u32 %v14686_v45, 16 }
 0x27d   : > { %v14933_v9 = vpop.eup %14932  ;;  %v5348_v23 = vadd.f32 1.0, %v14931_v8  ;;  %v5428_v5 = vpack.c.bf16 %v5405_v62, %v5404_v41  ;;  %13268 = vmatprep.mubr.msk.bf16.mxu0 %vm307_vm2, %v6786_v60  ;;  %v6787_v62 = vld [vmem:[#allocation2 + $0x440] sm:$0xff]  ;;  %v2196_v8 = vrot.slane %v2194_v49, 3  ;;  %v1981_v60 = vld [vmem:[#allocation2 + $0x570] sm:$0xe0]  ;;  %v17387_v49 = vld [vmem:[#allocation2 + $0x88] sm:$0xff] }
 0x27e   : > { %v14935_v42 = vpop.eup %14934  ;;  %14952 = vrcp.f32 %v5350_v48  ;;  %v5351_v52 = vadd.f32 1.0, %v14933_v9  ;;  %5470 = vrot.lane.b32.xlu1 %v5429_v56, %s15384_s23  ;;  %v1978_v48 = vld [vmem:[#allocation2 + $0x568] sm:$0xe0] }
 0x27f   : > { %v14937_v40 = vpop.eup %14936  ;;  %14954 = vrcp.f32 %v5348_v23  ;;  %v5349_v44 = vadd.f32 1.0, %v14935_v42  ;;  %5468 = vrot.lane.b32.xlu0 %v5428_v5, %s15384_s23  ;;  %v1979_v5 = vsel %vm16714_vm7, 0, %v1978_v48 }
 0x280   : > { %v14939_v24 = vpop.eup %14938  ;;  %14956 = vrcp.f32 %v5351_v52  ;;  %v17350_v26 = vmul.f32 %v14937_v40, %v17196_v11  ;;  %1980 = vst [vmem:[#allocation2 + $0x568] sm:$0xe0] %v1979_v5 }
 0x281   : > { %v14941_v53 = vpop.eup %14940  ;;  %14958 = vrcp.f32 %v5349_v44  ;;  %v17358_v21 = vmul.f32 %v14939_v24, %v17211_v16  ;;  %v17367_v16 = vld [vmem:[#allocation2 + $0x448] sm:$0xff]  ;;  %v14687_v44 = vld [vmem:[%s15468_s16 + $0x60] sm:$0xfc]   ;;  %v1982_v24 = vsel %vm16714_vm7, 0, %v1981_v60 }
 0x282   : > { %v14943_v20 = vpop.eup %14942  ;;  %v17353_v14 = vmul.f32 %v14941_v53, %v17217_v2  ;;  %13523 = vmatmul.mubr.msk.bf16.gmra.mrb[48].mxu1 %vm307_vm2, %v17343_v1  ;;  %v2193_v2 = vrot.slane %v2191_v7, 2  ;;  %v17382_v53 = vld [vmem:[#allocation2 + $0x80] sm:$0xff]  ;;  %1983 = vst [vmem:[#allocation2 + $0x570] sm:$0xe0] %v1982_v24 }
 0x283   : > { %v14945_v17 = vpop.eup %14944  ;;  %v17361_v58 = vmul.f32 %v14943_v20, %v17222_v19  ;;  %13526 = vmatprep.mubr.msk.bf16.mxu1 %vm307_vm2, %v17346_v36  ;;  %v17372_v19 = vld [vmem:[%s18541_s2 + $0x80] sm:$0xff]   ;;  %v14688_v20 = vld [vmem:[%s15468_s16 + $0x68] sm:$0xfc]  }
 0x284   : > { %v14947_v11 = vpop.eup %14946  ;;  %v5354_v41 = vadd.f32 1.0, %v14945_v17  ;;  %v2197_v30 = vor.u32 %v2196_v8, %v2193_v2  ;;  %v2282_v40 = vld [vmem:[#allocation2 + $0x560] sm:$0x3f]  ;;  %13269 = vmatmul.mubr.msk.bf16.vlgmr.msra.gmra.mrb[64].mxu0 %vm307_vm2, %v6787_v62  ;;  %v2207_v62 = vshrl.u32 %v14688_v20, 16  ;;  %v2210_v8 = vshll.u32 %v14688_v20, 16 }
 0x285   : > { %v14949_v9 = vpop.eup %14948  ;;  %v5352_v23 = vadd.f32 1.0, %v14947_v11  ;;  %13272 = vmatprep.mubr.msk.bf16.mxu0 %vm307_vm2, %v17367_v16  ;;  %13301 = vmatpush3.bf16.msra.mxu0 %v17083_v13  ;;  %v2199_v11 = vshrl.u32 %v14687_v44, 16 }
 0x286   : > { %v14951_v42 = vpop.eup %14950  ;;  %14960 = vrcp.f32 %v5354_v41  ;;  %v5355_v52 = vadd.f32 1.0, %v14949_v9  ;;  %v2283_v17 = vsel %vm16742_vm10, %v2197_v30, %v2282_v40  ;;  %v2202_v41 = vshll.u32 %v14687_v44, 16  ;;  %13334 = vmatprep.subr.bf16.mxu0 %v17372_v19  ;;  %v17409_v44 = vld [vmem:[#allocation2 + $0x450] sm:$0xff] }
 0x287   : > { %14962 = vrcp.f32 %v5352_v23  ;;  %v5353_v45 = vadd.f32 1.0, %v14951_v42  ;;  %2284 = vst [vmem:[#allocation2 + $0x560] sm:$0x3f] %v2283_v17  ;;  %v2201_v9 = vrot.slane %v2199_v11, 2  ;;  %v2209_v42 = vrot.slane %v2207_v62, 2  ;;  %v17453_v62 = vld [vmem:[#allocation2 + $0x468] sm:$0xff] }
 0x288   : > { %v14953_v7 = vpop.eup %14952  ;;  %14964 = vrcp.f32 %v5355_v52  ;;  %v2204_v23 = vrot.slane %v2202_v41, 3  ;;  %v2212_v52 = vrot.slane %v2210_v8, 3  ;;  %v1987_v17 = vld [vmem:[#allocation2 + $0x580] sm:$0xe0]  ;;  %v14689_v41 = vld [vmem:[%s15468_s16 + $0x70] sm:$0xfc]  }
 0x289   : > { %v14955_v2 = vpop.eup %14954  ;;  %14966 = vrcp.f32 %v5353_v45  ;;  %v17396_v13 = vmul.f32 %v14953_v7, %v17244_v50  ;;  %v1984_v50 = vld [vmem:[#allocation2 + $0x578] sm:$0xe0]  ;;  %v2288_v11 = vld [vmem:[#allocation2 + $0x570] sm:$0x3f] }
 0x28a   : > { %v14957_v48 = vpop.eup %14956  ;;  %13527 = vmatmul.mubr.msk.bf16.gmra.mrb[52].mxu1 %vm307_vm2, %v17382_v53  ;;  %v17404_v30 = vmul.f32 %v14955_v2, %v17258_v54  ;;  %v2205_v24 = vor.u32 %v2204_v23, %v2201_v9  ;;  %v17411_v45 = vld [vmem:[#allocation2 + $0x458] sm:$0xff]  ;;  %v2213_v20 = vor.u32 %v2212_v52, %v2209_v42  ;;  %v1985_v7 = vsel %vm16714_vm7, 0, %v1984_v50  ;;  %v17426_v8 = vld [vmem:[#allocation2 + $0x90] sm:$0xff] }
 0x28b   : > { %v14959_v5 = vpop.eup %14958  ;;  %v17399_v60 = vmul.f32 %v14957_v48, %v17261_v63  ;;  %13530 = vmatprep.mubr.msk.bf16.mxu1 %vm307_vm2, %v17387_v49  ;;  %v2285_v63 = vld [vmem:[#allocation2 + $0x568] sm:$0x3f]  ;;  %1986 = vst [vmem:[#allocation2 + $0x578] sm:$0xe0] %v1985_v7  ;;  %v1988_v2 = vsel %vm16714_vm7, 0, %v1987_v17  ;;  %v2218_v42 = vshll.u32 %v14689_v41, 16 }
 0x28c   : > { %v17407_v40 = vmul.f32 %v14959_v5, %v17265_v59  ;;  %v2286_v59 = vsel %vm16742_vm10, %v2205_v24, %v2285_v63  ;;  %13273 = vmatmul.mubr.msk.bf16.gmra.mrb[68].mxu0 %vm307_vm2, %v17409_v44  ;;  %v2289_v48 = vsel %vm16742_vm10, %v2213_v20, %v2288_v11  ;;  %1989 = vst [vmem:[#allocation2 + $0x580] sm:$0xe0] %v1988_v2  ;;  %v14690_v9 = vld [vmem:[%s15468_s16 + $0x78] sm:$0xfc]   ;;  %v2215_v5 = vshrl.u32 %v14689_v41, 16 }
 0x28d   : > { %2287 = vst [vmem:[#allocation2 + $0x568] sm:$0x3f] %v2286_v59  ;;  %13276 = vmatprep.mubr.msk.bf16.mxu0 %vm307_vm2, %v17411_v45  ;;  %2290 = vst [vmem:[#allocation2 + $0x570] sm:$0x3f] %v2289_v48  ;;  %v2223_v24 = vshrl.u32 %v14690_v9, 16  ;;  %v2226_v50 = vshll.u32 %v14690_v9, 16 }
 0x28e   : > { %v2217_v7 = vrot.slane %v2215_v5, 2  ;;  %v2220_v20 = vrot.slane %v2218_v42, 3  ;;  %v17451_v5 = vld [vmem:[#allocation2 + $0x460] sm:$0xff] }
 0x28f   : > { %v2225_v41 = vrot.slane %v2223_v24, 2  ;;  %v2228_v2 = vrot.slane %v2226_v50, 3 }
 0x290   : > { %v14961_v23 = vpop.eup %14960  ;;  %v2221_v42 = vor.u32 %v2220_v20, %v2217_v7  ;;  %v17472_v7 = vld [vmem:[#allocation2 + $0x470] sm:$0xff]  ;;  %v17474_v20 = vld [vmem:[#allocation2 + $0x478] sm:$0xff] }
 0x291   : > { %v14963_v52 = vpop.eup %14962  ;;  %v17438_v59 = vmul.f32 %v14961_v23, %v17283_v15  ;;  %v2229_v23 = vor.u32 %v2228_v2, %v2225_v41  ;;  %v17493_v41 = vld [vmem:[#allocation2 + $0x488] sm:$0xff]  ;;  %v7055_v2 = vld [vmem:[#allocation2 + $0x118] sm:$0xff] }
 0x292   : > { %v14965_v63 = vpop.eup %14964  ;;  %13531 = vmatmul.mubr.msk.bf16.gmra.mrb[56].mxu1 %vm307_vm2, %v17426_v8  ;;  %v17446_v48 = vmul.f32 %v14963_v52, %v17299_v12  ;;  %v2291_v15 = vld [vmem:[#allocation2 + $0x578] sm:$0x3f] }
 0x293   : > { %v14967_v17 = vpop.eup %14966  ;;  %v17441_v11 = vmul.f32 %v14965_v63, %v17305_v25  ;;  %13534 = vmatprep.mubr.msk.bf16.mxu1 %vm307_vm2, %v17433_v47  ;;  %v2292_v24 = vsel %vm16742_vm10, %v2221_v42, %v2291_v15  ;;  %v2294_v50 = vld [vmem:[#allocation2 + $0x580] sm:$0x3f]  ;;  %v9179_v63 = vld [vmem:[#allocation2 + $0x298] sm:$0xff]  ;;  %v17539_v42 = vld [vmem:[%s18541_s2 + $0x88] sm:$0xff]  }
 0x294   : > { %v17449_v9 = vmul.f32 %v14967_v17, %v17311_v38  ;;  %13277 = vmatmul.mubr.msk.bf16.gmra.mrb[72].mxu0 %vm307_vm2, %v17451_v5  ;;  %v17463_v38 = vld [vmem:[#allocation2 + $0xa0] sm:$0xff]  ;;  %2293 = vst [vmem:[#allocation2 + $0x578] sm:$0x3f] %v2292_v24  ;;  %v2295_v52 = vsel %vm16742_vm10, %v2229_v23, %v2294_v50  ;;  %v7057_v23 = vld [vmem:[#allocation2 + $0x128] sm:$0xff]  ;;  %v7058_v50 = vld [vmem:[#allocation2 + $0x130] sm:$0xff] }
 0x295   : > { %13280 = vmatprep.mubr.msk.bf16.mxu0 %vm307_vm2, %v17453_v62  ;;  %2296 = vst [vmem:[#allocation2 + $0x580] sm:$0x3f] %v2295_v52  ;;  %v17490_v17 = vld [vmem:[#allocation2 + $0x480] sm:$0xff]  ;;  %v7059_v52 = vld [vmem:[#allocation2 + $0x138] sm:$0xff]  ;;  %v17614_v12 = vld [vmem:[#allocation2 + $0x568] sm:$0xff] }
 0x296   : > { %v7056_v15 = vld [vmem:[#allocation2 + $0x120] sm:$0xff] }
 0x29a   : > { %13535 = vmatmul.mubr.msk.bf16.gmra.mrb[60].mxu1 %vm307_vm2, %v17463_v38 }
 0x29b   : > { %13540 = vmatprep.mubr.msk.bf16.mxu1 %vm307_vm2, %v9179_v63  ;;  %v9445_v63 = vld [vmem:[#allocation2 + $0x508] sm:$0xff] }
 0x29c   : > { %13281 = vmatmul.mubr.msk.bf16.gmra.mrb[76].mxu0 %vm307_vm2, %v17472_v7 }
 0x29d   : > { %13284 = vmatprep.mubr.msk.bf16.mxu0 %vm307_vm2, %v17474_v20 }
 0x2a2   : > { %13541 = vmatmul.mubr.msk.bf16.vlgmr.msra.gmra.mrb[32].mxu1 %vm307_vm2, %v17075_v27  ;;  %v17503_v27 = vld [vmem:[#allocation2 + $0x490] sm:$0xff] }
 0x2a3   : > { %13573 = vmatpush3.bf16.msra.mxu1 %v17207_v34  ;;  %13544 = vmatprep.mubr.msk.bf16.mxu1 %vm307_vm2, %v17078_v18  ;;  %v17505_v18 = vld [vmem:[#allocation2 + $0x498] sm:$0xff]  ;;  %v17517_v34 = vld [vmem:[#allocation2 + $0x4a8] sm:$0xff] }
 0x2a4   : > { %13606 = vmatprep.subr.bf16.mxu1 %v17483_v0  ;;  %13285 = vmatmul.mubr.msk.bf16.gmra.mrb[80].mxu0 %vm307_vm2, %v17490_v17 }
 0x2a5   : > { %13288 = vmatprep.mubr.msk.bf16.mxu0 %vm307_vm2, %v17493_v41 }
 0x2aa   : > { %13545 = vmatmul.mubr.msk.bf16.gmra.mrb[36].mxu1 %vm307_vm2, %v17112_v61  ;;  %v17515_v61 = vld [vmem:[#allocation2 + $0x4a0] sm:$0xff] }
 0x2ab   : > { %13548 = vmatprep.mubr.msk.bf16.mxu1 %vm307_vm2, %v17115_v31  ;;  %v17527_v31 = vld [vmem:[#allocation2 + $0x4b0] sm:$0xff] }
 0x2ac   : > { %13289 = vmatmul.mubr.msk.bf16.gmra.mrb[84].mxu0 %vm307_vm2, %v17503_v27 }
 0x2ad   : > { %13292 = vmatprep.mubr.msk.bf16.mxu0 %vm307_vm2, %v17505_v18 }
 0x2b2   : > { %13549 = vmatmul.mubr.msk.bf16.gmra.mrb[40].mxu1 %vm307_vm2, %v17142_v39  ;;  %v7053_v39 = vld [vmem:[#allocation2 + $0x108] sm:$0xff] }
 0x2b3   : > { %13552 = vmatprep.mubr.msk.bf16.mxu1 %vm307_vm2, %v17145_v51  ;;  %v7054_v51 = vld [vmem:[#allocation2 + $0x110] sm:$0xff] }
 0x2b4   : > { %13293 = vmatmul.mubr.msk.bf16.gmra.mrb[88].mxu0 %vm307_vm2, %v17515_v61 }
 0x2b5   : > { %13296 = vmatprep.mubr.msk.bf16.mxu0 %vm307_vm2, %v17517_v34 }
 0x2ba   : > { %13553 = vmatmul.mubr.msk.bf16.gmra.mrb[44].mxu1 %vm307_vm2, %v17181_v6 }
 0x2bb   : > { %13556 = vmatprep.mubr.msk.bf16.mxu1 %vm307_vm2, %v17185_v32 }
 0x2bc   : > { %13297 = vmatmul.mubr.msk.bf16.gmra.mrb[92].mxu0 %vm307_vm2, %v17527_v31 }
 0x2bd   : > { %13302 = vmatprep.mubr.msk.bf16.mxu0 %vm307_vm2, %v7053_v39 }
 0x2c2   : > { %13557 = vmatmul.mubr.msk.bf16.gmra.mrb[48].mxu1 %vm307_vm2, %v17227_v43 }
 0x2c3   : > { %13560 = vmatprep.mubr.msk.bf16.mxu1 %vm307_vm2, %v17231_v4 }
 0x2c4   : > { %13303 = vmatmul.mubr.msk.bf16.vlgmr.msra.gmra.mrb[64].mxu0 %vm307_vm2, %v7054_v51 }
 0x2c5   : > { %13306 = vmatprep.mubr.msk.bf16.mxu0 %vm307_vm2, %v7055_v2  ;;  %13335 = vmatpush3.bf16.msra.mxu0 %v17372_v19  ;;  %v7060_v2 = vld [vmem:[#allocation2 + $0x140] sm:$0xff] }
 0x2c6   : > { %13368 = vmatprep.subr.bf16.mxu0 %v17539_v42 }
 0x2ca   : > { %13561 = vmatmul.mubr.msk.bf16.gmra.mrb[52].mxu1 %vm307_vm2, %v17267_v37 }
 0x2cb   : > { %13564 = vmatprep.mubr.msk.bf16.mxu1 %vm307_vm2, %v17271_v35 }
 0x2cc   : > { %13307 = vmatmul.mubr.msk.bf16.gmra.mrb[68].mxu0 %vm307_vm2, %v7056_v15  ;;  %v7061_v15 = vld [vmem:[#allocation2 + $0x148] sm:$0xff] }
 0x2cd   : > { %13310 = vmatprep.mubr.msk.bf16.mxu0 %vm307_vm2, %v7057_v23  ;;  %v9446_v23 = vld [vmem:[#allocation2 + $0x510] sm:$0xff] }
 0x2cf   : > { %v5455_v24 = vpop.permute.xlu0 %5454 }
 0x2d0   : > { %5502 = vst.msk [vmem:[#allocation3 + $0x8] sm:$0xff] %vm5500_vm11, %v5455_v24 }
 0x2d2   : > { %13565 = vmatmul.mubr.msk.bf16.gmra.mrb[56].mxu1 %vm307_vm2, %v17307_v3 }
 0x2d3   : > { %v5453_v19 = vpop.permute.xlu0 %5452  ;;  %13568 = vmatprep.mubr.msk.bf16.mxu1 %vm307_vm2, %v17313_v55 }
 0x2d4   : > { %5501 = vst.msk [vmem:[#allocation3] sm:$0xff] %vm5500_vm11, %v5453_v19  ;;  %13311 = vmatmul.mubr.msk.bf16.gmra.mrb[72].mxu0 %vm307_vm2, %v7058_v50  ;;  %v9447_v19 = vld [vmem:[#allocation2 + $0x518] sm:$0xff]  ;;  %v17569_v50 = vld [vmem:[%s18541_s2 + $0xc8] sm:$0xff]  }
 0x2d5   : > { %13314 = vmatprep.mubr.msk.bf16.mxu0 %vm307_vm2, %v7059_v52  ;;  %v7062_v52 = vld [vmem:[#allocation2 + $0x150] sm:$0xff] }
 0x2da   : > { %13569 = vmatmul.mubr.msk.bf16.gmra.mrb[60].mxu1 %vm307_vm2, %v17335_v33 }
 0x2db   : > { %v5457_v39 = vpop.permute.xlu0 %5456  ;;  %13574 = vmatprep.mubr.msk.bf16.mxu1 %vm307_vm2, %v9445_v63 }
 0x2dc   : > { %v5459_v51 = vpop.permute.xlu1 %5458  ;;  %5503 = vst.msk [vmem:[#allocation3 + $0x10] sm:$0xff] %vm5500_vm11, %v5457_v39  ;;  %13315 = vmatmul.mubr.msk.bf16.gmra.mrb[76].mxu0 %vm307_vm2, %v7060_v2  ;;  %v7063_v39 = vld [vmem:[#allocation2 + $0x158] sm:$0xff]  ;;  %v9449_v2 = vld [vmem:[#allocation2 + $0x528] sm:$0xff] }
 0x2dd   : > { %5504 = vst.msk [vmem:[#allocation3 + $0x18] sm:$0xff] %vm5500_vm11, %v5459_v51  ;;  %13318 = vmatprep.mubr.msk.bf16.mxu0 %vm307_vm2, %v7061_v15  ;;  %v9448_v51 = vld [vmem:[#allocation2 + $0x520] sm:$0xff] }
 0x2e0   : > { %v5463_v24 = vpop.permute.xlu1 %5462 }
 0x2e1   : > { %5506 = vst.msk [vmem:[#allocation3 + $0x28] sm:$0xff] %vm5500_vm11, %v5463_v24  ;;  %v7065_v24 = vld [vmem:[#allocation2 + $0x168] sm:$0xff] }
 0x2e2   : > { %13575 = vmatmul.mubr.msk.bf16.vlgmr.msra.gmra.mrb[32].mxu1 %vm307_vm2, %v9446_v23  ;;  %v7064_v23 = vld [vmem:[#allocation2 + $0x160] sm:$0xff] }
 0x2e3   : > { %13607 = vmatpush3.bf16.msra.mxu1 %v17483_v0  ;;  %13578 = vmatprep.mubr.msk.bf16.mxu1 %vm307_vm2, %v9447_v19  ;;  %v17584_v19 = vld [vmem:[#allocation2 + $0x530] sm:$0xff] }
 0x2e4   : > { %13640 = vmatprep.subr.bf16.mxu1 %v17569_v50  ;;  %13319 = vmatmul.mubr.msk.bf16.gmra.mrb[80].mxu0 %vm307_vm2, %v7062_v52 }
 0x2e5   : > { %v5461_v63 = vpop.permute.xlu0 %5460  ;;  %13322 = vmatprep.mubr.msk.bf16.mxu0 %vm307_vm2, %v7063_v39 }
 0x2e6   : > { %5505 = vst.msk [vmem:[#allocation3 + $0x20] sm:$0xff] %vm5500_vm11, %v5461_v63  ;;  %v17587_v63 = vld [vmem:[#allocation2 + $0x538] sm:$0xff] }
 0x2ea   : > { %v5467_v15 = vpop.permute.xlu1 %5466  ;;  %13579 = vmatmul.mubr.msk.bf16.gmra.mrb[36].mxu1 %vm307_vm2, %v9448_v51  ;;  %v7066_v51 = vld [vmem:[#allocation2 + $0x170] sm:$0xff] }
 0x2eb   : > { %5508 = vst.msk [vmem:[#allocation3 + $0x38] sm:$0xff] %vm5500_vm11, %v5467_v15  ;;  %v5465_v0 = vpop.permute.xlu0 %5464  ;;  %13582 = vmatprep.mubr.msk.bf16.mxu1 %vm307_vm2, %v9449_v2  ;;  %v7067_v2 = vld [vmem:[#allocation2 + $0x178] sm:$0xff]  ;;  %v17596_v15 = vld [vmem:[#allocation2 + $0x540] sm:$0xff] }
 0x2ec   : > { %5507 = vst.msk [vmem:[#allocation3 + $0x30] sm:$0xff] %vm5500_vm11, %v5465_v0  ;;  %13323 = vmatmul.mubr.msk.bf16.gmra.mrb[84].mxu0 %vm307_vm2, %v7064_v23  ;;  %v17599_v0 = vld [vmem:[#allocation2 + $0x548] sm:$0xff]  ;;  %v7068_v23 = vld [vmem:[#allocation2 + $0x180] sm:$0xff] }
 0x2ed   : > { %13326 = vmatprep.mubr.msk.bf16.mxu0 %vm307_vm2, %v7065_v24  ;;  %v7320_v24 = vld [vmem:[#allocation2 + $0x2a8] sm:$0xff] }
 0x2f0   : > { %v5471_v52 = vpop.permute.xlu1 %5470 }
 0x2f1   : > { %5510 = vst.msk [vmem:[#allocation3 + $0x48] sm:$0xff] %vm5500_vm11, %v5471_v52  ;;  %v5469_v39 = vpop.permute.xlu0 %5468  ;;  %v15373_v52 = vld [vmem:[#allocation2 + $0x550] sm:$0xff] }
 0x2f2   : > { %5509 = vst.msk [vmem:[#allocation3 + $0x40] sm:$0xff] %vm5500_vm11, %v5469_v39  ;;  %13583 = vmatmul.mubr.msk.bf16.gmra.mrb[40].mxu1 %vm307_vm2, %v17584_v19  ;;  %v7321_v39 = vld [vmem:[#allocation2 + $0x2b0] sm:$0xff] }
 0x2f3   : > { %13586 = vmatprep.mubr.msk.bf16.mxu1 %vm307_vm2, %v17587_v63 }
 0x2f4   : > { %13327 = vmatmul.mubr.msk.bf16.gmra.mrb[88].mxu0 %vm307_vm2, %v7066_v51  ;;  %v7322_v51 = vld [vmem:[#allocation2 + $0x2b8] sm:$0xff] }
 0x2f5   : > { %13330 = vmatprep.mubr.msk.bf16.mxu0 %vm307_vm2, %v7067_v2  ;;  %v17611_v2 = vld [vmem:[#allocation2 + $0x560] sm:$0xff] }
 0x2fa   : > { %13587 = vmatmul.mubr.msk.bf16.gmra.mrb[44].mxu1 %vm307_vm2, %v17596_v15 }
 0x2fb   : > { %13590 = vmatprep.mubr.msk.bf16.mxu1 %vm307_vm2, %v17599_v0 }
 0x2fc   : > { %13331 = vmatmul.mubr.msk.bf16.gmra.mrb[92].mxu0 %vm307_vm2, %v7068_v23  ;;  %v7323_v23 = vld [vmem:[#allocation2 + $0x2c0] sm:$0xff] }
 0x2fd   : > { %13336 = vmatprep.mubr.msk.bf16.mxu0 %vm307_vm2, %v7320_v24  ;;  %v15374_v24 = vld [vmem:[#allocation2 + $0x2c8] sm:$0xff] }
 0x302   : > { %13591 = vmatmul.mubr.msk.bf16.gmra.mrb[48].mxu1 %vm307_vm2, %v15373_v52  ;;  %v17625_v52 = vld [vmem:[#allocation2 + $0x578] sm:$0xff] }
 0x303   : > { %13594 = vmatprep.mubr.msk.bf16.mxu1 %vm307_vm2, %v17155_v10  ;;  %v17622_v10 = vld [vmem:[#allocation2 + $0x570] sm:$0xff] }
 0x304   : > { %13337 = vmatmul.mubr.msk.bf16.vlgmr.msra.gmra.mrb[64].mxu0 %vm307_vm2, %v7321_v39 }
 0x305   : > { %13340 = vmatprep.mubr.msk.bf16.mxu0 %vm307_vm2, %v7322_v51  ;;  %13369 = vmatpush3.bf16.msra.mxu0 %v17539_v42  ;;  %v17633_v42 = vld [vmem:[#allocation2 + $0x580] sm:$0xff] }
 0x30a   : > { %13595 = vmatmul.mubr.msk.bf16.gmra.mrb[52].mxu1 %vm307_vm2, %v17611_v2 }
 0x30b   : > { %13598 = vmatprep.mubr.msk.bf16.mxu1 %vm307_vm2, %v17614_v12 }
 0x30c   : > { %13341 = vmatmul.mubr.msk.bf16.gmra.mrb[68].mxu0 %vm307_vm2, %v7323_v23 }
 0x30d   : > { %13344 = vmatprep.mubr.msk.bf16.mxu0 %vm307_vm2, %v15374_v24 }
 0x312   : > { %13599 = vmatmul.mubr.msk.bf16.gmra.mrb[56].mxu1 %vm307_vm2, %v17622_v10 }
 0x313   : > { %13602 = vmatprep.mubr.msk.bf16.mxu1 %vm307_vm2, %v17625_v52 }
 0x314   : > { %13345 = vmatmul.mubr.msk.bf16.gmra.mrb[72].mxu0 %vm307_vm2, %v17181_v6  ;;  %v14693_v6 = vld [vmem:[%s18541_s2 + $0xd0] sm:$0xff]  }
 0x315   : > { %13348 = vmatprep.mubr.msk.bf16.mxu0 %vm307_vm2, %v17185_v32  ;;  %v17669_v32 = vld [vmem:[#allocation2 + $0x318] sm:$0xff] }
 0x31a   : > { %13603 = vmatmul.mubr.msk.bf16.gmra.mrb[60].mxu1 %vm307_vm2, %v17633_v42 }
 0x31b   : > { %13608 = vmatprep.mubr.msk.bf16.mxu1 %vm307_vm2, %v17279_v22  ;;  %v9725_v22 = vld [vmem:[#allocation2 + $0xb8] sm:$0xff] }
 0x31c   : > { %13349 = vmatmul.mubr.msk.bf16.gmra.mrb[76].mxu0 %vm307_vm2, %v17227_v43  ;;  %v17679_v43 = vld [vmem:[#allocation2 + $0x320] sm:$0xff] }
 0x31d   : > { %13352 = vmatprep.mubr.msk.bf16.mxu0 %vm307_vm2, %v17231_v4  ;;  %v9723_v4 = vld [vmem:[#allocation2 + $0xa8] sm:$0xff] }
 0x322   : > { %13609 = vmatmul.mubr.msk.bf16.vlgmr.msra.gmra.mrb[32].mxu1 %vm307_vm2, %v17287_v57  ;;  %v9726_v57 = vld [vmem:[#allocation2 + $0xc0] sm:$0xff] }
 0x323   : > { %13641 = vmatpush3.bf16.msra.mxu1 %v17569_v50  ;;  %13612 = vmatprep.mubr.msk.bf16.mxu1 %vm307_vm2, %v17319_v46  ;;  %v15385_v46 = vmov 0.0   ;;  %v10259_v50 = vld [vmem:[#allocation2 + $0x598] sm:$0xff] }
 0x324   : > { %13674 = vmatprep.subr.bf16.mxu1 %v14693_v6  ;;  %13353 = vmatmul.mubr.msk.bf16.gmra.mrb[80].mxu0 %vm307_vm2, %v17267_v37  ;;  %v9724_v37 = vld [vmem:[#allocation2 + $0xb0] sm:$0xff] }
 0x325   : > { %13356 = vmatprep.mubr.msk.bf16.mxu0 %vm307_vm2, %v17271_v35  ;;  %13708 = vmatprep.subr.bf16.mxu0 %v15385_v46 }
 0x32a   : > { %13613 = vmatmul.mubr.msk.bf16.gmra.mrb[36].mxu1 %vm307_vm2, %v17324_v28  ;;  %v14694_v28 = vld [vmem:[%s18542_s3] sm:$0xff]  }
 0x32b   : > { %13616 = vmatprep.mubr.msk.bf16.mxu1 %vm307_vm2, %v17343_v1  ;;  %v9727_v1 = vld [vmem:[#allocation2 + $0xc8] sm:$0xff] }
 0x32c   : > { %13357 = vmatmul.mubr.msk.bf16.gmra.mrb[84].mxu0 %vm307_vm2, %v17307_v3 }
 0x32d   : > { %13360 = vmatprep.mubr.msk.bf16.mxu0 %vm307_vm2, %v17313_v55 }
 0x332   : > { %13617 = vmatmul.mubr.msk.bf16.gmra.mrb[40].mxu1 %vm307_vm2, %v17346_v36  ;;  %v9980_v36 = vld [vmem:[#allocation2 + $0x2c8] sm:$0xff] }
 0x333   : > { %13620 = vmatprep.mubr.msk.bf16.mxu1 %vm307_vm2, %v17382_v53  ;;  %v18568_v53 = vld [vmem:[#allocation4_spill] sm:$0xff] }
 0x334   : > { %13361 = vmatmul.mubr.msk.bf16.gmra.mrb[88].mxu0 %vm307_vm2, %v17335_v33 }
 0x335   : > { %13364 = vmatprep.mubr.msk.bf16.mxu0 %vm307_vm2, %v17669_v32 }
 0x33a   : > { %13621 = vmatmul.mubr.msk.bf16.gmra.mrb[44].mxu1 %vm307_vm2, %v17387_v49  ;;  %v10933_v49 = vrot.slane %v18568_v53, 4 }
 0x33b   : > { %13624 = vmatprep.mubr.msk.bf16.mxu1 %vm307_vm2, %v17426_v8 }
 0x33c   : > { %13365 = vmatmul.mubr.msk.bf16.gmra.mrb[92].mxu0 %vm307_vm2, %v17679_v43 }
 0x33d   : > { %13370 = vmatprep.mubr.msk.bf16.mxu0 %vm307_vm2, %v17367_v16  ;;  %v9981_v16 = vld [vmem:[#allocation2 + $0x2d0] sm:$0xff] }
 0x342   : > { %13625 = vmatmul.mubr.msk.bf16.gmra.mrb[48].mxu1 %vm307_vm2, %v17433_v47  ;;  %v9984_v47 = vld [vmem:[#allocation2 + $0x2e8] sm:$0xff] }
 0x343   : > { %13628 = vmatprep.mubr.msk.bf16.mxu1 %vm307_vm2, %v17463_v38 }
 0x344   : > { %13371 = vmatmul.mubr.msk.bf16.vlgmr.msra.gmra.mrb[64].mxu0 %vm307_vm2, %v17409_v44  ;;  %v9982_v44 = vld [vmem:[#allocation2 + $0x2d8] sm:$0xff] }
 0x345   : > { %13374 = vmatprep.mubr.msk.bf16.mxu0 %vm307_vm2, %v17411_v45  ;;  %13709 = vmatpush3.bf16.msra.mxu0 %v14694_v28  ;;  %v9983_v45 = vld [vmem:[#allocation2 + $0x2e0] sm:$0xff] }
 0x346   : > { %13714 = vmatprep.subr.bf16.mxu0 %v15385_v46 }
 0x34a   : > { %13629 = vmatmul.mubr.msk.bf16.gmra.mrb[52].mxu1 %vm307_vm2, %v9723_v4 }
 0x34b   : > { %13632 = vmatprep.mubr.msk.bf16.mxu1 %vm307_vm2, %v9724_v37 }
 0x34c   : > { %13375 = vmatmul.mubr.msk.bf16.gmra.mrb[68].mxu0 %vm307_vm2, %v17451_v5  ;;  %v9985_v5 = vld [vmem:[#allocation2 + $0x2f0] sm:$0xff] }
 0x34d   : > { %13378 = vmatprep.mubr.msk.bf16.mxu0 %vm307_vm2, %v17453_v62  ;;  %v10934_v62 = vadd.f32 %v10933_v49, %v18568_v53 }
 0x34f   : > { %v10935_v8 = vrot.slane %v10934_v62, 2 }
 0x351   : > { %v10936_v38 = vadd.f32 %v10935_v8, %v10934_v62 }
 0x352   : > { %13633 = vmatmul.mubr.msk.bf16.gmra.mrb[56].mxu1 %vm307_vm2, %v9725_v22 }
 0x353   : > { %13636 = vmatprep.mubr.msk.bf16.mxu1 %vm307_vm2, %v9726_v57 }
 0x354   : > { %13379 = vmatmul.mubr.msk.bf16.gmra.mrb[72].mxu0 %vm307_vm2, %v17472_v7  ;;  %v7601_v7 = vld [vmem:[#allocation2 + $0x4b8] sm:$0xff] }
 0x355   : > { %13382 = vmatprep.mubr.msk.bf16.mxu0 %vm307_vm2, %v17474_v20  ;;  %v10937_v20 = vrot.slane %v10936_v38, 1 }
 0x35a   : > { %13637 = vmatmul.mubr.msk.bf16.gmra.mrb[60].mxu1 %vm307_vm2, %v9727_v1 }
 0x35b   : > { %13642 = vmatprep.mubr.msk.bf16.mxu1 %vm307_vm2, %v7323_v23 }
 0x35c   : > { %13383 = vmatmul.mubr.msk.bf16.gmra.mrb[76].mxu0 %vm307_vm2, %v17490_v17  ;;  %v10938_v17 = vadd.f32 %v10937_v20, %v10936_v38 }
 0x35d   : > { %13386 = vmatprep.mubr.msk.bf16.mxu0 %vm307_vm2, %v17493_v41  ;;  %v7602_v41 = vld [vmem:[#allocation2 + $0x4c0] sm:$0xff] }
 0x362   : > { %13643 = vmatmul.mubr.msk.bf16.vlgmr.msra.gmra.mrb[32].mxu1 %vm307_vm2, %v9980_v36 }
 0x363   : > { %13675 = vmatpush3.bf16.msra.mxu1 %v14693_v6  ;;  %13646 = vmatprep.mubr.msk.bf16.mxu1 %vm307_vm2, %v9981_v16 }
 0x364   : > { %13387 = vmatmul.mubr.msk.bf16.gmra.mrb[80].mxu0 %vm307_vm2, %v17503_v27  ;;  %v10940_v27 = vmul.f32 0.00390625, %v10938_v17 }
 0x365   : > { %13390 = vmatprep.mubr.msk.bf16.mxu0 %vm307_vm2, %v17505_v18 }
 0x366   : > { %v10941_v18 = vpack.c.bf16 %v10940_v27, %v10940_v27 }
 0x36a   : > { %13647 = vmatmul.mubr.msk.bf16.gmra.mrb[36].mxu1 %vm307_vm2, %v9982_v44 }
 0x36b   : > { %13650 = vmatprep.mubr.msk.bf16.mxu1 %vm307_vm2, %v9983_v45 }
 0x36c   : > { %13391 = vmatmul.mubr.msk.bf16.gmra.mrb[84].mxu0 %vm307_vm2, %v17515_v61  ;;  %v10251_v61 = vld [vmem:[#allocation2 + $0x558] sm:$0xff] }
 0x36d   : > { %13394 = vmatprep.mubr.msk.bf16.mxu0 %vm307_vm2, %v17517_v34  ;;  %v10257_v34 = vld [vmem:[#allocation2 + $0x588] sm:$0xff] }
 0x372   : > { %13651 = vmatmul.mubr.msk.bf16.gmra.mrb[40].mxu1 %vm307_vm2, %v9984_v47 }
 0x373   : > { %13654 = vmatprep.mubr.msk.bf16.mxu1 %vm307_vm2, %v9985_v5 }
 0x374   : > { %13395 = vmatmul.mubr.msk.bf16.gmra.mrb[88].mxu0 %vm307_vm2, %v17527_v31  ;;  %v10258_v31 = vld [vmem:[#allocation2 + $0x590] sm:$0xff] }
 0x375   : > { %13398 = vmatprep.mubr.msk.bf16.mxu0 %vm307_vm2, %v7601_v7 }
 0x37a   : > { %13655 = vmatmul.mubr.msk.bf16.gmra.mrb[44].mxu1 %vm307_vm2, %v17271_v35  ;;  %v9992_v35 = vld [vmem:[#allocation2 + $0x328] sm:$0xff] }
 0x37b   : > { %13658 = vmatprep.mubr.msk.bf16.mxu1 %vm307_vm2, %v17307_v3  ;;  %v9993_v3 = vld [vmem:[#allocation2 + $0x330] sm:$0xff] }
 0x37c   : > { %13399 = vmatmul.mubr.msk.bf16.gmra.mrb[92].mxu0 %vm307_vm2, %v7602_v41 }
 0x37d   : > { %13710 = vmatprep.mubr.msk.bf16.mxu0 %vm15386_vm13, %v15385_v46 }
 0x382   : > { %13659 = vmatmul.mubr.msk.bf16.gmra.mrb[48].mxu1 %vm307_vm2, %v17313_v55  ;;  %v9994_v55 = vld [vmem:[#allocation2 + $0x338] sm:$0xff] }
 0x383   : > { %13662 = vmatprep.mubr.msk.bf16.mxu1 %vm307_vm2, %v17335_v33  ;;  %v10250_v33 = vld [vmem:[#allocation2 + $0x550] sm:$0xff] }
 0x384   : > { %13711 = vmatmul.mubr.msk.bf16.vlgmr.msra.gmra.mrb[96].mxu0 %vm307_vm2, %v10941_v18 }
 0x385   : > { %13716 = vmatprep.mubr.msk.bf16.mxu0 %vm15386_vm13, %v15385_v46 }
 0x38a   : > { %13663 = vmatmul.mubr.msk.bf16.gmra.mrb[52].mxu1 %vm307_vm2, %v17669_v32 }
 0x38b   : > { %13666 = vmatprep.mubr.msk.bf16.mxu1 %vm307_vm2, %v17679_v43 }
 0x392   : > { %13667 = vmatmul.mubr.msk.bf16.gmra.mrb[56].mxu1 %vm307_vm2, %v9992_v35 }
 0x393   : > { %13670 = vmatprep.mubr.msk.bf16.mxu1 %vm307_vm2, %v9993_v3 }
 0x39a   : > { %13671 = vmatmul.mubr.msk.bf16.gmra.mrb[60].mxu1 %vm307_vm2, %v9994_v55 }
 0x39b   : > { %13676 = vmatprep.mubr.msk.bf16.mxu1 %vm307_vm2, %v17584_v19  ;;  %v10260_v19 = vld [vmem:[#allocation2 + $0x5a0] sm:$0xff] }
 0x3a2   : > { %13677 = vmatmul.mubr.msk.bf16.vlgmr.msra.gmra.mrb[32].mxu1 %vm307_vm2, %v17587_v63  ;;  %v17778_v63 = vld [vmem:[%s18545_s6 + $0x2] ss:$0 sm:$0xff] }
 0x3a3   : > { %13680 = vmatprep.mubr.msk.bf16.mxu1 %vm307_vm2, %v17596_v15 }
 0x3aa   : > { %13681 = vmatmul.mubr.msk.bf16.gmra.mrb[36].mxu1 %vm307_vm2, %v17599_v0 }
 0x3ab   : > { %13684 = vmatprep.mubr.msk.bf16.mxu1 %vm307_vm2, %v10250_v33 }
 0x3b2   : > { %13685 = vmatmul.mubr.msk.bf16.gmra.mrb[40].mxu1 %vm307_vm2, %v10251_v61 }
 0x3b3   : > { %13688 = vmatprep.mubr.msk.bf16.mxu1 %vm307_vm2, %v17611_v2 }
 0x3ba   : > { %13689 = vmatmul.mubr.msk.bf16.gmra.mrb[44].mxu1 %vm307_vm2, %v17614_v12  ;;  %v10261_v12 = vld [vmem:[#allocation2 + $0x5a8] sm:$0xff] }
 0x3bb   : > { %13692 = vmatprep.mubr.msk.bf16.mxu1 %vm307_vm2, %v17622_v10 }
 0x3c2   : > { %13693 = vmatmul.mubr.msk.bf16.gmra.mrb[48].mxu1 %vm307_vm2, %v17625_v52 }
 0x3c3   : > { %13696 = vmatprep.mubr.msk.bf16.mxu1 %vm307_vm2, %v17633_v42 }
 0x3ca   : > { %13697 = vmatmul.mubr.msk.bf16.gmra.mrb[52].mxu1 %vm307_vm2, %v10257_v34 }
 0x3cb   : > { %13700 = vmatprep.mubr.msk.bf16.mxu1 %vm307_vm2, %v10258_v31 }
 0x3d2   : > { %13701 = vmatmul.mubr.msk.bf16.gmra.mrb[56].mxu1 %vm307_vm2, %v10259_v50 }
 0x3d3   : > { %13704 = vmatprep.mubr.msk.bf16.mxu1 %vm307_vm2, %v10260_v19 }
 0x3da   : > { %13705 = vmatmul.mubr.msk.bf16.gmra.mrb[60].mxu1 %vm307_vm2, %v10261_v12 }
 0x417   : > { %v13372_v15 = vpop.f32.mrb[64].mxu0 }
 0x418   : > { %v17781_v0 = vadd.f32 %v13372_v15, %v17778_v63  ;;  %v7694_v39 = vpop.f32.mrb[65].mxu0 }
 0x419   : > { %v17784_v51 = vadd.f32 %v17778_v63, %v7694_v39  ;;  %v13373_v2 = vpop.f32.mrb[66].mxu0 }
 0x41a   : > { %v7892_v23 = vsub.f32 0.0, %v17781_v0  ;;  %v17788_v10 = vadd.f32 %v13373_v2, %v17778_v63  ;;  %v7697_v24 = vpop.f32.mrb[67].mxu0 }
 0x41b   : > { %v7890_v52 = vsub.f32 0.0, %v17784_v51  ;;  %v17792_v42 = vadd.f32 %v17778_v63, %v7697_v24 }
 0x41c   : > { %v7926_v6 = vmul.f32 1.442695, %v7892_v23  ;;  %v7893_v32 = vsub.f32 0.0, %v17788_v10 }
 0x41d   : > { %v7922_v43 = vmul.f32 1.442695, %v7890_v52  ;;  %v7891_v4 = vsub.f32 0.0, %v17792_v42 }
 0x41e   : > { %14968 = vpow2.f32 %v7926_v6  ;;  %v7928_v37 = vmul.f32 1.442695, %v7893_v32 }
 0x41f   : > { %14970 = vpow2.f32 %v7922_v43  ;;  %v7924_v22 = vmul.f32 1.442695, %v7891_v4  ;;  %v13376_v57 = vpop.f32.mrb[68].mxu0 }
 0x420   : > { %14972 = vpow2.f32 %v7928_v37  ;;  %v17797_v46 = vadd.f32 %v13376_v57, %v17778_v63  ;;  %v7710_v28 = vpop.f32.mrb[69].mxu0 }
 0x421   : > { %14974 = vpow2.f32 %v7924_v22  ;;  %v17800_v1 = vadd.f32 %v17778_v63, %v7710_v28  ;;  %v13377_v36 = vpop.f32.mrb[70].mxu0 }
 0x422   : > { %v7896_v16 = vsub.f32 0.0, %v17797_v46  ;;  %v17804_v53 = vadd.f32 %v13377_v36, %v17778_v63  ;;  %v7713_v49 = vpop.f32.mrb[71].mxu0 }
 0x423   : > { %v7894_v44 = vsub.f32 0.0, %v17800_v1  ;;  %v17808_v45 = vadd.f32 %v17778_v63, %v7713_v49 }
 0x424   : > { %v7934_v62 = vmul.f32 1.442695, %v7896_v16  ;;  %v7897_v8 = vsub.f32 0.0, %v17804_v53 }
 0x425   : > { %v7930_v47 = vmul.f32 1.442695, %v7894_v44  ;;  %v7895_v5 = vsub.f32 0.0, %v17808_v45 }
 0x426   : > { %14976 = vpow2.f32 %v7934_v62  ;;  %v7936_v38 = vmul.f32 1.442695, %v7897_v8 }
 0x427   : > { %14978 = vpow2.f32 %v7930_v47  ;;  %v7932_v7 = vmul.f32 1.442695, %v7895_v5  ;;  %v13380_v20 = vpop.f32.mrb[72].mxu0 }
 0x428   : > { %v14969_v17 = vpop.eup %14968  ;;  %14980 = vpow2.f32 %v7936_v38  ;;  %v17813_v41 = vadd.f32 %v13380_v20, %v17778_v63  ;;  %v7726_v27 = vpop.f32.mrb[73].mxu0 }
 0x429   : > { %v14971_v18 = vpop.eup %14970  ;;  %v7988_v35 = vadd.f32 1.0, %v14969_v17  ;;  %14982 = vpow2.f32 %v7932_v7  ;;  %v17816_v3 = vadd.f32 %v17778_v63, %v7726_v27  ;;  %v13381_v55 = vpop.f32.mrb[74].mxu0 }
 0x42a   : > { %v14973_v33 = vpop.eup %14972  ;;  %v7986_v61 = vadd.f32 1.0, %v14971_v18  ;;  %v7900_v34 = vsub.f32 0.0, %v17813_v41  ;;  %v17820_v31 = vadd.f32 %v13381_v55, %v17778_v63  ;;  %v7729_v50 = vpop.f32.mrb[75].mxu0 }
 0x42b   : > { %v14975_v19 = vpop.eup %14974  ;;  %14984 = vrcp.f32 %v7988_v35  ;;  %v7989_v12 = vadd.f32 1.0, %v14973_v33  ;;  %v7898_v15 = vsub.f32 0.0, %v17816_v3  ;;  %v17824_v39 = vadd.f32 %v17778_v63, %v7729_v50 }
 0x42c   : > { %14986 = vrcp.f32 %v7986_v61  ;;  %v7987_v2 = vadd.f32 1.0, %v14975_v19  ;;  %v7942_v23 = vmul.f32 1.442695, %v7900_v34  ;;  %v7901_v24 = vsub.f32 0.0, %v17820_v31 }
 0x42d   : > { %14988 = vrcp.f32 %v7989_v12  ;;  %v7938_v52 = vmul.f32 1.442695, %v7898_v15  ;;  %v7899_v6 = vsub.f32 0.0, %v17824_v39 }
 0x42e   : > { %14990 = vrcp.f32 %v7987_v2  ;;  %v7944_v32 = vmul.f32 1.442695, %v7901_v24 }
 0x42f   : > { %14992 = vpow2.f32 %v7942_v23  ;;  %v7940_v43 = vmul.f32 1.442695, %v7899_v6  ;;  %v13384_v4 = vpop.f32.mrb[76].mxu0 }
 0x430   : > { %v14977_v37 = vpop.eup %14976  ;;  %14994 = vpow2.f32 %v7938_v52  ;;  %v17829_v22 = vadd.f32 %v13384_v4, %v17778_v63  ;;  %v7742_v57 = vpop.f32.mrb[77].mxu0 }
 0x431   : > { %v14979_v28 = vpop.eup %14978  ;;  %v7992_v36 = vadd.f32 1.0, %v14977_v37  ;;  %14996 = vpow2.f32 %v7944_v32  ;;  %v17832_v16 = vadd.f32 %v17778_v63, %v7742_v57  ;;  %v13385_v49 = vpop.f32.mrb[78].mxu0 }
 0x432   : > { %v14981_v44 = vpop.eup %14980  ;;  %v7990_v62 = vadd.f32 1.0, %v14979_v28  ;;  %14998 = vpow2.f32 %v7940_v43  ;;  %v7904_v8 = vsub.f32 0.0, %v17829_v22  ;;  %v17836_v47 = vadd.f32 %v13385_v49, %v17778_v63  ;;  %v7745_v5 = vpop.f32.mrb[79].mxu0 }
 0x433   : > { %v14983_v38 = vpop.eup %14982  ;;  %15000 = vrcp.f32 %v7992_v36  ;;  %v7993_v7 = vadd.f32 1.0, %v14981_v44  ;;  %v7902_v20 = vsub.f32 0.0, %v17832_v16  ;;  %v17840_v17 = vadd.f32 %v17778_v63, %v7745_v5 }
 0x434   : > { %15002 = vrcp.f32 %v7990_v62  ;;  %v7991_v27 = vadd.f32 1.0, %v14983_v38  ;;  %v7950_v18 = vmul.f32 1.442695, %v7904_v8  ;;  %v7905_v35 = vsub.f32 0.0, %v17836_v47 }
 0x435   : > { %v14985_v55 = vpop.eup %14984  ;;  %15004 = vrcp.f32 %v7993_v7  ;;  %v7946_v33 = vmul.f32 1.442695, %v7902_v20  ;;  %v7903_v61 = vsub.f32 0.0, %v17840_v17 }
 0x436   : > { %v14987_v34 = vpop.eup %14986  ;;  %15006 = vrcp.f32 %v7991_v27  ;;  %v7952_v50 = vmul.f32 1.442695, %v7905_v35  ;;  %v8052_v23 = vmul.f32 %v14985_v55, %v17781_v0 }
 0x437   : > { %v14989_v19 = vpop.eup %14988  ;;  %15008 = vpow2.f32 %v7950_v18  ;;  %v7948_v12 = vmul.f32 1.442695, %v7903_v61  ;;  %v13388_v15 = vpop.f32.mrb[80].mxu0  ;;  %v8050_v43 = vmul.f32 %v14987_v34, %v17784_v51 }
 0x438   : > { %v14991_v2 = vpop.eup %14990  ;;  %v8053_v24 = vmul.f32 %v14989_v19, %v17788_v10  ;;  %15010 = vpow2.f32 %v7946_v33  ;;  %v17847_v52 = vadd.f32 %v13388_v15, %v17778_v63  ;;  %v7758_v6 = vpop.f32.mrb[81].mxu0 }
 0x439   : > { %v14993_v32 = vpop.eup %14992  ;;  %v8051_v4 = vmul.f32 %v14991_v2, %v17792_v42  ;;  %15012 = vpow2.f32 %v7952_v50  ;;  %v17852_v37 = vadd.f32 %v17778_v63, %v7758_v6  ;;  %v13389_v57 = vpop.f32.mrb[82].mxu0 }
 0x43a   : > { %v14995_v28 = vpop.eup %14994  ;;  %v7996_v36 = vadd.f32 1.0, %v14993_v32  ;;  %15014 = vpow2.f32 %v7948_v12  ;;  %v7908_v0 = vsub.f32 0.0, %v17847_v52  ;;  %v17856_v10 = vadd.f32 %v13389_v57, %v17778_v63  ;;  %v7761_v49 = vpop.f32.mrb[83].mxu0 }
 0x43b   : > { %v14997_v44 = vpop.eup %14996  ;;  %v7994_v62 = vadd.f32 1.0, %v14995_v28  ;;  %v7906_v51 = vsub.f32 0.0, %v17852_v37  ;;  %v17860_v42 = vadd.f32 %v17778_v63, %v7761_v49  ;;  %v8083_v8 = vpack.c.bf16 %v8053_v24, %v8052_v23 }
 0x43c   : > { %v14999_v5 = vpop.eup %14998  ;;  %15016 = vrcp.f32 %v7996_v36  ;;  %v7997_v38 = vadd.f32 1.0, %v14997_v44  ;;  %v7958_v7 = vmul.f32 1.442695, %v7908_v0  ;;  %v7909_v20 = vsub.f32 0.0, %v17856_v10 }
 0x43d   : > { %v15001_v27 = vpop.eup %15000  ;;  %15018 = vrcp.f32 %v7994_v62  ;;  %v7995_v18 = vadd.f32 1.0, %v14999_v5  ;;  %v7954_v35 = vmul.f32 1.442695, %v7906_v51  ;;  %v7907_v55 = vsub.f32 0.0, %v17860_v42  ;;  %8116 = vrot.lane.b32.xlu1 %v8083_v8, %s15387_s20 }
 0x43e   : > { %v15003_v33 = vpop.eup %15002  ;;  %15020 = vrcp.f32 %v7997_v38  ;;  %v7960_v61 = vmul.f32 1.442695, %v7909_v20  ;;  %v8082_v34 = vpack.c.bf16 %v8051_v4, %v8050_v43  ;;  %v8056_v2 = vmul.f32 %v15001_v27, %v17797_v46 }
 0x43f   : > { %v15005_v50 = vpop.eup %15004  ;;  %15022 = vrcp.f32 %v7995_v18  ;;  %v7956_v19 = vmul.f32 1.442695, %v7907_v55  ;;  %v13392_v12 = vpop.f32.mrb[84].mxu0  ;;  %v8054_v23 = vmul.f32 %v15003_v33, %v17800_v1 }
 0x440   : > { %v15007_v15 = vpop.eup %15006  ;;  %15024 = vpow2.f32 %v7958_v7  ;;  %v17868_v24 = vadd.f32 %v13392_v12, %v17778_v63  ;;  %v7774_v6 = vpop.f32.mrb[85].mxu0  ;;  %v8057_v57 = vmul.f32 %v15005_v50, %v17804_v53 }
 0x441   : > { %v15009_v32 = vpop.eup %15008  ;;  %v8055_v28 = vmul.f32 %v15007_v15, %v17808_v45  ;;  %15026 = vpow2.f32 %v7954_v35  ;;  %8114 = vrot.lane.b32.xlu1 %v8082_v34, %s15387_s20  ;;  %v17874_v43 = vadd.f32 %v17778_v63, %v7774_v6  ;;  %v13393_v4 = vpop.f32.mrb[86].mxu0 }
 0x442   : > { %v15011_v46 = vpop.eup %15010  ;;  %v8000_v36 = vadd.f32 1.0, %v15009_v32  ;;  %15028 = vpow2.f32 %v7960_v61  ;;  %v7912_v1 = vsub.f32 0.0, %v17868_v24  ;;  %v17878_v0 = vadd.f32 %v13393_v4, %v17778_v63  ;;  %v7777_v49 = vpop.f32.mrb[87].mxu0 }
 0x443   : > { %v15013_v44 = vpop.eup %15012  ;;  %v7998_v53 = vadd.f32 1.0, %v15011_v46  ;;  %15030 = vpow2.f32 %v7956_v19  ;;  %v7910_v45 = vsub.f32 0.0, %v17874_v43  ;;  %v17882_v62 = vadd.f32 %v17778_v63, %v7777_v49 }
 0x444   : > { %v15015_v51 = vpop.eup %15014  ;;  %15032 = vrcp.f32 %v8000_v36  ;;  %v8001_v8 = vadd.f32 1.0, %v15013_v44  ;;  %v7966_v5 = vmul.f32 1.442695, %v7912_v1  ;;  %v7913_v38 = vsub.f32 0.0, %v17878_v0 }
 0x445   : > { %15034 = vrcp.f32 %v7998_v53  ;;  %v7999_v7 = vadd.f32 1.0, %v15015_v51  ;;  %v7962_v20 = vmul.f32 1.442695, %v7910_v45  ;;  %v7911_v27 = vsub.f32 0.0, %v17882_v62 }
 0x446   : > { %v15017_v18 = vpop.eup %15016  ;;  %15036 = vrcp.f32 %v8001_v8  ;;  %v7968_v35 = vmul.f32 1.442695, %v7913_v38  ;;  %v8085_v55 = vpack.c.bf16 %v8057_v57, %v8056_v2  ;;  %v8084_v33 = vpack.c.bf16 %v8055_v28, %v8054_v23 }
 0x447   : > { %v15019_v61 = vpop.eup %15018  ;;  %15038 = vrcp.f32 %v7999_v7  ;;  %v7964_v34 = vmul.f32 1.442695, %v7911_v27  ;;  %v13396_v50 = vpop.f32.mrb[88].mxu0  ;;  %v8060_v32 = vmul.f32 %v15017_v18, %v17813_v41 }
 0x448   : > { %v15021_v19 = vpop.eup %15020  ;;  %15040 = vpow2.f32 %v7966_v5  ;;  %8120 = vrot.lane.b32.xlu1 %v8085_v55, %s15387_s20  ;;  %8118 = vrot.lane.b32.xlu0 %v8084_v33, %s15387_s20  ;;  %v17889_v12 = vadd.f32 %v13396_v50, %v17778_v63  ;;  %v7790_v15 = vpop.f32.mrb[89].mxu0  ;;  %v8058_v45 = vmul.f32 %v15019_v61, %v17816_v3 }
 0x449   : > { %v15023_v6 = vpop.eup %15022  ;;  %v8061_v2 = vmul.f32 %v15021_v19, %v17820_v31  ;;  %15042 = vpow2.f32 %v7962_v20  ;;  %v17894_v23 = vadd.f32 %v17778_v63, %v7790_v15  ;;  %v13397_v57 = vpop.f32.mrb[90].mxu0 }
 0x44a   : > { %v15025_v28 = vpop.eup %15024  ;;  %v8059_v4 = vmul.f32 %v15023_v6, %v17824_v39  ;;  %15044 = vpow2.f32 %v7968_v35  ;;  %v7916_v46 = vsub.f32 0.0, %v17889_v12  ;;  %v17899_v36 = vadd.f32 %v13397_v57, %v17778_v63  ;;  %v7793_v1 = vpop.f32.mrb[91].mxu0 }
 0x44b   : > { %v15027_v49 = vpop.eup %15026  ;;  %v8004_v44 = vadd.f32 1.0, %v15025_v28  ;;  %15046 = vpow2.f32 %v7964_v34  ;;  %v7914_v41 = vsub.f32 0.0, %v17894_v23  ;;  %v17903_v31 = vadd.f32 %v17778_v63, %v7793_v1 }
 0x44c   : > { %v15029_v53 = vpop.eup %15028  ;;  %v8002_v51 = vadd.f32 1.0, %v15027_v49  ;;  %v7917_v39 = vsub.f32 0.0, %v17899_v36  ;;  %v8087_v8 = vpack.c.bf16 %v8061_v2, %v8060_v32  ;;  %v7974_v7 = vmul.f32 1.442695, %v7916_v46 }
 0x44d   : > { %v15031_v5 = vpop.eup %15030  ;;  %15048 = vrcp.f32 %v8004_v44  ;;  %v8005_v38 = vadd.f32 1.0, %v15029_v53  ;;  %v7915_v20 = vsub.f32 0.0, %v17903_v31  ;;  %v7970_v35 = vmul.f32 1.442695, %v7914_v41 }
 0x44e   : > { %v15033_v27 = vpop.eup %15032  ;;  %15050 = vrcp.f32 %v8002_v51  ;;  %v8003_v18 = vadd.f32 1.0, %v15031_v5  ;;  %8124 = vrot.lane.b32.xlu1 %v8087_v8, %s15387_s20  ;;  %v8086_v55 = vpack.c.bf16 %v8059_v4, %v8058_v45  ;;  %v7976_v3 = vmul.f32 1.442695, %v7917_v39  ;;  %v10944_v8 = vld [vmem:[%s18545_s6 + $0x4] sm:$0x1] }
 0x44f   : > { %v15035_v33 = vpop.eup %15034  ;;  %15052 = vrcp.f32 %v8005_v38  ;;  %v13400_v61 = vpop.f32.mrb[92].mxu0  ;;  %v7972_v50 = vmul.f32 1.442695, %v7915_v20  ;;  %v8064_v32 = vmul.f32 %v15033_v27, %v17829_v22 }
 0x450   : > { %v15037_v34 = vpop.eup %15036  ;;  %15054 = vrcp.f32 %v8003_v18  ;;  %8122 = vrot.lane.b32.xlu0 %v8086_v55, %s15387_s20  ;;  %v17911_v19 = vadd.f32 %v13400_v61, %v17778_v63  ;;  %v7806_v15 = vpop.f32.mrb[93].mxu0  ;;  %v8062_v51 = vmul.f32 %v15035_v33, %v17832_v16 }
 0x451   : > { %v15039_v6 = vpop.eup %15038  ;;  %v8065_v2 = vmul.f32 %v15037_v34, %v17836_v47  ;;  %15056 = vpow2.f32 %v7974_v7  ;;  %v17916_v57 = vadd.f32 %v17778_v63, %v7806_v15  ;;  %v13401_v28 = vpop.f32.mrb[94].mxu0 }
 0x452   : > { %v15041_v4 = vpop.eup %15040  ;;  %v8063_v46 = vmul.f32 %v15039_v6, %v17840_v17  ;;  %15058 = vpow2.f32 %v7970_v35  ;;  %v7920_v1 = vsub.f32 0.0, %v17911_v19  ;;  %v17921_v49 = vadd.f32 %v13401_v28, %v17778_v63  ;;  %v7809_v44 = vpop.f32.mrb[95].mxu0 }
 0x453   : > { %v15043_v41 = vpop.eup %15042  ;;  %v8008_v53 = vadd.f32 1.0, %v15041_v4  ;;  %15060 = vpow2.f32 %v7976_v3  ;;  %v7918_v22 = vsub.f32 0.0, %v17916_v57  ;;  %v17925_v47 = vadd.f32 %v17778_v63, %v7809_v44  ;;  %v11001_v63 = vld [vmem:[%s18544_s5] sm:$0x3] }
 0x454   : > { %v15045_v45 = vpop.eup %15044  ;;  %v8006_v39 = vadd.f32 1.0, %v15043_v41  ;;  %15062 = vpow2.f32 %v7972_v50  ;;  %v7921_v17 = vsub.f32 0.0, %v17921_v49  ;;  %v7982_v7 = vmul.f32 1.442695, %v7920_v1 }
 0x455   : > { %v15047_v5 = vpop.eup %15046  ;;  %15064 = vrcp.f32 %v8008_v53  ;;  %v8009_v38 = vadd.f32 1.0, %v15045_v45  ;;  %v7919_v20 = vsub.f32 0.0, %v17925_v47  ;;  %v7978_v27 = vmul.f32 1.442695, %v7918_v22 }
 0x456   : > { %15066 = vrcp.f32 %v8006_v39  ;;  %v8007_v16 = vadd.f32 1.0, %v15047_v5  ;;  %v8089_v18 = vpack.c.bf16 %v8065_v2, %v8064_v32  ;;  %v7984_v55 = vmul.f32 1.442695, %v7921_v17 }
 0x457   : > { %v15049_v35 = vpop.eup %15048  ;;  %15068 = vrcp.f32 %v8009_v38  ;;  %v8088_v33 = vpack.c.bf16 %v8063_v46, %v8062_v51  ;;  %v10988_v3 = vpop.f32.mrb[96].mxu0  ;;  %v7980_v34 = vmul.f32 1.442695, %v7919_v20  ;;  %v11008_v6 = vsel %vm11006_vm14, %v11001_v63, 0 }
 0x458   : > { %v15051_v61 = vpop.eup %15050  ;;  %15070 = vrcp.f32 %v8007_v16  ;;  %8128 = vrot.lane.b32.xlu1 %v8089_v18, %s15387_s20  ;;  %v17937_v50 = vadd.f32 %v10988_v3, %v10944_v8  ;;  %v13712_v15 = vpop.f32.mrb[97].mxu0  ;;  %13715 = vmatpush3.bf16.msra.mxu0 %v11008_v6  ;;  %v17941_v4 = vmul.f32 %v15049_v35, %v17847_v52 }
 0x459   : > { %v15053_v28 = vpop.eup %15052  ;;  %15072 = vpow2.f32 %v7982_v7  ;;  %8126 = vrot.lane.b32.xlu0 %v8088_v33, %s15387_s20  ;;  %v10991_v32 = vpop.f32.mrb[98].mxu0  ;;  %v17948_v53 = vmul.f32 %v15051_v61, %v17852_v37 }
 0x45a   : > { %v15055_v2 = vpop.eup %15054  ;;  %v17944_v46 = vmul.f32 %v15053_v28, %v17856_v10  ;;  %15074 = vpow2.f32 %v7978_v27  ;;  %v10994_v1 = vsub.f32 0.0, %v17937_v50  ;;  %v13713_v44 = vpop.f32.mrb[99].mxu0 }
 0x45b   : > { %v15057_v41 = vpop.eup %15056  ;;  %v17951_v22 = vmul.f32 %v15055_v2, %v17860_v42  ;;  %15076 = vpow2.f32 %v7984_v55 }
 0x45c   : > { %v15059_v45 = vpop.eup %15058  ;;  %v8012_v51 = vadd.f32 1.0, %v15057_v41  ;;  %15078 = vpow2.f32 %v7980_v34  ;;  %v10995_v37 = vmul.f32 1.442695, %v10994_v1 }
 0x45d   : > { %v15061_v10 = vpop.eup %15060  ;;  %v8010_v39 = vadd.f32 1.0, %v15059_v45 }
 0x45e   : > { %v15063_v8 = vpop.eup %15062  ;;  %15080 = vrcp.f32 %v8012_v51  ;;  %v8013_v5 = vadd.f32 1.0, %v15061_v10 }
 0x45f   : > { %v15065_v38 = vpop.eup %15064  ;;  %15082 = vrcp.f32 %v8010_v39  ;;  %v8011_v42 = vadd.f32 1.0, %v15063_v8 }
 0x460   : > { %v15067_v7 = vpop.eup %15066  ;;  %15084 = vrcp.f32 %v8013_v5  ;;  %v17958_v16 = vmul.f32 %v15065_v38, %v17868_v24 }
 0x461   : > { %v15069_v20 = vpop.eup %15068  ;;  %15086 = vrcp.f32 %v8011_v42  ;;  %v17964_v35 = vmul.f32 %v15067_v7, %v17874_v43 }
 0x462   : > { %v15071_v63 = vpop.eup %15070  ;;  %v17961_v27 = vmul.f32 %v15069_v20, %v17878_v0  ;;  %15088 = vpow2.f32 %v10995_v37 }
 0x463   : > { %v15073_v18 = vpop.eup %15072  ;;  %v17967_v55 = vmul.f32 %v15071_v63, %v17882_v62 }
 0x464   : > { %v15075_v33 = vpop.eup %15074  ;;  %v8016_v3 = vadd.f32 1.0, %v15073_v18 }
 0x465   : > { %v15077_v34 = vpop.eup %15076  ;;  %v8014_v15 = vadd.f32 1.0, %v15075_v33 }
 0x466   : > { %v15079_v0 = vpop.eup %15078  ;;  %15090 = vrcp.f32 %v8016_v3  ;;  %v8017_v6 = vadd.f32 1.0, %v15077_v34 }
 0x467   : > { %15092 = vrcp.f32 %v8014_v15  ;;  %v8015_v28 = vadd.f32 1.0, %v15079_v0 }
 0x468   : > { %v15081_v43 = vpop.eup %15080  ;;  %15094 = vrcp.f32 %v8017_v6 }
 0x469   : > { %v15083_v32 = vpop.eup %15082  ;;  %15096 = vrcp.f32 %v8015_v28  ;;  %v17974_v1 = vmul.f32 %v15081_v43, %v17889_v12 }
 0x46a   : > { %v15085_v62 = vpop.eup %15084  ;;  %v17980_v45 = vmul.f32 %v15083_v32, %v17894_v23 }
 0x46b   : > { %v15087_v2 = vpop.eup %15086  ;;  %v17977_v44 = vmul.f32 %v15085_v62, %v17899_v36  ;;  %v17992_v36 = vld [vmem:[%s18545_s6 + $0x3] ss:$0 sm:$0xff] }
 0x46c   : > { %v15089_v41 = vpop.eup %15088  ;;  %v17983_v51 = vmul.f32 %v15087_v2, %v17903_v31 }
 0x46d   : > { %v10997_v39 = vadd.f32 1.0, %v15089_v41 }
 0x46f   : > { %15098 = vrcp.f32 %v10997_v39 }
 0x470   : > { %v15091_v12 = vpop.eup %15090 }
 0x471   : > { %v15093_v5 = vpop.eup %15092  ;;  %v17995_v31 = vmul.f32 %v15091_v12, %v17911_v19 }
 0x472   : > { %v15095_v23 = vpop.eup %15094  ;;  %v18004_v63 = vmul.f32 %v15093_v5, %v17916_v57 }
 0x473   : > { %v15097_v38 = vpop.eup %15096  ;;  %v17998_v42 = vmul.f32 %v15095_v23, %v17921_v49 }
 0x474   : > { %18569 = vst [vmem:[#allocation4_spill] sm:$0xff] %v18004_v63  ;;  %v18007_v18 = vmul.f32 %v15097_v38, %v17925_v47 }
 0x475   : > { %v13678_v37 = vpop.f32.mrb[32].mxu1 }
 0x476   : > { %v18001_v7 = vadd.f32 %v13678_v37, %v17992_v36  ;;  %v10353_v20 = vpop.f32.mrb[33].mxu1  ;;  %18570 = vst [vmem:[#allocation5_spill] sm:$0xff] %v18007_v18 }
 0x477   : > { %v18010_v33 = vadd.f32 %v17992_v36, %v10353_v20  ;;  %v13679_v3 = vpop.f32.mrb[34].mxu1 }
 0x478   : > { %v10551_v19 = vsub.f32 0.0, %v18001_v7  ;;  %v18014_v34 = vadd.f32 %v13679_v3, %v17992_v36  ;;  %v10356_v49 = vpop.f32.mrb[35].mxu1 }
 0x479   : > { %v10549_v0 = vsub.f32 0.0, %v18010_v33  ;;  %v18020_v57 = vadd.f32 %v17992_v36, %v10356_v49  ;;  %v15099_v62 = vpop.eup %15098 }
 0x47a   : > { %v10585_v6 = vmul.f32 1.442695, %v10551_v19  ;;  %v10552_v28 = vsub.f32 0.0, %v18014_v34  ;;  %v10999_v12 = vmul.f32 %v15099_v62, %v17937_v50 }
 0x47b   : > { %v10581_v43 = vmul.f32 1.442695, %v10549_v0  ;;  %v10550_v32 = vsub.f32 0.0, %v18020_v57 }
 0x47c   : > { %15100 = vpow2.f32 %v10585_v6  ;;  %v10587_v2 = vmul.f32 1.442695, %v10552_v28  ;;  %v11000_v20 = vpack.c.bf16 %v10999_v12, %v10999_v12 }
 0x47d   : > { %15102 = vpow2.f32 %v10581_v43  ;;  %v10583_v41 = vmul.f32 1.442695, %v10550_v32  ;;  %v13682_v39 = vpop.f32.mrb[36].mxu1 }
 0x47e   : > { %15104 = vpow2.f32 %v10587_v2  ;;  %v18028_v5 = vadd.f32 %v13682_v39, %v17992_v36  ;;  %v10369_v23 = vpop.f32.mrb[37].mxu1  ;;  %13717 = vmatmul.mubr.msk.bf16.vlgmr.msra.gmra.mrb[100].mxu0 %vm2839_vm12, %v11000_v20  ;;  %vm8162_vm12 = vcmask 97344  }
 0x47f   : > { %15106 = vpow2.f32 %v10583_v41  ;;  %v18031_v37 = vadd.f32 %v17992_v36, %v10369_v23  ;;  %v13683_v38 = vpop.f32.mrb[38].mxu1 }
 0x480   : > { %v10555_v3 = vsub.f32 0.0, %v18028_v5  ;;  %v18035_v19 = vadd.f32 %v13683_v38, %v17992_v36  ;;  %v10372_v49 = vpop.f32.mrb[39].mxu1 }
 0x481   : > { %v10553_v0 = vsub.f32 0.0, %v18031_v37  ;;  %v18039_v50 = vadd.f32 %v17992_v36, %v10372_v49 }
 0x482   : > { %v10593_v6 = vmul.f32 1.442695, %v10555_v3  ;;  %v10556_v28 = vsub.f32 0.0, %v18035_v19 }
 0x483   : > { %v10589_v43 = vmul.f32 1.442695, %v10553_v0  ;;  %v10554_v32 = vsub.f32 0.0, %v18039_v50 }
 0x484   : > { %15108 = vpow2.f32 %v10593_v6  ;;  %v10595_v62 = vmul.f32 1.442695, %v10556_v28 }
 0x485   : > { %15110 = vpow2.f32 %v10589_v43  ;;  %v10591_v2 = vmul.f32 1.442695, %v10554_v32  ;;  %v13686_v41 = vpop.f32.mrb[40].mxu1 }
 0x486   : > { %v15101_v39 = vpop.eup %15100  ;;  %15112 = vpow2.f32 %v10595_v62  ;;  %v18045_v12 = vadd.f32 %v13686_v41, %v17992_v36  ;;  %v10385_v23 = vpop.f32.mrb[41].mxu1 }
 0x487   : > { %v15103_v38 = vpop.eup %15102  ;;  %v10647_v49 = vadd.f32 1.0, %v15101_v39  ;;  %15114 = vpow2.f32 %v10591_v2  ;;  %v18048_v20 = vadd.f32 %v17992_v36, %v10385_v23  ;;  %v13687_v3 = vpop.f32.mrb[42].mxu1 }
 0x488   : > { %v15105_v0 = vpop.eup %15104  ;;  %v10645_v47 = vadd.f32 1.0, %v15103_v38  ;;  %v10559_v6 = vsub.f32 0.0, %v18045_v12  ;;  %v18052_v28 = vadd.f32 %v13687_v3, %v17992_v36  ;;  %v10388_v43 = vpop.f32.mrb[43].mxu1 }
 0x489   : > { %v15107_v32 = vpop.eup %15106  ;;  %15116 = vrcp.f32 %v10647_v49  ;;  %v10648_v62 = vadd.f32 1.0, %v15105_v0  ;;  %v10557_v41 = vsub.f32 0.0, %v18048_v20  ;;  %v18056_v39 = vadd.f32 %v17992_v36, %v10388_v43 }
 0x48a   : > { %15118 = vrcp.f32 %v10645_v47  ;;  %v10646_v2 = vadd.f32 1.0, %v15107_v32  ;;  %v10601_v23 = vmul.f32 1.442695, %v10559_v6  ;;  %v10560_v15 = vsub.f32 0.0, %v18052_v28 }
 0x48b   : > { %15120 = vrcp.f32 %v10648_v62  ;;  %v10597_v38 = vmul.f32 1.442695, %v10557_v41  ;;  %v10558_v25 = vsub.f32 0.0, %v18056_v39 }
 0x48c   : > { %15122 = vrcp.f32 %v10646_v2  ;;  %v10603_v3 = vmul.f32 1.442695, %v10560_v15 }
 0x48d   : > { %15124 = vpow2.f32 %v10601_v23  ;;  %v10599_v8 = vmul.f32 1.442695, %v10558_v25  ;;  %v13690_v49 = vpop.f32.mrb[44].mxu1 }
 0x48e   : > { %v15109_v0 = vpop.eup %15108  ;;  %15126 = vpow2.f32 %v10597_v38  ;;  %v18061_v10 = vadd.f32 %v13690_v49, %v17992_v36  ;;  %v10401_v43 = vpop.f32.mrb[45].mxu1 }
 0x48f   : > { %v15111_v47 = vpop.eup %15110  ;;  %v10651_v32 = vadd.f32 1.0, %v15109_v0  ;;  %15128 = vpow2.f32 %v10603_v3  ;;  %v18064_v6 = vadd.f32 %v17992_v36, %v10401_v43  ;;  %v13691_v62 = vpop.f32.mrb[46].mxu1  ;;  %v14695_v0 = vld [vmem:[%s18543_s4] sm:$0xff]  }
 0x490   : > { %v15113_v41 = vpop.eup %15112  ;;  %v10649_v54 = vadd.f32 1.0, %v15111_v47  ;;  %15130 = vpow2.f32 %v10599_v8  ;;  %v10563_v15 = vsub.f32 0.0, %v18061_v10  ;;  %v18068_v25 = vadd.f32 %v13691_v62, %v17992_v36  ;;  %v10404_v2 = vpop.f32.mrb[47].mxu1  ;;  %13720 = vmatprep.subr.bf16.mxu0 %v14695_v0 }
 0x491   : > { %v15115_v23 = vpop.eup %15114  ;;  %15132 = vrcp.f32 %v10651_v32  ;;  %v10652_v38 = vadd.f32 1.0, %v15113_v41  ;;  %v10561_v49 = vsub.f32 0.0, %v18064_v6  ;;  %v18072_v3 = vadd.f32 %v17992_v36, %v10404_v2  ;;  %13721 = vmatpush3.bf16.msra.mxu0 %v14695_v0 }
 0x492   : > { %15134 = vrcp.f32 %v10649_v54  ;;  %v10650_v8 = vadd.f32 1.0, %v15115_v23  ;;  %v10609_v43 = vmul.f32 1.442695, %v10563_v15  ;;  %v10564_v47 = vsub.f32 0.0, %v18068_v25 }
 0x493   : > { %v15117_v62 = vpop.eup %15116  ;;  %15136 = vrcp.f32 %v10652_v38  ;;  %v10605_v24 = vmul.f32 1.442695, %v10561_v49  ;;  %v10562_v32 = vsub.f32 0.0, %v18072_v3 }
 0x494   : > { %v15119_v41 = vpop.eup %15118  ;;  %15138 = vrcp.f32 %v10650_v8  ;;  %v10611_v61 = vmul.f32 1.442695, %v10564_v47  ;;  %v10711_v54 = vmul.f32 %v15117_v62, %v18001_v7 }
 0x495   : > { %v15121_v2 = vpop.eup %15120  ;;  %15140 = vpow2.f32 %v10609_v43  ;;  %v10607_v29 = vmul.f32 1.442695, %v10562_v32  ;;  %v13694_v56 = vpop.f32.mrb[48].mxu1  ;;  %v10709_v52 = vmul.f32 %v15119_v41, %v18010_v33 }
 0x496   : > { %v15123_v17 = vpop.eup %15122  ;;  %v10712_v15 = vmul.f32 %v15121_v2, %v18014_v34  ;;  %15142 = vpow2.f32 %v10605_v24  ;;  %v18082_v23 = vadd.f32 %v13694_v56, %v17992_v36  ;;  %v10417_v38 = vpop.f32.mrb[49].mxu1 }
 0x497   : > { %v15125_v49 = vpop.eup %15124  ;;  %v10710_v8 = vmul.f32 %v15123_v17, %v18020_v57  ;;  %15144 = vpow2.f32 %v10611_v61  ;;  %v18087_v0 = vadd.f32 %v17992_v36, %v10417_v38  ;;  %v13695_v43 = vpop.f32.mrb[50].mxu1 }
 0x498   : > { %v15127_v47 = vpop.eup %15126  ;;  %v10655_v32 = vadd.f32 1.0, %v15125_v49  ;;  %15146 = vpow2.f32 %v10607_v29  ;;  %v10567_v7 = vsub.f32 0.0, %v18082_v23  ;;  %v18091_v24 = vadd.f32 %v13695_v43, %v17992_v36  ;;  %v10420_v56 = vpop.f32.mrb[51].mxu1 }
 0x499   : > { %v15129_v34 = vpop.eup %15128  ;;  %v10653_v62 = vadd.f32 1.0, %v15127_v47  ;;  %v10565_v33 = vsub.f32 0.0, %v18087_v0  ;;  %v18095_v17 = vadd.f32 %v17992_v36, %v10420_v56  ;;  %v10742_v61 = vpack.c.bf16 %v10712_v15, %v10711_v54 }
 0x49a   : > { %v15131_v57 = vpop.eup %15130  ;;  %15148 = vrcp.f32 %v10655_v32  ;;  %v10656_v41 = vadd.f32 1.0, %v15129_v34  ;;  %v10617_v2 = vmul.f32 1.442695, %v10567_v7  ;;  %v10568_v29 = vsub.f32 0.0, %v18091_v24 }
 0x49b   : > { %v15133_v38 = vpop.eup %15132  ;;  %15150 = vrcp.f32 %v10653_v62  ;;  %v10654_v49 = vadd.f32 1.0, %v15131_v57  ;;  %v10613_v43 = vmul.f32 1.442695, %v10565_v33  ;;  %v10566_v63 = vsub.f32 0.0, %v18095_v17  ;;  %10775 = vrot.lane.b32.xlu1 %v10742_v61, %s15388_s9 }
 0x49c   : > { %v15135_v47 = vpop.eup %15134  ;;  %15152 = vrcp.f32 %v10656_v41  ;;  %v10619_v56 = vmul.f32 1.442695, %v10568_v29  ;;  %v10741_v18 = vpack.c.bf16 %v10710_v8, %v10709_v52  ;;  %v10715_v34 = vmul.f32 %v15133_v38, %v18028_v5 }
 0x49d   : > { %v15137_v54 = vpop.eup %15136  ;;  %15154 = vrcp.f32 %v10654_v49  ;;  %v10615_v15 = vmul.f32 1.442695, %v10566_v63  ;;  %v13698_v32 = vpop.f32.mrb[52].mxu1  ;;  %v10713_v62 = vmul.f32 %v15135_v47, %v18031_v37  ;;  %v18571_v63 = vpack.c.bf16 %v17944_v46, %v17941_v4 }
 0x49e   : > { %v15139_v7 = vpop.eup %15138  ;;  %15156 = vpow2.f32 %v10617_v2  ;;  %10773 = vrot.lane.b32.xlu0 %v10741_v18, %s15388_s9  ;;  %v18104_v33 = vadd.f32 %v13698_v32, %v17992_v36  ;;  %v10433_v61 = vpop.f32.mrb[53].mxu1  ;;  %v10716_v41 = vmul.f32 %v15137_v54, %v18035_v19 }
 0x49f   : > { %v15141_v57 = vpop.eup %15140  ;;  %v10714_v52 = vmul.f32 %v15139_v7, %v18039_v50  ;;  %15158 = vpow2.f32 %v10613_v43  ;;  %8132 = vrot.lane.b32.xlu1 %v18571_v63, %s15387_s20  ;;  %v18113_v5 = vadd.f32 %v17992_v36, %v10433_v61  ;;  %v13699_v37 = vpop.f32.mrb[54].mxu1 }
 0x4a0   : > { %v15143_v18 = vpop.eup %15142  ;;  %v10659_v8 = vadd.f32 1.0, %v15141_v57  ;;  %15160 = vpow2.f32 %v10619_v56  ;;  %v10571_v2 = vsub.f32 0.0, %v18104_v33  ;;  %v18117_v29 = vadd.f32 %v13699_v37, %v17992_v36  ;;  %v10436_v19 = vpop.f32.mrb[55].mxu1 }
 0x4a1   : > { %v15145_v50 = vpop.eup %15144  ;;  %v10657_v38 = vadd.f32 1.0, %v15143_v18  ;;  %15162 = vpow2.f32 %v10615_v15  ;;  %v10569_v49 = vsub.f32 0.0, %v18113_v5  ;;  %v18121_v4 = vadd.f32 %v17992_v36, %v10436_v19 }
 0x4a2   : > { %v15147_v46 = vpop.eup %15146  ;;  %15164 = vrcp.f32 %v10659_v8  ;;  %v10660_v43 = vadd.f32 1.0, %v15145_v50  ;;  %v10625_v47 = vmul.f32 1.442695, %v10571_v2  ;;  %v18572_v56 = vpack.c.bf16 %v17951_v22, %v17948_v53 }
 0x4a3   : > { %v10572_v54 = vsub.f32 0.0, %v18117_v29  ;;  %15166 = vrcp.f32 %v10657_v38  ;;  %v10658_v32 = vadd.f32 1.0, %v15147_v46  ;;  %v10621_v7 = vmul.f32 1.442695, %v10569_v49 }
 0x4a4   : > { %8130 = vrot.lane.b32.xlu0 %v18572_v56, %s15387_s20  ;;  %v10570_v15 = vsub.f32 0.0, %v18121_v4  ;;  %v15149_v61 = vpop.eup %15148  ;;  %15168 = vrcp.f32 %v10660_v43  ;;  %v10744_v63 = vpack.c.bf16 %v10716_v41, %v10715_v34  ;;  %v10743_v37 = vpack.c.bf16 %v10714_v52, %v10713_v62 }
 0x4a5   : > { %v10627_v57 = vmul.f32 1.442695, %v10572_v54  ;;  %v15151_v18 = vpop.eup %15150  ;;  %15170 = vrcp.f32 %v10658_v32  ;;  %v13702_v2 = vpop.f32.mrb[56].mxu1  ;;  %v10719_v38 = vmul.f32 %v15149_v61, %v18045_v12  ;;  %v18574_v61 = vpack.c.bf16 %v17361_v58, %v17358_v21 }
 0x4a6   : > { %v10623_v8 = vmul.f32 1.442695, %v10570_v15  ;;  %v15153_v19 = vpop.eup %15152  ;;  %15172 = vpow2.f32 %v10625_v47  ;;  %10779 = vrot.lane.b32.xlu1 %v10744_v63, %s15388_s9  ;;  %v18132_v53 = vadd.f32 %v13702_v2, %v17992_v36  ;;  %v10449_v22 = vpop.f32.mrb[57].mxu1 }
 0x4a7   : > { %v15155_v50 = vpop.eup %15154  ;;  %v10720_v34 = vmul.f32 %v15153_v19, %v18052_v28  ;;  %15174 = vpow2.f32 %v10621_v7  ;;  %v18137_v62 = vadd.f32 %v17992_v36, %v10449_v22  ;;  %v13703_v41 = vpop.f32.mrb[58].mxu1  ;;  %v10717_v7 = vmul.f32 %v15151_v18, %v18048_v20 }
 0x4a8   : > { %10777 = vrot.lane.b32.xlu0 %v10743_v37, %s15388_s9  ;;  %v15157_v52 = vpop.eup %15156  ;;  %v10718_v49 = vmul.f32 %v15155_v50, %v18056_v39  ;;  %15176 = vpow2.f32 %v10627_v57  ;;  %v10575_v46 = vsub.f32 0.0, %v18132_v53  ;;  %v18142_v43 = vadd.f32 %v13703_v41, %v17992_v36  ;;  %v10452_v47 = vpop.f32.mrb[59].mxu1 }
 0x4a9   : > { %v15159_v56 = vpop.eup %15158  ;;  %v10663_v54 = vadd.f32 1.0, %v15157_v52  ;;  %15178 = vpow2.f32 %v10623_v8  ;;  %v10573_v12 = vsub.f32 0.0, %v18137_v62  ;;  %v18146_v28 = vadd.f32 %v17992_v36, %v10452_v47 }
 0x4aa   : > { %v15161_v32 = vpop.eup %15160  ;;  %v10661_v15 = vadd.f32 1.0, %v15159_v56  ;;  %v18573_v39 = vpack.c.bf16 %v17353_v14, %v17350_v26  ;;  %v10576_v57 = vsub.f32 0.0, %v18142_v43  ;;  %v10746_v63 = vpack.c.bf16 %v10720_v34, %v10719_v38 }
 0x4ab   : > { %v15163_v37 = vpop.eup %15162  ;;  %15180 = vrcp.f32 %v10663_v54  ;;  %v10664_v8 = vadd.f32 1.0, %v15161_v32  ;;  %v10633_v2 = vmul.f32 1.442695, %v10575_v46  ;;  %v10574_v20 = vsub.f32 0.0, %v18146_v28 }
 0x4ac   : > { %5474 = vrot.lane.b32.xlu1 %v18573_v39, %s15384_s23  ;;  %5472 = vrot.lane.b32.xlu0 %v18574_v61, %s15384_s23  ;;  %v15165_v18 = vpop.eup %15164  ;;  %15182 = vrcp.f32 %v10661_v15  ;;  %v10662_v19 = vadd.f32 1.0, %v15163_v37  ;;  %v10629_v22 = vmul.f32 1.442695, %v10573_v12  ;;  %v10745_v26 = vpack.c.bf16 %v10718_v49, %v10717_v7 }
 0x4ad   : > { %v15167_v14 = vpop.eup %15166  ;;  %15184 = vrcp.f32 %v10664_v8  ;;  %v10635_v50 = vmul.f32 1.442695, %v10576_v57  ;;  %v13706_v41 = vpop.f32.mrb[60].mxu1  ;;  %v10631_v58 = vmul.f32 1.442695, %v10574_v20  ;;  %v10723_v46 = vmul.f32 %v15165_v18, %v18061_v10 }
 0x4ae   : > { %v15169_v21 = vpop.eup %15168  ;;  %15186 = vrcp.f32 %v10662_v19  ;;  %v18162_v38 = vadd.f32 %v13706_v41, %v17992_v36  ;;  %v10465_v34 = vpop.f32.mrb[61].mxu1  ;;  %v18575_v8 = vpack.c.bf16 %v17961_v27, %v17958_v16 }
 0x4af   : > { %v15171_v52 = vpop.eup %15170  ;;  %v10724_v49 = vmul.f32 %v15169_v21, %v18068_v25  ;;  %15188 = vpow2.f32 %v10633_v2  ;;  %v18167_v47 = vadd.f32 %v17992_v36, %v10465_v34  ;;  %v13707_v56 = vpop.f32.mrb[62].mxu1  ;;  %v18576_v2 = vpack.c.bf16 %v17967_v55, %v17964_v35 }
 0x4b0   : > { %10783 = vrot.lane.b32.xlu1 %v10746_v63, %s15388_s9  ;;  %10781 = vrot.lane.b32.xlu0 %v10745_v26, %s15388_s9  ;;  %v15173_v54 = vpop.eup %15172  ;;  %v10722_v12 = vmul.f32 %v15171_v52, %v18072_v3  ;;  %15190 = vpow2.f32 %v10629_v22  ;;  %v10579_v32 = vsub.f32 0.0, %v18162_v38  ;;  %v18172_v7 = vadd.f32 %v13707_v56, %v17992_v36  ;;  %v10468_v15 = vpop.f32.mrb[63].mxu1 }
 0x4b1   : > { %v15175_v39 = vpop.eup %15174  ;;  %v10667_v61 = vadd.f32 1.0, %v15173_v54  ;;  %15192 = vpow2.f32 %v10635_v50  ;;  %v10577_v10 = vsub.f32 0.0, %v18167_v47  ;;  %v18176_v25 = vadd.f32 %v17992_v36, %v10468_v15  ;;  %v8117_v3 = vpop.permute.xlu1 %8116 }
 0x4b2   : > { %v15177_v57 = vpop.eup %15176  ;;  %v10721_v63 = vmul.f32 %v15167_v14, %v18064_v6  ;;  %v10665_v37 = vadd.f32 1.0, %v15175_v39  ;;  %15194 = vpow2.f32 %v10631_v58  ;;  %v10580_v20 = vsub.f32 0.0, %v18172_v7  ;;  %8164 = vst.msk [vmem:[#allocation3 + $0x8] sm:$0xff] %vm8162_vm12, %v8117_v3 }
 0x4b3   : > { %v15179_v36 = vpop.eup %15178  ;;  %15196 = vrcp.f32 %v10667_v61  ;;  %v10668_v18 = vadd.f32 1.0, %v15177_v57  ;;  %v10641_v6 = vmul.f32 1.442695, %v10579_v32  ;;  %v10578_v19 = vsub.f32 0.0, %v18176_v25 }
 0x4b4   : > { %8136 = vrot.lane.b32.xlu1 %v18575_v8, %s15387_s20  ;;  %8134 = vrot.lane.b32.xlu0 %v18576_v2, %s15387_s20  ;;  %15198 = vrcp.f32 %v10665_v37  ;;  %v10666_v22 = vadd.f32 1.0, %v15179_v36  ;;  %v10637_v26 = vmul.f32 1.442695, %v10577_v10  ;;  %v10748_v16 = vpack.c.bf16 %v10724_v49, %v10723_v46 }
 0x4b5   : > { %v15181_v27 = vpop.eup %15180  ;;  %15200 = vrcp.f32 %v10668_v18  ;;  %v10643_v14 = vmul.f32 1.442695, %v10580_v20  ;;  %v10747_v50 = vpack.c.bf16 %v10722_v12, %v10721_v63  ;;  %v10639_v55 = vmul.f32 1.442695, %v10578_v19  ;;  %v8115_v41 = vpop.permute.xlu1 %8114 }
 0x4b6   : > { %v15183_v35 = vpop.eup %15182  ;;  %15202 = vrcp.f32 %v10666_v22  ;;  %8163 = vst.msk [vmem:[#allocation3] sm:$0xff] %vm8162_vm12, %v8115_v41  ;;  %v10727_v34 = vmul.f32 %v15181_v27, %v18082_v23  ;;  %v18577_v32 = vpack.c.bf16 %v17399_v60, %v17396_v13 }
 0x4b7   : > { %v15185_v21 = vpop.eup %15184  ;;  %15204 = vpow2.f32 %v10641_v6  ;;  %v10725_v49 = vmul.f32 %v15183_v35, %v18087_v0  ;;  %v18579_v6 = vpack.c.bf16 %v17977_v44, %v17974_v1 }
 0x4b8   : > { %10787 = vrot.lane.b32.xlu1 %v10748_v16, %s15388_s9  ;;  %10785 = vrot.lane.b32.xlu0 %v10747_v50, %s15388_s9  ;;  %v15187_v58 = vpop.eup %15186  ;;  %v10728_v52 = vmul.f32 %v15185_v21, %v18091_v24  ;;  %15206 = vpow2.f32 %v10637_v26  ;;  %v18578_v24 = vpack.c.bf16 %v17407_v40, %v17404_v30  ;;  %v18581_v21 = vpack.c.bf16 %v17441_v11, %v17438_v59 }
 0x4b9   : > { %v15189_v46 = vpop.eup %15188  ;;  %v10726_v56 = vmul.f32 %v15187_v58, %v18095_v17  ;;  %15208 = vpow2.f32 %v10643_v14  ;;  %v18582_v58 = vpack.c.bf16 %v17449_v9, %v17446_v48 }
 0x4ba   : > { %v15191_v54 = vpop.eup %15190  ;;  %v10671_v12 = vadd.f32 1.0, %v15189_v46  ;;  %15210 = vpow2.f32 %v10639_v55  ;;  %v10750_v15 = vpack.c.bf16 %v10728_v52, %v10727_v34  ;;  %v8121_v63 = vpop.permute.xlu1 %8120 }
 0x4bb   : > { %v15193_v39 = vpop.eup %15192  ;;  %v10669_v23 = vadd.f32 1.0, %v15191_v54  ;;  %v10749_v0 = vpack.c.bf16 %v10726_v56, %v10725_v49  ;;  %v8119_v37 = vpop.permute.xlu0 %8118  ;;  %8166 = vst.msk [vmem:[#allocation3 + $0x18] sm:$0xff] %vm8162_vm12, %v8121_v63  ;;  %v18583_v56 = vpack.c.bf16 %v17998_v42, %v17995_v31  ;;  %v18584_v54 = vld [vmem:[#allocation5_spill] sm:$0xff] }
 0x4bc   : > { %5478 = vrot.lane.b32.xlu1 %v18577_v32, %s15384_s23  ;;  %5476 = vrot.lane.b32.xlu0 %v18578_v24, %s15384_s23  ;;  %v15195_v61 = vpop.eup %15194  ;;  %15212 = vrcp.f32 %v10671_v12  ;;  %v10672_v17 = vadd.f32 1.0, %v15193_v39  ;;  %8165 = vst.msk [vmem:[#allocation3 + $0x10] sm:$0xff] %vm8162_vm12, %v8119_v37  ;;  %v18585_v12 = vld [vmem:[#allocation4_spill] sm:$0xff] }
 0x4bd   : > { %v15197_v10 = vpop.eup %15196  ;;  %15214 = vrcp.f32 %v10669_v23  ;;  %v10670_v57 = vadd.f32 1.0, %v15195_v61  ;;  %v18586_v32 = vpack.c.bf16 %v18584_v54, %v18585_v12 }
 0x4be   : > { %v15199_v3 = vpop.eup %15198  ;;  %15216 = vrcp.f32 %v10672_v17  ;;  %v10731_v30 = vmul.f32 %v15197_v10, %v18104_v33  ;;  %v18580_v33 = vpack.c.bf16 %v17983_v51, %v17980_v45 }
 0x4bf   : > { %v15201_v13 = vpop.eup %15200  ;;  %15218 = vrcp.f32 %v10670_v57  ;;  %v10729_v2 = vmul.f32 %v15199_v3, %v18113_v5 }
 0x4c0   : > { %10791 = vrot.lane.b32.xlu1 %v10750_v15, %s15388_s9  ;;  %10789 = vrot.lane.b32.xlu0 %v10749_v0, %s15388_s9  ;;  %v15203_v60 = vpop.eup %15202  ;;  %v10732_v40 = vmul.f32 %v15201_v13, %v18117_v29  ;;  %v8125_v16 = vpop.permute.xlu1 %8124 }
 0x4c1   : > { %v15205_v8 = vpop.eup %15204  ;;  %v10730_v20 = vmul.f32 %v15203_v60, %v18121_v4  ;;  %8168 = vst.msk [vmem:[#allocation3 + $0x28] sm:$0xff] %vm8162_vm12, %v8125_v16 }
 0x4c2   : > { %v15207_v36 = vpop.eup %15206  ;;  %v10675_v18 = vadd.f32 1.0, %v15205_v8  ;;  %v10752_v19 = vpack.c.bf16 %v10732_v40, %v10731_v30  ;;  %v8123_v14 = vpop.permute.xlu0 %8122 }
 0x4c3   : > { %v15209_v22 = vpop.eup %15208  ;;  %v10673_v26 = vadd.f32 1.0, %v15207_v36  ;;  %v10751_v29 = vpack.c.bf16 %v10730_v20, %v10729_v2  ;;  %8167 = vst.msk [vmem:[#allocation3 + $0x20] sm:$0xff] %vm8162_vm12, %v8123_v14 }
 0x4c4   : > { %8140 = vrot.lane.b32.xlu1 %v18579_v6, %s15387_s20  ;;  %8138 = vrot.lane.b32.xlu0 %v18580_v33, %s15387_s20  ;;  %v15211_v5 = vpop.eup %15210  ;;  %15220 = vrcp.f32 %v10675_v18  ;;  %v10676_v4 = vadd.f32 1.0, %v15209_v22 }
 0x4c5   : > { %15222 = vrcp.f32 %v10673_v26  ;;  %v10674_v27 = vadd.f32 1.0, %v15211_v5 }
 0x4c6   : > { %v15213_v1 = vpop.eup %15212  ;;  %15224 = vrcp.f32 %v10676_v4 }
 0x4c7   : > { %v15215_v44 = vpop.eup %15214  ;;  %15226 = vrcp.f32 %v10674_v27  ;;  %v10735_v50 = vmul.f32 %v15213_v1, %v18132_v53 }
 0x4c8   : > { %10795 = vrot.lane.b32.xlu1 %v10752_v19, %s15388_s9  ;;  %10793 = vrot.lane.b32.xlu0 %v10751_v29, %s15388_s9  ;;  %v15217_v45 = vpop.eup %15216  ;;  %v10733_v55 = vmul.f32 %v15215_v44, %v18137_v62 }
 0x4c9   : > { %v15219_v51 = vpop.eup %15218  ;;  %v10736_v35 = vmul.f32 %v15217_v45, %v18142_v43 }
 0x4ca   : > { %v10734_v41 = vmul.f32 %v15219_v51, %v18146_v28  ;;  %v8129_v46 = vpop.permute.xlu1 %8128 }
 0x4cb   : > { %v10754_v34 = vpack.c.bf16 %v10736_v35, %v10735_v50  ;;  %8170 = vst.msk [vmem:[#allocation3 + $0x38] sm:$0xff] %vm8162_vm12, %v8129_v46  ;;  %v8127_v43 = vpop.permute.xlu0 %8126 }
 0x4cc   : > { %5482 = vrot.lane.b32.xlu1 %v18581_v21, %s15384_s23  ;;  %5480 = vrot.lane.b32.xlu0 %v18582_v58, %s15384_s23  ;;  %v10753_v52 = vpack.c.bf16 %v10734_v41, %v10733_v55  ;;  %8169 = vst.msk [vmem:[#allocation3 + $0x30] sm:$0xff] %vm8162_vm12, %v8127_v43  ;;  %v11068_v43 = vlaneseq }
 0x4ce   : > { %v15221_v53 = vpop.eup %15220 }
 0x4cf   : > { %v15223_v62 = vpop.eup %15222  ;;  %v10739_v28 = vmul.f32 %v15221_v53, %v18162_v38 }
 0x4d0   : > { %10799 = vrot.lane.b32.xlu1 %v10754_v34, %s15388_s9  ;;  %10797 = vrot.lane.b32.xlu0 %v10753_v52, %s15388_s9  ;;  %v15225_v59 = vpop.eup %15224  ;;  %v10737_v9 = vmul.f32 %v15223_v62, %v18167_v47  ;;  %v11069_v62 = vshrl.u32 %v11068_v43, 7 }
 0x4d1   : > { %v15227_v11 = vpop.eup %15226  ;;  %v10740_v48 = vmul.f32 %v15225_v59, %v18172_v7  ;;  %v11002_v59 = vld [vmem:[%s18546_s7] sm:$0x1] }
 0x4d2   : > { %v10738_v49 = vmul.f32 %v15227_v11, %v18176_v25 }
 0x4d3   : > { %v10756_v15 = vpack.c.bf16 %v10740_v48, %v10739_v28  ;;  %v11070_v28 = vsub.s32 0, %v11069_v62 }
 0x4d4   : > { %8144 = vrot.lane.b32.xlu1 %v18583_v56, %s15387_s20  ;;  %8142 = vrot.lane.b32.xlu0 %v18586_v32, %s15387_s20  ;;  %v10755_v39 = vpack.c.bf16 %v10738_v49, %v10737_v9 }
 0x4d8   : > { %10803 = vrot.lane.b32.xlu1 %v10756_v15, %s15388_s9  ;;  %10801 = vrot.lane.b32.xlu0 %v10755_v39, %s15388_s9 }
 0x50d   : > { %v10776_v38 = vpop.permute.xlu1 %10775 }
 0x50e   : > { %10823 = vst.msk [vmem:[#allocation3 + $0x8] sm:$0xff] %vm10821_vm15, %v10776_v38 }
 0x510   : > { %v10774_v47 = vpop.permute.xlu0 %10773 }
 0x511   : > { %10822 = vst.msk [vmem:[#allocation3] sm:$0xff] %vm10821_vm15, %v10774_v47  ;;  %v8133_v31 = vpop.permute.xlu1 %8132 }
 0x512   : > { %8172 = vst.msk [vmem:[#allocation3 + $0x48] sm:$0xff] %vm8162_vm12, %v8133_v31 }
 0x515   : > { %v11051_v24 = vld [vmem:[#allocation3 + $0x8] sm:$0xff] }
 0x516   : > { %v8131_v42 = vpop.permute.xlu0 %8130 }
 0x517   : > { %8171 = vst.msk [vmem:[#allocation3 + $0x40] sm:$0xff] %vm8162_vm12, %v8131_v42 }
 0x518   : > { %v10780_v7 = vpop.permute.xlu1 %10779  ;;  %v11050_v23 = vld [vmem:[#allocation3] sm:$0xff] }
 0x519   : > { %10825 = vst.msk [vmem:[#allocation3 + $0x18] sm:$0xff] %vm10821_vm15, %v10780_v7  ;;  %13722 = vmatprep.mubr.msk.bf16.mxu0 %vm307_vm2, %v11050_v23 }
 0x51a   : > { %v10778_v25 = vpop.permute.xlu0 %10777  ;;  %13723 = vmatmul.mubr.msk.bf16.vlgmr.msra.gmra.mrb[104].mxu0 %vm307_vm2, %v11051_v24 }
 0x51b   : > { %10824 = vst.msk [vmem:[#allocation3 + $0x10] sm:$0xff] %vm10821_vm15, %v10778_v25 }
 0x51e   : > { %v5475_v0 = vpop.permute.xlu1 %5474  ;;  %v5473_v61 = vpop.permute.xlu0 %5472 }
 0x51f   : > { %5512 = vst.msk [vmem:[#allocation3 + $0x58] sm:$0xff] %vm5500_vm11, %v5475_v0  ;;  %5511 = vst.msk [vmem:[#allocation3 + $0x50] sm:$0xff] %vm5500_vm11, %v5473_v61 }
 0x520   : > { %v11053_v63 = vld [vmem:[#allocation3 + $0x18] sm:$0xff] }
 0x522   : > { %v10784_v17 = vpop.permute.xlu1 %10783  ;;  %v10782_v10 = vpop.permute.xlu0 %10781  ;;  %v11052_v57 = vld [vmem:[#allocation3 + $0x10] sm:$0xff] }
 0x523   : > { %10827 = vst.msk [vmem:[#allocation3 + $0x28] sm:$0xff] %vm10821_vm15, %v10784_v17  ;;  %10826 = vst.msk [vmem:[#allocation3 + $0x20] sm:$0xff] %vm10821_vm15, %v10782_v10  ;;  %13726 = vmatprep.mubr.msk.bf16.mxu0 %vm307_vm2, %v11052_v57 }
 0x524   : > { %13727 = vmatmul.mubr.msk.bf16.gmra.mrb[108].mxu0 %vm307_vm2, %v11053_v63 }
 0x526   : > { %v8137_v37 = vpop.permute.xlu1 %8136  ;;  %v8135_v3 = vpop.permute.xlu0 %8134 }
 0x527   : > { %8174 = vst.msk [vmem:[#allocation3 + $0x58] sm:$0xff] %vm8162_vm12, %v8137_v37  ;;  %8173 = vst.msk [vmem:[#allocation3 + $0x50] sm:$0xff] %vm8162_vm12, %v8135_v3 }
 0x52a   : > { %v10788_v13 = vpop.permute.xlu1 %10787  ;;  %v11054_v60 = vld [vmem:[#allocation3 + $0x20] sm:$0xff]  ;;  %v10786_v30 = vpop.permute.xlu0 %10785  ;;  %v11055_v40 = vld [vmem:[#allocation3 + $0x28] sm:$0xff] }
 0x52b   : > { %10829 = vst.msk [vmem:[#allocation3 + $0x38] sm:$0xff] %vm10821_vm15, %v10788_v13  ;;  %13730 = vmatprep.mubr.msk.bf16.mxu0 %vm307_vm2, %v11054_v60  ;;  %10828 = vst.msk [vmem:[#allocation3 + $0x30] sm:$0xff] %vm10821_vm15, %v10786_v30 }
 0x52c   : > { %13731 = vmatmul.mubr.msk.bf16.gmra.mrb[112].mxu0 %vm307_vm2, %v11055_v40 }
 0x52e   : > { %v5479_v8 = vpop.permute.xlu1 %5478  ;;  %v5477_v2 = vpop.permute.xlu0 %5476 }
 0x52f   : > { %5514 = vst.msk [vmem:[#allocation3 + $0x68] sm:$0xff] %vm5500_vm11, %v5479_v8  ;;  %5513 = vst.msk [vmem:[#allocation3 + $0x60] sm:$0xff] %vm5500_vm11, %v5477_v2 }
 0x532   : > { %v10792_v20 = vpop.permute.xlu1 %10791  ;;  %v10790_v36 = vpop.permute.xlu0 %10789  ;;  %v11056_v18 = vld [vmem:[#allocation3 + $0x30] sm:$0xff]  ;;  %v11057_v6 = vld [vmem:[#allocation3 + $0x38] sm:$0xff] }
 0x533   : > { %10831 = vst.msk [vmem:[#allocation3 + $0x48] sm:$0xff] %vm10821_vm15, %v10792_v20  ;;  %10830 = vst.msk [vmem:[#allocation3 + $0x40] sm:$0xff] %vm10821_vm15, %v10790_v36  ;;  %13734 = vmatprep.mubr.msk.bf16.mxu0 %vm307_vm2, %v11056_v18 }
 0x534   : > { %13735 = vmatmul.mubr.msk.bf16.gmra.mrb[116].mxu0 %vm307_vm2, %v11057_v6 }
 0x536   : > { %v8141_v19 = vpop.permute.xlu1 %8140  ;;  %v8139_v22 = vpop.permute.xlu0 %8138 }
 0x537   : > { %8176 = vst.msk [vmem:[#allocation3 + $0x68] sm:$0xff] %vm8162_vm12, %v8141_v19  ;;  %8175 = vst.msk [vmem:[#allocation3 + $0x60] sm:$0xff] %vm8162_vm12, %v8139_v22 }
 0x53a   : > { %v10796_v26 = vpop.permute.xlu1 %10795  ;;  %v10794_v16 = vpop.permute.xlu0 %10793  ;;  %v11058_v33 = vld [vmem:[#allocation3 + $0x40] sm:$0xff]  ;;  %v11059_v29 = vld [vmem:[#allocation3 + $0x48] sm:$0xff] }
 0x53b   : > { %10833 = vst.msk [vmem:[#allocation3 + $0x58] sm:$0xff] %vm10821_vm15, %v10796_v26  ;;  %10832 = vst.msk [vmem:[#allocation3 + $0x50] sm:$0xff] %vm10821_vm15, %v10794_v16  ;;  %13738 = vmatprep.mubr.msk.bf16.mxu0 %vm307_vm2, %v11058_v33 }
 0x53c   : > { %13739 = vmatmul.mubr.msk.bf16.gmra.mrb[120].mxu0 %vm307_vm2, %v11059_v29 }
 0x53e   : > { %v5483_v5 = vpop.permute.xlu1 %5482  ;;  %v5481_v4 = vpop.permute.xlu0 %5480 }
 0x53f   : > { %5516 = vst.msk [vmem:[#allocation3 + $0x78] sm:$0xff] %vm5500_vm11, %v5483_v5  ;;  %5515 = vst.msk [vmem:[#allocation3 + $0x70] sm:$0xff] %vm5500_vm11, %v5481_v4 }
 0x542   : > { %v10800_v27 = vpop.permute.xlu1 %10799  ;;  %v10798_v14 = vpop.permute.xlu0 %10797  ;;  %v11060_v1 = vld [vmem:[#allocation3 + $0x50] sm:$0xff]  ;;  %v11061_v44 = vld [vmem:[#allocation3 + $0x58] sm:$0xff] }
 0x543   : > { %10835 = vst.msk [vmem:[#allocation3 + $0x68] sm:$0xff] %vm10821_vm15, %v10800_v27  ;;  %10834 = vst.msk [vmem:[#allocation3 + $0x60] sm:$0xff] %vm10821_vm15, %v10798_v14  ;;  %13742 = vmatprep.mubr.msk.bf16.mxu0 %vm307_vm2, %v11060_v1 }
 0x544   : > { %13743 = vmatmul.mubr.msk.bf16.gmra.mrb[124].mxu0 %vm307_vm2, %v11061_v44 }
 0x546   : > { %v8145_v45 = vpop.permute.xlu1 %8144  ;;  %v8143_v51 = vpop.permute.xlu0 %8142 }
 0x547   : > { %8178 = vst.msk [vmem:[#allocation3 + $0x78] sm:$0xff] %vm8162_vm12, %v8145_v45  ;;  %8177 = vst.msk [vmem:[#allocation3 + $0x70] sm:$0xff] %vm8162_vm12, %v8143_v51 }
 0x54a   : > { %v10804_v50 = vpop.permute.xlu1 %10803  ;;  %v10802_v35 = vpop.permute.xlu0 %10801  ;;  %v11062_v55 = vld [vmem:[#allocation3 + $0x60] sm:$0xff]  ;;  %v11063_v41 = vld [vmem:[#allocation3 + $0x68] sm:$0xff] }
 0x54b   : > { %10837 = vst.msk [vmem:[#allocation3 + $0x78] sm:$0xff] %vm10821_vm15, %v10804_v50  ;;  %10836 = vst.msk [vmem:[#allocation3 + $0x70] sm:$0xff] %vm10821_vm15, %v10802_v35  ;;  %13746 = vmatprep.mubr.msk.bf16.mxu0 %vm307_vm2, %v11062_v55 }
 0x54c   : > { %13747 = vmatmul.mubr.msk.bf16.gmra.mrb[128].mxu0 %vm307_vm2, %v11063_v41 }
 0x551   : > { %v11044_v34 = vpop.f32.mrb[100].mxu0 }
 0x552   : > { %v11064_v21 = vld [vmem:[#allocation3 + $0x70] sm:$0xff]  ;;  %v11065_v58 = vld [vmem:[#allocation3 + $0x78] sm:$0xff]  ;;  %v13718_v52 = vpop.f32.mrb[101].mxu0  ;;  %v11045_v11 = vadd.f32 %v11044_v34, %v11002_v59 }
 0x553   : > { %13750 = vmatprep.mubr.msk.bf16.mxu0 %vm307_vm2, %v11064_v21  ;;  %v11047_v46 = vpop.f32.mrb[102].mxu0 }
 0x554   : > { %13751 = vmatmul.mubr.msk.bf16.gmra.mrb[132].mxu0 %vm307_vm2, %v11065_v58  ;;  %v13719_v53 = vpop.f32.mrb[103].mxu0  ;;  %v18304_v48 = vrot.slane %v11045_v11, %v11070_v28 }
 0x5ed   : > { %v13724_v9 = vpop.f32.mrb[104].mxu0 }
 0x5ee   : > { %v18307_v49 = vadd.f32 %v13724_v9, %v18304_v48  ;;  %v11160_v56 = vpop.f32.mrb[105].mxu0 }
 0x5ef   : > { %v18310_v54 = vadd.f32 %v11160_v56, %v18304_v48  ;;  %v13725_v12 = vpop.f32.mrb[106].mxu0 }
 0x5f0   : > { %v11289_v32 = vsub.f32 0.0, %v18307_v49  ;;  %v18314_v15 = vadd.f32 %v13725_v12, %v18304_v48  ;;  %v11163_v39 = vpop.f32.mrb[107].mxu0 }
 0x5f1   : > { %v11287_v38 = vsub.f32 0.0, %v18310_v54  ;;  %v18318_v47 = vadd.f32 %v11163_v39, %v18304_v48 }
 0x5f2   : > { %v11323_v31 = vmul.f32 1.442695, %v11289_v32  ;;  %v11290_v42 = vsub.f32 0.0, %v18314_v15 }
 0x5f3   : > { %v11319_v7 = vmul.f32 1.442695, %v11287_v38  ;;  %v11288_v25 = vsub.f32 0.0, %v18318_v47 }
 0x5f4   : > { %15228 = vpow2.f32 %v11323_v31  ;;  %v11325_v23 = vmul.f32 1.442695, %v11290_v42 }
 0x5f5   : > { %15230 = vpow2.f32 %v11319_v7  ;;  %v11321_v24 = vmul.f32 1.442695, %v11288_v25 }
 0x5f6   : > { %15232 = vpow2.f32 %v11325_v23 }
 0x5f7   : > { %v13728_v0 = vpop.f32.mrb[108].mxu0  ;;  %15234 = vpow2.f32 %v11321_v24 }
 0x5f8   : > { %v18323_v61 = vadd.f32 %v13728_v0, %v18304_v48  ;;  %v11176_v17 = vpop.f32.mrb[109].mxu0 }
 0x5f9   : > { %v18326_v10 = vadd.f32 %v11176_v17, %v18304_v48  ;;  %v13729_v57 = vpop.f32.mrb[110].mxu0 }
 0x5fa   : > { %v11293_v63 = vsub.f32 0.0, %v18323_v61  ;;  %v18330_v37 = vadd.f32 %v13729_v57, %v18304_v48  ;;  %v11179_v3 = vpop.f32.mrb[111].mxu0 }
 0x5fb   : > { %v11291_v13 = vsub.f32 0.0, %v18326_v10  ;;  %v18334_v60 = vadd.f32 %v11179_v3, %v18304_v48 }
 0x5fc   : > { %v11331_v30 = vmul.f32 1.442695, %v11293_v63  ;;  %v11294_v40 = vsub.f32 0.0, %v18330_v37 }
 0x5fd   : > { %v11327_v8 = vmul.f32 1.442695, %v11291_v13  ;;  %v11292_v2 = vsub.f32 0.0, %v18334_v60 }
 0x5fe   : > { %15236 = vpow2.f32 %v11331_v30  ;;  %v11333_v20 = vmul.f32 1.442695, %v11294_v40  ;;  %v15229_v6 = vpop.eup %15228 }
 0x5ff   : > { %15238 = vpow2.f32 %v11327_v8  ;;  %v11329_v36 = vmul.f32 1.442695, %v11292_v2  ;;  %v13732_v18 = vpop.f32.mrb[112].mxu0  ;;  %v15231_v26 = vpop.eup %15230  ;;  %v11385_v16 = vadd.f32 1.0, %v15229_v6 }
 0x600   : > { %15240 = vpow2.f32 %v11333_v20  ;;  %v18339_v19 = vadd.f32 %v13732_v18, %v18304_v48  ;;  %v11192_v22 = vpop.f32.mrb[113].mxu0  ;;  %v15233_v5 = vpop.eup %15232  ;;  %v11383_v4 = vadd.f32 1.0, %v15231_v26 }
 0x601   : > { %15242 = vpow2.f32 %v11329_v36  ;;  %v18342_v33 = vadd.f32 %v11192_v22, %v18304_v48  ;;  %v13733_v29 = vpop.f32.mrb[114].mxu0  ;;  %v15235_v44 = vpop.eup %15234  ;;  %v11386_v45 = vadd.f32 1.0, %v15233_v5 }
 0x602   : > { %v11297_v27 = vsub.f32 0.0, %v18339_v19  ;;  %v18346_v14 = vadd.f32 %v13733_v29, %v18304_v48  ;;  %v11195_v1 = vpop.f32.mrb[115].mxu0  ;;  %15244 = vrcp.f32 %v11385_v16  ;;  %v11384_v35 = vadd.f32 1.0, %v15235_v44 }
 0x603   : > { %v11295_v51 = vsub.f32 0.0, %v18342_v33  ;;  %v18350_v50 = vadd.f32 %v11195_v1, %v18304_v48  ;;  %15246 = vrcp.f32 %v11383_v4 }
 0x604   : > { %v11339_v55 = vmul.f32 1.442695, %v11297_v27  ;;  %v11298_v41 = vsub.f32 0.0, %v18346_v14  ;;  %15248 = vrcp.f32 %v11386_v45 }
 0x605   : > { %v11335_v21 = vmul.f32 1.442695, %v11295_v51  ;;  %v11296_v58 = vsub.f32 0.0, %v18350_v50  ;;  %15250 = vrcp.f32 %v11384_v35 }
 0x606   : > { %v11341_v34 = vmul.f32 1.442695, %v11298_v41  ;;  %15252 = vpow2.f32 %v11339_v55 }
 0x607   : > { %v11337_v52 = vmul.f32 1.442695, %v11296_v58  ;;  %15254 = vpow2.f32 %v11335_v21  ;;  %v13736_v53 = vpop.f32.mrb[116].mxu0 }
 0x608   : > { %v15237_v46 = vpop.eup %15236  ;;  %15256 = vpow2.f32 %v11341_v34  ;;  %v18355_v59 = vadd.f32 %v13736_v53, %v18304_v48  ;;  %v11208_v11 = vpop.f32.mrb[117].mxu0 }
 0x609   : > { %v15239_v43 = vpop.eup %15238  ;;  %v11389_v62 = vadd.f32 1.0, %v15237_v46  ;;  %15258 = vpow2.f32 %v11337_v52  ;;  %v18359_v56 = vadd.f32 %v11208_v11, %v18304_v48  ;;  %v13737_v12 = vpop.f32.mrb[118].mxu0 }
 0x60a   : > { %v15241_v28 = vpop.eup %15240  ;;  %v11387_v9 = vadd.f32 1.0, %v15239_v43  ;;  %v11301_v38 = vsub.f32 0.0, %v18355_v59  ;;  %v18363_v31 = vadd.f32 %v13737_v12, %v18304_v48  ;;  %v11211_v42 = vpop.f32.mrb[119].mxu0 }
 0x60b   : > { %v15243_v32 = vpop.eup %15242  ;;  %15260 = vrcp.f32 %v11389_v62  ;;  %v11390_v39 = vadd.f32 1.0, %v15241_v28  ;;  %v11299_v25 = vsub.f32 0.0, %v18359_v56  ;;  %v18367_v23 = vadd.f32 %v11211_v42, %v18304_v48 }
 0x60c   : > { %15262 = vrcp.f32 %v11387_v9  ;;  %v11388_v7 = vadd.f32 1.0, %v15243_v32  ;;  %v15245_v24 = vpop.eup %15244  ;;  %v11347_v0 = vmul.f32 1.442695, %v11301_v38  ;;  %v11302_v17 = vsub.f32 0.0, %v18363_v31 }
 0x60d   : > { %15264 = vrcp.f32 %v11390_v39  ;;  %v15247_v57 = vpop.eup %15246  ;;  %v11449_v63 = vmul.f32 %v15245_v24, %v18307_v49  ;;  %v11343_v3 = vmul.f32 1.442695, %v11299_v25  ;;  %v11300_v13 = vsub.f32 0.0, %v18367_v23 }
 0x60e   : > { %15266 = vrcp.f32 %v11388_v7  ;;  %v15249_v30 = vpop.eup %15248  ;;  %v11447_v40 = vmul.f32 %v15247_v57, %v18310_v54  ;;  %v11349_v8 = vmul.f32 1.442695, %v11302_v17 }
 0x60f   : > { %15268 = vpow2.f32 %v11347_v0  ;;  %v15251_v2 = vpop.eup %15250  ;;  %11481 = vst.msk [vmem:[%s18372_s13 + $0x10] sm:$0xff] %vm307_vm2, %v11449_v63  ;;  %v11450_v20 = vmul.f32 %v15249_v30, %v18314_v15  ;;  %v11345_v36 = vmul.f32 1.442695, %v11300_v13  ;;  %v13740_v18 = vpop.f32.mrb[120].mxu0 }
 0x610   : > { %15270 = vpow2.f32 %v11343_v3  ;;  %v15253_v49 = vpop.eup %15252  ;;  %11479 = vst.msk [vmem:[%s18372_s13] sm:$0xff] %vm307_vm2, %v11447_v40  ;;  %v11448_v6 = vmul.f32 %v15251_v2, %v18318_v47  ;;  %v18385_v54 = vadd.f32 %v13740_v18, %v18304_v48  ;;  %v11224_v22 = vpop.f32.mrb[121].mxu0 }
 0x611   : > { %15272 = vpow2.f32 %v11349_v8  ;;  %v15255_v26 = vpop.eup %15254  ;;  %11482 = vst.msk [vmem:[%s18372_s13 + $0x18] sm:$0xff] %vm307_vm2, %v11450_v20  ;;  %v11393_v16 = vadd.f32 1.0, %v15253_v49  ;;  %v18390_v15 = vadd.f32 %v11224_v22, %v18304_v48  ;;  %v13741_v29 = vpop.f32.mrb[122].mxu0 }
 0x612   : > { %15274 = vpow2.f32 %v11345_v36  ;;  %v15257_v5 = vpop.eup %15256  ;;  %11480 = vst.msk [vmem:[%s18372_s13 + $0x8] sm:$0xff] %vm307_vm2, %v11448_v6  ;;  %v11391_v4 = vadd.f32 1.0, %v15255_v26  ;;  %v11305_v47 = vsub.f32 0.0, %v18385_v54  ;;  %v18396_v27 = vadd.f32 %v13741_v29, %v18304_v48  ;;  %v11227_v1 = vpop.f32.mrb[123].mxu0 }
 0x613   : > { %v15259_v44 = vpop.eup %15258  ;;  %15276 = vrcp.f32 %v11393_v16  ;;  %v11394_v45 = vadd.f32 1.0, %v15257_v5  ;;  %v11303_v51 = vsub.f32 0.0, %v18390_v15  ;;  %v18400_v35 = vadd.f32 %v11227_v1, %v18304_v48 }
 0x614   : > { %15278 = vrcp.f32 %v11391_v4  ;;  %v11392_v41 = vadd.f32 1.0, %v15259_v44  ;;  %v11355_v21 = vmul.f32 1.442695, %v11305_v47  ;;  %v11306_v58 = vsub.f32 0.0, %v18396_v27 }
 0x615   : > { %v15261_v55 = vpop.eup %15260  ;;  %15280 = vrcp.f32 %v11394_v45  ;;  %v11351_v46 = vmul.f32 1.442695, %v11303_v51  ;;  %v11304_v53 = vsub.f32 0.0, %v18400_v35 }
 0x616   : > { %v15263_v34 = vpop.eup %15262  ;;  %v11453_v52 = vmul.f32 %v15261_v55, %v18323_v61  ;;  %15282 = vrcp.f32 %v11392_v41  ;;  %v11357_v11 = vmul.f32 1.442695, %v11306_v58 }
 0x617   : > { %v15265_v43 = vpop.eup %15264  ;;  %v11451_v62 = vmul.f32 %v15263_v34, %v18326_v10  ;;  %15284 = vpow2.f32 %v11355_v21  ;;  %v11353_v12 = vmul.f32 1.442695, %v11304_v53  ;;  %v13744_v32 = vpop.f32.mrb[124].mxu0 }
 0x618   : > { %v15267_v28 = vpop.eup %15266  ;;  %11485 = vst.msk [vmem:[%s18372_s13 + $0x30] sm:$0xff] %vm307_vm2, %v11453_v52  ;;  %v11454_v9 = vmul.f32 %v15265_v43, %v18330_v37  ;;  %15286 = vpow2.f32 %v11351_v46  ;;  %v18413_v10 = vadd.f32 %v13744_v32, %v18304_v48  ;;  %v11240_v38 = vpop.f32.mrb[125].mxu0 }
 0x619   : > { %v15269_v61 = vpop.eup %15268  ;;  %11483 = vst.msk [vmem:[%s18372_s13 + $0x20] sm:$0xff] %vm307_vm2, %v11451_v62  ;;  %v11452_v39 = vmul.f32 %v15267_v28, %v18334_v60  ;;  %15288 = vpow2.f32 %v11357_v11  ;;  %v18418_v37 = vadd.f32 %v11240_v38, %v18304_v48  ;;  %v13745_v25 = vpop.f32.mrb[126].mxu0 }
 0x61a   : > { %v15271_v42 = vpop.eup %15270  ;;  %11486 = vst.msk [vmem:[%s18372_s13 + $0x38] sm:$0xff] %vm307_vm2, %v11454_v9  ;;  %v11397_v7 = vadd.f32 1.0, %v15269_v61  ;;  %15290 = vpow2.f32 %v11353_v12  ;;  %v11309_v60 = vsub.f32 0.0, %v18413_v10  ;;  %v18424_v17 = vadd.f32 %v13745_v25, %v18304_v48  ;;  %v11243_v57 = vpop.f32.mrb[127].mxu0 }
 0x61b   : > { %v15273_v24 = vpop.eup %15272  ;;  %11484 = vst.msk [vmem:[%s18372_s13 + $0x28] sm:$0xff] %vm307_vm2, %v11452_v39  ;;  %v11395_v0 = vadd.f32 1.0, %v15271_v42  ;;  %v11307_v13 = vsub.f32 0.0, %v18418_v37  ;;  %v18428_v30 = vadd.f32 %v11243_v57, %v18304_v48 }
 0x61c   : > { %v15275_v63 = vpop.eup %15274  ;;  %15292 = vrcp.f32 %v11397_v7  ;;  %v11398_v3 = vadd.f32 1.0, %v15273_v24  ;;  %v11363_v8 = vmul.f32 1.442695, %v11309_v60  ;;  %v11310_v2 = vsub.f32 0.0, %v18424_v17 }
 0x61d   : > { %15294 = vrcp.f32 %v11395_v0  ;;  %v11396_v40 = vadd.f32 1.0, %v15275_v63  ;;  %v15277_v20 = vpop.eup %15276  ;;  %v11359_v36 = vmul.f32 1.442695, %v11307_v13  ;;  %v11308_v18 = vsub.f32 0.0, %v18428_v30 }
 0x61e   : > { %15296 = vrcp.f32 %v11398_v3  ;;  %v15279_v49 = vpop.eup %15278  ;;  %v11457_v6 = vmul.f32 %v15277_v20, %v18339_v19  ;;  %v11365_v22 = vmul.f32 1.442695, %v11310_v2 }
 0x61f   : > { %15298 = vrcp.f32 %v11396_v40  ;;  %v15281_v26 = vpop.eup %15280  ;;  %v11455_v16 = vmul.f32 %v15279_v49, %v18342_v33  ;;  %v11361_v29 = vmul.f32 1.442695, %v11308_v18  ;;  %v13748_v5 = vpop.f32.mrb[128].mxu0 }
 0x620   : > { %15300 = vpow2.f32 %v11363_v8  ;;  %v15283_v4 = vpop.eup %15282  ;;  %11489 = vst.msk [vmem:[%s18372_s13 + $0x50] sm:$0xff] %vm307_vm2, %v11457_v6  ;;  %v11458_v47 = vmul.f32 %v15281_v26, %v18346_v14  ;;  %v18438_v1 = vadd.f32 %v13748_v5, %v18304_v48  ;;  %v11256_v19 = vpop.f32.mrb[129].mxu0 }
 0x621   : > { %15302 = vpow2.f32 %v11359_v36  ;;  %v15285_v44 = vpop.eup %15284  ;;  %11487 = vst.msk [vmem:[%s18372_s13 + $0x40] sm:$0xff] %vm307_vm2, %v11455_v16  ;;  %v11456_v33 = vmul.f32 %v15283_v4, %v18350_v50  ;;  %v18444_v45 = vadd.f32 %v11256_v19, %v18304_v48  ;;  %v13749_v51 = vpop.f32.mrb[130].mxu0 }
 0x622   : > { %15304 = vpow2.f32 %v11365_v22  ;;  %v15287_v55 = vpop.eup %15286  ;;  %11490 = vst.msk [vmem:[%s18372_s13 + $0x58] sm:$0xff] %vm307_vm2, %v11458_v47  ;;  %v11401_v14 = vadd.f32 1.0, %v15285_v44  ;;  %v11313_v41 = vsub.f32 0.0, %v18438_v1  ;;  %v18450_v21 = vadd.f32 %v13749_v51, %v18304_v48  ;;  %v11259_v58 = vpop.f32.mrb[131].mxu0 }
 0x623   : > { %15306 = vpow2.f32 %v11361_v29  ;;  %v15289_v34 = vpop.eup %15288  ;;  %11488 = vst.msk [vmem:[%s18372_s13 + $0x48] sm:$0xff] %vm307_vm2, %v11456_v33  ;;  %v11399_v50 = vadd.f32 1.0, %v15287_v55  ;;  %v11311_v52 = vsub.f32 0.0, %v18444_v45  ;;  %v18456_v46 = vadd.f32 %v11259_v58, %v18304_v48 }
 0x624   : > { %v15291_v53 = vpop.eup %15290  ;;  %15308 = vrcp.f32 %v11401_v14  ;;  %v11402_v43 = vadd.f32 1.0, %v15289_v34  ;;  %v11371_v62 = vmul.f32 1.442695, %v11313_v41  ;;  %v11314_v11 = vsub.f32 0.0, %v18450_v21 }
 0x625   : > { %15310 = vrcp.f32 %v11399_v50  ;;  %v11400_v9 = vadd.f32 1.0, %v15291_v53  ;;  %v11367_v12 = vmul.f32 1.442695, %v11311_v52  ;;  %v11312_v32 = vsub.f32 0.0, %v18456_v46 }
 0x626   : > { %v15293_v28 = vpop.eup %15292  ;;  %15312 = vrcp.f32 %v11402_v43  ;;  %v11373_v38 = vmul.f32 1.442695, %v11314_v11 }
 0x627   : > { %v15295_v61 = vpop.eup %15294  ;;  %v11461_v39 = vmul.f32 %v15293_v28, %v18355_v59  ;;  %15314 = vrcp.f32 %v11400_v9  ;;  %v11369_v25 = vmul.f32 1.442695, %v11312_v32  ;;  %v13752_v24 = vpop.f32.mrb[132].mxu0 }
 0x628   : > { %v15297_v42 = vpop.eup %15296  ;;  %v11459_v7 = vmul.f32 %v15295_v61, %v18359_v56  ;;  %15316 = vpow2.f32 %v11371_v62  ;;  %v18466_v57 = vadd.f32 %v13752_v24, %v18304_v48  ;;  %v11272_v59 = vpop.f32.mrb[133].mxu0 }
 0x629   : > { %v15299_v0 = vpop.eup %15298  ;;  %11493 = vst.msk [vmem:[%s18372_s13 + $0x70] sm:$0xff] %vm307_vm2, %v11461_v39  ;;  %v11462_v60 = vmul.f32 %v15297_v42, %v18363_v31  ;;  %15318 = vpow2.f32 %v11367_v12  ;;  %v18472_v3 = vadd.f32 %v11272_v59, %v18304_v48  ;;  %v13753_v13 = vpop.f32.mrb[134].mxu0 }
 0x62a   : > { %v15301_v63 = vpop.eup %15300  ;;  %11491 = vst.msk [vmem:[%s18372_s13 + $0x60] sm:$0xff] %vm307_vm2, %v11459_v7  ;;  %v11460_v56 = vmul.f32 %v15299_v0, %v18367_v23  ;;  %15320 = vpow2.f32 %v11373_v38  ;;  %v11317_v8 = vsub.f32 0.0, %v18466_v57  ;;  %v18478_v2 = vadd.f32 %v13753_v13, %v18304_v48  ;;  %v11275_v20 = vpop.f32.mrb[135].mxu0 }
 0x62b   : > { %v15303_v40 = vpop.eup %15302  ;;  %11494 = vst.msk [vmem:[%s18372_s13 + $0x78] sm:$0xff] %vm307_vm2, %v11462_v60  ;;  %v11405_v31 = vadd.f32 1.0, %v15301_v63  ;;  %15322 = vpow2.f32 %v11369_v25  ;;  %v11315_v18 = vsub.f32 0.0, %v18472_v3  ;;  %v18484_v49 = vadd.f32 %v11275_v20, %v18304_v48 }
 0x62c   : > { %v15305_v36 = vpop.eup %15304  ;;  %11492 = vst.msk [vmem:[%s18372_s13 + $0x68] sm:$0xff] %vm307_vm2, %v11460_v56  ;;  %v11403_v23 = vadd.f32 1.0, %v15303_v40  ;;  %v11379_v26 = vmul.f32 1.442695, %v11317_v8  ;;  %v11318_v16 = vsub.f32 0.0, %v18478_v2 }
 0x62d   : > { %v15307_v6 = vpop.eup %15306  ;;  %15324 = vrcp.f32 %v11405_v31  ;;  %v11406_v22 = vadd.f32 1.0, %v15305_v36  ;;  %v11375_v5 = vmul.f32 1.442695, %v11315_v18  ;;  %v11316_v4 = vsub.f32 0.0, %v18484_v49 }
 0x62e   : > { %15326 = vrcp.f32 %v11403_v23  ;;  %v11404_v29 = vadd.f32 1.0, %v15307_v6  ;;  %v15309_v47 = vpop.eup %15308  ;;  %v11381_v19 = vmul.f32 1.442695, %v11318_v16 }
 0x62f   : > { %15328 = vrcp.f32 %v11406_v22  ;;  %v15311_v44 = vpop.eup %15310  ;;  %v11465_v48 = vmul.f32 %v15309_v47, %v18385_v54  ;;  %v11377_v33 = vmul.f32 1.442695, %v11316_v4 }
 0x630   : > { %15330 = vrcp.f32 %v11404_v29  ;;  %v15313_v51 = vpop.eup %15312  ;;  %v11463_v55 = vmul.f32 %v15311_v44, %v18390_v15 }
 0x631   : > { %15332 = vpow2.f32 %v11379_v26  ;;  %v15315_v14 = vpop.eup %15314  ;;  %11497 = vst.msk [vmem:[%s18372_s13 + $0x90] sm:$0xff] %vm307_vm2, %v11465_v48  ;;  %v11466_v41 = vmul.f32 %v15313_v51, %v18396_v27 }
 0x632   : > { %15334 = vpow2.f32 %v11375_v5  ;;  %v15317_v58 = vpop.eup %15316  ;;  %11495 = vst.msk [vmem:[%s18372_s13 + $0x80] sm:$0xff] %vm307_vm2, %v11463_v55  ;;  %v11464_v34 = vmul.f32 %v15315_v14, %v18400_v35 }
 0x633   : > { %15336 = vpow2.f32 %v11381_v19  ;;  %v15319_v54 = vpop.eup %15318  ;;  %11498 = vst.msk [vmem:[%s18372_s13 + $0x98] sm:$0xff] %vm307_vm2, %v11466_v41  ;;  %v11409_v50 = vadd.f32 1.0, %v15317_v58 }
 0x634   : > { %15338 = vpow2.f32 %v11377_v33  ;;  %v15321_v52 = vpop.eup %15320  ;;  %11496 = vst.msk [vmem:[%s18372_s13 + $0x88] sm:$0xff] %vm307_vm2, %v11464_v34  ;;  %v11407_v15 = vadd.f32 1.0, %v15319_v54 }
 0x635   : > { %v15323_v53 = vpop.eup %15322  ;;  %15340 = vrcp.f32 %v11409_v50  ;;  %v11410_v27 = vadd.f32 1.0, %v15321_v52 }
 0x636   : > { %15342 = vrcp.f32 %v11407_v15  ;;  %v11408_v62 = vadd.f32 1.0, %v15323_v53 }
 0x637   : > { %v15325_v43 = vpop.eup %15324  ;;  %15344 = vrcp.f32 %v11410_v27 }
 0x638   : > { %v15327_v35 = vpop.eup %15326  ;;  %v11469_v11 = vmul.f32 %v15325_v43, %v18413_v10  ;;  %15346 = vrcp.f32 %v11408_v62 }
 0x639   : > { %v15329_v28 = vpop.eup %15328  ;;  %v11467_v9 = vmul.f32 %v15327_v35, %v18418_v37 }
 0x63a   : > { %v15331_v12 = vpop.eup %15330  ;;  %11501 = vst.msk [vmem:[%s18372_s13 + $0xb0] sm:$0xff] %vm307_vm2, %v11469_v11  ;;  %v11470_v32 = vmul.f32 %v15329_v28, %v18424_v17 }
 0x63b   : > { %v15333_v61 = vpop.eup %15332  ;;  %11499 = vst.msk [vmem:[%s18372_s13 + $0xa0] sm:$0xff] %vm307_vm2, %v11467_v9  ;;  %v11468_v39 = vmul.f32 %v15331_v12, %v18428_v30 }
 0x63c   : > { %v15335_v38 = vpop.eup %15334  ;;  %11502 = vst.msk [vmem:[%s18372_s13 + $0xb8] sm:$0xff] %vm307_vm2, %v11470_v32  ;;  %v11413_v42 = vadd.f32 1.0, %v15333_v61 }
 0x63d   : > { %v15337_v10 = vpop.eup %15336  ;;  %11500 = vst.msk [vmem:[%s18372_s13 + $0xa8] sm:$0xff] %vm307_vm2, %v11468_v39  ;;  %v11411_v37 = vadd.f32 1.0, %v15335_v38 }
 0x63e   : > { %v15339_v7 = vpop.eup %15338  ;;  %15348 = vrcp.f32 %v11413_v42  ;;  %v11414_v25 = vadd.f32 1.0, %v15337_v10 }
 0x63f   : > { %15350 = vrcp.f32 %v11411_v37  ;;  %v11412_v17 = vadd.f32 1.0, %v15339_v7  ;;  %v15341_v24 = vpop.eup %15340 }
 0x640   : > { %15352 = vrcp.f32 %v11414_v25  ;;  %v15343_v30 = vpop.eup %15342  ;;  %v11473_v0 = vmul.f32 %v15341_v24, %v18438_v1 }
 0x641   : > { %15354 = vrcp.f32 %v11412_v17  ;;  %v15345_v60 = vpop.eup %15344  ;;  %v11471_v59 = vmul.f32 %v15343_v30, %v18444_v45 }
 0x642   : > { %v15347_v63 = vpop.eup %15346  ;;  %11505 = vst.msk [vmem:[%s18372_s13 + $0xd0] sm:$0xff] %vm307_vm2, %v11473_v0  ;;  %v11474_v56 = vmul.f32 %v15345_v60, %v18450_v21 }
 0x643   : > { %11503 = vst.msk [vmem:[%s18372_s13 + $0xc0] sm:$0xff] %vm307_vm2, %v11471_v59  ;;  %v11472_v13 = vmul.f32 %v15347_v63, %v18456_v46 }
 0x644   : > { %11506 = vst.msk [vmem:[%s18372_s13 + $0xd8] sm:$0xff] %vm307_vm2, %v11474_v56 }
 0x645   : > { %11504 = vst.msk [vmem:[%s18372_s13 + $0xc8] sm:$0xff] %vm307_vm2, %v11472_v13 }
 0x648   : > { %v15349_v1 = vpop.eup %15348 }
 0x649   : > { %v15351_v40 = vpop.eup %15350  ;;  %v11477_v45 = vmul.f32 %v15349_v1, %v18466_v57 }
 0x64a   : > { %v15353_v31 = vpop.eup %15352  ;;  %v11475_v8 = vmul.f32 %v15351_v40, %v18472_v3 }
 0x64b   : > { %v15355_v20 = vpop.eup %15354  ;;  %11509 = vst.msk [vmem:[%s18372_s13 + $0xf0] sm:$0xff] %vm307_vm2, %v11477_v45  ;;  %v11478_v21 = vmul.f32 %v15353_v31, %v18478_v2 }
 0x64c   : > { %11507 = vst.msk [vmem:[%s18372_s13 + $0xe0] sm:$0xff] %vm307_vm2, %v11475_v8  ;;  %v11476_v46 = vmul.f32 %v15355_v20, %v18484_v49 }
 0x64d   : > { %11510 = vst.msk [vmem:[%s18372_s13 + $0xf8] sm:$0xff] %vm307_vm2, %v11478_v21 }
 0x64e   : > { %11508 = vst.msk [vmem:[%s18372_s13 + $0xe8] sm:$0xff] %vm307_vm2, %v11476_v46 }
 0x64f PF: > { %s18_s27 = sadd.s32 1, %s15381_s27  }
 0x650   : > { %p15_p4 = scmp.ge.s32.totalorder %s18_s27, 4  }
 0x652   :  { %17 = sbr.rel (!%p15_p4) target bundleno = 1 (0x1), region = 143 }

</bundles_post_ra>
